<compile_context>
chip_gen: v6e
topology: v6e:2x2x1
jax: 0.10.0
libtpu: 0.0.40
codegen_flags: <defaults>
</compile_context>

<pallas_src>
import functools

import jax
import jax.numpy as jnp
import numpy as np
from jax.experimental import pallas as pl
from jax.experimental.pallas import tpu as pltpu

OUT_SCALE = 1e-3            # SiamFC head out_scale
LANE = 128                  # TPU lane width; channel dims are padded to this
VMEM_LIMIT = 32 * 1024 * 1024


# ---------------------------------------------------------------------------
# Kernel 1: fused Conv2d(3x3, valid, stride 1) + bias + ReLU over a
# row-flattened, channel-padded activation slab.
# ---------------------------------------------------------------------------
def _conv_bias_relu_kernel(x_ref, w_ref, b_ref, o_ref, *, W, KH, KW, M):
    # x_ref: (1, Lp, 128) f32    w_ref: (KH*KW, 128, 128) bf16
    # b_ref: (1, 128)     f32    o_ref: (1, M, 128)       f32
    acc = jnp.zeros((M, LANE), jnp.float32)
    for kh in range(KH):
        for kw in range(KW):
            tap = kh * KW + kw
            xs = x_ref[0, pl.ds(kh * W + kw, M), :].astype(jnp.bfloat16)
            acc = acc + jnp.dot(xs, w_ref[tap],
                                preferred_element_type=jnp.float32)
    o_ref[0] = jnp.maximum(acc + b_ref[...], 0.0)


def conv_bias_relu(feat, w_hwio, bias, *, W, m_full):
    """feat: (B, L, 128) f32 row-flattened full-width activations.
    Returns (B, m_full, 128) f32: conv+bias+relu at every full-width row."""
    B, L, C = feat.shape
    KH, KW, Cin, Cout = w_hwio.shape
    assert C == LANE and Cin <= LANE and Cout <= LANE

    # Pad weights/bias channel dims to 128 (lane-dense); weights in bf16.
    w = jnp.pad(w_hwio, ((0, 0), (0, 0), (0, LANE - Cin), (0, LANE - Cout)))
    w = w.reshape(KH * KW, LANE, LANE).astype(jnp.bfloat16)
    b = jnp.pad(bias, (0, LANE - Cout)).reshape(1, LANE).astype(jnp.float32)

    need = m_full + (KH - 1) * W + (KW - 1)      # last row read by last output
    if need > L:
        feat = jnp.pad(feat, ((0, 0), (0, need - L), (0, 0)))
    Lp = feat.shape[1]

    kern = functools.partial(_conv_bias_relu_kernel, W=W, KH=KH, KW=KW, M=m_full)
    return pl.pallas_call(
        kern,
        out_shape=jax.ShapeDtypeStruct((B, m_full, LANE), jnp.float32),
        grid=(B,),
        in_specs=[
            pl.BlockSpec((1, Lp, LANE), lambda i: (i, 0, 0)),
            pl.BlockSpec((KH * KW, LANE, LANE), lambda i: (0, 0, 0)),
            pl.BlockSpec((1, LANE), lambda i: (0, 0)),
        ],
        out_specs=pl.BlockSpec((1, m_full, LANE), lambda i: (i, 0, 0)),
        compiler_params=pltpu.CompilerParams(
            dimension_semantics=("parallel",),
            vmem_limit_bytes=VMEM_LIMIT),
    )(feat, w, b)


# ---------------------------------------------------------------------------
# Kernel 2: SiamFC cross-correlation head on the shared feature slab.
#   out[m] = 0.001 * sum_{kh,kw,c} feat[x_base + m + kh*W + kw, c] * feat[kh*W + kw, c]
# Per-channel accumulation in the tap loop; single cross-lane reduce at end.
# ---------------------------------------------------------------------------
def _xcorr_kernel(f_ref, o_ref, *, W, Hz, Wz, M, x_base):
    # f_ref: (1, Lp, 128) f32    o_ref: (1, M, 1) f32
    acc = jnp.zeros((M, LANE), jnp.float32)
    for kh in range(Hz):
        for kw in range(Wz):
            tap = kh * W + kw
            zv = f_ref[0, pl.ds(tap, 1), :]             # (1, 128) exemplar tap
            xs = f_ref[0, pl.ds(x_base + tap, M), :]    # (M, 128) search rows
            acc = acc + xs * zv
    o_ref[0] = jnp.sum(acc, axis=-1, keepdims=True) * OUT_SCALE


def xcorr_head(feat, *, W, hz, wz, m_out, x_base):
    B, L, C = feat.shape
    assert C == LANE
    need = x_base + m_out + (hz - 1) * W + (wz - 1)
    if need > L:
        feat = jnp.pad(feat, ((0, 0), (0, need - L), (0, 0)))
    Lp = feat.shape[1]

    kern = functools.partial(_xcorr_kernel, W=W, Hz=hz, Wz=wz, M=m_out,
                             x_base=x_base)
    return pl.pallas_call(
        kern,
        out_shape=jax.ShapeDtypeStruct((B, m_out, 1), jnp.float32),
        grid=(B,),
        in_specs=[pl.BlockSpec((1, Lp, LANE), lambda i: (i, 0, 0))],
        out_specs=pl.BlockSpec((1, m_out, 1), lambda i: (i, 0, 0)),
        compiler_params=pltpu.CompilerParams(
            dimension_semantics=("parallel",),
            vmem_limit_bytes=VMEM_LIMIT),
    )(feat)


# ---------------------------------------------------------------------------
# Net.forward(z, x) = head(backbone(z), backbone(x))
# ---------------------------------------------------------------------------
def net_forward(params, z_nchw, x_nchw):
    B, Cin, Hz, Wz = z_nchw.shape
    _, _, Hx, Wx = x_nchw.shape
    W = Wx  # shared full width (z is zero-padded on the right up to W)

    def to_slab(t_nchw):
        t = jnp.transpose(t_nchw, (0, 2, 3, 1)).astype(jnp.float32)   # NHWC
        return jnp.pad(t, ((0, 0), (0, 0), (0, W - t.shape[2]),
                           (0, LANE - t.shape[3])))

    z = to_slab(z_nchw)                                   # (B, Hz, W, 128)
    x = to_slab(x_nchw)                                   # (B, Hx, W, 128)
    feat = jnp.concatenate([z, x], axis=1).reshape(B, (Hz + Hx) * W, LANE)

    x_base = Hz * W          # row offset of the search branch inside the slab
    hz, wz = Hz, Wz          # current valid spatial extents per branch
    hx, wx = Hx, Wx

    for w_hwio, bias in ((params["w1"], params["b1"]),
                         (params["w2"], params["b2"])):
        KH, KW = w_hwio.shape[0], w_hwio.shape[1]
        hz, wz = hz - KH + 1, wz - KW + 1
        hx, wx = hx - KH + 1, wx - KW + 1
        m_full = x_base + hx * W      # compute through the last search row
        feat = conv_bias_relu(feat, w_hwio, bias, W=W, m_full=m_full)

    Ho, Wo = hx - hz + 1, wx - wz + 1
    resp = xcorr_head(feat, W=W, hz=hz, wz=wz, m_out=Ho * W, x_base=x_base)
    resp = resp[..., 0].reshape(B, Ho, W)[:, :, :Wo]      # keep valid columns
    return resp[:, None, :, :]                             # (B, 1, Ho, Wo)


# ---------------------------------------------------------------------------
# Pure-JAX f32 reference (sanity check for the Pallas path).
# ---------------------------------------------------------------------------
def _ref_conv_relu(x_nhwc, w_hwio, b):
    y = jax.lax.conv_general_dilated(
        x_nhwc, w_hwio, window_strides=(1, 1), padding="VALID",
        dimension_numbers=("NHWC", "HWIO", "NHWC"),
        precision=jax.lax.Precision.HIGHEST)
    return jnp.maximum(y + b[None, None, None, :], 0.0)


def _ref_forward(params, z_nchw, x_nchw):
    z = jnp.transpose(z_nchw, (0, 2, 3, 1))
    x = jnp.transpose(x_nchw, (0, 2, 3, 1))

    def backbone(t):
        t = _ref_conv_relu(t, params["w1"], params["b1"])
        t = _ref_conv_relu(t, params["w2"], params["b2"])
        return t

    zf, xf = backbone(z), backbone(x)
    B, Hz, Wz, C = zf.shape
    _, Hx, Wx, _ = xf.shape
    Ho, Wo = Hx - Hz + 1, Wx - Wz + 1
    out = jnp.zeros((B, Ho, Wo), jnp.float32)
    for ho in range(Ho):
        for wo in range(Wo):
            patch = xf[:, ho:ho + Hz, wo:wo + Wz, :]
            out = out.at[:, ho, wo].set(jnp.sum(patch * zf, axis=(1, 2, 3)))
    return (out * OUT_SCALE)[:, None, :, :]


if __name__ == "__main__":
    key = jax.random.PRNGKey(0)
    k_z, k_x, k_w1, k_b1, k_w2, k_b2 = jax.random.split(key, 6)

    B, Cin = 2, 3
    C1, C2 = 16, 32
    # exemplar z: 8x8, search x: 16x16 -> features 4x4 / 12x12 -> response 9x9
    z_nchw = jax.random.normal(k_z, (B, Cin, 8, 8), dtype=jnp.float32)
    x_nchw = jax.random.normal(k_x, (B, Cin, 16, 16), dtype=jnp.float32)

    params = {
        "w1": 0.1 * jax.random.normal(k_w1, (3, 3, Cin, C1), dtype=jnp.float32),
        "b1": 0.01 * jax.random.normal(k_b1, (C1,), dtype=jnp.float32),
        "w2": 0.1 * jax.random.normal(k_w2, (3, 3, C1, C2), dtype=jnp.float32),
        "b2": 0.01 * jax.random.normal(k_b2, (C2,), dtype=jnp.float32),
    }

    out = jax.jit(net_forward)(params, z_nchw, x_nchw)
    out = jax.block_until_ready(out)
    assert out.shape == (B, 1, 9, 9), out.shape

    ref = _ref_forward(params, z_nchw, x_nchw)
    # bf16 MXU operands with f32 accumulation vs. an all-f32 reference.
    np.testing.assert_allclose(np.asarray(out), np.asarray(ref),
                               rtol=3e-2, atol=5e-4)

    print("KERNEL_OK")
</pallas_src>

<mosaic_0001>
module attributes {stable_mosaic.version = 11 : i64} {
  func.func @_conv_bias_relu_kernel(%arg0: i32, %arg1: memref<1x386x128xf32, #tpu.memory_space<vmem>>, %arg2: memref<9x128x128xbf16, #tpu.memory_space<vmem>>, %arg3: memref<1x128xf32, #tpu.memory_space<vmem>>, %arg4: memref<1x352x128xf32, #tpu.memory_space<vmem>>) attributes {dimension_semantics = [#tpu.dimension_semantics<parallel>], iteration_bounds = array<i64: 2>, scalar_prefetch = 0 : i64, scratch_operands = 0 : i64, tpu.core_type = #tpu.core_type<tc>, window_params = [{transform_indices = @transform_0, window_bounds = array<i64: 1, 386, 128>}, {pipeline_mode = #tpu.pipeline_mode<synchronous>, transform_indices = @transform_1, window_bounds = array<i64: 9, 128, 128>}, {pipeline_mode = #tpu.pipeline_mode<synchronous>, transform_indices = @transform_2, window_bounds = array<i64: 1, 128>}, {transform_indices = @transform_3, window_bounds = array<i64: 1, 352, 128>}]} {
    %cst = arith.constant 0.000000e+00 : f32
    %0 = vector.broadcast %cst : f32 to vector<352x128xf32>
    %c0 = arith.constant 0 : index
    %c0_0 = arith.constant 0 : index
    %c0_1 = arith.constant 0 : index
    %1 = vector.load %arg1[%c0, %c0_0, %c0_1] : memref<1x386x128xf32, #tpu.memory_space<vmem>>, vector<1x352x128xf32>
    %2 = vector.shape_cast %1 : vector<1x352x128xf32> to vector<352x128xf32>
    %3 = arith.truncf %2 : vector<352x128xf32> to vector<352x128xbf16>
    %c0_2 = arith.constant 0 : index
    %c0_3 = arith.constant 0 : index
    %c0_4 = arith.constant 0 : index
    %4 = vector.load %arg2[%c0_2, %c0_3, %c0_4] : memref<9x128x128xbf16, #tpu.memory_space<vmem>>, vector<1x128x128xbf16>
    %5 = vector.shape_cast %4 : vector<1x128x128xbf16> to vector<128x128xbf16>
    %cst_5 = arith.constant dense<0.000000e+00> : vector<352x128xf32>
    %6 = tpu.matmul %3, %5, %cst_5 {dimension_numbers = #tpu.dot_dimension_numbers<[1], [0], [0], [1], [0, 0, 1, 1], [], []>} : vector<352x128xbf16>, vector<128x128xbf16>, vector<352x128xf32> -> vector<352x128xf32>
    %7 = arith.addf %0, %6 : vector<352x128xf32>
    %c0_6 = arith.constant 0 : index
    %c1 = arith.constant 1 : index
    %c0_7 = arith.constant 0 : index
    %8 = vector.load %arg1[%c0_6, %c1, %c0_7] : memref<1x386x128xf32, #tpu.memory_space<vmem>>, vector<1x352x128xf32>
    %9 = vector.shape_cast %8 : vector<1x352x128xf32> to vector<352x128xf32>
    %10 = arith.truncf %9 : vector<352x128xf32> to vector<352x128xbf16>
    %c1_8 = arith.constant 1 : index
    %c0_9 = arith.constant 0 : index
    %c0_10 = arith.constant 0 : index
    %11 = vector.load %arg2[%c1_8, %c0_9, %c0_10] : memref<9x128x128xbf16, #tpu.memory_space<vmem>>, vector<1x128x128xbf16>
    %12 = vector.shape_cast %11 : vector<1x128x128xbf16> to vector<128x128xbf16>
    %cst_11 = arith.constant dense<0.000000e+00> : vector<352x128xf32>
    %13 = tpu.matmul %10, %12, %cst_11 {dimension_numbers = #tpu.dot_dimension_numbers<[1], [0], [0], [1], [0, 0, 1, 1], [], []>} : vector<352x128xbf16>, vector<128x128xbf16>, vector<352x128xf32> -> vector<352x128xf32>
    %14 = arith.addf %7, %13 : vector<352x128xf32>
    %c0_12 = arith.constant 0 : index
    %c2 = arith.constant 2 : index
    %c0_13 = arith.constant 0 : index
    %15 = vector.load %arg1[%c0_12, %c2, %c0_13] : memref<1x386x128xf32, #tpu.memory_space<vmem>>, vector<1x352x128xf32>
    %16 = vector.shape_cast %15 : vector<1x352x128xf32> to vector<352x128xf32>
    %17 = arith.truncf %16 : vector<352x128xf32> to vector<352x128xbf16>
    %c2_14 = arith.constant 2 : index
    %c0_15 = arith.constant 0 : index
    %c0_16 = arith.constant 0 : index
    %18 = vector.load %arg2[%c2_14, %c0_15, %c0_16] : memref<9x128x128xbf16, #tpu.memory_space<vmem>>, vector<1x128x128xbf16>
    %19 = vector.shape_cast %18 : vector<1x128x128xbf16> to vector<128x128xbf16>
    %cst_17 = arith.constant dense<0.000000e+00> : vector<352x128xf32>
    %20 = tpu.matmul %17, %19, %cst_17 {dimension_numbers = #tpu.dot_dimension_numbers<[1], [0], [0], [1], [0, 0, 1, 1], [], []>} : vector<352x128xbf16>, vector<128x128xbf16>, vector<352x128xf32> -> vector<352x128xf32>
    %21 = arith.addf %14, %20 : vector<352x128xf32>
    %c0_18 = arith.constant 0 : index
    %c16 = arith.constant 16 : index
    %c0_19 = arith.constant 0 : index
    %22 = vector.load %arg1[%c0_18, %c16, %c0_19] : memref<1x386x128xf32, #tpu.memory_space<vmem>>, vector<1x352x128xf32>
    %23 = vector.shape_cast %22 : vector<1x352x128xf32> to vector<352x128xf32>
    %24 = arith.truncf %23 : vector<352x128xf32> to vector<352x128xbf16>
    %c3 = arith.constant 3 : index
    %c0_20 = arith.constant 0 : index
    %c0_21 = arith.constant 0 : index
    %25 = vector.load %arg2[%c3, %c0_20, %c0_21] : memref<9x128x128xbf16, #tpu.memory_space<vmem>>, vector<1x128x128xbf16>
    %26 = vector.shape_cast %25 : vector<1x128x128xbf16> to vector<128x128xbf16>
    %cst_22 = arith.constant dense<0.000000e+00> : vector<352x128xf32>
    %27 = tpu.matmul %24, %26, %cst_22 {dimension_numbers = #tpu.dot_dimension_numbers<[1], [0], [0], [1], [0, 0, 1, 1], [], []>} : vector<352x128xbf16>, vector<128x128xbf16>, vector<352x128xf32> -> vector<352x128xf32>
    %28 = arith.addf %21, %27 : vector<352x128xf32>
    %c0_23 = arith.constant 0 : index
    %c17 = arith.constant 17 : index
    %c0_24 = arith.constant 0 : index
    %29 = vector.load %arg1[%c0_23, %c17, %c0_24] : memref<1x386x128xf32, #tpu.memory_space<vmem>>, vector<1x352x128xf32>
    %30 = vector.shape_cast %29 : vector<1x352x128xf32> to vector<352x128xf32>
    %31 = arith.truncf %30 : vector<352x128xf32> to vector<352x128xbf16>
    %c4 = arith.constant 4 : index
    %c0_25 = arith.constant 0 : index
    %c0_26 = arith.constant 0 : index
    %32 = vector.load %arg2[%c4, %c0_25, %c0_26] : memref<9x128x128xbf16, #tpu.memory_space<vmem>>, vector<1x128x128xbf16>
    %33 = vector.shape_cast %32 : vector<1x128x128xbf16> to vector<128x128xbf16>
    %cst_27 = arith.constant dense<0.000000e+00> : vector<352x128xf32>
    %34 = tpu.matmul %31, %33, %cst_27 {dimension_numbers = #tpu.dot_dimension_numbers<[1], [0], [0], [1], [0, 0, 1, 1], [], []>} : vector<352x128xbf16>, vector<128x128xbf16>, vector<352x128xf32> -> vector<352x128xf32>
    %35 = arith.addf %28, %34 : vector<352x128xf32>
    %c0_28 = arith.constant 0 : index
    %c18 = arith.constant 18 : index
    %c0_29 = arith.constant 0 : index
    %36 = vector.load %arg1[%c0_28, %c18, %c0_29] : memref<1x386x128xf32, #tpu.memory_space<vmem>>, vector<1x352x128xf32>
    %37 = vector.shape_cast %36 : vector<1x352x128xf32> to vector<352x128xf32>
    %38 = arith.truncf %37 : vector<352x128xf32> to vector<352x128xbf16>
    %c5 = arith.constant 5 : index
    %c0_30 = arith.constant 0 : index
    %c0_31 = arith.constant 0 : index
    %39 = vector.load %arg2[%c5, %c0_30, %c0_31] : memref<9x128x128xbf16, #tpu.memory_space<vmem>>, vector<1x128x128xbf16>
    %40 = vector.shape_cast %39 : vector<1x128x128xbf16> to vector<128x128xbf16>
    %cst_32 = arith.constant dense<0.000000e+00> : vector<352x128xf32>
    %41 = tpu.matmul %38, %40, %cst_32 {dimension_numbers = #tpu.dot_dimension_numbers<[1], [0], [0], [1], [0, 0, 1, 1], [], []>} : vector<352x128xbf16>, vector<128x128xbf16>, vector<352x128xf32> -> vector<352x128xf32>
    %42 = arith.addf %35, %41 : vector<352x128xf32>
    %c0_33 = arith.constant 0 : index
    %c32 = arith.constant 32 : index
    %c0_34 = arith.constant 0 : index
    %43 = vector.load %arg1[%c0_33, %c32, %c0_34] : memref<1x386x128xf32, #tpu.memory_space<vmem>>, vector<1x352x128xf32>
    %44 = vector.shape_cast %43 : vector<1x352x128xf32> to vector<352x128xf32>
    %45 = arith.truncf %44 : vector<352x128xf32> to vector<352x128xbf16>
    %c6 = arith.constant 6 : index
    %c0_35 = arith.constant 0 : index
    %c0_36 = arith.constant 0 : index
    %46 = vector.load %arg2[%c6, %c0_35, %c0_36] : memref<9x128x128xbf16, #tpu.memory_space<vmem>>, vector<1x128x128xbf16>
    %47 = vector.shape_cast %46 : vector<1x128x128xbf16> to vector<128x128xbf16>
    %cst_37 = arith.constant dense<0.000000e+00> : vector<352x128xf32>
    %48 = tpu.matmul %45, %47, %cst_37 {dimension_numbers = #tpu.dot_dimension_numbers<[1], [0], [0], [1], [0, 0, 1, 1], [], []>} : vector<352x128xbf16>, vector<128x128xbf16>, vector<352x128xf32> -> vector<352x128xf32>
    %49 = arith.addf %42, %48 : vector<352x128xf32>
    %c0_38 = arith.constant 0 : index
    %c33 = arith.constant 33 : index
    %c0_39 = arith.constant 0 : index
    %50 = vector.load %arg1[%c0_38, %c33, %c0_39] : memref<1x386x128xf32, #tpu.memory_space<vmem>>, vector<1x352x128xf32>
    %51 = vector.shape_cast %50 : vector<1x352x128xf32> to vector<352x128xf32>
    %52 = arith.truncf %51 : vector<352x128xf32> to vector<352x128xbf16>
    %c7 = arith.constant 7 : index
    %c0_40 = arith.constant 0 : index
    %c0_41 = arith.constant 0 : index
    %53 = vector.load %arg2[%c7, %c0_40, %c0_41] : memref<9x128x128xbf16, #tpu.memory_space<vmem>>, vector<1x128x128xbf16>
    %54 = vector.shape_cast %53 : vector<1x128x128xbf16> to vector<128x128xbf16>
    %cst_42 = arith.constant dense<0.000000e+00> : vector<352x128xf32>
    %55 = tpu.matmul %52, %54, %cst_42 {dimension_numbers = #tpu.dot_dimension_numbers<[1], [0], [0], [1], [0, 0, 1, 1], [], []>} : vector<352x128xbf16>, vector<128x128xbf16>, vector<352x128xf32> -> vector<352x128xf32>
    %56 = arith.addf %49, %55 : vector<352x128xf32>
    %c0_43 = arith.constant 0 : index
    %c34 = arith.constant 34 : index
    %c0_44 = arith.constant 0 : index
    %57 = vector.load %arg1[%c0_43, %c34, %c0_44] : memref<1x386x128xf32, #tpu.memory_space<vmem>>, vector<1x352x128xf32>
    %58 = vector.shape_cast %57 : vector<1x352x128xf32> to vector<352x128xf32>
    %59 = arith.truncf %58 : vector<352x128xf32> to vector<352x128xbf16>
    %c8 = arith.constant 8 : index
    %c0_45 = arith.constant 0 : index
    %c0_46 = arith.constant 0 : index
    %60 = vector.load %arg2[%c8, %c0_45, %c0_46] : memref<9x128x128xbf16, #tpu.memory_space<vmem>>, vector<1x128x128xbf16>
    %61 = vector.shape_cast %60 : vector<1x128x128xbf16> to vector<128x128xbf16>
    %cst_47 = arith.constant dense<0.000000e+00> : vector<352x128xf32>
    %62 = tpu.matmul %59, %61, %cst_47 {dimension_numbers = #tpu.dot_dimension_numbers<[1], [0], [0], [1], [0, 0, 1, 1], [], []>} : vector<352x128xbf16>, vector<128x128xbf16>, vector<352x128xf32> -> vector<352x128xf32>
    %63 = arith.addf %56, %62 : vector<352x128xf32>
    %c0_48 = arith.constant 0 : index
    %c0_49 = arith.constant 0 : index
    %64 = vector.load %arg3[%c0_48, %c0_49] : memref<1x128xf32, #tpu.memory_space<vmem>>, vector<1x128xf32>
    %65 = vector.broadcast %64 : vector<1x128xf32> to vector<352x128xf32>
    %66 = arith.addf %63, %65 : vector<352x128xf32>
    %cst_50 = arith.constant 0.000000e+00 : f32
    %67 = vector.broadcast %cst_50 : f32 to vector<352x128xf32>
    %68 = arith.maximumf %66, %67 : vector<352x128xf32>
    %c0_51 = arith.constant 0 : index
    %c0_52 = arith.constant 0 : index
    %c0_53 = arith.constant 0 : index
    %69 = vector.load %arg4[%c0_51, %c0_52, %c0_53] : memref<1x352x128xf32, #tpu.memory_space<vmem>>, vector<1x352x128xf32>
    %70 = vector.shape_cast %69 : vector<1x352x128xf32> to vector<352x128xf32>
    %71 = vector.shape_cast %68 : vector<352x128xf32> to vector<1x352x128xf32>
    tpu.vector_store %arg4[%c0_51, %c0_52, %c0_53], %71 {strides = array<i32>} : memref<1x352x128xf32, #tpu.memory_space<vmem>>, vector<1x352x128xf32>,
    return
  }
  func.func @transform_0(%arg0: i32) -> (i32, i32, i32) {
    %c0_i32 = arith.constant 0 : i32
    %c0_i32_0 = arith.constant 0 : i32
    %c0_i32_1 = arith.constant 0 : i32
    return %arg0, %c0_i32, %c0_i32_0 : i32, i32, i32
  }
  func.func @transform_1(%arg0: i32) -> (i32, i32, i32) {
    %c0_i32 = arith.constant 0 : i32
    %c0_i32_0 = arith.constant 0 : i32
    %c0_i32_1 = arith.constant 0 : i32
    %c0_i32_2 = arith.constant 0 : i32
    return %c0_i32, %c0_i32_0, %c0_i32_1 : i32, i32, i32
  }
  func.func @transform_2(%arg0: i32) -> (i32, i32) {
    %c0_i32 = arith.constant 0 : i32
    %c0_i32_0 = arith.constant 0 : i32
    %c0_i32_1 = arith.constant 0 : i32
    return %c0_i32, %c0_i32_0 : i32, i32
  }
  func.func @transform_3(%arg0: i32) -> (i32, i32, i32) {
    %c0_i32 = arith.constant 0 : i32
    %c0_i32_0 = arith.constant 0 : i32
    %c0_i32_1 = arith.constant 0 : i32
    return %arg0, %c0_i32, %c0_i32_0 : i32, i32, i32
  }
}

module attributes {stable_mosaic.version = 11 : i64} {
  func.func @_xcorr_kernel(%arg0: i32, %arg1: memref<1x323x128xf32, #tpu.memory_space<vmem>>, %arg2: memref<1x144x1xf32, #tpu.memory_space<vmem>>) attributes {dimension_semantics = [#tpu.dimension_semantics<parallel>], iteration_bounds = array<i64: 2>, scalar_prefetch = 0 : i64, scratch_operands = 0 : i64, tpu.core_type = #tpu.core_type<tc>, window_params = [{transform_indices = @transform_0, window_bounds = array<i64: 1, 323, 128>}, {transform_indices = @transform_1, window_bounds = array<i64: 1, 144, 1>}]} {
    %cst = arith.constant 0.000000e+00 : f32
    %0 = vector.broadcast %cst : f32 to vector<144x128xf32>
    %c0 = arith.constant 0 : index
    %c0_0 = arith.constant 0 : index
    %c0_1 = arith.constant 0 : index
    %1 = vector.load %arg1[%c0, %c0_0, %c0_1] : memref<1x323x128xf32, #tpu.memory_space<vmem>>, vector<1x1x128xf32>
    %2 = vector.shape_cast %1 : vector<1x1x128xf32> to vector<1x128xf32>
    %c0_2 = arith.constant 0 : index
    %c128 = arith.constant 128 : index
    %c0_3 = arith.constant 0 : index
    %3 = vector.load %arg1[%c0_2, %c128, %c0_3] : memref<1x323x128xf32, #tpu.memory_space<vmem>>, vector<1x144x128xf32>
    %4 = vector.shape_cast %3 : vector<1x144x128xf32> to vector<144x128xf32>
    %5 = vector.broadcast %2 : vector<1x128xf32> to vector<144x128xf32>
    %6 = arith.mulf %4, %5 : vector<144x128xf32>
    %7 = arith.addf %0, %6 : vector<144x128xf32>
    %c0_4 = arith.constant 0 : index
    %c1 = arith.constant 1 : index
    %c0_5 = arith.constant 0 : index
    %8 = vector.load %arg1[%c0_4, %c1, %c0_5] : memref<1x323x128xf32, #tpu.memory_space<vmem>>, vector<1x1x128xf32>
    %9 = vector.shape_cast %8 : vector<1x1x128xf32> to vector<1x128xf32>
    %c0_6 = arith.constant 0 : index
    %c129 = arith.constant 129 : index
    %c0_7 = arith.constant 0 : index
    %10 = vector.load %arg1[%c0_6, %c129, %c0_7] : memref<1x323x128xf32, #tpu.memory_space<vmem>>, vector<1x144x128xf32>
    %11 = vector.shape_cast %10 : vector<1x144x128xf32> to vector<144x128xf32>
    %12 = vector.broadcast %9 : vector<1x128xf32> to vector<144x128xf32>
    %13 = arith.mulf %11, %12 : vector<144x128xf32>
    %14 = arith.addf %7, %13 : vector<144x128xf32>
    %c0_8 = arith.constant 0 : index
    %c2 = arith.constant 2 : index
    %c0_9 = arith.constant 0 : index
    %15 = vector.load %arg1[%c0_8, %c2, %c0_9] : memref<1x323x128xf32, #tpu.memory_space<vmem>>, vector<1x1x128xf32>
    %16 = vector.shape_cast %15 : vector<1x1x128xf32> to vector<1x128xf32>
    %c0_10 = arith.constant 0 : index
    %c130 = arith.constant 130 : index
    %c0_11 = arith.constant 0 : index
    %17 = vector.load %arg1[%c0_10, %c130, %c0_11] : memref<1x323x128xf32, #tpu.memory_space<vmem>>, vector<1x144x128xf32>
    %18 = vector.shape_cast %17 : vector<1x144x128xf32> to vector<144x128xf32>
    %19 = vector.broadcast %16 : vector<1x128xf32> to vector<144x128xf32>
    %20 = arith.mulf %18, %19 : vector<144x128xf32>
    %21 = arith.addf %14, %20 : vector<144x128xf32>
    %c0_12 = arith.constant 0 : index
    %c3 = arith.constant 3 : index
    %c0_13 = arith.constant 0 : index
    %22 = vector.load %arg1[%c0_12, %c3, %c0_13] : memref<1x323x128xf32, #tpu.memory_space<vmem>>, vector<1x1x128xf32>
    %23 = vector.shape_cast %22 : vector<1x1x128xf32> to vector<1x128xf32>
    %c0_14 = arith.constant 0 : index
    %c131 = arith.constant 131 : index
    %c0_15 = arith.constant 0 : index
    %24 = vector.load %arg1[%c0_14, %c131, %c0_15] : memref<1x323x128xf32, #tpu.memory_space<vmem>>, vector<1x144x128xf32>
    %25 = vector.shape_cast %24 : vector<1x144x128xf32> to vector<144x128xf32>
    %26 = vector.broadcast %23 : vector<1x128xf32> to vector<144x128xf32>
    %27 = arith.mulf %25, %26 : vector<144x128xf32>
    %28 = arith.addf %21, %27 : vector<144x128xf32>
    %c0_16 = arith.constant 0 : index
    %c16 = arith.constant 16 : index
    %c0_17 = arith.constant 0 : index
    %29 = vector.load %arg1[%c0_16, %c16, %c0_17] : memref<1x323x128xf32, #tpu.memory_space<vmem>>, vector<1x1x128xf32>
    %30 = vector.shape_cast %29 : vector<1x1x128xf32> to vector<1x128xf32>
    %c0_18 = arith.constant 0 : index
    %c144 = arith.constant 144 : index
    %c0_19 = arith.constant 0 : index
    %31 = vector.load %arg1[%c0_18, %c144, %c0_19] : memref<1x323x128xf32, #tpu.memory_space<vmem>>, vector<1x144x128xf32>
    %32 = vector.shape_cast %31 : vector<1x144x128xf32> to vector<144x128xf32>
    %33 = vector.broadcast %30 : vector<1x128xf32> to vector<144x128xf32>
    %34 = arith.mulf %32, %33 : vector<144x128xf32>
    %35 = arith.addf %28, %34 : vector<144x128xf32>
    %c0_20 = arith.constant 0 : index
    %c17 = arith.constant 17 : index
    %c0_21 = arith.constant 0 : index
    %36 = vector.load %arg1[%c0_20, %c17, %c0_21] : memref<1x323x128xf32, #tpu.memory_space<vmem>>, vector<1x1x128xf32>
    %37 = vector.shape_cast %36 : vector<1x1x128xf32> to vector<1x128xf32>
    %c0_22 = arith.constant 0 : index
    %c145 = arith.constant 145 : index
    %c0_23 = arith.constant 0 : index
    %38 = vector.load %arg1[%c0_22, %c145, %c0_23] : memref<1x323x128xf32, #tpu.memory_space<vmem>>, vector<1x144x128xf32>
    %39 = vector.shape_cast %38 : vector<1x144x128xf32> to vector<144x128xf32>
    %40 = vector.broadcast %37 : vector<1x128xf32> to vector<144x128xf32>
    %41 = arith.mulf %39, %40 : vector<144x128xf32>
    %42 = arith.addf %35, %41 : vector<144x128xf32>
    %c0_24 = arith.constant 0 : index
    %c18 = arith.constant 18 : index
    %c0_25 = arith.constant 0 : index
    %43 = vector.load %arg1[%c0_24, %c18, %c0_25] : memref<1x323x128xf32, #tpu.memory_space<vmem>>, vector<1x1x128xf32>
    %44 = vector.shape_cast %43 : vector<1x1x128xf32> to vector<1x128xf32>
    %c0_26 = arith.constant 0 : index
    %c146 = arith.constant 146 : index
    %c0_27 = arith.constant 0 : index
    %45 = vector.load %arg1[%c0_26, %c146, %c0_27] : memref<1x323x128xf32, #tpu.memory_space<vmem>>, vector<1x144x128xf32>
    %46 = vector.shape_cast %45 : vector<1x144x128xf32> to vector<144x128xf32>
    %47 = vector.broadcast %44 : vector<1x128xf32> to vector<144x128xf32>
    %48 = arith.mulf %46, %47 : vector<144x128xf32>
    %49 = arith.addf %42, %48 : vector<144x128xf32>
    %c0_28 = arith.constant 0 : index
    %c19 = arith.constant 19 : index
    %c0_29 = arith.constant 0 : index
    %50 = vector.load %arg1[%c0_28, %c19, %c0_29] : memref<1x323x128xf32, #tpu.memory_space<vmem>>, vector<1x1x128xf32>
    %51 = vector.shape_cast %50 : vector<1x1x128xf32> to vector<1x128xf32>
    %c0_30 = arith.constant 0 : index
    %c147 = arith.constant 147 : index
    %c0_31 = arith.constant 0 : index
    %52 = vector.load %arg1[%c0_30, %c147, %c0_31] : memref<1x323x128xf32, #tpu.memory_space<vmem>>, vector<1x144x128xf32>
    %53 = vector.shape_cast %52 : vector<1x144x128xf32> to vector<144x128xf32>
    %54 = vector.broadcast %51 : vector<1x128xf32> to vector<144x128xf32>
    %55 = arith.mulf %53, %54 : vector<144x128xf32>
    %56 = arith.addf %49, %55 : vector<144x128xf32>
    %c0_32 = arith.constant 0 : index
    %c32 = arith.constant 32 : index
    %c0_33 = arith.constant 0 : index
    %57 = vector.load %arg1[%c0_32, %c32, %c0_33] : memref<1x323x128xf32, #tpu.memory_space<vmem>>, vector<1x1x128xf32>
    %58 = vector.shape_cast %57 : vector<1x1x128xf32> to vector<1x128xf32>
    %c0_34 = arith.constant 0 : index
    %c160 = arith.constant 160 : index
    %c0_35 = arith.constant 0 : index
    %59 = vector.load %arg1[%c0_34, %c160, %c0_35] : memref<1x323x128xf32, #tpu.memory_space<vmem>>, vector<1x144x128xf32>
    %60 = vector.shape_cast %59 : vector<1x144x128xf32> to vector<144x128xf32>
    %61 = vector.broadcast %58 : vector<1x128xf32> to vector<144x128xf32>
    %62 = arith.mulf %60, %61 : vector<144x128xf32>
    %63 = arith.addf %56, %62 : vector<144x128xf32>
    %c0_36 = arith.constant 0 : index
    %c33 = arith.constant 33 : index
    %c0_37 = arith.constant 0 : index
    %64 = vector.load %arg1[%c0_36, %c33, %c0_37] : memref<1x323x128xf32, #tpu.memory_space<vmem>>, vector<1x1x128xf32>
    %65 = vector.shape_cast %64 : vector<1x1x128xf32> to vector<1x128xf32>
    %c0_38 = arith.constant 0 : index
    %c161 = arith.constant 161 : index
    %c0_39 = arith.constant 0 : index
    %66 = vector.load %arg1[%c0_38, %c161, %c0_39] : memref<1x323x128xf32, #tpu.memory_space<vmem>>, vector<1x144x128xf32>
    %67 = vector.shape_cast %66 : vector<1x144x128xf32> to vector<144x128xf32>
    %68 = vector.broadcast %65 : vector<1x128xf32> to vector<144x128xf32>
    %69 = arith.mulf %67, %68 : vector<144x128xf32>
    %70 = arith.addf %63, %69 : vector<144x128xf32>
    %c0_40 = arith.constant 0 : index
    %c34 = arith.constant 34 : index
    %c0_41 = arith.constant 0 : index
    %71 = vector.load %arg1[%c0_40, %c34, %c0_41] : memref<1x323x128xf32, #tpu.memory_space<vmem>>, vector<1x1x128xf32>
    %72 = vector.shape_cast %71 : vector<1x1x128xf32> to vector<1x128xf32>
    %c0_42 = arith.constant 0 : index
    %c162 = arith.constant 162 : index
    %c0_43 = arith.constant 0 : index
    %73 = vector.load %arg1[%c0_42, %c162, %c0_43] : memref<1x323x128xf32, #tpu.memory_space<vmem>>, vector<1x144x128xf32>
    %74 = vector.shape_cast %73 : vector<1x144x128xf32> to vector<144x128xf32>
    %75 = vector.broadcast %72 : vector<1x128xf32> to vector<144x128xf32>
    %76 = arith.mulf %74, %75 : vector<144x128xf32>
    %77 = arith.addf %70, %76 : vector<144x128xf32>
    %c0_44 = arith.constant 0 : index
    %c35 = arith.constant 35 : index
    %c0_45 = arith.constant 0 : index
    %78 = vector.load %arg1[%c0_44, %c35, %c0_45] : memref<1x323x128xf32, #tpu.memory_space<vmem>>, vector<1x1x128xf32>
    %79 = vector.shape_cast %78 : vector<1x1x128xf32> to vector<1x128xf32>
    %c0_46 = arith.constant 0 : index
    %c163 = arith.constant 163 : index
    %c0_47 = arith.constant 0 : index
    %80 = vector.load %arg1[%c0_46, %c163, %c0_47] : memref<1x323x128xf32, #tpu.memory_space<vmem>>, vector<1x144x128xf32>
    %81 = vector.shape_cast %80 : vector<1x144x128xf32> to vector<144x128xf32>
    %82 = vector.broadcast %79 : vector<1x128xf32> to vector<144x128xf32>
    %83 = arith.mulf %81, %82 : vector<144x128xf32>
    %84 = arith.addf %77, %83 : vector<144x128xf32>
    %c0_48 = arith.constant 0 : index
    %c48 = arith.constant 48 : index
    %c0_49 = arith.constant 0 : index
    %85 = vector.load %arg1[%c0_48, %c48, %c0_49] : memref<1x323x128xf32, #tpu.memory_space<vmem>>, vector<1x1x128xf32>
    %86 = vector.shape_cast %85 : vector<1x1x128xf32> to vector<1x128xf32>
    %c0_50 = arith.constant 0 : index
    %c176 = arith.constant 176 : index
    %c0_51 = arith.constant 0 : index
    %87 = vector.load %arg1[%c0_50, %c176, %c0_51] : memref<1x323x128xf32, #tpu.memory_space<vmem>>, vector<1x144x128xf32>
    %88 = vector.shape_cast %87 : vector<1x144x128xf32> to vector<144x128xf32>
    %89 = vector.broadcast %86 : vector<1x128xf32> to vector<144x128xf32>
    %90 = arith.mulf %88, %89 : vector<144x128xf32>
    %91 = arith.addf %84, %90 : vector<144x128xf32>
    %c0_52 = arith.constant 0 : index
    %c49 = arith.constant 49 : index
    %c0_53 = arith.constant 0 : index
    %92 = vector.load %arg1[%c0_52, %c49, %c0_53] : memref<1x323x128xf32, #tpu.memory_space<vmem>>, vector<1x1x128xf32>
    %93 = vector.shape_cast %92 : vector<1x1x128xf32> to vector<1x128xf32>
    %c0_54 = arith.constant 0 : index
    %c177 = arith.constant 177 : index
    %c0_55 = arith.constant 0 : index
    %94 = vector.load %arg1[%c0_54, %c177, %c0_55] : memref<1x323x128xf32, #tpu.memory_space<vmem>>, vector<1x144x128xf32>
    %95 = vector.shape_cast %94 : vector<1x144x128xf32> to vector<144x128xf32>
    %96 = vector.broadcast %93 : vector<1x128xf32> to vector<144x128xf32>
    %97 = arith.mulf %95, %96 : vector<144x128xf32>
    %98 = arith.addf %91, %97 : vector<144x128xf32>
    %c0_56 = arith.constant 0 : index
    %c50 = arith.constant 50 : index
    %c0_57 = arith.constant 0 : index
    %99 = vector.load %arg1[%c0_56, %c50, %c0_57] : memref<1x323x128xf32, #tpu.memory_space<vmem>>, vector<1x1x128xf32>
    %100 = vector.shape_cast %99 : vector<1x1x128xf32> to vector<1x128xf32>
    %c0_58 = arith.constant 0 : index
    %c178 = arith.constant 178 : index
    %c0_59 = arith.constant 0 : index
    %101 = vector.load %arg1[%c0_58, %c178, %c0_59] : memref<1x323x128xf32, #tpu.memory_space<vmem>>, vector<1x144x128xf32>
    %102 = vector.shape_cast %101 : vector<1x144x128xf32> to vector<144x128xf32>
    %103 = vector.broadcast %100 : vector<1x128xf32> to vector<144x128xf32>
    %104 = arith.mulf %102, %103 : vector<144x128xf32>
    %105 = arith.addf %98, %104 : vector<144x128xf32>
    %c0_60 = arith.constant 0 : index
    %c51 = arith.constant 51 : index
    %c0_61 = arith.constant 0 : index
    %106 = vector.load %arg1[%c0_60, %c51, %c0_61] : memref<1x323x128xf32, #tpu.memory_space<vmem>>, vector<1x1x128xf32>
    %107 = vector.shape_cast %106 : vector<1x1x128xf32> to vector<1x128xf32>
    %c0_62 = arith.constant 0 : index
    %c179 = arith.constant 179 : index
    %c0_63 = arith.constant 0 : index
    %108 = vector.load %arg1[%c0_62, %c179, %c0_63] : memref<1x323x128xf32, #tpu.memory_space<vmem>>, vector<1x144x128xf32>
    %109 = vector.shape_cast %108 : vector<1x144x128xf32> to vector<144x128xf32>
    %110 = vector.broadcast %107 : vector<1x128xf32> to vector<144x128xf32>
    %111 = arith.mulf %109, %110 : vector<144x128xf32>
    %112 = arith.addf %105, %111 : vector<144x128xf32>
    %cst_64 = arith.constant dense<0.000000e+00> : vector<144xf32>
    %113 = vector.multi_reduction <add>, %112, %cst_64 [1] : vector<144x128xf32> to vector<144xf32>
    %114 = vector.shape_cast %113 : vector<144xf32> to vector<144x1xf32>
    %cst_65 = arith.constant 1.000000e-03 : f32
    %115 = vector.broadcast %cst_65 : f32 to vector<144x1xf32>
    %116 = arith.mulf %114, %115 : vector<144x1xf32>
    %c0_66 = arith.constant 0 : index
    %c0_67 = arith.constant 0 : index
    %c0_68 = arith.constant 0 : index
    %117 = vector.load %arg2[%c0_66, %c0_67, %c0_68] : memref<1x144x1xf32, #tpu.memory_space<vmem>>, vector<1x144x1xf32>
    %118 = vector.shape_cast %117 : vector<1x144x1xf32> to vector<144x1xf32>
    %119 = vector.shape_cast %116 : vector<144x1xf32> to vector<1x144x1xf32>
    tpu.vector_store %arg2[%c0_66, %c0_67, %c0_68], %119 {strides = array<i32>} : memref<1x144x1xf32, #tpu.memory_space<vmem>>, vector<1x144x1xf32>,
    return
  }
  func.func @transform_0(%arg0: i32) -> (i32, i32, i32) {
    %c0_i32 = arith.constant 0 : i32
    %c0_i32_0 = arith.constant 0 : i32
    %c0_i32_1 = arith.constant 0 : i32
    return %arg0, %c0_i32, %c0_i32_0 : i32, i32, i32
  }
  func.func @transform_1(%arg0: i32) -> (i32, i32, i32) {
    %c0_i32 = arith.constant 0 : i32
    %c0_i32_0 = arith.constant 0 : i32
    %c0_i32_1 = arith.constant 0 : i32
    return %arg0, %c0_i32, %c0_i32_0 : i32, i32, i32
  }
}

module attributes {stable_mosaic.version = 11 : i64} {
  func.func @_conv_bias_relu_kernel(%arg0: i32, %arg1: memref<1x354x128xf32, #tpu.memory_space<vmem>>, %arg2: memref<9x128x128xbf16, #tpu.memory_space<vmem>>, %arg3: memref<1x128xf32, #tpu.memory_space<vmem>>, %arg4: memref<1x320x128xf32, #tpu.memory_space<vmem>>) attributes {dimension_semantics = [#tpu.dimension_semantics<parallel>], iteration_bounds = array<i64: 2>, scalar_prefetch = 0 : i64, scratch_operands = 0 : i64, tpu.core_type = #tpu.core_type<tc>, window_params = [{transform_indices = @transform_0, window_bounds = array<i64: 1, 354, 128>}, {pipeline_mode = #tpu.pipeline_mode<synchronous>, transform_indices = @transform_1, window_bounds = array<i64: 9, 128, 128>}, {pipeline_mode = #tpu.pipeline_mode<synchronous>, transform_indices = @transform_2, window_bounds = array<i64: 1, 128>}, {transform_indices = @transform_3, window_bounds = array<i64: 1, 320, 128>}]} {
    %cst = arith.constant 0.000000e+00 : f32
    %0 = vector.broadcast %cst : f32 to vector<320x128xf32>
    %c0 = arith.constant 0 : index
    %c0_0 = arith.constant 0 : index
    %c0_1 = arith.constant 0 : index
    %1 = vector.load %arg1[%c0, %c0_0, %c0_1] : memref<1x354x128xf32, #tpu.memory_space<vmem>>, vector<1x320x128xf32>
    %2 = vector.shape_cast %1 : vector<1x320x128xf32> to vector<320x128xf32>
    %3 = arith.truncf %2 : vector<320x128xf32> to vector<320x128xbf16>
    %c0_2 = arith.constant 0 : index
    %c0_3 = arith.constant 0 : index
    %c0_4 = arith.constant 0 : index
    %4 = vector.load %arg2[%c0_2, %c0_3, %c0_4] : memref<9x128x128xbf16, #tpu.memory_space<vmem>>, vector<1x128x128xbf16>
    %5 = vector.shape_cast %4 : vector<1x128x128xbf16> to vector<128x128xbf16>
    %cst_5 = arith.constant dense<0.000000e+00> : vector<320x128xf32>
    %6 = tpu.matmul %3, %5, %cst_5 {dimension_numbers = #tpu.dot_dimension_numbers<[1], [0], [0], [1], [0, 0, 1, 1], [], []>} : vector<320x128xbf16>, vector<128x128xbf16>, vector<320x128xf32> -> vector<320x128xf32>
    %7 = arith.addf %0, %6 : vector<320x128xf32>
    %c0_6 = arith.constant 0 : index
    %c1 = arith.constant 1 : index
    %c0_7 = arith.constant 0 : index
    %8 = vector.load %arg1[%c0_6, %c1, %c0_7] : memref<1x354x128xf32, #tpu.memory_space<vmem>>, vector<1x320x128xf32>
    %9 = vector.shape_cast %8 : vector<1x320x128xf32> to vector<320x128xf32>
    %10 = arith.truncf %9 : vector<320x128xf32> to vector<320x128xbf16>
    %c1_8 = arith.constant 1 : index
    %c0_9 = arith.constant 0 : index
    %c0_10 = arith.constant 0 : index
    %11 = vector.load %arg2[%c1_8, %c0_9, %c0_10] : memref<9x128x128xbf16, #tpu.memory_space<vmem>>, vector<1x128x128xbf16>
    %12 = vector.shape_cast %11 : vector<1x128x128xbf16> to vector<128x128xbf16>
    %cst_11 = arith.constant dense<0.000000e+00> : vector<320x128xf32>
    %13 = tpu.matmul %10, %12, %cst_11 {dimension_numbers = #tpu.dot_dimension_numbers<[1], [0], [0], [1], [0, 0, 1, 1], [], []>} : vector<320x128xbf16>, vector<128x128xbf16>, vector<320x128xf32> -> vector<320x128xf32>
    %14 = arith.addf %7, %13 : vector<320x128xf32>
    %c0_12 = arith.constant 0 : index
    %c2 = arith.constant 2 : index
    %c0_13 = arith.constant 0 : index
    %15 = vector.load %arg1[%c0_12, %c2, %c0_13] : memref<1x354x128xf32, #tpu.memory_space<vmem>>, vector<1x320x128xf32>
    %16 = vector.shape_cast %15 : vector<1x320x128xf32> to vector<320x128xf32>
    %17 = arith.truncf %16 : vector<320x128xf32> to vector<320x128xbf16>
    %c2_14 = arith.constant 2 : index
    %c0_15 = arith.constant 0 : index
    %c0_16 = arith.constant 0 : index
    %18 = vector.load %arg2[%c2_14, %c0_15, %c0_16] : memref<9x128x128xbf16, #tpu.memory_space<vmem>>, vector<1x128x128xbf16>
    %19 = vector.shape_cast %18 : vector<1x128x128xbf16> to vector<128x128xbf16>
    %cst_17 = arith.constant dense<0.000000e+00> : vector<320x128xf32>
    %20 = tpu.matmul %17, %19, %cst_17 {dimension_numbers = #tpu.dot_dimension_numbers<[1], [0], [0], [1], [0, 0, 1, 1], [], []>} : vector<320x128xbf16>, vector<128x128xbf16>, vector<320x128xf32> -> vector<320x128xf32>
    %21 = arith.addf %14, %20 : vector<320x128xf32>
    %c0_18 = arith.constant 0 : index
    %c16 = arith.constant 16 : index
    %c0_19 = arith.constant 0 : index
    %22 = vector.load %arg1[%c0_18, %c16, %c0_19] : memref<1x354x128xf32, #tpu.memory_space<vmem>>, vector<1x320x128xf32>
    %23 = vector.shape_cast %22 : vector<1x320x128xf32> to vector<320x128xf32>
    %24 = arith.truncf %23 : vector<320x128xf32> to vector<320x128xbf16>
    %c3 = arith.constant 3 : index
    %c0_20 = arith.constant 0 : index
    %c0_21 = arith.constant 0 : index
    %25 = vector.load %arg2[%c3, %c0_20, %c0_21] : memref<9x128x128xbf16, #tpu.memory_space<vmem>>, vector<1x128x128xbf16>
    %26 = vector.shape_cast %25 : vector<1x128x128xbf16> to vector<128x128xbf16>
    %cst_22 = arith.constant dense<0.000000e+00> : vector<320x128xf32>
    %27 = tpu.matmul %24, %26, %cst_22 {dimension_numbers = #tpu.dot_dimension_numbers<[1], [0], [0], [1], [0, 0, 1, 1], [], []>} : vector<320x128xbf16>, vector<128x128xbf16>, vector<320x128xf32> -> vector<320x128xf32>
    %28 = arith.addf %21, %27 : vector<320x128xf32>
    %c0_23 = arith.constant 0 : index
    %c17 = arith.constant 17 : index
    %c0_24 = arith.constant 0 : index
    %29 = vector.load %arg1[%c0_23, %c17, %c0_24] : memref<1x354x128xf32, #tpu.memory_space<vmem>>, vector<1x320x128xf32>
    %30 = vector.shape_cast %29 : vector<1x320x128xf32> to vector<320x128xf32>
    %31 = arith.truncf %30 : vector<320x128xf32> to vector<320x128xbf16>
    %c4 = arith.constant 4 : index
    %c0_25 = arith.constant 0 : index
    %c0_26 = arith.constant 0 : index
    %32 = vector.load %arg2[%c4, %c0_25, %c0_26] : memref<9x128x128xbf16, #tpu.memory_space<vmem>>, vector<1x128x128xbf16>
    %33 = vector.shape_cast %32 : vector<1x128x128xbf16> to vector<128x128xbf16>
    %cst_27 = arith.constant dense<0.000000e+00> : vector<320x128xf32>
    %34 = tpu.matmul %31, %33, %cst_27 {dimension_numbers = #tpu.dot_dimension_numbers<[1], [0], [0], [1], [0, 0, 1, 1], [], []>} : vector<320x128xbf16>, vector<128x128xbf16>, vector<320x128xf32> -> vector<320x128xf32>
    %35 = arith.addf %28, %34 : vector<320x128xf32>
    %c0_28 = arith.constant 0 : index
    %c18 = arith.constant 18 : index
    %c0_29 = arith.constant 0 : index
    %36 = vector.load %arg1[%c0_28, %c18, %c0_29] : memref<1x354x128xf32, #tpu.memory_space<vmem>>, vector<1x320x128xf32>
    %37 = vector.shape_cast %36 : vector<1x320x128xf32> to vector<320x128xf32>
    %38 = arith.truncf %37 : vector<320x128xf32> to vector<320x128xbf16>
    %c5 = arith.constant 5 : index
    %c0_30 = arith.constant 0 : index
    %c0_31 = arith.constant 0 : index
    %39 = vector.load %arg2[%c5, %c0_30, %c0_31] : memref<9x128x128xbf16, #tpu.memory_space<vmem>>, vector<1x128x128xbf16>
    %40 = vector.shape_cast %39 : vector<1x128x128xbf16> to vector<128x128xbf16>
    %cst_32 = arith.constant dense<0.000000e+00> : vector<320x128xf32>
    %41 = tpu.matmul %38, %40, %cst_32 {dimension_numbers = #tpu.dot_dimension_numbers<[1], [0], [0], [1], [0, 0, 1, 1], [], []>} : vector<320x128xbf16>, vector<128x128xbf16>, vector<320x128xf32> -> vector<320x128xf32>
    %42 = arith.addf %35, %41 : vector<320x128xf32>
    %c0_33 = arith.constant 0 : index
    %c32 = arith.constant 32 : index
    %c0_34 = arith.constant 0 : index
    %43 = vector.load %arg1[%c0_33, %c32, %c0_34] : memref<1x354x128xf32, #tpu.memory_space<vmem>>, vector<1x320x128xf32>
    %44 = vector.shape_cast %43 : vector<1x320x128xf32> to vector<320x128xf32>
    %45 = arith.truncf %44 : vector<320x128xf32> to vector<320x128xbf16>
    %c6 = arith.constant 6 : index
    %c0_35 = arith.constant 0 : index
    %c0_36 = arith.constant 0 : index
    %46 = vector.load %arg2[%c6, %c0_35, %c0_36] : memref<9x128x128xbf16, #tpu.memory_space<vmem>>, vector<1x128x128xbf16>
    %47 = vector.shape_cast %46 : vector<1x128x128xbf16> to vector<128x128xbf16>
    %cst_37 = arith.constant dense<0.000000e+00> : vector<320x128xf32>
    %48 = tpu.matmul %45, %47, %cst_37 {dimension_numbers = #tpu.dot_dimension_numbers<[1], [0], [0], [1], [0, 0, 1, 1], [], []>} : vector<320x128xbf16>, vector<128x128xbf16>, vector<320x128xf32> -> vector<320x128xf32>
    %49 = arith.addf %42, %48 : vector<320x128xf32>
    %c0_38 = arith.constant 0 : index
    %c33 = arith.constant 33 : index
    %c0_39 = arith.constant 0 : index
    %50 = vector.load %arg1[%c0_38, %c33, %c0_39] : memref<1x354x128xf32, #tpu.memory_space<vmem>>, vector<1x320x128xf32>
    %51 = vector.shape_cast %50 : vector<1x320x128xf32> to vector<320x128xf32>
    %52 = arith.truncf %51 : vector<320x128xf32> to vector<320x128xbf16>
    %c7 = arith.constant 7 : index
    %c0_40 = arith.constant 0 : index
    %c0_41 = arith.constant 0 : index
    %53 = vector.load %arg2[%c7, %c0_40, %c0_41] : memref<9x128x128xbf16, #tpu.memory_space<vmem>>, vector<1x128x128xbf16>
    %54 = vector.shape_cast %53 : vector<1x128x128xbf16> to vector<128x128xbf16>
    %cst_42 = arith.constant dense<0.000000e+00> : vector<320x128xf32>
    %55 = tpu.matmul %52, %54, %cst_42 {dimension_numbers = #tpu.dot_dimension_numbers<[1], [0], [0], [1], [0, 0, 1, 1], [], []>} : vector<320x128xbf16>, vector<128x128xbf16>, vector<320x128xf32> -> vector<320x128xf32>
    %56 = arith.addf %49, %55 : vector<320x128xf32>
    %c0_43 = arith.constant 0 : index
    %c34 = arith.constant 34 : index
    %c0_44 = arith.constant 0 : index
    %57 = vector.load %arg1[%c0_43, %c34, %c0_44] : memref<1x354x128xf32, #tpu.memory_space<vmem>>, vector<1x320x128xf32>
    %58 = vector.shape_cast %57 : vector<1x320x128xf32> to vector<320x128xf32>
    %59 = arith.truncf %58 : vector<320x128xf32> to vector<320x128xbf16>
    %c8 = arith.constant 8 : index
    %c0_45 = arith.constant 0 : index
    %c0_46 = arith.constant 0 : index
    %60 = vector.load %arg2[%c8, %c0_45, %c0_46] : memref<9x128x128xbf16, #tpu.memory_space<vmem>>, vector<1x128x128xbf16>
    %61 = vector.shape_cast %60 : vector<1x128x128xbf16> to vector<128x128xbf16>
    %cst_47 = arith.constant dense<0.000000e+00> : vector<320x128xf32>
    %62 = tpu.matmul %59, %61, %cst_47 {dimension_numbers = #tpu.dot_dimension_numbers<[1], [0], [0], [1], [0, 0, 1, 1], [], []>} : vector<320x128xbf16>, vector<128x128xbf16>, vector<320x128xf32> -> vector<320x128xf32>
    %63 = arith.addf %56, %62 : vector<320x128xf32>
    %c0_48 = arith.constant 0 : index
    %c0_49 = arith.constant 0 : index
    %64 = vector.load %arg3[%c0_48, %c0_49] : memref<1x128xf32, #tpu.memory_space<vmem>>, vector<1x128xf32>
    %65 = vector.broadcast %64 : vector<1x128xf32> to vector<320x128xf32>
    %66 = arith.addf %63, %65 : vector<320x128xf32>
    %cst_50 = arith.constant 0.000000e+00 : f32
    %67 = vector.broadcast %cst_50 : f32 to vector<320x128xf32>
    %68 = arith.maximumf %66, %67 : vector<320x128xf32>
    %c0_51 = arith.constant 0 : index
    %c0_52 = arith.constant 0 : index
    %c0_53 = arith.constant 0 : index
    %69 = vector.load %arg4[%c0_51, %c0_52, %c0_53] : memref<1x320x128xf32, #tpu.memory_space<vmem>>, vector<1x320x128xf32>
    %70 = vector.shape_cast %69 : vector<1x320x128xf32> to vector<320x128xf32>
    %71 = vector.shape_cast %68 : vector<320x128xf32> to vector<1x320x128xf32>
    tpu.vector_store %arg4[%c0_51, %c0_52, %c0_53], %71 {strides = array<i32>} : memref<1x320x128xf32, #tpu.memory_space<vmem>>, vector<1x320x128xf32>,
    return
  }
  func.func @transform_0(%arg0: i32) -> (i32, i32, i32) {
    %c0_i32 = arith.constant 0 : i32
    %c0_i32_0 = arith.constant 0 : i32
    %c0_i32_1 = arith.constant 0 : i32
    return %arg0, %c0_i32, %c0_i32_0 : i32, i32, i32
  }
  func.func @transform_1(%arg0: i32) -> (i32, i32, i32) {
    %c0_i32 = arith.constant 0 : i32
    %c0_i32_0 = arith.constant 0 : i32
    %c0_i32_1 = arith.constant 0 : i32
    %c0_i32_2 = arith.constant 0 : i32
    return %c0_i32, %c0_i32_0, %c0_i32_1 : i32, i32, i32
  }
  func.func @transform_2(%arg0: i32) -> (i32, i32) {
    %c0_i32 = arith.constant 0 : i32
    %c0_i32_0 = arith.constant 0 : i32
    %c0_i32_1 = arith.constant 0 : i32
    return %c0_i32, %c0_i32_0 : i32, i32
  }
  func.func @transform_3(%arg0: i32) -> (i32, i32, i32) {
    %c0_i32 = arith.constant 0 : i32
    %c0_i32_0 = arith.constant 0 : i32
    %c0_i32_1 = arith.constant 0 : i32
    return %arg0, %c0_i32, %c0_i32_0 : i32, i32, i32
  }
}

</mosaic_0001>

<bundles_post_ra>
// kernel: squeeze.1
= control target key start
LH: loop header
LB: loop body
LE: loop exit
PB: predicated region body
PF: predicated region fallthrough
CT: control target
= control target key end

     0   :  { %s78_s10 = smov 80   ;;  %vm12_vm0 = vcmask 130048   ;;  %s79_s15 = smov 96   ;;  %s136_s0 = inlined_call_operand.vmem [shape: f32[2,144], index: 0, kind: input, shape index: {}]   ;;  %s137_s1 = inlined_call_operand.vmem [shape: f32[2,9,16], index: 1, kind: output, shape index: {}]  }
   0x1   :  { %v9_v0 = vld [vmem:[%s136_s0] sm:$0x3]  ;;  %v61_v1 = vld [vmem:[%s136_s0 + $0x2] sm:$0x3]  ;;  %s77_s0 = smov 112   ;;  %s80_s16 = smov 64  }
   0x2   :  { %10 = vst [vmem:[#allocation0] sm:$0x3] %v9_v0  ;;  %8 = vst [vmem:[#allocation0 + $0x8] sm:$0x3] %v61_v1  ;;  %s81_s17 = smov 48   ;;  %s82_s18 = smov 32  }
   0x3   :  { %s83_s19 = smov 16  }
   0x9   :  { %v19_v2 = vld [vmem:[#allocation0] sm:$0x3]   ;;  %v15_v7 = vld [vmem:[#allocation0 + $0x8] sm:$0x3]  }
   0xa   :  { %v31_v3 = vld [vmem:[#allocation0] sm:$0x3]   ;;  %20 = vrot.lane.b32.xlu0 %v19_v2, %s77_s0  ;;  %62 = vst.msk [vmem:[%s137_s1 + $0x8] ss:$16 sm:$0x3] %vm12_vm0, %v15_v7  }
   0xb   :  { %32 = vrot.lane.b32.xlu1 %v31_v3, %s78_s10  ;;  %v25_v4 = vld [vmem:[#allocation0] sm:$0x3]  }
   0xc   :  { %v37_v5 = vld [vmem:[#allocation0] sm:$0x3]  }
   0xd   :  { %v11_v6 = vld [vmem:[#allocation0] sm:$0x3]  }
   0xe   :  { %13 = vst.msk [vmem:[%s137_s1] ss:$16 sm:$0x3] %vm12_vm0, %v11_v6   ;;  %26 = vrot.lane.b32.xlu0 %v25_v4, %s79_s15  ;;  %v43_v8 = vld [vmem:[#allocation0] sm:$0x3]  }
   0xf   :  { %38 = vrot.lane.b32.xlu1 %v37_v5, %s80_s16  ;;  %v49_v9 = vld [vmem:[#allocation0] sm:$0x3]  }
  0x10   :  { %v55_v10 = vld [vmem:[#allocation0] sm:$0x3]  }
  0x12   :  { %44 = vrot.lane.b32.xlu0 %v43_v8, %s81_s17 }
  0x13   :  { %50 = vrot.lane.b32.xlu1 %v49_v9, %s82_s18 }
  0x16   :  { %56 = vrot.lane.b32.xlu0 %v55_v10, %s83_s19 }
  0x7c   :  { %v21_v11 = vpop.permute.xlu0 %20  }
  0x7d   :  { %v33_v12 = vpop.permute.xlu1 %32   ;;  %63 = vst.msk [vmem:[%s137_s1 + $0x1] ss:$16 sm:$0x3] %vm12_vm0, %v21_v11  }
  0x7e   :  { %65 = vst.msk [vmem:[%s137_s1 + $0x3] ss:$16 sm:$0x3] %vm12_vm0, %v33_v12  }
  0x80   :  { %v27_v13 = vpop.permute.xlu0 %26  }
  0x81   :  { %v39_v14 = vpop.permute.xlu1 %38   ;;  %64 = vst.msk [vmem:[%s137_s1 + $0x2] ss:$16 sm:$0x3] %vm12_vm0, %v27_v13  }
  0x82   :  { %66 = vst.msk [vmem:[%s137_s1 + $0x4] ss:$16 sm:$0x3] %vm12_vm0, %v39_v14  }
  0x84   :  { %v45_v15 = vpop.permute.xlu0 %44  }
  0x85   :  { %v51_v16 = vpop.permute.xlu1 %50   ;;  %67 = vst.msk [vmem:[%s137_s1 + $0x5] ss:$16 sm:$0x3] %vm12_vm0, %v45_v15  }
  0x86   :  { %68 = vst.msk [vmem:[%s137_s1 + $0x6] ss:$16 sm:$0x3] %vm12_vm0, %v51_v16  }
  0x88   :  { %v57_v17 = vpop.permute.xlu0 %56  }
  0x89   :  { %69 = vst.msk [vmem:[%s137_s1 + $0x7] ss:$16 sm:$0x3] %vm12_vm0, %v57_v17  }

// kernel: net_forward.5
= control target key start
LH: loop header
LB: loop body
LE: loop exit
PB: predicated region body
PF: predicated region fallthrough
CT: control target
= control target key end

     0   :  { %s1079_s6 = smov 0   ;;  %s2012_s0 = inlined_call_operand.vmem [shape: f32[2,323,128], index: 0, kind: input, shape index: {}]   ;;  %s2013_s1 = inlined_call_operand.vmem [shape: f32[2,144,1], index: 1, kind: output, shape index: {}]  }
   0x1 LB: > { %s1013_s7 = sadd.s32 4294967295, %s1067_s6   ;;  %p1017_p0 = scmp.ge.s32.totalorder %s1067_s6, 1  ;;  %s1067_s6 = sphi %s1079_s6, %s11_s6  }
   0x2   : > { %p87_p1 = scmp.lt.s32.totalorder %s1067_s6, 3 }
   0x4   : > { %p88_p2 = pnand %p1017_p0, %p87_p1 }
   0x6   : > { %91 = sbr.rel (%p88_p2) target bundleno = 309 (0x135), region = 24 }
   0xb   : > { %p107_p3 = scmp.lt.s32.totalorder %s1013_s7, 1  ;;  %vm939_vm0 = vcmask 7168  }
   0xd   : > { %s2035_s7 = smov (!%p107_p3, %s1013_s7), 1 }
   0xe   : > { %s1038_s8 = smul.u32 328, %s2035_s7 }
   0xf   : > { %s1039_s12 = smul.u32 144, %s2035_s7 }
  0x10   : > { %s1093_s11 = scalar_lea.vmem %s2012_s0, %s1038_s8 }
  0x11   : > { %v1096_v0 = vld [vmem:[%s1093_s11] ss:$0 sm:$0xff]  ;;  %v1099_v1 = vld [vmem:[%s1093_s11 + $0x90] sm:$0xff]  ;;  %v1115_v7 = vld [vmem:[%s1093_s11 + $0x1] ss:$0 sm:$0xff]  ;;  %s1971_s15 = scalar_lea.vmem %s2013_s1, %s1039_s12 }
  0x12   : > { %v1102_v2 = vld [vmem:[%s1093_s11 + $0xa0] sm:$0xff]  ;;  %v1105_v3 = vld [vmem:[%s1093_s11 + $0xb0] sm:$0xff]  ;;  %v142_v5 = vmul.f32 %v1096_v0, %v1099_v1 }
  0x13   : > { %v1108_v4 = vld [vmem:[%s1093_s11 + $0xc0] sm:$0xff]  ;;  %v144_v6 = vmul.f32 %v1096_v0, %v1102_v2  ;;  %v146_v8 = vmul.f32 %v1096_v0, %v1105_v3  ;;  %v1122_v10 = vld [vmem:[%s1093_s11 + $0x91] sm:$0xff]  ;;  %v1177_v35 = vld [vmem:[%s1093_s11 + $0x10] ss:$0 sm:$0xff] }
  0x14   : > { %v148_v9 = vmul.f32 %v1096_v0, %v1108_v4  ;;  %v1125_v11 = vld [vmem:[%s1093_s11 + $0xa1] sm:$0xff]  ;;  %v1128_v12 = vld [vmem:[%s1093_s11 + $0xb1] sm:$0xff]  ;;  %v201_v14 = vmul.f32 %v1115_v7, %v1122_v10  ;;  %v362_v43 = vmul.f32 %v1177_v35, %v1102_v2  ;;  %v364_v44 = vmul.f32 %v1177_v35, %v1105_v3  ;;  %v1209_v57 = vld [vmem:[%s1093_s11 + $0x20] ss:$0 sm:$0xff] }
  0x15   : > { %v1131_v13 = vld [vmem:[%s1093_s11 + $0xc1] sm:$0xff]  ;;  %v203_v15 = vmul.f32 %v1115_v7, %v1125_v11  ;;  %v205_v16 = vmul.f32 %v1115_v7, %v1128_v12  ;;  %v1143_v18 = vld [vmem:[%s1093_s11 + $0x92] sm:$0xff]  ;;  %v1180_v36 = vld [vmem:[%s1093_s11 + $0x11] ss:$0 sm:$0xff]  ;;  %v366_v48 = vmul.f32 %v1177_v35, %v1108_v4 }
  0x16   : > { %v1140_v17 = vld [vmem:[%s1093_s11 + $0x2] ss:$0 sm:$0xff]  ;;  %v207_v19 = vmul.f32 %v1115_v7, %v1131_v13  ;;  %v1151_v21 = vld [vmem:[%s1093_s11 + $0xb2] sm:$0xff]  ;;  %v219_v24 = vadd.f32 %v201_v14, %v142_v5  ;;  %v1161_v28 = vld [vmem:[%s1093_s11 + $0x3] ss:$0 sm:$0xff]  ;;  %v405_v49 = vmul.f32 %v1180_v36, %v1125_v11  ;;  %v407_v51 = vmul.f32 %v1180_v36, %v1128_v12 }
  0x17   : > { %v1148_v20 = vld [vmem:[%s1093_s11 + $0xa2] sm:$0xff]  ;;  %v260_v23 = vmul.f32 %v1140_v17, %v1143_v18  ;;  %v221_v25 = vadd.f32 %v203_v15, %v144_v6  ;;  %v223_v26 = vadd.f32 %v205_v16, %v146_v8  ;;  %v1164_v29 = vld [vmem:[%s1093_s11 + $0x93] sm:$0xff]  ;;  %v264_v32 = vmul.f32 %v1140_v17, %v1151_v21  ;;  %v1193_v45 = vld [vmem:[%s1093_s11 + $0x12] ss:$0 sm:$0xff] }
  0x18   : > { %v1154_v22 = vld [vmem:[%s1093_s11 + $0xc2] sm:$0xff]  ;;  %v262_v27 = vmul.f32 %v1140_v17, %v1148_v20  ;;  %v225_v31 = vadd.f32 %v207_v19, %v148_v9  ;;  %v1172_v33 = vld [vmem:[%s1093_s11 + $0xb3] sm:$0xff]  ;;  %v319_v34 = vmul.f32 %v1161_v28, %v1164_v29  ;;  %v409_v52 = vmul.f32 %v1180_v36, %v1131_v13  ;;  %v1214_v60 = vld [vmem:[%s1093_s11 + $0x21] ss:$0 sm:$0xff] }
  0x19   : > { %v1167_v30 = vld [vmem:[%s1093_s11 + $0xa3] sm:$0xff]  ;;  %v278_v37 = vadd.f32 %v260_v23, %v219_v24  ;;  %v323_v40 = vmul.f32 %v1161_v28, %v1172_v33  ;;  %v266_v41 = vmul.f32 %v1140_v17, %v1154_v22  ;;  %v282_v42 = vadd.f32 %v264_v32, %v223_v26  ;;  %v1204_v53 = vld [vmem:[%s1093_s11 + $0x13] ss:$0 sm:$0xff]  ;;  %v1221_v6 = vld [vmem:[%s1093_s11 + $0x22] ss:$0 sm:$0xff] }
  0x1a   : > { %v280_v38 = vadd.f32 %v262_v27, %v221_v25  ;;  %v321_v39 = vmul.f32 %v1161_v28, %v1167_v30  ;;  %v448_v56 = vmul.f32 %v1193_v45, %v1148_v20  ;;  %v450_v59 = vmul.f32 %v1193_v45, %v1151_v21  ;;  %v1224_v8 = vld [vmem:[%s1093_s11 + $0x23] ss:$0 sm:$0xff]  ;;  %v1233_v19 = vld [vmem:[%s1093_s11 + $0x30] ss:$0 sm:$0xff]  ;;  %v1248_v32 = vld [vmem:[%s1093_s11 + $0x31] ss:$0 sm:$0xff] }
  0x1b   : > { %v337_v46 = vadd.f32 %v319_v34, %v278_v37  ;;  %v341_v50 = vadd.f32 %v323_v40, %v282_v42  ;;  %v1216_v61 = vadd.f32 %v266_v41, %v225_v31  ;;  %v491_v5 = vmul.f32 %v1204_v53, %v1167_v30  ;;  %v118_v23 = vld [vmem:[%s1093_s11 + $0x80] sm:$0xff]  ;;  %v1251_v34 = vld [vmem:[%s1093_s11 + $0x32] ss:$0 sm:$0xff]  ;;  %v1263_v42 = vld [vmem:[%s1093_s11 + $0x33] ss:$0 sm:$0xff] }
  0x1c   : > { %v339_v47 = vadd.f32 %v321_v39, %v280_v38  ;;  %v452_v14 = vmul.f32 %v1193_v45, %v1154_v22  ;;  %v493_v15 = vmul.f32 %v1204_v53, %v1172_v33  ;;  %v534_v16 = vmul.f32 %v1209_v57, %v1105_v3  ;;  %v177_v24 = vld [vmem:[%s1093_s11 + $0x81] sm:$0xff] }
  0x1d   : > { %v380_v54 = vadd.f32 %v362_v43, %v337_v46  ;;  %v384_v58 = vadd.f32 %v366_v48, %v341_v50  ;;  %2016 = vst [vmem:[#allocation2_spill] sm:$0xff] %v1216_v61  ;;  %v1239_v26 = vmul.f32 %v1209_v57, %v1108_v4  ;;  %v577_v27 = vmul.f32 %v1214_v60, %v1128_v12  ;;  %v236_v37 = vld [vmem:[%s1093_s11 + $0x82] sm:$0xff] }
  0x1e   : > { %v382_v55 = vadd.f32 %v364_v44, %v339_v47  ;;  %v1245_v31 = vmul.f32 %v1214_v60, %v1131_v13  ;;  %v620_v39 = vmul.f32 %v1221_v6, %v1151_v21  ;;  %v1258_v40 = vmul.f32 %v1221_v6, %v1154_v22  ;;  %v295_v43 = vld [vmem:[%s1093_s11 + $0x83] sm:$0xff] }
  0x1f   : > { %v423_v62 = vadd.f32 %v405_v49, %v380_v54  ;;  %v427_v9 = vadd.f32 %v409_v52, %v384_v58  ;;  %2017 = vst [vmem:[#allocation3_spill] sm:$0xff] %v1239_v26  ;;  %v663_v41 = vmul.f32 %v1224_v8, %v1172_v33  ;;  %v706_v46 = vmul.f32 %v1233_v19, %v1108_v4  ;;  %v1279_v52 = vld [vmem:[%s1093_s11 + $0xc3] sm:$0xff]  ;;  %v1394_v26 = vld [vmem:[%s1093_s11 + $0xab] sm:$0xff] }
  0x20   : > { %v425_v63 = vadd.f32 %v407_v51, %v382_v55  ;;  %2018 = vst [vmem:[#allocation4_spill] sm:$0xff] %v1245_v31  ;;  %2019 = vst [vmem:[#allocation5_spill] sm:$0xff] %v1258_v40  ;;  %v140_v47 = vmul.f32 %v1096_v0, %v118_v23  ;;  %v199_v48 = vmul.f32 %v1115_v7, %v177_v24  ;;  %v1306_v23 = vld [vmem:[%s1093_s11 + $0xc8] sm:$0xff]  ;;  %v1312_v24 = vld [vmem:[%s1093_s11 + $0xb9] sm:$0xff] }
  0x21   : > { %v466_v25 = vadd.f32 %v448_v56, %v423_v62  ;;  %v1270_v49 = vadd.f32 %v452_v14, %v427_v9  ;;  %v749_v50 = vmul.f32 %v1248_v32, %v1131_v13  ;;  %v1276_v51 = vmul.f32 %v1251_v34, %v1154_v22  ;;  %2021 = vst [vmem:[#allocation7_spill] sm:$0xff] %v1279_v52  ;;  %v1288_v13 = vld [vmem:[%s1093_s11 + $0x98] sm:$0xff]  ;;  %v241_v31 = vld [vmem:[%s1093_s11 + $0xaa] sm:$0xff] }
  0x22   : > { %v468_v38 = vadd.f32 %v450_v59, %v425_v63  ;;  %v258_v54 = vmul.f32 %v1140_v17, %v236_v37  ;;  %v1284_v55 = vmul.f32 %v1263_v42, %v1279_v52  ;;  %v217_v56 = vadd.f32 %v199_v48, %v140_v47 }
  0x23   : > { %v509_v44 = vadd.f32 %v491_v5, %v466_v25  ;;  %2020 = vst [vmem:[#allocation6_spill] sm:$0xff] %v1270_v49  ;;  %v317_v58 = vmul.f32 %v1161_v28, %v295_v43  ;;  %v360_v22 = vmul.f32 %v1177_v35, %v1099_v1  ;;  %v403_v62 = vmul.f32 %v1180_v36, %v1122_v10  ;;  %v1299_v5 = vld [vmem:[%s1093_s11 + $0xb8] sm:$0xff]  ;;  %v1329_v25 = vld [vmem:[%s1093_s11 + $0xc9] sm:$0xff] }
  0x24   : > { %v1290_v59 = vadd.f32 %v493_v15, %v468_v38  ;;  %v446_v63 = vmul.f32 %v1193_v45, %v1143_v18  ;;  %v276_v14 = vadd.f32 %v258_v54, %v217_v56  ;;  %v489_v15 = vmul.f32 %v1204_v53, %v1164_v29  ;;  %v1309_v1 = vld [vmem:[%s1093_s11 + $0x99] sm:$0xff] }
  0x25   : > { %v552_v4 = vadd.f32 %v534_v16, %v509_v44  ;;  %v532_v16 = vmul.f32 %v1209_v57, %v1102_v2  ;;  %v1316_v10 = vmul.f32 %v1214_v60, %v1125_v11  ;;  %v1320_v18 = vmul.f32 %v1221_v6, %v1148_v20 }
  0x26   : > { %2022 = vst [vmem:[#allocation8_spill] sm:$0xff] %v1290_v59  ;;  %v1324_v29 = vmul.f32 %v1224_v8, %v1167_v30  ;;  %v143_v2 = vmul.f32 %v1096_v0, %v1288_v13  ;;  %v335_v11 = vadd.f32 %v317_v58, %v276_v14  ;;  %v1336_v38 = vmul.f32 %v1233_v19, %v1105_v3  ;;  %v1341_v30 = vld [vmem:[%s1093_s11 + $0xba] sm:$0xff] }
  0x27   : > { %v595_v9 = vadd.f32 %v577_v27, %v552_v4  ;;  %v1332_v27 = vld [vmem:[%s1093_s11 + $0x9a] sm:$0xff]  ;;  %v147_v20 = vmul.f32 %v1096_v0, %v1299_v5  ;;  %v1345_v43 = vmul.f32 %v1248_v32, %v1128_v12  ;;  %v149_v44 = vmul.f32 %v1096_v0, %v1306_v23  ;;  %v1357_v4 = vld [vmem:[%s1093_s11 + $0xa8] sm:$0xff] }
  0x28   : > { %v206_v47 = vmul.f32 %v1115_v7, %v1312_v24  ;;  %v1354_v3 = vld [vmem:[%s1093_s11 + $0x9b] sm:$0xff]  ;;  %v378_v54 = vadd.f32 %v360_v22, %v335_v11  ;;  %v208_v12 = vmul.f32 %v1115_v7, %v1329_v25  ;;  %v261_v56 = vmul.f32 %v1140_v17, %v1332_v27 }
  0x29   : > { %v638_v37 = vadd.f32 %v620_v39, %v595_v9  ;;  %v202_v39 = vmul.f32 %v1115_v7, %v1309_v1  ;;  %v1364_v58 = vld [vmem:[%s1093_s11 + $0xbb] sm:$0xff]  ;;  %v1368_v9 = vmul.f32 %v1251_v34, %v1151_v21  ;;  %v1374_v11 = vmul.f32 %v1263_v42, %v1172_v33 }
  0x2a   : > { %v224_v49 = vadd.f32 %v206_v47, %v147_v20  ;;  %v320_v40 = vmul.f32 %v1161_v28, %v1354_v3  ;;  %v1380_v21 = vmul.f32 %v1096_v0, %v1357_v4  ;;  %v324_v47 = vmul.f32 %v1161_v28, %v1364_v58 }
  0x2b   : > { %v681_v48 = vadd.f32 %v663_v41, %v638_v37  ;;  %v220_v14 = vadd.f32 %v202_v39, %v143_v2  ;;  %v265_v41 = vmul.f32 %v1140_v17, %v1341_v30  ;;  %v421_v37 = vadd.f32 %v403_v62, %v378_v54  ;;  %v1383_v2 = vld [vmem:[%s1093_s11 + $0xca] sm:$0xff] }
  0x2c   : > { %v226_v33 = vadd.f32 %v208_v12, %v149_v44  ;;  %v363_v54 = vmul.f32 %v1177_v35, %v1357_v4  ;;  %v267_v44 = vmul.f32 %v1140_v17, %v1383_v2  ;;  %v410_v12 = vmul.f32 %v1180_v36, %v1329_v25 }
  0x2d   : > { %v724_v22 = vadd.f32 %v706_v46, %v681_v48  ;;  %v279_v20 = vadd.f32 %v261_v56, %v220_v14  ;;  %v283_v39 = vadd.f32 %v265_v41, %v224_v49  ;;  %v464_v62 = vadd.f32 %v446_v63, %v421_v37  ;;  %v1388_v48 = vld [vmem:[%s1093_s11 + $0xa9] sm:$0xff] }
  0x2e   : > { %v367_v56 = vmul.f32 %v1177_v35, %v1306_v23  ;;  %v406_v49 = vmul.f32 %v1180_v36, %v1388_v48 }
  0x2f   : > { %v767_v46 = vadd.f32 %v749_v50, %v724_v22  ;;  %v338_v59 = vadd.f32 %v320_v40, %v279_v20  ;;  %v342_v61 = vadd.f32 %v324_v47, %v283_v39  ;;  %v507_v63 = vadd.f32 %v489_v15, %v464_v62  ;;  %v178_v62 = vld [vmem:[%s1093_s11 + $0x89] sm:$0xff] }
  0x30   : > { %v204_v40 = vmul.f32 %v1115_v7, %v1388_v48  ;;  %v449_v22 = vmul.f32 %v1193_v45, %v241_v31  ;;  %v263_v15 = vmul.f32 %v1140_v17, %v241_v31  ;;  %v1412_v20 = vmul.f32 %v1161_v28, %v1394_v26 }
  0x31   : > { %v810_v50 = vadd.f32 %v1276_v51, %v767_v46  ;;  %v381_v14 = vadd.f32 %v363_v54, %v338_v59  ;;  %v385_v41 = vadd.f32 %v367_v56, %v342_v61  ;;  %v550_v51 = vadd.f32 %v532_v16, %v507_v63  ;;  %v119_v59 = vld [vmem:[%s1093_s11 + $0x88] sm:$0xff] }
  0x32   : > { %v453_v46 = vmul.f32 %v1193_v45, %v1383_v2  ;;  %v492_v61 = vmul.f32 %v1204_v53, %v1394_v26  ;;  %v237_v54 = vld [vmem:[%s1093_s11 + $0x8a] sm:$0xff]  ;;  %v285_v16 = vadd.f32 %v267_v44, %v226_v33  ;;  %v1424_v56 = vmul.f32 %v1204_v53, %v1364_v58 }
  0x33   : > { %v869_v37 = vadd.f32 %v1284_v55, %v810_v50  ;;  %v424_v39 = vadd.f32 %v406_v49, %v381_v14  ;;  %v428_v47 = vadd.f32 %v410_v12, %v385_v41  ;;  %v593_v55 = vadd.f32 %v1316_v10, %v550_v51  ;;  %v296_v10 = vld [vmem:[%s1093_s11 + $0x8b] sm:$0xff] }
  0x34   : > { %2023 = vst [vmem:[#allocation9_spill] sm:$0xff] %v1424_v56  ;;  %v535_v49 = vmul.f32 %v1209_v57, %v1299_v5  ;;  %v578_v63 = vmul.f32 %v1214_v60, %v1312_v24  ;;  %v621_v12 = vmul.f32 %v1221_v6, %v1341_v30  ;;  %v664_v14 = vmul.f32 %v1224_v8, %v1364_v58 }
  0x35   : > { %889 = vadd.xlane.f32.xlu1 %v869_v37  ;;  %v467_v50 = vadd.f32 %v449_v22, %v424_v39  ;;  %v636_v33 = vadd.f32 %v1320_v18, %v593_v55  ;;  %v141_v44 = vmul.f32 %v1096_v0, %v119_v59  ;;  %v200_v41 = vmul.f32 %v1115_v7, %v178_v62  ;;  %v1449_v59 = vld [vmem:[%s1093_s11 + $0xcb] sm:$0xff] }
  0x36   : > { %v259_v22 = vmul.f32 %v1140_v17, %v237_v54  ;;  %v1439_v37 = vadd.f32 %v453_v46, %v428_v47  ;;  %v707_v39 = vmul.f32 %v1233_v19, %v1306_v23  ;;  %v750_v56 = vmul.f32 %v1248_v32, %v1329_v25 }
  0x37   : > { %v510_v51 = vadd.f32 %v492_v61, %v467_v50  ;;  %v679_v52 = vadd.f32 %v1324_v29, %v636_v33  ;;  %v793_v18 = vmul.f32 %v1251_v34, %v1383_v2  ;;  %v218_v62 = vadd.f32 %v200_v41, %v141_v44  ;;  %v1459_v29 = vld [vmem:[%s1093_s11 + $0xd8] sm:$0xff] }
  0x38   : > { %2024 = vst [vmem:[#allocation10_spill] sm:$0xff] %v1439_v37  ;;  %v318_v54 = vmul.f32 %v1161_v28, %v296_v10  ;;  %v852_v46 = vmul.f32 %v1263_v42, %v1449_v59  ;;  %v361_v61 = vmul.f32 %v1177_v35, %v1288_v13  ;;  %v404_v55 = vmul.f32 %v1180_v36, %v1309_v1  ;;  %v1462_v50 = vld [vmem:[%s1093_s11 + $0xd9] sm:$0xff] }
  0x39   : > { %v553_v47 = vadd.f32 %v535_v49, %v510_v51  ;;  %v722_v33 = vadd.f32 %v1336_v38, %v679_v52  ;;  %v277_v44 = vadd.f32 %v259_v22, %v218_v62  ;;  %v447_v10 = vmul.f32 %v1193_v45, %v1332_v27  ;;  %v1477_v37 = vld [vmem:[%s1093_s11 + $0xda] sm:$0xff] }
  0x3a   : > { %v490_v49 = vmul.f32 %v1204_v53, %v1354_v3  ;;  %v533_v13 = vmul.f32 %v1209_v57, %v1357_v4  ;;  %v576_v1 = vmul.f32 %v1214_v60, %v1388_v48  ;;  %v1474_v51 = vmul.f32 %v1221_v6, %v241_v31 }
  0x3b   : > { %v596_v41 = vadd.f32 %v578_v63, %v553_v47  ;;  %v765_v52 = vadd.f32 %v1345_v43, %v722_v33  ;;  %v336_v38 = vadd.f32 %v318_v54, %v277_v44  ;;  %v151_v27 = vmul.f32 %v1096_v0, %v1459_v29 }
  0x3c   : > { %v210_v3 = vmul.f32 %v1115_v7, %v1462_v50  ;;  %v1486_v4 = vmul.f32 %v1224_v8, %v1394_v26  ;;  %v222_v48 = vadd.f32 %v204_v40, %v1380_v21  ;;  %v326_v31 = vmul.f32 %v1161_v28, %v1449_v59 }
  0x3d   : > { %v639_v63 = vadd.f32 %v621_v12, %v596_v41  ;;  %v808_v22 = vadd.f32 %v1368_v9, %v765_v52  ;;  %v379_v43 = vadd.f32 %v361_v61, %v336_v38  ;;  %v269_v62 = vmul.f32 %v1140_v17, %v1477_v37 }
  0x3e   : > { %v365_v54 = vmul.f32 %v1177_v35, %v1299_v5  ;;  %v281_v12 = vadd.f32 %v263_v15, %v222_v48  ;;  %v344_v33 = vadd.f32 %v326_v31, %v285_v16  ;;  %v369_v26 = vmul.f32 %v1177_v35, %v1459_v29  ;;  %v1524_v48 = vld [vmem:[%s1093_s11 + $0xd1] sm:$0xff] }
  0x3f   : > { %v682_v47 = vadd.f32 %v664_v14, %v639_v63  ;;  %v867_v21 = vadd.f32 %v1374_v11, %v808_v22  ;;  %v422_v40 = vadd.f32 %v404_v55, %v379_v43  ;;  %v228_v44 = vadd.f32 %v210_v3, %v151_v27 }
  0x40   : > { %v408_v9 = vmul.f32 %v1180_v36, %v1312_v24  ;;  %v340_v41 = vadd.f32 %v1412_v20, %v281_v12  ;;  %v387_v52 = vadd.f32 %v369_v26, %v344_v33  ;;  %v412_v15 = vmul.f32 %v1180_v36, %v1462_v50  ;;  %v1547_v33 = vld [vmem:[%s1093_s11 + $0xd2] sm:$0xff] }
  0x41   : > { %v725_v61 = vadd.f32 %v707_v39, %v682_v47  ;;  %885 = vadd.xlane.f32.xlu0 %v867_v21  ;;  %v465_v16 = vadd.f32 %v447_v10, %v422_v40  ;;  %v705_v14 = vmul.f32 %v1233_v19, %v1299_v5  ;;  %v748_v11 = vmul.f32 %v1248_v32, %v1312_v24  ;;  %v1521_v24 = vld [vmem:[%s1093_s11 + $0xd0] sm:$0xff]  ;;  %v1557_v40 = vld [vmem:[%s1093_s11 + $0xdb] sm:$0xff] }
  0x42   : > { %v1510_v55 = vmul.f32 %v1251_v34, %v1341_v30  ;;  %v1514_v20 = vmul.f32 %v1263_v42, %v1364_v58  ;;  %v383_v38 = vadd.f32 %v365_v54, %v340_v41  ;;  %v451_v27 = vmul.f32 %v1193_v45, %v1341_v30  ;;  %v2027_v41 = vld [vmem:[#allocation2_spill] sm:$0xff] }
  0x43   : > { %v768_v39 = vadd.f32 %v750_v56, %v725_v61  ;;  %v508_v10 = vadd.f32 %v490_v49, %v465_v16  ;;  %v287_v3 = vadd.f32 %v269_v62, %v228_v44  ;;  %v430_v63 = vadd.f32 %v412_v15, %v387_v52  ;;  %v2028_v15 = vld [vmem:[#allocation8_spill] sm:$0xff]  ;;  %v2029_v16 = vld [vmem:[#allocation3_spill] sm:$0xff] }
  0x44   : > { %v455_v5 = vmul.f32 %v1193_v45, %v1477_v37  ;;  %v426_v31 = vadd.f32 %v408_v9, %v383_v38  ;;  %v1528_v58 = vmul.f32 %v1204_v53, %v1449_v59  ;;  %v537_v30 = vmul.f32 %v1209_v57, %v1306_v23 }
  0x45   : > { %v811_v56 = vadd.f32 %v793_v18, %v768_v39  ;;  %v551_v49 = vadd.f32 %v533_v13, %v508_v10  ;;  %v580_v22 = vmul.f32 %v1214_v60, %v1329_v25  ;;  %v623_v43 = vmul.f32 %v1221_v6, %v1383_v2  ;;  %v2025_v2 = vld [vmem:[#allocation7_spill] sm:$0xff] }
  0x46   : > { %v666_v62 = vmul.f32 %v1224_v8, %v1449_v59  ;;  %v469_v54 = vadd.f32 %v451_v27, %v426_v31  ;;  %v150_v47 = vmul.f32 %v1096_v0, %v1521_v24  ;;  %v209_v12 = vmul.f32 %v1115_v7, %v1524_v48 }
  0x47   : > { %v870_v18 = vadd.f32 %v852_v46, %v811_v56  ;;  %v594_v23 = vadd.f32 %v576_v1, %v551_v49  ;;  %v1542_v13 = vadd.f32 %v455_v5, %v430_v63  ;;  %v709_v25 = vmul.f32 %v1233_v19, %v1459_v29  ;;  %v2026_v46 = vld [vmem:[#allocation9_spill] sm:$0xff]  ;;  %v1574_v5 = vld [vmem:[%s1093_s11 + $0xe8] sm:$0xff]  ;;  %v2030_v49 = vld [vmem:[#allocation4_spill] sm:$0xff] }
  0x48   : > { %v325_v59 = vmul.f32 %v1161_v28, %v2025_v2  ;;  %v512_v26 = vadd.f32 %v2026_v46, %v469_v54  ;;  %v752_v21 = vmul.f32 %v1248_v32, %v1462_v50  ;;  %v795_v1 = vmul.f32 %v1251_v34, %v1477_v37  ;;  %v2031_v46 = vld [vmem:[#allocation5_spill] sm:$0xff] }
  0x49   : > { %891 = vadd.xlane.f32.xlu1 %v870_v18  ;;  %v368_v44 = vmul.f32 %v1177_v35, %v1521_v24  ;;  %v637_v9 = vadd.f32 %v1474_v51, %v594_v23  ;;  %v1564_v61 = vmul.f32 %v1263_v42, %v1557_v40  ;;  %v554_v39 = vadd.f32 %v2029_v16, %v2028_v15  ;;  %v1577_v51 = vld [vmem:[%s1093_s11 + $0xe9] sm:$0xff] }
  0x4a   : > { %v343_v52 = vadd.f32 %v325_v59, %v2027_v41  ;;  %v555_v38 = vadd.f32 %v537_v30, %v512_v26  ;;  %v227_v27 = vadd.f32 %v209_v12, %v150_v47  ;;  %v268_v10 = vmul.f32 %v1140_v17, %v1547_v33  ;;  %v1597_v41 = vld [vmem:[%s1093_s11 + $0xea] sm:$0xff] }
  0x4b   : > { %v411_v63 = vmul.f32 %v1180_v36, %v1524_v48  ;;  %v680_v56 = vadd.f32 %v1486_v4, %v637_v9  ;;  %v454_v31 = vmul.f32 %v1193_v45, %v1547_v33  ;;  %v597_v18 = vadd.f32 %v2030_v49, %v554_v39 }
  0x4c   : > { %v665_v30 = vmul.f32 %v1224_v8, %v2025_v2  ;;  %v598_v54 = vadd.f32 %v580_v22, %v555_v38  ;;  %v386_v47 = vadd.f32 %v368_v44, %v343_v52  ;;  %v1587_v12 = vmul.f32 %v1204_v53, %v2025_v2 }
  0x4d   : > { %v708_v23 = vmul.f32 %v1233_v19, %v1521_v24  ;;  %v723_v59 = vadd.f32 %v705_v14, %v680_v56  ;;  %v640_v4 = vadd.f32 %v2031_v46, %v597_v18  ;;  %v153_v26 = vmul.f32 %v1096_v0, %v1574_v5  ;;  %v2032_v46 = vld [vmem:[#allocation10_spill] sm:$0xff] }
  0x4e   : > { %v212_v9 = vmul.f32 %v1115_v7, %v1577_v51  ;;  %v641_v22 = vadd.f32 %v623_v43, %v598_v54  ;;  %v286_v44 = vadd.f32 %v268_v10, %v227_v27  ;;  %v328_v2 = vmul.f32 %v1161_v28, %v1557_v40  ;;  %v831_v54 = vld [vmem:[%s1093_s11 + $0xd3] sm:$0xff] }
  0x4f   : > { %v371_v52 = vmul.f32 %v1177_v35, %v1574_v5  ;;  %v766_v14 = vadd.f32 %v748_v11, %v723_v59  ;;  %v683_v15 = vadd.f32 %v665_v30, %v640_v4  ;;  %v751_v16 = vmul.f32 %v1248_v32, %v1524_v48 }
  0x50   : > { %v794_v39 = vmul.f32 %v1251_v34, %v1547_v33  ;;  %v684_v38 = vadd.f32 %v666_v62, %v641_v22  ;;  %v429_v56 = vadd.f32 %v411_v63, %v386_v47  ;;  %v271_v43 = vmul.f32 %v1140_v17, %v1597_v41  ;;  %v1629_v22 = vld [vmem:[%s1093_s11 + $0xe1] sm:$0xff] }
  0x51   : > { %v346_v27 = vadd.f32 %v328_v2, %v287_v3  ;;  %v809_v10 = vadd.f32 %v1510_v55, %v766_v14  ;;  %v726_v49 = vadd.f32 %v708_v23, %v683_v15  ;;  %v230_v18 = vadd.f32 %v212_v9, %v153_v26 }
  0x52   : > { %v414_v11 = vmul.f32 %v1180_v36, %v1577_v51  ;;  %v727_v30 = vadd.f32 %v709_v25, %v684_v38  ;;  %v514_v62 = vadd.f32 %v1528_v58, %v2032_v46  ;;  %v539_v63 = vmul.f32 %v1209_v57, %v1459_v29  ;;  %v1626_v58 = vld [vmem:[%s1093_s11 + $0xe0] sm:$0xff] }
  0x53   : > { %v389_v59 = vadd.f32 %v371_v52, %v346_v27  ;;  %v868_v3 = vadd.f32 %v1514_v20, %v809_v10  ;;  %v769_v47 = vadd.f32 %v751_v16, %v726_v49  ;;  %v853_v55 = vmul.f32 %v1263_v42, %v831_v54 }
  0x54   : > { %v582_v23 = vmul.f32 %v1214_v60, %v1462_v50  ;;  %v770_v4 = vadd.f32 %v752_v21, %v727_v30  ;;  %v1621_v26 = vadd.f32 %v454_v31, %v429_v56  ;;  %v557_v25 = vadd.f32 %v539_v63, %v514_v62  ;;  %v1662_v63 = vld [vmem:[%s1093_s11 + $0xf8] sm:$0xff] }
  0x55   : > { %v625_v9 = vmul.f32 %v1221_v6, %v1477_v37  ;;  %887 = vadd.xlane.f32.xlu0 %v868_v3  ;;  %v812_v29 = vadd.f32 %v794_v39, %v769_v47  ;;  %v289_v20 = vadd.f32 %v271_v43, %v230_v18  ;;  %v457_v2 = vmul.f32 %v1193_v45, %v1597_v41  ;;  %v1638_v37 = vld [vmem:[%s1093_s11 + $0xe2] sm:$0xff] }
  0x56   : > { %v498_v50 = vmul.f32 %v1204_v53, %v1557_v40  ;;  %v813_v21 = vadd.f32 %v795_v1, %v770_v4  ;;  %v432_v31 = vadd.f32 %v414_v11, %v389_v59  ;;  %v600_v52 = vadd.f32 %v582_v23, %v557_v25  ;;  %v834_v11 = vld [vmem:[%s1093_s11 + $0xeb] sm:$0xff]  ;;  %v2033_v59 = vld [vmem:[#allocation6_spill] sm:$0xff] }
  0x57   : > { %v668_v14 = vmul.f32 %v1224_v8, %v1557_v40  ;;  %v871_v15 = vadd.f32 %v853_v55, %v812_v29  ;;  %v711_v16 = vmul.f32 %v1233_v19, %v1574_v5  ;;  %v152_v39 = vmul.f32 %v1096_v0, %v1626_v58 }
  0x58   : > { %v211_v38 = vmul.f32 %v1115_v7, %v1629_v22  ;;  %v872_v1 = vadd.f32 %v1564_v61, %v813_v21  ;;  %v643_v56 = vadd.f32 %v625_v9, %v600_v52  ;;  %v327_v43 = vmul.f32 %v1161_v28, %v831_v54 }
  0x59   : > { %v370_v40 = vmul.f32 %v1177_v35, %v1626_v58  ;;  %893 = vadd.xlane.f32.xlu0 %v871_v15  ;;  %v754_v27 = vmul.f32 %v1248_v32, %v1577_v51  ;;  %v797_v10 = vmul.f32 %v1251_v34, %v1597_v41  ;;  %v270_v18 = vmul.f32 %v1140_v17, %v1638_v37  ;;  %v1685_v15 = vld [vmem:[%s1093_s11 + $0xfa] sm:$0xff] }
  0x5a   : > { %v229_v49 = vadd.f32 %v211_v38, %v152_v39  ;;  %895 = vadd.xlane.f32.xlu1 %v872_v1  ;;  %v686_v61 = vadd.f32 %v668_v14, %v643_v56  ;;  %v345_v30 = vadd.f32 %v327_v43, %v286_v44  ;;  %v513_v46 = vadd.f32 %v1587_v12, %v2033_v59  ;;  %v1672_v44 = vld [vmem:[%s1093_s11 + $0xf9] sm:$0xff] }
  0x5b   : > { %v538_v62 = vmul.f32 %v1209_v57, %v1521_v24  ;;  %v1664_v3 = vadd.f32 %v457_v2, %v432_v31  ;;  %v856_v47 = vmul.f32 %v1263_v42, %v834_v11  ;;  %v413_v55 = vmul.f32 %v1180_v36, %v1629_v22 }
  0x5c   : > { %v581_v23 = vmul.f32 %v1214_v60, %v1524_v48  ;;  %v729_v4 = vadd.f32 %v711_v16, %v686_v61  ;;  %v388_v12 = vadd.f32 %v370_v40, %v345_v30  ;;  %v624_v24 = vmul.f32 %v1221_v6, %v1547_v33  ;;  %v833_v40 = vld [vmem:[%s1093_s11 + $0xe3] sm:$0xff] }
  0x5d   : > { %v556_v25 = vadd.f32 %v538_v62, %v513_v46  ;;  %v288_v9 = vadd.f32 %v270_v18, %v229_v49  ;;  %v456_v29 = vmul.f32 %v1193_v45, %v1638_v37  ;;  %v497_v2 = vmul.f32 %v1204_v53, %v831_v54  ;;  %v1704_v62 = vld [vmem:[%s1093_s11 + $0xf0] sm:$0xff] }
  0x5e   : > { %v155_v21 = vmul.f32 %v1096_v0, %v1662_v63  ;;  %v772_v31 = vadd.f32 %v754_v27, %v729_v4  ;;  %v667_v52 = vmul.f32 %v1224_v8, %v831_v54  ;;  %v214_v14 = vmul.f32 %v1115_v7, %v1672_v44 }
  0x5f   : > { %v599_v48 = vadd.f32 %v581_v23, %v556_v25  ;;  %v431_v33 = vadd.f32 %v413_v55, %v388_v12  ;;  %v710_v16 = vmul.f32 %v1233_v19, %v1626_v58  ;;  %v330_v39 = vmul.f32 %v1161_v28, %v834_v11 }
  0x60   : > { %v373_v38 = vmul.f32 %v1177_v35, %v1662_v63  ;;  %v815_v1 = vadd.f32 %v797_v10, %v772_v31  ;;  %v753_v54 = vmul.f32 %v1248_v32, %v1629_v22  ;;  %v796_v43 = vmul.f32 %v1251_v34, %v1638_v37 }
  0x61   : > { %v642_v56 = vadd.f32 %v624_v24, %v599_v48  ;;  %v232_v27 = vadd.f32 %v214_v14, %v155_v21  ;;  %v273_v49 = vmul.f32 %v1140_v17, %v1685_v15  ;;  %v348_v18 = vadd.f32 %v330_v39, %v289_v20  ;;  %v1724_v21 = vld [vmem:[%s1093_s11 + $0xf2] sm:$0xff] }
  0x62   : > { %v516_v61 = vadd.f32 %v498_v50, %v1542_v13  ;;  %v874_v30 = vadd.f32 %v856_v47, %v815_v1  ;;  %v855_v10 = vmul.f32 %v1263_v42, %v833_v40  ;;  %v541_v46 = vmul.f32 %v1209_v57, %v1574_v5  ;;  %v1713_v13 = vld [vmem:[%s1093_s11 + $0xf1] sm:$0xff] }
  0x63   : > { %v685_v59 = vadd.f32 %v667_v52, %v642_v56  ;;  %v1706_v55 = vadd.f32 %v456_v29, %v431_v33  ;;  %v391_v23 = vadd.f32 %v373_v38, %v348_v18  ;;  %v416_v4 = vmul.f32 %v1180_v36, %v1672_v44 }
  0x64   : > { %v584_v20 = vmul.f32 %v1214_v60, %v1577_v51  ;;  %899 = vadd.xlane.f32.xlu1 %v874_v30  ;;  %v459_v47 = vmul.f32 %v1193_v45, %v1685_v15  ;;  %v559_v5 = vadd.f32 %v541_v46, %v516_v61  ;;  %v627_v12 = vmul.f32 %v1221_v6, %v1597_v41 }
  0x65   : > { %v728_v50 = vadd.f32 %v710_v16, %v685_v59  ;;  %v291_v25 = vadd.f32 %v273_v49, %v232_v27  ;;  %v500_v24 = vmul.f32 %v1204_v53, %v834_v11  ;;  %v670_v29 = vmul.f32 %v1224_v8, %v834_v11 }
  0x66   : > { %v154_v51 = vmul.f32 %v1096_v0, %v1704_v62  ;;  %v602_v48 = vadd.f32 %v584_v20, %v559_v5  ;;  %v713_v52 = vmul.f32 %v1233_v19, %v1662_v63  ;;  %v213_v14 = vmul.f32 %v1115_v7, %v1713_v13 }
  0x67   : > { %v771_v31 = vadd.f32 %v753_v54, %v728_v50  ;;  %v434_v41 = vadd.f32 %v416_v4, %v391_v23  ;;  %v756_v33 = vmul.f32 %v1248_v32, %v1672_v44  ;;  %v329_v11 = vmul.f32 %v1161_v28, %v833_v40  ;;  %v836_v54 = vld [vmem:[%s1093_s11 + $0xfb] sm:$0xff]  ;;  %v1747_v23 = vld [vmem:[%s1093_s11 + $0x108] sm:$0xff] }
  0x68   : > { %v372_v16 = vmul.f32 %v1177_v35, %v1704_v62  ;;  %v645_v38 = vadd.f32 %v627_v12, %v602_v48  ;;  %v799_v1 = vmul.f32 %v1251_v34, %v1685_v15  ;;  %v272_v56 = vmul.f32 %v1140_v17, %v1724_v21 }
  0x69   : > { %v814_v39 = vadd.f32 %v796_v43, %v771_v31  ;;  %v231_v27 = vadd.f32 %v213_v14, %v154_v51  ;;  %v347_v49 = vadd.f32 %v329_v11, %v288_v9  ;;  %v515_v18 = vadd.f32 %v497_v2, %v1621_v26  ;;  %v1754_v2 = vld [vmem:[%s1093_s11 + $0x109] sm:$0xff] }
  0x6a   : > { %v540_v61 = vmul.f32 %v1209_v57, %v1626_v58  ;;  %v688_v59 = vadd.f32 %v670_v29, %v645_v38  ;;  %v858_v43 = vmul.f32 %v1263_v42, %v836_v54  ;;  %v583_v46 = vmul.f32 %v1214_v60, %v1629_v22  ;;  %v1765_v31 = vld [vmem:[%s1093_s11 + $0x10a] sm:$0xff] }
  0x6b   : > { %v873_v30 = vadd.f32 %v855_v10, %v814_v39  ;;  %v390_v4 = vadd.f32 %v372_v16, %v347_v49  ;;  %v415_v20 = vmul.f32 %v1180_v36, %v1713_v13  ;;  %v626_v26 = vmul.f32 %v1221_v6, %v1638_v37 }
  0x6c   : > { %v558_v9 = vadd.f32 %v540_v61, %v515_v18  ;;  %v1756_v58 = vadd.f32 %v459_v47, %v434_v41  ;;  %v731_v10 = vadd.f32 %v713_v52, %v688_v59  ;;  %v458_v22 = vmul.f32 %v1193_v45, %v1724_v21 }
  0x6d   : > { %897 = vadd.xlane.f32.xlu0 %v873_v30  ;;  %v499_v50 = vmul.f32 %v1204_v53, %v833_v40  ;;  %v290_v5 = vadd.f32 %v272_v56, %v231_v27  ;;  %v669_v29 = vmul.f32 %v1224_v8, %v833_v40  ;;  %v157_v51 = vmul.f32 %v1096_v0, %v1747_v23  ;;  %v835_v30 = vld [vmem:[%s1093_s11 + $0xf3] sm:$0xff] }
  0x6e   : > { %v601_v12 = vadd.f32 %v583_v46, %v558_v9  ;;  %v774_v37 = vadd.f32 %v756_v33, %v731_v10  ;;  %v712_v47 = vmul.f32 %v1233_v19, %v1704_v62  ;;  %v216_v48 = vmul.f32 %v1115_v7, %v1754_v2 }
  0x6f   : > { %v332_v52 = vmul.f32 %v1161_v28, %v836_v54  ;;  %v433_v14 = vadd.f32 %v415_v20, %v390_v4  ;;  %v755_v40 = vmul.f32 %v1248_v32, %v1713_v13  ;;  %v375_v11 = vmul.f32 %v1177_v35, %v1747_v23 }
  0x70   : > { %v644_v41 = vadd.f32 %v626_v26, %v601_v12  ;;  %v817_v16 = vadd.f32 %v799_v1, %v774_v37  ;;  %v234_v39 = vadd.f32 %v216_v48, %v157_v51  ;;  %v275_v33 = vmul.f32 %v1140_v17, %v1765_v31 }
  0x71   : > { %v350_v38 = vadd.f32 %v332_v52, %v291_v25  ;;  %v418_v27 = vmul.f32 %v1180_v36, %v1754_v2  ;;  %v518_v49 = vadd.f32 %v500_v24, %v1664_v3  ;;  %v543_v18 = vmul.f32 %v1209_v57, %v1662_v63  ;;  %v1792_v3 = vld [vmem:[%s1093_s11 + $0x100] sm:$0xff] }
  0x72   : > { %v687_v56 = vadd.f32 %v669_v29, %v644_v41  ;;  %v876_v61 = vadd.f32 %v858_v43, %v817_v16  ;;  %v798_v1 = vmul.f32 %v1251_v34, %v1724_v21  ;;  %v586_v46 = vmul.f32 %v1214_v60, %v1672_v44  ;;  %v1795_v24 = vld [vmem:[%s1093_s11 + $0x101] sm:$0xff]  ;;  %v838_v41 = vld [vmem:[%s1093_s11 + $0x10b] sm:$0xff] }
  0x73   : > { %v393_v59 = vadd.f32 %v375_v11, %v350_v38  ;;  %v857_v25 = vmul.f32 %v1263_v42, %v835_v30  ;;  %v561_v20 = vadd.f32 %v543_v18, %v518_v49  ;;  %v629_v9 = vmul.f32 %v1221_v6, %v1685_v15 }
  0x74   : > { %v730_v4 = vadd.f32 %v712_v47, %v687_v56  ;;  %903 = vadd.xlane.f32.xlu1 %v876_v61  ;;  %v1797_v63 = vadd.f32 %v458_v22, %v433_v14  ;;  %v293_v43 = vadd.f32 %v275_v33, %v234_v39  ;;  %v461_v44 = vmul.f32 %v1193_v45, %v1765_v31 }
  0x75   : > { %v502_v26 = vmul.f32 %v1204_v53, %v836_v54  ;;  %v436_v12 = vadd.f32 %v418_v27, %v393_v59  ;;  %v604_v29 = vadd.f32 %v586_v46, %v561_v20  ;;  %v672_v15 = vmul.f32 %v1224_v8, %v836_v54 }
  0x76   : > { %v773_v10 = vadd.f32 %v755_v40, %v730_v4  ;;  %v715_v51 = vmul.f32 %v1233_v19, %v1747_v23  ;;  %v156_v37 = vmul.f32 %v1096_v0, %v1792_v3  ;;  %v215_v22 = vmul.f32 %v1115_v7, %v1795_v24  ;;  %v1814_v40 = vld [vmem:[%s1093_s11 + $0x102] sm:$0xff] }
  0x77   : > { %v331_v47 = vmul.f32 %v1161_v28, %v835_v30  ;;  %v647_v52 = vadd.f32 %v629_v9, %v604_v29  ;;  %v758_v14 = vmul.f32 %v1248_v32, %v1754_v2  ;;  %v374_v54 = vmul.f32 %v1177_v35, %v1792_v3 }
  0x78   : > { %v816_v48 = vadd.f32 %v798_v1, %v773_v10  ;;  %v801_v0 = vmul.f32 %v1251_v34, %v1765_v31  ;;  %v860_v11 = vmul.f32 %v1263_v42, %v838_v41  ;;  %v417_v16 = vmul.f32 %v1180_v36, %v1795_v24 }
  0x79   : > { %v349_v7 = vadd.f32 %v331_v47, %v290_v5  ;;  %v690_v33 = vadd.f32 %v672_v15, %v647_v52  ;;  %v517_v38 = vadd.f32 %v499_v50, %v1706_v55  ;;  %v542_v56 = vmul.f32 %v1209_v57, %v1704_v62  ;;  %v355_v5 = vld [vmem:[%s1093_s11 + $0x118] sm:$0xff] }
  0x7a   : > { %v875_v39 = vadd.f32 %v857_v25, %v816_v48  ;;  %v233_v27 = vadd.f32 %v215_v22, %v156_v37  ;;  %v274_v49 = vmul.f32 %v1140_v17, %v1814_v40  ;;  %v585_v61 = vmul.f32 %v1214_v60, %v1713_v13 }
  0x7b   : > { %v392_v18 = vadd.f32 %v374_v54, %v349_v7  ;;  %v1831_v1 = vadd.f32 %v461_v44, %v436_v12  ;;  %v733_v59 = vadd.f32 %v715_v51, %v690_v33  ;;  %v560_v46 = vadd.f32 %v542_v56, %v517_v38  ;;  %v398_v44 = vld [vmem:[%s1093_s11 + $0x119] sm:$0xff]  ;;  %v1849_v51 = vld [vmem:[%s1093_s11 + $0x103] sm:$0xff]  ;;  %v397_v33 = vld [vmem:[%s1093_s11 + $0x111] sm:$0xff] }
  0x7c   : > { %901 = vadd.xlane.f32.xlu0 %v875_v39  ;;  %v628_v55 = vmul.f32 %v1221_v6, %v1724_v21  ;;  %v460_v50 = vmul.f32 %v1193_v45, %v1814_v40  ;;  %v501_v17 = vmul.f32 %v1204_v53, %v835_v30  ;;  %v671_v4 = vmul.f32 %v1224_v8, %v835_v30 }
  0x7d   : > { %v435_v62 = vadd.f32 %v417_v16, %v392_v18  ;;  %v776_v13 = vadd.f32 %v758_v14, %v733_v59  ;;  %v603_v25 = vadd.f32 %v585_v61, %v560_v46  ;;  %v334_v20 = vmul.f32 %v1161_v28, %v838_v41  ;;  %v441_v28 = vld [vmem:[%s1093_s11 + $0x11a] sm:$0xff]  ;;  %v1050_v46 = vld [vmem:[%s1093_s11 + $0x11] ss:$0 sm:$0xff] }
  0x7e   : > { %v377_v9 = vmul.f32 %v1177_v35, %v355_v5  ;;  %v292_v10 = vadd.f32 %v274_v49, %v233_v27  ;;  %v714_v21 = vmul.f32 %v1233_v19, %v1792_v3  ;;  %v757_v12 = vmul.f32 %v1248_v32, %v1795_v24 }
  0x7f   : > { %v800_v29 = vmul.f32 %v1251_v34, %v1814_v40  ;;  %v819_v15 = vadd.f32 %v801_v0, %v776_v13  ;;  %v646_v30 = vadd.f32 %v628_v55, %v603_v25  ;;  %v352_v37 = vadd.f32 %v334_v20, %v293_v43  ;;  %v840_v25 = vld [vmem:[%s1093_s11 + $0x11b] sm:$0xff] }
  0x80   : > { %v520_v35 = vadd.f32 %v502_v26, %v1756_v58  ;;  %v859_v22 = vmul.f32 %v1263_v42, %v1849_v51  ;;  %v420_v47 = vmul.f32 %v1180_v36, %v398_v44  ;;  %v545_v48 = vmul.f32 %v1209_v57, %v1747_v23  ;;  %v1863_v58 = vld [vmem:[%s1093_s11 + $0x110] sm:$0xff] }
  0x81   : > { %v588_v52 = vmul.f32 %v1214_v60, %v1754_v2  ;;  %v878_v14 = vadd.f32 %v860_v11, %v819_v15  ;;  %v1860_v54 = vadd.f32 %v460_v50, %v435_v62  ;;  %v689_v43 = vadd.f32 %v671_v4, %v646_v30  ;;  %v440_v62 = vld [vmem:[%s1093_s11 + $0x112] sm:$0xff]  ;;  %v570_v15 = vld [vmem:[%s1093_s11 + $0x129] sm:$0xff]  ;;  %v1055_v30 = vld [vmem:[%s1093_s11 + $0x21] ss:$0 sm:$0xff] }
  0x82   : > { %v395_v0 = vadd.f32 %v377_v9, %v352_v37  ;;  %v463_v26 = vmul.f32 %v1193_v45, %v441_v28  ;;  %v504_v36 = vmul.f32 %v1204_v53, %v838_v41  ;;  %v563_v7 = vadd.f32 %v545_v48, %v520_v35  ;;  %v1048_v53 = vld [vmem:[%s1093_s11 + $0x3] ss:$0 sm:$0xff] }
  0x83   : > { %v631_v23 = vmul.f32 %v1221_v6, %v1765_v31  ;;  %907 = vadd.xlane.f32.xlu1 %v878_v14  ;;  %v732_v16 = vadd.f32 %v714_v21, %v689_v43  ;;  %v1870_v2 = vmul.f32 %v1209_v57, %v355_v5  ;;  %v1873_v11 = vmul.f32 %v1214_v60, %v398_v44  ;;  %v1049_v31 = vld [vmem:[%s1093_s11 + $0x10] ss:$0 sm:$0xff]  ;;  %v1053_v21 = vld [vmem:[%s1093_s11 + $0x13] ss:$0 sm:$0xff]  ;;  %v1910_v35 = vld [vmem:[%s1093_s11 + $0x23] ss:$0 sm:$0xff] }
  0x84   : > { %v674_v39 = vmul.f32 %v1224_v8, %v838_v41  ;;  %v438_v45 = vadd.f32 %v420_v47, %v395_v0  ;;  %v606_v38 = vadd.f32 %v588_v52, %v563_v7  ;;  %v333_v56 = vmul.f32 %v1048_v53, %v1849_v51  ;;  %v613_v43 = vld [vmem:[%s1093_s11 + $0x12a] sm:$0xff] }
  0x85   : > { %v376_v27 = vmul.f32 %v1049_v31, %v1863_v58  ;;  %v775_v49 = vadd.f32 %v757_v12, %v732_v16  ;;  %v1882_v18 = vmul.f32 %v1221_v6, %v441_v28  ;;  %v717_v61 = vmul.f32 %v1233_v19, %v355_v5  ;;  %v1930_v31 = vld [vmem:[%s1093_s11 + $0x32] ss:$0 sm:$0xff] }
  0x86   : > { %v760_v59 = vmul.f32 %v1248_v32, %v398_v44  ;;  %v649_v8 = vadd.f32 %v631_v23, %v606_v38  ;;  %v351_v41 = vadd.f32 %v333_v56, %v292_v10  ;;  %v419_v55 = vmul.f32 %v1050_v46, %v397_v33  ;;  %v1898_v10 = vld [vmem:[%s1093_s11 + $0x22] ss:$0 sm:$0xff]  ;;  %v839_v23 = vld [vmem:[%s1093_s11 + $0x113] sm:$0xff]  ;;  %v1924_v38 = vld [vmem:[%s1093_s11 + $0x31] ss:$0 sm:$0xff] }
  0x87   : > { %v519_v50 = vadd.f32 %v501_v17, %v1797_v63  ;;  %v818_v4 = vadd.f32 %v800_v29, %v775_v49  ;;  %v803_v13 = vmul.f32 %v1251_v34, %v441_v28  ;;  %v544_v6 = vmul.f32 %v1209_v57, %v1792_v3  ;;  %v1051_v17 = vld [vmem:[%s1093_s11 + $0x12] ss:$0 sm:$0xff]  ;;  %v527_v3 = vld [vmem:[%s1093_s11 + $0x128] sm:$0xff] }
  0x88   : > { %v587_v19 = vmul.f32 %v1214_v60, %v1795_v24  ;;  %v481_v32 = vadd.f32 %v463_v26, %v438_v45  ;;  %v692_v5 = vadd.f32 %v674_v39, %v649_v8  ;;  %v862_v20 = vmul.f32 %v1263_v42, %v840_v25  ;;  %v1054_v42 = vld [vmem:[%s1093_s11 + $0x20] ss:$0 sm:$0xff]  ;;  %v1918_v26 = vld [vmem:[%s1093_s11 + $0x30] ss:$0 sm:$0xff] }
  0x89   : > { %v394_v9 = vadd.f32 %v376_v27, %v351_v41  ;;  %v877_v63 = vadd.f32 %v859_v22, %v818_v4  ;;  %v462_v44 = vmul.f32 %v1051_v17, %v440_v62  ;;  %v562_v34 = vadd.f32 %v544_v6, %v519_v50  ;;  %v612_v4 = vld [vmem:[%s1093_s11 + $0x122] sm:$0xff] }
  0x8a   : > { %v630_v57 = vmul.f32 %v1898_v10, %v1814_v40  ;;  %v735_v60 = vadd.f32 %v717_v61, %v692_v5  ;;  %v503_v12 = vmul.f32 %v1053_v21, %v1849_v51  ;;  %v546_v29 = vmul.f32 %v1054_v42, %v1863_v58  ;;  %v569_v61 = vld [vmem:[%s1093_s11 + $0x121] sm:$0xff] }
  0x8b   : > { %v437_v24 = vadd.f32 %v419_v55, %v394_v9  ;;  %905 = vadd.xlane.f32.xlu0 %v877_v63  ;;  %v589_v37 = vmul.f32 %v1055_v30, %v397_v33  ;;  %v605_v28 = vadd.f32 %v587_v19, %v562_v34  ;;  %v673_v40 = vmul.f32 %v1910_v35, %v1849_v51 }
  0x8c   : > { %v506_v22 = vmul.f32 %v1053_v21, %v840_v25  ;;  %v778_v47 = vadd.f32 %v760_v59, %v735_v60  ;;  %v632_v48 = vmul.f32 %v1898_v10, %v440_v62  ;;  %v522_v52 = vadd.f32 %v504_v36, %v1831_v1  ;;  %v526_v36 = vld [vmem:[%s1093_s11 + $0x120] sm:$0xff] }
  0x8d   : > { %v549_v14 = vmul.f32 %v1054_v42, %v527_v3  ;;  %v648_v0 = vadd.f32 %v630_v57, %v605_v28  ;;  %v716_v7 = vmul.f32 %v1918_v26, %v1863_v58  ;;  %v592_v51 = vmul.f32 %v1055_v30, %v570_v15 }
  0x8e   : > { %v524_v16 = vadd.f32 %v506_v22, %v481_v32  ;;  %v821_v39 = vadd.f32 %v803_v13, %v778_v47  ;;  %v480_v45 = vadd.f32 %v462_v44, %v437_v24  ;;  %v759_v53 = vmul.f32 %v1924_v38, %v397_v33  ;;  %v1060_v32 = vld [vmem:[%s1093_s11 + $0x33] ss:$0 sm:$0xff]  ;;  %v742_v24 = vld [vmem:[%s1093_s11 + $0x139] sm:$0xff] }
  0x8f   : > { %v565_v1 = vadd.f32 %v1870_v2, %v522_v52  ;;  %v691_v56 = vadd.f32 %v673_v40, %v648_v0  ;;  %v802_v27 = vmul.f32 %v1930_v31, %v440_v62  ;;  %v635_v58 = vmul.f32 %v1898_v10, %v613_v43  ;;  %v741_v0 = vld [vmem:[%s1093_s11 + $0x131] sm:$0xff] }
  0x90   : > { %v567_v49 = vadd.f32 %v549_v14, %v524_v16  ;;  %v880_v59 = vadd.f32 %v862_v20, %v821_v39  ;;  %v676_v41 = vmul.f32 %v1910_v35, %v840_v25  ;;  %v505_v33 = vmul.f32 %v1053_v21, %v839_v23  ;;  %v842_v20 = vld [vmem:[%s1093_s11 + $0x12b] sm:$0xff]  ;;  %v844_v16 = vld [vmem:[%s1093_s11 + $0x13b] sm:$0xff] }
  0x91   : > { %v608_v8 = vadd.f32 %v1873_v11, %v565_v1  ;;  %v734_v2 = vadd.f32 %v716_v7, %v691_v56  ;;  %v521_v55 = vadd.f32 %v503_v12, %v1860_v54  ;;  %v548_v50 = vmul.f32 %v1054_v42, %v526_v36  ;;  %v699_v54 = vld [vmem:[%s1093_s11 + $0x138] sm:$0xff]  ;;  %v841_v42 = vld [vmem:[%s1093_s11 + $0x123] sm:$0xff] }
  0x92   : > { %v610_v46 = vadd.f32 %v592_v51, %v567_v49  ;;  %911 = vadd.xlane.f32.xlu1 %v880_v59  ;;  %v719_v13 = vmul.f32 %v1918_v26, %v527_v3  ;;  %v523_v6 = vadd.f32 %v505_v33, %v480_v45  ;;  %v591_v19 = vmul.f32 %v1055_v30, %v569_v61  ;;  %v698_v30 = vld [vmem:[%s1093_s11 + $0x130] sm:$0xff] }
  0x93   : > { %v651_v62 = vadd.f32 %v1882_v18, %v608_v8  ;;  %v777_v11 = vadd.f32 %v759_v53, %v734_v2  ;;  %v861_v25 = vmul.f32 %v1060_v32, %v839_v23  ;;  %v762_v5 = vmul.f32 %v1924_v38, %v570_v15  ;;  %v784_v1 = vld [vmem:[%s1093_s11 + $0x132] sm:$0xff] }
  0x94   : > { %v564_v9 = vadd.f32 %v546_v29, %v521_v55  ;;  %v653_v63 = vadd.f32 %v635_v58, %v610_v46  ;;  %v566_v44 = vadd.f32 %v548_v50, %v523_v6  ;;  %v634_v18 = vmul.f32 %v1898_v10, %v612_v4 }
  0x95   : > { %v694_v17 = vadd.f32 %v676_v41, %v651_v62  ;;  %v820_v34 = vadd.f32 %v802_v27, %v777_v11  ;;  %v805_v57 = vmul.f32 %v1930_v31, %v613_v43  ;;  %v675_v60 = vmul.f32 %v1910_v35, %v839_v23 }
  0x96   : > { %v607_v3 = vadd.f32 %v589_v37, %v564_v9  ;;  %v609_v12 = vadd.f32 %v591_v19, %v566_v44  ;;  %v678_v29 = vmul.f32 %v1910_v35, %v842_v20  ;;  %v721_v15 = vmul.f32 %v1918_v26, %v699_v54  ;;  %v785_v37 = vld [vmem:[%s1093_s11 + $0x13a] sm:$0xff] }
  0x97   : > { %v737_v21 = vadd.f32 %v719_v13, %v694_v17  ;;  %v879_v28 = vadd.f32 %v861_v25, %v820_v34  ;;  %v864_v10 = vmul.f32 %v1060_v32, %v842_v20  ;;  %v718_v22 = vmul.f32 %v1918_v26, %v526_v36 }
  0x98   : > { %v650_v40 = vadd.f32 %v632_v48, %v607_v3  ;;  %v652_v52 = vadd.f32 %v634_v18, %v609_v12  ;;  %v696_v14 = vadd.f32 %v678_v29, %v653_v63  ;;  %v764_v43 = vmul.f32 %v1924_v38, %v742_v24 }
  0x99   : > { %v780_v47 = vadd.f32 %v762_v5, %v737_v21  ;;  %909 = vadd.xlane.f32.xlu0 %v879_v28  ;;  %v761_v23 = vmul.f32 %v1924_v38, %v569_v61  ;;  %v677_v51 = vmul.f32 %v1910_v35, %v841_v42  ;;  %v720_v48 = vmul.f32 %v1918_v26, %v698_v30  ;;  %v843_v61 = vld [vmem:[%s1093_s11 + $0x133] sm:$0xff] }
  0x9a   : > { %v693_v7 = vadd.f32 %v675_v60, %v650_v40  ;;  %v739_v45 = vadd.f32 %v721_v15, %v696_v14  ;;  %v807_v53 = vmul.f32 %v1930_v31, %v785_v37  ;;  %v804_v56 = vmul.f32 %v1930_v31, %v612_v4 }
  0x9b   : > { %v823_v39 = vadd.f32 %v805_v57, %v780_v47  ;;  %v695_v27 = vadd.f32 %v677_v51, %v652_v52  ;;  %v763_v49 = vmul.f32 %v1924_v38, %v741_v0  ;;  %v866_v8 = vmul.f32 %v1060_v32, %v844_v16 }
  0x9c   : > { %v736_v36 = vadd.f32 %v718_v22, %v693_v7  ;;  %v782_v59 = vadd.f32 %v764_v43, %v739_v45  ;;  %v863_v35 = vmul.f32 %v1060_v32, %v841_v42  ;;  %v806_v26 = vmul.f32 %v1930_v31, %v784_v1 }
  0x9d   : > { %v882_v58 = vadd.f32 %v864_v10, %v823_v39  ;;  %v738_v33 = vadd.f32 %v720_v48, %v695_v27  ;;  %v865_v50 = vmul.f32 %v1060_v32, %v843_v61 }
  0x9e   : > { %v779_v41 = vadd.f32 %v761_v23, %v736_v36  ;;  %v825_v2 = vadd.f32 %v807_v53, %v782_v59 }
  0x9f   : > { %915 = vadd.xlane.f32.xlu1 %v882_v58  ;;  %v781_v55 = vadd.f32 %v763_v49, %v738_v33 }
  0xa0   : > { %v822_v46 = vadd.f32 %v804_v56, %v779_v41  ;;  %v884_v62 = vadd.f32 %v866_v8, %v825_v2 }
  0xa1   : > { %v824_v13 = vadd.f32 %v806_v26, %v781_v55 }
  0xa2   : > { %v881_v4 = vadd.f32 %v863_v35, %v822_v46 }
  0xa3   : > { %919 = vadd.xlane.f32.xlu1 %v884_v62  ;;  %v883_v38 = vadd.f32 %v865_v50, %v824_v13 }
  0xa4   : > { %913 = vadd.xlane.f32.xlu0 %v881_v4 }
  0xa8   : > { %917 = vadd.xlane.f32.xlu0 %v883_v38 }
  0xbe   : > { %v890_v31 = vpop.xlane.xlu1 %889 }
  0xbf   : > { %v923_v6 = vmul.f32 0.001, %v890_v31 }
  0xc1   : > { %942 = vst.msk [vmem:[%s1971_s15 + $0x10] sm:$0xff] %vm939_vm0, %v923_v6 }
  0xca   : > { %v886_v19 = vpop.xlane.xlu0 %885 }
  0xcb   : > { %v921_v11 = vmul.f32 0.001, %v886_v19 }
  0xcd   : > { %940 = vst.msk [vmem:[%s1971_s15] sm:$0xff] %vm939_vm0, %v921_v11 }
  0xd2   : > { %v892_v32 = vpop.xlane.xlu1 %891 }
  0xd3   : > { %v924_v25 = vmul.f32 0.001, %v892_v32 }
  0xd5   : > { %943 = vst.msk [vmem:[%s1971_s15 + $0x18] sm:$0xff] %vm939_vm0, %v924_v25 }
  0xde   : > { %v888_v5 = vpop.xlane.xlu0 %887 }
  0xdf   : > { %v922_v20 = vmul.f32 0.001, %v888_v5 }
  0xe1   : > { %941 = vst.msk [vmem:[%s1971_s15 + $0x8] sm:$0xff] %vm939_vm0, %v922_v20 }
  0xe2   : > { %v894_v9 = vpop.xlane.xlu0 %893 }
  0xe3   : > { %v896_v54 = vpop.xlane.xlu1 %895  ;;  %v925_v63 = vmul.f32 0.001, %v894_v9 }
  0xe4   : > { %v926_v17 = vmul.f32 0.001, %v896_v54 }
  0xe5   : > { %944 = vst.msk [vmem:[%s1971_s15 + $0x20] sm:$0xff] %vm939_vm0, %v925_v63 }
  0xe6   : > { %945 = vst.msk [vmem:[%s1971_s15 + $0x28] sm:$0xff] %vm939_vm0, %v926_v17 }
  0xed   : > { %v900_v44 = vpop.xlane.xlu1 %899 }
  0xee   : > { %v928_v18 = vmul.f32 0.001, %v900_v44 }
  0xf0   : > { %947 = vst.msk [vmem:[%s1971_s15 + $0x38] sm:$0xff] %vm939_vm0, %v928_v18 }
  0xf6   : > { %v898_v34 = vpop.xlane.xlu0 %897 }
  0xf7   : > { %v927_v57 = vmul.f32 0.001, %v898_v34 }
  0xf9   : > { %946 = vst.msk [vmem:[%s1971_s15 + $0x30] sm:$0xff] %vm939_vm0, %v927_v57 }
  0xfd   : > { %v904_v3 = vpop.xlane.xlu1 %903 }
  0xfe   : > { %v930_v60 = vmul.f32 0.001, %v904_v3 }
 0x100   : > { %949 = vst.msk [vmem:[%s1971_s15 + $0x48] sm:$0xff] %vm939_vm0, %v930_v60 }
 0x105   : > { %v902_v24 = vpop.xlane.xlu0 %901 }
 0x106   : > { %v929_v21 = vmul.f32 0.001, %v902_v24 }
 0x108   : > { %948 = vst.msk [vmem:[%s1971_s15 + $0x40] sm:$0xff] %vm939_vm0, %v929_v21 }
 0x10c   : > { %v908_v12 = vpop.xlane.xlu1 %907 }
 0x10d   : > { %v932_v42 = vmul.f32 0.001, %v908_v12 }
 0x10f   : > { %951 = vst.msk [vmem:[%s1971_s15 + $0x58] sm:$0xff] %vm939_vm0, %v932_v42 }
 0x114   : > { %v906_v29 = vpop.xlane.xlu0 %905 }
 0x115   : > { %v931_v15 = vmul.f32 0.001, %v906_v29 }
 0x117   : > { %950 = vst.msk [vmem:[%s1971_s15 + $0x50] sm:$0xff] %vm939_vm0, %v931_v15 }
 0x11b   : > { %v912_v30 = vpop.xlane.xlu1 %911 }
 0x11c   : > { %v934_v28 = vmul.f32 0.001, %v912_v30 }
 0x11e   : > { %953 = vst.msk [vmem:[%s1971_s15 + $0x68] sm:$0xff] %vm939_vm0, %v934_v28 }
 0x122   : > { %v910_v10 = vpop.xlane.xlu0 %909 }
 0x123   : > { %v933_v40 = vmul.f32 0.001, %v910_v10 }
 0x125   : > { %952 = vst.msk [vmem:[%s1971_s15 + $0x60] sm:$0xff] %vm939_vm0, %v933_v40 }
 0x128   : > { %v916_v22 = vpop.xlane.xlu1 %915 }
 0x129   : > { %v936_v37 = vmul.f32 0.001, %v916_v22 }
 0x12b   : > { %955 = vst.msk [vmem:[%s1971_s15 + $0x78] sm:$0xff] %vm939_vm0, %v936_v37 }
 0x12c   : > { %v920_v47 = vpop.xlane.xlu1 %919 }
 0x12d   : > { %v914_v52 = vpop.xlane.xlu0 %913  ;;  %v938_v14 = vmul.f32 0.001, %v920_v47 }
 0x12e   : > { %v935_v43 = vmul.f32 0.001, %v914_v52 }
 0x12f   : > { %957 = vst.msk [vmem:[%s1971_s15 + $0x88] sm:$0xff] %vm939_vm0, %v938_v14 }
 0x130   : > { %954 = vst.msk [vmem:[%s1971_s15 + $0x70] sm:$0xff] %vm939_vm0, %v935_v43 }
 0x131   : > { %v918_v0 = vpop.xlane.xlu0 %917 }
 0x132   : > { %v937_v7 = vmul.f32 0.001, %v918_v0 }
 0x134   : > { %956 = vst.msk [vmem:[%s1971_s15 + $0x80] sm:$0xff] %vm939_vm0, %v937_v7 }
 0x135 PF: > { %s11_s6 = sadd.s32 1, %s1067_s6  }
 0x136   : > { %p8_p4 = scmp.ge.s32.totalorder %s11_s6, 4  }
 0x138   :  { %10 = sbr.rel (!%p8_p4) target bundleno = 1 (0x1), region = 54 }

// kernel: net_forward.3
= control target key start
LH: loop header
LB: loop body
LE: loop exit
PB: predicated region body
PF: predicated region fallthrough
CT: control target
= control target key end

     0   :  { %s4879_s12 = smov 0   ;;  %s6263_s0 = inlined_call_operand.vmem [shape: f32[2,386,128], index: 0, kind: input, shape index: {}]   ;;  %s6264_s1 = inlined_call_operand.vmem [shape: bf16[9,128,128], index: 1, kind: input, shape index: {}]   ;;  %s6265_s2 = inlined_call_operand.vmem [shape: f32[1,128], index: 2, kind: input, shape index: {}]   ;;  %s6266_s3 = inlined_call_operand.vmem [shape: f32[2,352,128], index: 3, kind: output, shape index: {}]  }
   0x1 LB: > { %s3733_s13 = sadd.s32 4294967295, %s4857_s12   ;;  %p3737_p0 = scmp.ge.s32.totalorder %s4857_s12, 1  ;;  %s4857_s12 = sphi %s4879_s12, %s13_s12  }
   0x2   : > { %p137_p1 = scmp.lt.s32.totalorder %s4857_s12, 3 }
   0x4   : > { %p138_p2 = pnand %p3737_p0, %p137_p1 }
   0x6   : > { %141 = sbr.rel (%p138_p2) target bundleno = 642 (0x282), region = 32 }
   0xb   : > { %v4779_v0 = vld [vmem:[%s6264_s1 + $0x78] sm:$0xff]   ;;  %p161_p3 = scmp.lt.s32.totalorder %s3733_s13, 1  ;;  %v4780_v1 = vld [vmem:[%s6264_s1 + $0x70] sm:$0xff]   ;;  %v4781_v2 = vld [vmem:[%s6264_s1 + $0x68] sm:$0xff]  }
   0xc   : > { %4213 = vmatprep.subr.bf16.mxu0 %v4779_v0  ;;  %4753 = vmatprep.subr.bf16.mxu1 %v4779_v0  ;;  %v4782_v3 = vld [vmem:[%s6264_s1 + $0x60] sm:$0xff]   ;;  %v4783_v10 = vld [vmem:[%s6264_s1 + $0x58] sm:$0xff]   ;;  %v4784_v11 = vld [vmem:[%s6264_s1 + $0x50] sm:$0xff]  }
   0xd   : > { %s6328_s13 = smov (!%p161_p3, %s3733_s13), 1  ;;  %4214 = vmatpush3.bf16.msra.mxu0 %v4779_v0  ;;  %4761 = vmatpush3.bf16.msra.mxu1 %v4779_v0  ;;  %v4785_v12 = vld [vmem:[%s6264_s1 + $0x48] sm:$0xff]   ;;  %v4786_v13 = vld [vmem:[%s6264_s1 + $0x40] sm:$0xff]   ;;  %v4787_v18 = vld [vmem:[%s6264_s1 + $0xb8] sm:$0xff]  }
   0xe   : > { %4215 = vmatprep.subr.bf16.mxu0 %v4780_v1  ;;  %4754 = vmatprep.subr.bf16.mxu1 %v4780_v1  ;;  %s4769_s20 = smul.u32 392, %s6328_s13  ;;  %v4788_v19 = vld [vmem:[%s6264_s1 + $0x38] sm:$0xff]   ;;  %v4789_v27 = vld [vmem:[%s6264_s1 + $0xb0] sm:$0xff]   ;;  %v4791_v34 = vld [vmem:[%s6264_s1 + $0xa8] sm:$0xff]  }
   0xf   : > { %v4790_v32 = vld [vmem:[%s6264_s1 + $0x30] sm:$0xff]   ;;  %v4792_v43 = vld [vmem:[%s6264_s1 + $0x28] sm:$0xff]   ;;  %v4793_v47 = vld [vmem:[%s6264_s1 + $0xa0] sm:$0xff]  }
  0x10   : > { %s4902_s23 = scalar_lea.vmem %s6263_s0, %s4769_s20  ;;  %v4794_v49 = vld [vmem:[%s6264_s1 + $0x20] sm:$0xff]   ;;  %v4796_v54 = vld [vmem:[%s6264_s1 + $0x98] sm:$0xff]   ;;  %v4798_v62 = vld [vmem:[%s6264_s1 + $0x90] sm:$0xff]  }
  0x11   : > { %4216 = vmatpush3.bf16.msra.mxu0 %v4780_v1  ;;  %4762 = vmatpush3.bf16.msra.mxu1 %v4780_v1  ;;  %v254_v4 = vld [vmem:[%s4902_s23 + $0x1] sm:$0xff]  ;;  %v255_v5 = vld [vmem:[%s4902_s23 + $0x9] sm:$0xff]  ;;  %v256_v14 = vld [vmem:[%s4902_s23 + $0x11] sm:$0xff] }
  0x12   : > { %4217 = vmatprep.subr.bf16.mxu0 %v4781_v2  ;;  %4755 = vmatprep.subr.bf16.mxu1 %v4781_v2  ;;  %v278_v6 = vld [vmem:[%s4902_s23 + $0xc1] sm:$0xff]  ;;  %v298_v7 = vpack.c.bf16 %v255_v5, %v254_v4  ;;  %v279_v8 = vld [vmem:[%s4902_s23 + $0xc9] sm:$0xff]  ;;  %v257_v15 = vld [vmem:[%s4902_s23 + $0x19] sm:$0xff] }
  0x13   : > { %v310_v9 = vpack.c.bf16 %v279_v8, %v278_v6  ;;  %v280_v16 = vld [vmem:[%s4902_s23 + $0xd1] sm:$0xff]  ;;  %v281_v17 = vld [vmem:[%s4902_s23 + $0xd9] sm:$0xff]  ;;  %v258_v20 = vld [vmem:[%s4902_s23 + $0x21] sm:$0xff]  ;;  %v4937_v24 = vpack.c.bf16 %v257_v15, %v256_v14 }
  0x14   : > { %4229 = vmatprep.mubr.bf16.mxu0 %v298_v7  ;;  %v259_v21 = vld [vmem:[%s4902_s23 + $0x29] sm:$0xff]  ;;  %v282_v22 = vld [vmem:[%s4902_s23 + $0xe1] sm:$0xff]  ;;  %v311_v25 = vpack.c.bf16 %v281_v17, %v280_v16  ;;  %v260_v29 = vld [vmem:[%s4902_s23 + $0x31] sm:$0xff] }
  0x15   : > { %4218 = vmatpush3.bf16.msra.mxu0 %v4781_v2  ;;  %4763 = vmatpush3.bf16.msra.mxu1 %v4781_v2  ;;  %v283_v23 = vld [vmem:[%s4902_s23 + $0xe9] sm:$0xff]  ;;  %v4939_v26 = vpack.c.bf16 %v259_v21, %v258_v20  ;;  %v261_v30 = vld [vmem:[%s4902_s23 + $0x39] sm:$0xff]  ;;  %v284_v31 = vld [vmem:[%s4902_s23 + $0xf1] sm:$0xff] }
  0x16   : > { %4219 = vmatprep.subr.bf16.mxu0 %v4782_v3  ;;  %4756 = vmatprep.subr.bf16.mxu1 %v4782_v3  ;;  %v312_v28 = vpack.c.bf16 %v283_v23, %v282_v22  ;;  %v285_v33 = vld [vmem:[%s4902_s23 + $0xf9] sm:$0xff]  ;;  %v262_v35 = vld [vmem:[%s4902_s23 + $0x41] sm:$0xff]  ;;  %v263_v36 = vld [vmem:[%s4902_s23 + $0x49] sm:$0xff]  ;;  %v4960_v39 = vpack.c.bf16 %v261_v30, %v260_v29 }
  0x17   : > { %4253 = vmatprep.mubr.bf16.mxu1 %v310_v9  ;;  %v286_v37 = vld [vmem:[%s4902_s23 + $0x101] sm:$0xff]  ;;  %v287_v38 = vld [vmem:[%s4902_s23 + $0x109] sm:$0xff]  ;;  %v313_v40 = vpack.c.bf16 %v285_v33, %v284_v31  ;;  %v4962_v41 = vpack.c.bf16 %v263_v36, %v262_v35  ;;  %v264_v44 = vld [vmem:[%s4902_s23 + $0x51] sm:$0xff] }
  0x18   : > { %v314_v42 = vpack.c.bf16 %v287_v38, %v286_v37  ;;  %v265_v45 = vld [vmem:[%s4902_s23 + $0x59] sm:$0xff]  ;;  %v288_v46 = vld [vmem:[%s4902_s23 + $0x111] sm:$0xff]  ;;  %v266_v50 = vld [vmem:[%s4902_s23 + $0x61] sm:$0xff] }
  0x19   : > { %4220 = vmatpush3.bf16.msra.mxu0 %v4782_v3  ;;  %4764 = vmatpush3.bf16.msra.mxu1 %v4782_v3  ;;  %v289_v48 = vld [vmem:[%s4902_s23 + $0x119] sm:$0xff]  ;;  %v267_v51 = vld [vmem:[%s4902_s23 + $0x69] sm:$0xff]  ;;  %v290_v52 = vld [vmem:[%s4902_s23 + $0x121] sm:$0xff]  ;;  %v4986_v55 = vpack.c.bf16 %v265_v45, %v264_v44 }
  0x1a   : > { %4221 = vmatprep.subr.bf16.mxu0 %v4783_v10  ;;  %4757 = vmatprep.subr.bf16.mxu1 %v4783_v10  ;;  %v291_v53 = vld [vmem:[%s4902_s23 + $0x129] sm:$0xff]  ;;  %v315_v56 = vpack.c.bf16 %v289_v48, %v288_v46  ;;  %v4988_v57 = vpack.c.bf16 %v267_v51, %v266_v50  ;;  %v4795_v59 = vld [vmem:[%s6264_s1 + $0x18] sm:$0xff]   ;;  %v270_v2 = vld [vmem:[%s4902_s23 + $0x81] sm:$0xff] }
  0x1b   : > { %v316_v58 = vpack.c.bf16 %v291_v53, %v290_v52  ;;  %v268_v60 = vld [vmem:[%s4902_s23 + $0x71] sm:$0xff]  ;;  %v269_v61 = vld [vmem:[%s4902_s23 + $0x79] sm:$0xff]  ;;  %v271_v3 = vld [vmem:[%s4902_s23 + $0x89] sm:$0xff] }
  0x1c   : > { %v292_v63 = vld [vmem:[%s4902_s23 + $0x131] sm:$0xff]  ;;  %v293_v0 = vld [vmem:[%s4902_s23 + $0x139] sm:$0xff]  ;;  %v294_v4 = vld [vmem:[%s4902_s23 + $0x141] sm:$0xff]  ;;  %v5012_v7 = vpack.c.bf16 %v269_v61, %v268_v60  ;;  %v5014_v9 = vpack.c.bf16 %v271_v3, %v270_v2 }
  0x1d   : > { %4222 = vmatpush3.bf16.msra.mxu0 %v4783_v10  ;;  %4765 = vmatpush3.bf16.msra.mxu1 %v4783_v10  ;;  %v4797_v1 = vld [vmem:[%s6264_s1 + $0x10] sm:$0xff]   ;;  %v4801_v6 = vld [vmem:[%s6264_s1 + $0x88] sm:$0xff]   ;;  %v317_v8 = vpack.c.bf16 %v293_v0, %v292_v63  ;;  %v297_v15 = vld [vmem:[%s4902_s23 + $0x159] sm:$0xff] }
  0x1e   : > { %4223 = vmatprep.subr.bf16.mxu0 %v4784_v11  ;;  %4758 = vmatprep.subr.bf16.mxu1 %v4784_v11  ;;  %v295_v5 = vld [vmem:[%s4902_s23 + $0x149] sm:$0xff]  ;;  %v296_v14 = vld [vmem:[%s4902_s23 + $0x151] sm:$0xff]  ;;  %v4802_v16 = vld [vmem:[%s6264_s1 + $0x80] sm:$0xff]  }
  0x1f   : > { %v318_v10 = vpack.c.bf16 %v295_v5, %v294_v4  ;;  %v4800_v17 = vld [vmem:[%s6264_s1] sm:$0xff]   ;;  %v173_v21 = vld [vmem:[%s4902_s23 + $0x8] sm:$0xff]  ;;  %v4804_v22 = vld [vmem:[%s6264_s1 + $0x138] sm:$0xff]  }
  0x20   : > { %v172_v20 = vld [vmem:[%s4902_s23] sm:$0xff]  ;;  %v4803_v29 = vld [vmem:[%s6264_s1 + $0xf8] sm:$0xff]   ;;  %v177_v35 = vld [vmem:[%s4902_s23 + $0x28] sm:$0xff] }
  0x21   : > { %4224 = vmatpush3.bf16.msra.mxu0 %v4784_v11  ;;  %4766 = vmatpush3.bf16.msra.mxu1 %v4784_v11  ;;  %v4799_v11 = vld [vmem:[%s6264_s1 + $0x8] sm:$0xff]   ;;  %v276_v30 = vld [vmem:[%s4902_s23 + $0xb1] sm:$0xff]  ;;  %v277_v31 = vld [vmem:[%s4902_s23 + $0xb9] sm:$0xff] }
  0x22   : > { %4225 = vmatprep.subr.bf16.mxu0 %v4785_v12  ;;  %4759 = vmatprep.subr.bf16.mxu1 %v4785_v12  ;;  %v175_v33 = vld [vmem:[%s4902_s23 + $0x18] sm:$0xff]  ;;  %v851_v36 = vld [vmem:[%s4902_s23 + $0x2] sm:$0xff]  ;;  %v852_v37 = vld [vmem:[%s4902_s23 + $0xa] sm:$0xff]  ;;  %v5055_v38 = vpack.c.bf16 %v277_v31, %v276_v30 }
  0x23   : > { %v178_v44 = vld [vmem:[%s4902_s23 + $0x30] sm:$0xff]  ;;  %v179_v46 = vld [vmem:[%s4902_s23 + $0x38] sm:$0xff]  ;;  %v181_v50 = vld [vmem:[%s4902_s23 + $0x48] sm:$0xff] }
  0x24   : > { %v4805_v45 = vld [vmem:[%s6264_s1 + $0xf0] sm:$0xff]   ;;  %v854_v48 = vld [vmem:[%s4902_s23 + $0x1a] sm:$0xff]  ;;  %v855_v51 = vld [vmem:[%s4902_s23 + $0x22] sm:$0xff] }
  0x25   : > { %4226 = vmatpush3.bf16.msra.mxu0 %v4785_v12  ;;  %4767 = vmatpush3.bf16.msra.mxu1 %v4785_v12  ;;  %v272_v12 = vld [vmem:[%s4902_s23 + $0x91] sm:$0xff]  ;;  %v4807_v53 = vld [vmem:[%s6264_s1 + $0xe8] sm:$0xff]   ;;  %v858_v0 = vld [vmem:[%s4902_s23 + $0x3a] sm:$0xff] }
  0x26   : > { %4227 = vmatprep.subr.bf16.mxu0 %v4786_v13  ;;  %4760 = vmatprep.subr.bf16.mxu1 %v4786_v13  ;;  %v856_v52 = vld [vmem:[%s4902_s23 + $0x2a] sm:$0xff]  ;;  %v857_v63 = vld [vmem:[%s4902_s23 + $0x32] sm:$0xff]  ;;  %v4809_v2 = vld [vmem:[%s6264_s1 + $0xe0] sm:$0xff]  }
  0x27   : > { %v4806_v60 = vld [vmem:[%s6264_s1 + $0x130] sm:$0xff]   ;;  %v185_v3 = vld [vmem:[%s4902_s23 + $0x68] sm:$0xff] }
  0x28   : > { %v182_v61 = vld [vmem:[%s4902_s23 + $0x50] sm:$0xff]  ;;  %v859_v4 = vld [vmem:[%s4902_s23 + $0x42] sm:$0xff] }
  0x29   : > { %4228 = vmatpush3.bf16.msra.mxu0 %v4786_v13  ;;  %4768 = vmatpush3.bf16.msra.mxu1 %v4786_v13  ;;  %v273_v13 = vld [vmem:[%s4902_s23 + $0x99] sm:$0xff]  ;;  %v860_v5 = vld [vmem:[%s4902_s23 + $0x4a] sm:$0xff] }
  0x2a   : > { %4333 = vmatprep.subr.bf16.mxu0 %v4787_v18  ;;  %4273 = vmatprep.subr.bf16.mxu1 %v4788_v19  ;;  %v5038_v23 = vpack.c.bf16 %v273_v13, %v272_v12  ;;  %v5113_v12 = vpack.c.bf16 %v860_v5, %v859_v4  ;;  %v4811_v13 = vld [vmem:[%s6264_s1 + $0xd8] sm:$0xff]   ;;  %v871_v4 = vld [vmem:[%s4902_s23 + $0xa2] sm:$0xff]  ;;  %v872_v5 = vld [vmem:[%s4902_s23 + $0xaa] sm:$0xff] }
  0x2c   : > { %4230 = vmatmul.mubr.bf16.vlgmr.msra.gmra.mxu0 %v4937_v24  ;;  %4254 = vmatmul.mubr.bf16.vlgmr.msra.gmra.mxu1 %v311_v25  ;;  %v319_v25 = vpack.c.bf16 %v297_v15, %v296_v14  ;;  %v186_v14 = vld [vmem:[%s4902_s23 + $0x70] sm:$0xff]  ;;  %v187_v15 = vld [vmem:[%s4902_s23 + $0x78] sm:$0xff] }
  0x2d   : > { %4334 = vmatpush3.bf16.msra.mxu0 %v4787_v18  ;;  %4233 = vmatprep.mubr.bf16.mxu0 %v4939_v26  ;;  %v274_v18 = vld [vmem:[%s4902_s23 + $0xa1] sm:$0xff] }
  0x2e   : > { %4335 = vmatprep.subr.bf16.mxu0 %v4789_v27  ;;  %4257 = vmatprep.mubr.bf16.mxu1 %v312_v28  ;;  %v216_v28 = vpack.c.bf16 %v173_v21, %v172_v20  ;;  %v4813_v20 = vld [vmem:[%s6264_s1 + $0xd0] sm:$0xff]   ;;  %v189_v21 = vld [vmem:[%s4902_s23 + $0x88] sm:$0xff] }
  0x2f   : > { %4274 = vmatpush3.bf16.msra.mxu1 %v4788_v19  ;;  %v275_v19 = vld [vmem:[%s4902_s23 + $0xa9] sm:$0xff] }
  0x30   : > { %4275 = vmatprep.subr.bf16.mxu1 %v4790_v32 }
  0x31   : > { %4336 = vmatpush3.bf16.msra.mxu0 %v4789_v27  ;;  %v5040_v27 = vpack.c.bf16 %v275_v19, %v274_v18  ;;  %v4810_v18 = vld [vmem:[%s6264_s1 + $0x120] sm:$0xff]  }
  0x32   : > { %4337 = vmatprep.subr.bf16.mxu0 %v4791_v34  ;;  %v188_v19 = vld [vmem:[%s4902_s23 + $0x80] sm:$0xff] }
  0x33   : > { %4276 = vmatpush3.bf16.msra.mxu1 %v4790_v32  ;;  %v174_v32 = vld [vmem:[%s4902_s23 + $0x10] sm:$0xff]  ;;  %v5141_v31 = vpack.c.bf16 %v189_v21, %v188_v19  ;;  %v200_v21 = vld [vmem:[%s4902_s23 + $0xe0] sm:$0xff] }
  0x34   : > { %4234 = vmatmul.mubr.bf16.gmra.mxu0 %v4960_v39  ;;  %4258 = vmatmul.mubr.bf16.gmra.mxu1 %v313_v40  ;;  %v5057_v40 = vpack.c.bf16 %v175_v33, %v174_v32  ;;  %v4815_v33 = vld [vmem:[%s6264_s1 + $0xc8] sm:$0xff]   ;;  %v873_v19 = vld [vmem:[%s4902_s23 + $0xb2] sm:$0xff] }
  0x35   : > { %4338 = vmatpush3.bf16.msra.mxu0 %v4791_v34  ;;  %4237 = vmatprep.mubr.bf16.mxu0 %v4962_v41  ;;  %v176_v34 = vld [vmem:[%s4902_s23 + $0x20] sm:$0xff] }
  0x36   : > { %4261 = vmatprep.mubr.bf16.mxu1 %v314_v42  ;;  %4277 = vmatprep.subr.bf16.mxu1 %v4792_v43  ;;  %v5059_v42 = vpack.c.bf16 %v177_v35, %v176_v34  ;;  %v190_v34 = vld [vmem:[%s4902_s23 + $0x90] sm:$0xff]  ;;  %v191_v35 = vld [vmem:[%s4902_s23 + $0x98] sm:$0xff] }
  0x37   : > { %4278 = vmatpush3.bf16.msra.mxu1 %v4792_v43  ;;  %4339 = vmatprep.subr.bf16.mxu0 %v4793_v47  ;;  %v895_v43 = vpack.c.bf16 %v852_v37, %v851_v36  ;;  %v865_v36 = vld [vmem:[%s4902_s23 + $0x72] sm:$0xff]  ;;  %v866_v37 = vld [vmem:[%s4902_s23 + $0x7a] sm:$0xff] }
  0x38   : > { %4279 = vmatprep.subr.bf16.mxu1 %v4794_v49 }
  0x39   : > { %4340 = vmatpush3.bf16.msra.mxu0 %v4793_v47  ;;  %v853_v47 = vld [vmem:[%s4902_s23 + $0x12] sm:$0xff] }
  0x3a   : > { %4341 = vmatprep.subr.bf16.mxu0 %v4796_v54 }
  0x3b   : > { %4280 = vmatpush3.bf16.msra.mxu1 %v4794_v49  ;;  %v180_v49 = vld [vmem:[%s4902_s23 + $0x40] sm:$0xff] }
  0x3c   : > { %4238 = vmatmul.mubr.bf16.gmra.mxu0 %v4986_v55  ;;  %4262 = vmatmul.mubr.bf16.gmra.mxu1 %v315_v56  ;;  %v5080_v56 = vpack.c.bf16 %v854_v48, %v853_v47  ;;  %v868_v47 = vld [vmem:[%s4902_s23 + $0x8a] sm:$0xff]  ;;  %v4817_v48 = vld [vmem:[%s6264_s1 + $0xc0] sm:$0xff]  }
  0x3d   : > { %4241 = vmatprep.mubr.bf16.mxu0 %v4988_v57  ;;  %4265 = vmatprep.mubr.bf16.mxu1 %v316_v58  ;;  %v5082_v58 = vpack.c.bf16 %v181_v50, %v180_v49  ;;  %v4816_v49 = vld [vmem:[%s6264_s1 + $0x108] sm:$0xff]   ;;  %v5168_v50 = vpack.c.bf16 %v191_v35, %v190_v34 }
  0x3e   : > { %4281 = vmatprep.subr.bf16.mxu1 %v4795_v59  ;;  %4342 = vmatpush3.bf16.msra.mxu0 %v4796_v54  ;;  %v5078_v54 = vpack.c.bf16 %v179_v46, %v178_v44  ;;  %v192_v44 = vld [vmem:[%s4902_s23 + $0xa0] sm:$0xff] }
  0x3f   : > { %4282 = vmatpush3.bf16.msra.mxu1 %v4795_v59  ;;  %4343 = vmatprep.subr.bf16.mxu0 %v4798_v62  ;;  %v5084_v59 = vpack.c.bf16 %v856_v52, %v855_v51  ;;  %v867_v46 = vld [vmem:[%s4902_s23 + $0x82] sm:$0xff]  ;;  %v902_v51 = vpack.c.bf16 %v866_v37, %v865_v36  ;;  %v202_v36 = vld [vmem:[%s4902_s23 + $0xf0] sm:$0xff]  ;;  %v203_v37 = vld [vmem:[%s4902_s23 + $0xf8] sm:$0xff] }
  0x40   : > { %4283 = vmatprep.subr.bf16.mxu1 %v4797_v1 }
  0x42   : > { %4344 = vmatpush3.bf16.msra.mxu0 %v4798_v62  ;;  %v183_v62 = vld [vmem:[%s4902_s23 + $0x58] sm:$0xff] }
  0x43   : > { %4284 = vmatpush3.bf16.msra.mxu1 %v4797_v1  ;;  %4345 = vmatprep.subr.bf16.mxu0 %v4801_v6  ;;  %v184_v1 = vld [vmem:[%s4902_s23 + $0x60] sm:$0xff] }
  0x44   : > { %4242 = vmatmul.mubr.bf16.gmra.mxu0 %v5012_v7  ;;  %4266 = vmatmul.mubr.bf16.gmra.mxu1 %v317_v8  ;;  %v5107_v8 = vpack.c.bf16 %v183_v62, %v182_v61  ;;  %v5178_v61 = vld [vmem:[%s6264_s1 + $0x178] sm:$0xff]   ;;  %v194_v62 = vld [vmem:[%s4902_s23 + $0xb0] sm:$0xff] }
  0x45   : > { %4245 = vmatprep.mubr.bf16.mxu0 %v5014_v9  ;;  %4269 = vmatprep.mubr.bf16.mxu1 %v318_v10  ;;  %v5109_v10 = vpack.c.bf16 %v858_v0, %v857_v63  ;;  %v195_v63 = vld [vmem:[%s4902_s23 + $0xb8] sm:$0xff] }
  0x46   : > { %4285 = vmatprep.subr.bf16.mxu1 %v4799_v11  ;;  %4346 = vmatpush3.bf16.msra.mxu0 %v4801_v6  ;;  %v4808_v6 = vld [vmem:[%s6264_s1 + $0x128] sm:$0xff]   ;;  %v869_v0 = vld [vmem:[%s4902_s23 + $0x92] sm:$0xff] }
  0x47   : > { %4286 = vmatpush3.bf16.msra.mxu1 %v4799_v11  ;;  %4347 = vmatprep.subr.bf16.mxu0 %v4802_v16  ;;  %v5111_v11 = vpack.c.bf16 %v185_v3, %v184_v1  ;;  %v870_v1 = vld [vmem:[%s4902_s23 + $0x9a] sm:$0xff]  ;;  %v197_v3 = vld [vmem:[%s4902_s23 + $0xc8] sm:$0xff] }
  0x48   : > { %4287 = vmatprep.subr.bf16.mxu1 %v4800_v17 }
  0x4a   : > { %4348 = vmatpush3.bf16.msra.mxu0 %v4802_v16  ;;  %v861_v16 = vld [vmem:[%s4902_s23 + $0x52] sm:$0xff] }
  0x4b   : > { %4288 = vmatpush3.bf16.msra.mxu1 %v4800_v17  ;;  %4453 = vmatprep.subr.bf16.mxu0 %v4804_v22  ;;  %v862_v17 = vld [vmem:[%s4902_s23 + $0x5a] sm:$0xff] }
  0x4c   : > { %4246 = vmatmul.mubr.bf16.gmra.mxu0 %v5038_v23  ;;  %4270 = vmatmul.mubr.bf16.gmra.mxu1 %v319_v25  ;;  %v864_v25 = vld [vmem:[%s4902_s23 + $0x6a] sm:$0xff]  ;;  %v900_v30 = vpack.c.bf16 %v862_v17, %v861_v16  ;;  %v905_v16 = vpack.c.bf16 %v872_v5, %v871_v4  ;;  %v883_v4 = vld [vmem:[%s4902_s23 + $0x102] sm:$0xff] }
  0x4d   : > { %4249 = vmatprep.mubr.bf16.mxu0 %v5040_v27  ;;  %4289 = vmatprep.mubr.bf16.mxu1 %v216_v28  ;;  %v4812_v28 = vld [vmem:[%s6264_s1 + $0x118] sm:$0xff]   ;;  %v198_v17 = vld [vmem:[%s4902_s23 + $0xd0] sm:$0xff] }
  0x4e   : > { %4393 = vmatprep.subr.bf16.mxu1 %v4803_v29  ;;  %v884_v5 = vld [vmem:[%s4902_s23 + $0x10a] sm:$0xff] }
  0x54   : > { %4250 = vmatmul.mubr.bf16.gmra.mxu0 %v5055_v38  ;;  %4290 = vmatmul.mubr.bf16.vlgmr.msra.gmra.mxu1 %v5057_v40 }
  0x55   : > { %4293 = vmatprep.mubr.bf16.mxu1 %v5059_v42  ;;  %4349 = vmatprep.mubr.bf16.mxu0 %v895_v43  ;;  %v4814_v43 = vld [vmem:[%s6264_s1 + $0x110] sm:$0xff]  }
  0x56   : > { %4394 = vmatpush3.bf16.msra.mxu1 %v4803_v29  ;;  %v5139_v29 = vpack.c.bf16 %v187_v15, %v186_v14  ;;  %v904_v14 = vpack.c.bf16 %v870_v1, %v869_v0  ;;  %v881_v0 = vld [vmem:[%s4902_s23 + $0xf2] sm:$0xff]  ;;  %v882_v1 = vld [vmem:[%s4902_s23 + $0xfa] sm:$0xff] }
  0x57   : > { %4395 = vmatprep.subr.bf16.mxu1 %v4805_v45 }
  0x5a   : > { %4396 = vmatpush3.bf16.msra.mxu1 %v4805_v45  ;;  %v193_v45 = vld [vmem:[%s4902_s23 + $0xa8] sm:$0xff] }
  0x5b   : > { %4397 = vmatprep.subr.bf16.mxu1 %v4807_v53  ;;  %v5170_v52 = vpack.c.bf16 %v193_v45, %v192_v44  ;;  %v878_v44 = vld [vmem:[%s4902_s23 + $0xda] sm:$0xff] }
  0x5c   : > { %4294 = vmatmul.mubr.bf16.gmra.mxu1 %v5078_v54  ;;  %4350 = vmatmul.mubr.bf16.vlgmr.msra.gmra.mxu0 %v5080_v56  ;;  %v204_v45 = vld [vmem:[%s4902_s23 + $0x100] sm:$0xff] }
  0x5d   : > { %4454 = vmatpush3.bf16.msra.mxu0 %v4804_v22  ;;  %4297 = vmatprep.mubr.bf16.mxu1 %v5082_v58  ;;  %v863_v22 = vld [vmem:[%s4902_s23 + $0x62] sm:$0xff] }
  0x5e   : > { %4353 = vmatprep.mubr.bf16.mxu0 %v5084_v59  ;;  %4455 = vmatprep.subr.bf16.mxu0 %v4806_v60  ;;  %v5143_v32 = vpack.c.bf16 %v864_v25, %v863_v22  ;;  %v201_v22 = vld [vmem:[%s4902_s23 + $0xe8] sm:$0xff] }
  0x5f   : > { %4398 = vmatpush3.bf16.msra.mxu1 %v4807_v53  ;;  %v903_v53 = vpack.c.bf16 %v868_v47, %v867_v46  ;;  %v875_v25 = vld [vmem:[%s4902_s23 + $0xc2] sm:$0xff]  ;;  %v5213_v34 = vpack.c.bf16 %v201_v22, %v200_v21  ;;  %v885_v21 = vld [vmem:[%s4902_s23 + $0x112] sm:$0xff]  ;;  %v886_v22 = vld [vmem:[%s4902_s23 + $0x11a] sm:$0xff] }
  0x60   : > { %4399 = vmatprep.subr.bf16.mxu1 %v4809_v2  ;;  %v205_v46 = vld [vmem:[%s4902_s23 + $0x108] sm:$0xff] }
  0x61   : > { %4456 = vmatpush3.bf16.msra.mxu0 %v4806_v60  ;;  %v4818_v60 = vld [vmem:[%s6264_s1 + $0x100] sm:$0xff]  }
  0x62   : > { %4457 = vmatprep.subr.bf16.mxu0 %v4808_v6  ;;  %v879_v47 = vld [vmem:[%s4902_s23 + $0xe2] sm:$0xff] }
  0x63   : > { %4400 = vmatpush3.bf16.msra.mxu1 %v4809_v2  ;;  %v196_v2 = vld [vmem:[%s4902_s23 + $0xc0] sm:$0xff] }
  0x64   : > { %4298 = vmatmul.mubr.bf16.gmra.mxu1 %v5107_v8  ;;  %4354 = vmatmul.mubr.bf16.gmra.mxu0 %v5109_v10  ;;  %v5198_v15 = vpack.c.bf16 %v197_v3, %v196_v2  ;;  %v208_v2 = vld [vmem:[%s4902_s23 + $0x120] sm:$0xff]  ;;  %v209_v3 = vld [vmem:[%s4902_s23 + $0x128] sm:$0xff] }
  0x65   : > { %4301 = vmatprep.mubr.bf16.mxu1 %v5111_v11  ;;  %4357 = vmatprep.mubr.bf16.mxu0 %v5113_v12 }
  0x66   : > { %4458 = vmatpush3.bf16.msra.mxu0 %v4808_v6  ;;  %4401 = vmatprep.subr.bf16.mxu1 %v4811_v13  ;;  %v5194_v6 = vld [vmem:[%s6264_s1 + $0x1b8] sm:$0xff]  }
  0x67   : > { %4459 = vmatprep.subr.bf16.mxu0 %v4810_v18  ;;  %4402 = vmatpush3.bf16.msra.mxu1 %v4811_v13  ;;  %v5196_v13 = vpack.c.bf16 %v195_v63, %v194_v62  ;;  %v206_v62 = vld [vmem:[%s4902_s23 + $0x110] sm:$0xff]  ;;  %v207_v63 = vld [vmem:[%s4902_s23 + $0x118] sm:$0xff] }
  0x68   : > { %4403 = vmatprep.subr.bf16.mxu1 %v4813_v20 }
  0x6a   : > { %4460 = vmatpush3.bf16.msra.mxu0 %v4810_v18  ;;  %v199_v18 = vld [vmem:[%s4902_s23 + $0xd8] sm:$0xff] }
  0x6b   : > { %4461 = vmatprep.subr.bf16.mxu0 %v4812_v28  ;;  %4404 = vmatpush3.bf16.msra.mxu1 %v4813_v20  ;;  %v874_v20 = vld [vmem:[%s4902_s23 + $0xba] sm:$0xff] }
  0x6c   : > { %4302 = vmatmul.mubr.bf16.gmra.mxu1 %v5139_v29  ;;  %4358 = vmatmul.mubr.bf16.gmra.mxu0 %v900_v30  ;;  %v5211_v30 = vpack.c.bf16 %v199_v18, %v198_v17  ;;  %v5241_v17 = vpack.c.bf16 %v209_v3, %v208_v2  ;;  %v911_v18 = vpack.c.bf16 %v884_v5, %v883_v4  ;;  %v894_v2 = vld [vmem:[%s4902_s23 + $0x15a] sm:$0xff]  ;;  %v4821_v4 = vld [vmem:[%s6264_s1 + $0x170] sm:$0xff]  }
  0x6d   : > { %4305 = vmatprep.mubr.bf16.mxu1 %v5141_v31  ;;  %4361 = vmatprep.mubr.bf16.mxu0 %v5143_v32  ;;  %v4822_v5 = vld [vmem:[%s6264_s1 + $0x1b0] sm:$0xff]  }
  0x6e   : > { %4462 = vmatpush3.bf16.msra.mxu0 %v4812_v28  ;;  %4405 = vmatprep.subr.bf16.mxu1 %v4815_v33  ;;  %v876_v28 = vld [vmem:[%s4902_s23 + $0xca] sm:$0xff] }
  0x6f   : > { %4463 = vmatprep.subr.bf16.mxu0 %v4814_v43  ;;  %4406 = vmatpush3.bf16.msra.mxu1 %v4815_v33  ;;  %v906_v33 = vpack.c.bf16 %v874_v20, %v873_v19  ;;  %v907_v35 = vpack.c.bf16 %v876_v28, %v875_v25  ;;  %v210_v19 = vld [vmem:[%s4902_s23 + $0x130] sm:$0xff]  ;;  %v211_v20 = vld [vmem:[%s4902_s23 + $0x138] sm:$0xff]  ;;  %v212_v25 = vld [vmem:[%s4902_s23 + $0x140] sm:$0xff] }
  0x70   : > { %4407 = vmatprep.subr.bf16.mxu1 %v4817_v48  ;;  %v213_v28 = vld [vmem:[%s4902_s23 + $0x148] sm:$0xff] }
  0x72   : > { %4464 = vmatpush3.bf16.msra.mxu0 %v4814_v43  ;;  %v877_v43 = vld [vmem:[%s4902_s23 + $0xd2] sm:$0xff] }
  0x73   : > { %4465 = vmatprep.subr.bf16.mxu0 %v4816_v49  ;;  %4408 = vmatpush3.bf16.msra.mxu1 %v4817_v48  ;;  %v880_v48 = vld [vmem:[%s4902_s23 + $0xea] sm:$0xff] }
  0x74   : > { %4306 = vmatmul.mubr.bf16.gmra.mxu1 %v5168_v50  ;;  %4362 = vmatmul.mubr.bf16.gmra.mxu0 %v902_v51  ;;  %v908_v51 = vpack.c.bf16 %v878_v44, %v877_v43  ;;  %v5255_v43 = vpack.c.bf16 %v213_v28, %v212_v25 }
  0x75   : > { %4309 = vmatprep.mubr.bf16.mxu1 %v5170_v52  ;;  %4365 = vmatprep.mubr.bf16.mxu0 %v903_v53  ;;  %v5227_v53 = vpack.c.bf16 %v205_v46, %v204_v45  ;;  %v214_v45 = vld [vmem:[%s4902_s23 + $0x150] sm:$0xff]  ;;  %v215_v46 = vld [vmem:[%s4902_s23 + $0x158] sm:$0xff] }
  0x76   : > { %4466 = vmatpush3.bf16.msra.mxu0 %v4816_v49  ;;  %4513 = vmatprep.subr.bf16.mxu1 %v5178_v61  ;;  %v5225_v49 = vpack.c.bf16 %v203_v37, %v202_v36  ;;  %v5253_v36 = vpack.c.bf16 %v211_v20, %v210_v19  ;;  %v912_v37 = vpack.c.bf16 %v886_v22, %v885_v21 }
  0x77   : > { %4467 = vmatprep.subr.bf16.mxu0 %v4818_v60 }
  0x7a   : > { %4468 = vmatpush3.bf16.msra.mxu0 %v4818_v60  ;;  %v909_v60 = vpack.c.bf16 %v880_v48, %v879_v47  ;;  %v889_v47 = vld [vmem:[%s4902_s23 + $0x132] sm:$0xff]  ;;  %v890_v48 = vld [vmem:[%s4902_s23 + $0x13a] sm:$0xff] }
  0x7b   : > { %4573 = vmatprep.subr.bf16.mxu0 %v5194_v6 }
  0x7c   : > { %4310 = vmatmul.mubr.bf16.gmra.mxu1 %v5196_v13  ;;  %4366 = vmatmul.mubr.bf16.gmra.mxu0 %v904_v14  ;;  %v5239_v14 = vpack.c.bf16 %v207_v63, %v206_v62  ;;  %v5265_v62 = vpack.c.bf16 %v215_v46, %v214_v45  ;;  %v914_v63 = vpack.c.bf16 %v890_v48, %v889_v47 }
  0x7d   : > { %4313 = vmatprep.mubr.bf16.mxu1 %v5198_v15  ;;  %4369 = vmatprep.mubr.bf16.mxu0 %v905_v16  ;;  %v910_v16 = vpack.c.bf16 %v882_v1, %v881_v0  ;;  %v893_v1 = vld [vmem:[%s4902_s23 + $0x152] sm:$0xff] }
  0x7e   : > { %v916_v3 = vpack.c.bf16 %v894_v2, %v893_v1 }
  0x84   : > { %4314 = vmatmul.mubr.bf16.gmra.mxu1 %v5211_v30  ;;  %4370 = vmatmul.mubr.bf16.gmra.mxu0 %v906_v33  ;;  %v887_v33 = vld [vmem:[%s4902_s23 + $0x122] sm:$0xff] }
  0x85   : > { %4317 = vmatprep.mubr.bf16.mxu1 %v5213_v34  ;;  %4373 = vmatprep.mubr.bf16.mxu0 %v907_v35  ;;  %v888_v35 = vld [vmem:[%s4902_s23 + $0x12a] sm:$0xff] }
  0x86   : > { %v913_v44 = vpack.c.bf16 %v888_v35, %v887_v33  ;;  %v1655_v33 = vld [vmem:[%s4902_s23 + $0x131] sm:$0xff]  ;;  %v1656_v35 = vld [vmem:[%s4902_s23 + $0x139] sm:$0xff] }
  0x8c   : > { %4318 = vmatmul.mubr.bf16.gmra.mxu1 %v5225_v49  ;;  %4374 = vmatmul.mubr.bf16.gmra.mxu0 %v908_v51  ;;  %v891_v51 = vld [vmem:[%s4902_s23 + $0x142] sm:$0xff] }
  0x8d   : > { %4321 = vmatprep.mubr.bf16.mxu1 %v5227_v53  ;;  %4377 = vmatprep.mubr.bf16.mxu0 %v909_v60  ;;  %v892_v60 = vld [vmem:[%s4902_s23 + $0x14a] sm:$0xff] }
  0x8e   : > { %v915_v0 = vpack.c.bf16 %v892_v60, %v891_v51  ;;  %v1277_v51 = vld [vmem:[%s4902_s23 + $0x160] sm:$0xff]  ;;  %v1278_v60 = vld [vmem:[%s4902_s23 + $0x168] sm:$0xff] }
  0x94   : > { %4322 = vmatmul.mubr.bf16.gmra.mxu1 %v5239_v14  ;;  %4378 = vmatmul.mubr.bf16.gmra.mxu0 %v910_v16  ;;  %v1650_v16 = vld [vmem:[%s4902_s23 + $0x109] sm:$0xff] }
  0x95   : > { %4325 = vmatprep.mubr.bf16.mxu1 %v5241_v17  ;;  %4381 = vmatprep.mubr.bf16.mxu0 %v911_v18  ;;  %v1652_v18 = vld [vmem:[%s4902_s23 + $0x119] sm:$0xff] }
  0x9c   : > { %4326 = vmatmul.mubr.bf16.gmra.mxu1 %v5253_v36  ;;  %4382 = vmatmul.mubr.bf16.gmra.mxu0 %v912_v37 }
  0x9d   : > { %4329 = vmatprep.mubr.bf16.mxu1 %v5255_v43  ;;  %4385 = vmatprep.mubr.bf16.mxu0 %v913_v44 }
  0xa4   : > { %4330 = vmatmul.mubr.bf16.gmra.mxu1 %v5265_v62  ;;  %4386 = vmatmul.mubr.bf16.gmra.mxu0 %v914_v63  ;;  %v1657_v63 = vld [vmem:[%s4902_s23 + $0x141] sm:$0xff] }
  0xa5   : > { %4389 = vmatprep.mubr.bf16.mxu0 %v915_v0  ;;  %4409 = vmatprep.mubr.bf16.mxu1 %v5057_v40  ;;  %v4823_v40 = vld [vmem:[%s6264_s1 + $0x168] sm:$0xff]  }
  0xa6   : > { %v1658_v0 = vld [vmem:[%s4902_s23 + $0x149] sm:$0xff] }
  0xac   : > { %4390 = vmatmul.mubr.bf16.gmra.mxu0 %v916_v3  ;;  %4410 = vmatmul.mubr.bf16.vlgmr.msra.gmra.mxu1 %v5059_v42  ;;  %v4824_v42 = vld [vmem:[%s6264_s1 + $0x1a8] sm:$0xff]   ;;  %v1659_v3 = vld [vmem:[%s4902_s23 + $0x151] sm:$0xff] }
  0xad   : > { %4413 = vmatprep.mubr.bf16.mxu1 %v5078_v54  ;;  %4469 = vmatprep.mubr.bf16.mxu0 %v4937_v24  ;;  %v4825_v24 = vld [vmem:[%s6264_s1 + $0x160] sm:$0xff]  }
  0xae   : > { %4514 = vmatpush3.bf16.msra.mxu1 %v5178_v61  ;;  %v4826_v54 = vld [vmem:[%s6264_s1 + $0x1a0] sm:$0xff]  }
  0xaf   : > { %4515 = vmatprep.subr.bf16.mxu1 %v4821_v4 }
  0xb2   : > { %4516 = vmatpush3.bf16.msra.mxu1 %v4821_v4  ;;  %v1660_v4 = vld [vmem:[%s4902_s23 + $0x159] sm:$0xff] }
  0xb3   : > { %4517 = vmatprep.subr.bf16.mxu1 %v4823_v40 }
  0xb4   : > { %4414 = vmatmul.mubr.bf16.gmra.mxu1 %v5082_v58  ;;  %4470 = vmatmul.mubr.bf16.vlgmr.msra.gmra.mxu0 %v4939_v26  ;;  %v4827_v26 = vld [vmem:[%s6264_s1 + $0x158] sm:$0xff]  }
  0xb5   : > { %4574 = vmatpush3.bf16.msra.mxu0 %v5194_v6  ;;  %4417 = vmatprep.mubr.bf16.mxu1 %v5107_v8  ;;  %v4828_v58 = vld [vmem:[%s6264_s1 + $0x198] sm:$0xff]   ;;  %v4833_v8 = vld [vmem:[%s6264_s1 + $0x140] sm:$0xff]   ;;  %v1646_v6 = vld [vmem:[%s4902_s23 + $0xe9] sm:$0xff] }
  0xb6   : > { %4473 = vmatprep.mubr.bf16.mxu0 %v4960_v39  ;;  %4575 = vmatprep.subr.bf16.mxu0 %v4822_v5  ;;  %v4829_v39 = vld [vmem:[%s6264_s1 + $0x150] sm:$0xff]  }
  0xb7   : > { %4518 = vmatpush3.bf16.msra.mxu1 %v4823_v40 }
  0xb8   : > { %4519 = vmatprep.subr.bf16.mxu1 %v4825_v24 }
  0xb9   : > { %4576 = vmatpush3.bf16.msra.mxu0 %v4822_v5 }
  0xba   : > { %4577 = vmatprep.subr.bf16.mxu0 %v4824_v42 }
  0xbb   : > { %4520 = vmatpush3.bf16.msra.mxu1 %v4825_v24  ;;  %v1683_v24 = vpack.c.bf16 %v1660_v4, %v1659_v3  ;;  %v2016_v3 = vld [vmem:[%s4902_s23 + $0x7a] sm:$0xff] }
  0xbc   : > { %4418 = vmatmul.mubr.bf16.gmra.mxu1 %v5111_v11  ;;  %4474 = vmatmul.mubr.bf16.gmra.mxu0 %v4962_v41  ;;  %v4831_v41 = vld [vmem:[%s6264_s1 + $0x148] sm:$0xff]  }
  0xbd   : > { %4421 = vmatprep.mubr.bf16.mxu1 %v5139_v29  ;;  %4477 = vmatprep.mubr.bf16.mxu0 %v4986_v55  ;;  %v4830_v55 = vld [vmem:[%s6264_s1 + $0x190] sm:$0xff]   ;;  %v4832_v11 = vld [vmem:[%s6264_s1 + $0x188] sm:$0xff]   ;;  %v5343_v29 = vld [vmem:[%s6264_s1 + $0x238] sm:$0xff]  }
  0xbe   : > { %4578 = vmatpush3.bf16.msra.mxu0 %v4824_v42  ;;  %4521 = vmatprep.subr.bf16.mxu1 %v4827_v26 }
  0xbf   : > { %4579 = vmatprep.subr.bf16.mxu0 %v4826_v54  ;;  %4522 = vmatpush3.bf16.msra.mxu1 %v4827_v26 }
  0xc0   : > { %4523 = vmatprep.subr.bf16.mxu1 %v4829_v39 }
  0xc2   : > { %4580 = vmatpush3.bf16.msra.mxu0 %v4826_v54 }
  0xc3   : > { %4581 = vmatprep.subr.bf16.mxu0 %v4828_v58  ;;  %4524 = vmatpush3.bf16.msra.mxu1 %v4829_v39 }
  0xc4   : > { %4422 = vmatmul.mubr.bf16.gmra.mxu1 %v5141_v31  ;;  %4478 = vmatmul.mubr.bf16.gmra.mxu0 %v4988_v57  ;;  %v5330_v57 = vld [vmem:[%s6264_s1 + $0x1f8] sm:$0xff]  }
  0xc5   : > { %4425 = vmatprep.mubr.bf16.mxu1 %v5168_v50  ;;  %4481 = vmatprep.mubr.bf16.mxu0 %v5012_v7  ;;  %v4834_v7 = vld [vmem:[%s6264_s1 + $0x180] sm:$0xff]   ;;  %v1643_v31 = vld [vmem:[%s4902_s23 + $0xd1] sm:$0xff] }
  0xc6   : > { %4582 = vmatpush3.bf16.msra.mxu0 %v4828_v58  ;;  %4525 = vmatprep.subr.bf16.mxu1 %v4831_v41  ;;  %v1644_v50 = vld [vmem:[%s4902_s23 + $0xd9] sm:$0xff]  ;;  %v1661_v58 = vld [vmem:[%s4902_s23 + $0x161] sm:$0xff] }
  0xc7   : > { %4583 = vmatprep.subr.bf16.mxu0 %v4830_v55  ;;  %4526 = vmatpush3.bf16.msra.mxu1 %v4831_v41  ;;  %v1675_v61 = vpack.c.bf16 %v1644_v50, %v1643_v31  ;;  %v1662_v41 = vld [vmem:[%s4902_s23 + $0x169] sm:$0xff] }
  0xc8   : > { %4527 = vmatprep.subr.bf16.mxu1 %v4833_v8  ;;  %v1684_v31 = vpack.c.bf16 %v1662_v41, %v1661_v58  ;;  %v4840_v58 = vld [vmem:[%s6264_s1 + $0x228] sm:$0xff]  }
  0xca   : > { %4584 = vmatpush3.bf16.msra.mxu0 %v4830_v55 }
  0xcb   : > { %4585 = vmatprep.subr.bf16.mxu0 %v4832_v11  ;;  %4528 = vmatpush3.bf16.msra.mxu1 %v4833_v8 }
  0xcc   : > { %4426 = vmatmul.mubr.bf16.gmra.mxu1 %v5170_v52  ;;  %4482 = vmatmul.mubr.bf16.gmra.mxu0 %v5014_v9  ;;  %v1641_v9 = vld [vmem:[%s4902_s23 + $0xc1] sm:$0xff] }
  0xcd   : > { %4429 = vmatprep.mubr.bf16.mxu1 %v5196_v13  ;;  %4485 = vmatprep.mubr.bf16.mxu0 %v5038_v23  ;;  %v1642_v23 = vld [vmem:[%s4902_s23 + $0xc9] sm:$0xff]  ;;  %v1647_v13 = vld [vmem:[%s4902_s23 + $0xf1] sm:$0xff] }
  0xce   : > { %4586 = vmatpush3.bf16.msra.mxu0 %v4832_v11  ;;  %4633 = vmatprep.subr.bf16.mxu1 %v5330_v57  ;;  %v1674_v52 = vpack.c.bf16 %v1642_v23, %v1641_v9  ;;  %v2387_v11 = vld [vmem:[%s4902_s23 + $0x20] sm:$0xff] }
  0xcf   : > { %4587 = vmatprep.subr.bf16.mxu0 %v4834_v7 }
  0xd2   : > { %4588 = vmatpush3.bf16.msra.mxu0 %v4834_v7  ;;  %v2388_v7 = vld [vmem:[%s4902_s23 + $0x28] sm:$0xff] }
  0xd3   : > { %4693 = vmatprep.subr.bf16.mxu0 %v5343_v29  ;;  %v2431_v50 = vpack.c.bf16 %v2388_v7, %v2387_v11 }
  0xd4   : > { %4430 = vmatmul.mubr.bf16.gmra.mxu1 %v5198_v15  ;;  %4486 = vmatmul.mubr.bf16.gmra.mxu0 %v5040_v27  ;;  %v1645_v27 = vld [vmem:[%s4902_s23 + $0xe1] sm:$0xff] }
  0xd5   : > { %4433 = vmatprep.mubr.bf16.mxu1 %v5211_v30  ;;  %4489 = vmatprep.mubr.bf16.mxu0 %v5055_v38  ;;  %v1648_v38 = vld [vmem:[%s4902_s23 + $0xf9] sm:$0xff]  ;;  %v1676_v15 = vpack.c.bf16 %v1646_v6, %v1645_v27 }
  0xd6   : > { %v1677_v30 = vpack.c.bf16 %v1648_v38, %v1647_v13  ;;  %v2389_v13 = vld [vmem:[%s4902_s23 + $0x30] sm:$0xff]  ;;  %v2390_v38 = vld [vmem:[%s4902_s23 + $0x38] sm:$0xff] }
  0xdc   : > { %4434 = vmatmul.mubr.bf16.gmra.mxu1 %v5213_v34  ;;  %4490 = vmatmul.mubr.bf16.gmra.mxu0 %v1674_v52  ;;  %v1649_v34 = vld [vmem:[%s4902_s23 + $0x101] sm:$0xff] }
  0xdd   : > { %4437 = vmatprep.mubr.bf16.mxu1 %v5225_v49  ;;  %4493 = vmatprep.mubr.bf16.mxu0 %v1675_v61  ;;  %v1651_v49 = vld [vmem:[%s4902_s23 + $0x111] sm:$0xff]  ;;  %v1678_v19 = vpack.c.bf16 %v1650_v16, %v1649_v34  ;;  %v2012_v16 = vld [vmem:[%s4902_s23 + $0x5a] sm:$0xff] }
  0xde   : > { %v1679_v20 = vpack.c.bf16 %v1652_v18, %v1651_v49  ;;  %v4837_v61 = vld [vmem:[%s6264_s1 + $0x1f0] sm:$0xff]   ;;  %v2391_v49 = vld [vmem:[%s4902_s23 + $0x40] sm:$0xff]  ;;  %v2392_v18 = vld [vmem:[%s4902_s23 + $0x48] sm:$0xff] }
  0xdf   : > { %v2011_v34 = vld [vmem:[%s4902_s23 + $0x52] sm:$0xff] }
  0xe4   : > { %4438 = vmatmul.mubr.bf16.gmra.mxu1 %v5227_v53  ;;  %4494 = vmatmul.mubr.bf16.gmra.mxu0 %v1676_v15  ;;  %v1653_v53 = vld [vmem:[%s4902_s23 + $0x121] sm:$0xff] }
  0xe5   : > { %4441 = vmatprep.mubr.bf16.mxu1 %v5239_v14  ;;  %4497 = vmatprep.mubr.bf16.mxu0 %v1677_v30  ;;  %v1654_v14 = vld [vmem:[%s4902_s23 + $0x129] sm:$0xff] }
  0xec   : > { %v5366_v21 = vpop.f32.mrf.mxu0  ;;  %v5368_v22 = vpop.f32.mrf.mxu1  ;;  %4442 = vmatmul.mubr.bf16.gmra.mxu1 %v5241_v17  ;;  %4498 = vmatmul.mubr.bf16.gmra.mxu0 %v1678_v19  ;;  %v1680_v17 = vpack.c.bf16 %v1654_v14, %v1653_v53  ;;  %v5463_v53 = vpack.c.bf16 %v2012_v16, %v2011_v34 }
  0xed   : > { %4445 = vmatprep.mubr.bf16.mxu1 %v5253_v36  ;;  %4501 = vmatprep.mubr.bf16.mxu0 %v1679_v20  ;;  %v1681_v36 = vpack.c.bf16 %v1656_v35, %v1655_v33  ;;  %v2432_v20 = vpack.c.bf16 %v2390_v38, %v2389_v13  ;;  %v2433_v33 = vpack.c.bf16 %v2392_v18, %v2391_v49  ;;  %v4838_v35 = vld [vmem:[%s6264_s1 + $0x230] sm:$0xff]   ;;  %v4843_v13 = vld [vmem:[%s6264_s1 + $0x1d8] sm:$0xff]   ;;  %v4842_v38 = vld [vmem:[%s6264_s1 + $0x220] sm:$0xff]  }
  0xee   : > { %v5374_v25 = vpop.f32.mrf.mxu0  ;;  %v5376_v28 = vpop.f32.mrf.mxu1  ;;  %6283 = vst [vmem:[#allocation2_spill] sm:$0xff] %v5463_v53  ;;  %v2017_v49 = vld [vmem:[%s4902_s23 + $0x82] sm:$0xff]  ;;  %v2018_v18 = vld [vmem:[%s4902_s23 + $0x8a] sm:$0xff] }
  0xf0   : > { %v5380_v37 = vpop.f32.mrf.mxu0  ;;  %v5382_v44 = vpop.f32.mrf.mxu1 }
  0xf2   : > { %v5384_v45 = vpop.f32.mrf.mxu0  ;;  %v5386_v46 = vpop.f32.mrf.mxu1 }
  0xf4   : > { %v5388_v47 = vpop.f32.mrf.mxu0  ;;  %v5390_v48 = vpop.f32.mrf.mxu1  ;;  %4446 = vmatmul.mubr.bf16.gmra.mxu1 %v5255_v43  ;;  %4502 = vmatmul.mubr.bf16.gmra.mxu0 %v1680_v17  ;;  %v5408_v43 = vpack.c.bf16 %v1278_v60, %v1277_v51  ;;  %v2393_v51 = vld [vmem:[%s4902_s23 + $0x50] sm:$0xff]  ;;  %v4841_v60 = vld [vmem:[%s6264_s1 + $0x1e0] sm:$0xff]  }
  0xf5   : > { %4449 = vmatprep.mubr.bf16.mxu1 %v5265_v62  ;;  %4505 = vmatprep.mubr.bf16.mxu0 %v1681_v36  ;;  %v1682_v62 = vpack.c.bf16 %v1658_v0, %v1657_v63  ;;  %v2394_v63 = vld [vmem:[%s4902_s23 + $0x58] sm:$0xff] }
  0xf6   : > { %v5398_v1 = vpop.f32.mrf.mxu0  ;;  %v5400_v2 = vpop.f32.mrf.mxu1  ;;  %v2015_v0 = vld [vmem:[%s4902_s23 + $0x72] sm:$0xff]  ;;  %v2434_v11 = vpack.c.bf16 %v2394_v63, %v2393_v51 }
  0xf7   : > { %v5499_v7 = vpack.c.bf16 %v2016_v3, %v2015_v0  ;;  %v2019_v51 = vld [vmem:[%s4902_s23 + $0x92] sm:$0xff]  ;;  %v2020_v0 = vld [vmem:[%s4902_s23 + $0x9a] sm:$0xff]  ;;  %v2400_v3 = vld [vmem:[%s4902_s23 + $0x88] sm:$0xff] }
  0xf8   : > { %v5404_v40 = vpop.f32.mrf.mxu0  ;;  %v5406_v5 = vpop.f32.mrf.mxu1 }
  0xf9   : > { %6286 = vst [vmem:[#allocation5_spill] sm:$0xff] %v5499_v7 }
  0xfa   : > { %v5410_v42 = vpop.f32.mrf.mxu0  ;;  %v5412_v26 = vpop.f32.mrf.mxu1 }
  0xfc   : > { %v5414_v54 = vpop.f32.mrf.mxu0  ;;  %v5416_v39 = vpop.f32.mrf.mxu1  ;;  %4450 = vmatmul.mubr.bf16.gmra.mxu1 %v5408_v43  ;;  %4506 = vmatmul.mubr.bf16.gmra.mxu0 %v1682_v62 }
  0xfd   : > { %4509 = vmatprep.mubr.bf16.mxu0 %v1683_v24  ;;  %4529 = vmatprep.mubr.bf16.mxu1 %v5080_v56  ;;  %v2396_v24 = vld [vmem:[%s4902_s23 + $0x68] sm:$0xff] }
  0xfe   : > { %v5422_v55 = vpop.f32.mrf.mxu0  ;;  %v5424_v8 = vpop.f32.mrf.mxu1 }
 0x100   : > { %v5428_v9 = vpop.f32.mrf.mxu0  ;;  %v5430_v23 = vpop.f32.mrf.mxu1 }
 0x102   : > { %v5432_v52 = vpop.f32.mrf.mxu0  ;;  %v5434_v56 = vpop.f32.mrf.mxu1 }
 0x104   : > { %v5439_v27 = vpop.f32.mrf.mxu0  ;;  %v5441_v6 = vpop.f32.mrf.mxu1  ;;  %4510 = vmatmul.mubr.bf16.gmra.mxu0 %v1684_v31  ;;  %4530 = vmatmul.mubr.bf16.vlgmr.msra.gmra.mxu1 %v5084_v59  ;;  %v4839_v59 = vld [vmem:[%s6264_s1 + $0x1e8] sm:$0xff]  }
 0x105   : > { %4533 = vmatprep.mubr.bf16.mxu1 %v5109_v10  ;;  %4589 = vmatprep.mubr.bf16.mxu0 %v2431_v50 }
 0x106   : > { %v5447_v15 = vpop.f32.mrf.mxu0  ;;  %v5449_v30 = vpop.f32.mrf.mxu1  ;;  %4634 = vmatpush3.bf16.msra.mxu1 %v5330_v57 }
 0x107   : > { %4635 = vmatprep.subr.bf16.mxu1 %v4837_v61 }
 0x108   : > { %v5459_v10 = vpop.f32.mrf.mxu0  ;;  %v5461_v19 = vpop.f32.mrf.mxu1 }
 0x10a   : > { %v5465_v57 = vpop.f32.mrf.mxu0  ;;  %v5467_v14 = vpop.f32.mrf.mxu1  ;;  %4636 = vmatpush3.bf16.msra.mxu1 %v4837_v61 }
 0x10b   : > { %4637 = vmatprep.subr.bf16.mxu1 %v4839_v59 }
 0x10c   : > { %v5472_v17 = vpop.f32.mrf.mxu0  ;;  %v5474_v36 = vpop.f32.mrf.mxu1  ;;  %4534 = vmatmul.mubr.bf16.gmra.mxu1 %v5113_v12  ;;  %4590 = vmatmul.mubr.bf16.vlgmr.msra.gmra.mxu0 %v2432_v20  ;;  %v2395_v12 = vld [vmem:[%s4902_s23 + $0x60] sm:$0xff] }
 0x10d   : > { %4694 = vmatpush3.bf16.msra.mxu0 %v5343_v29  ;;  %4537 = vmatprep.mubr.bf16.mxu1 %v5463_v53  ;;  %v2435_v31 = vpack.c.bf16 %v2396_v24, %v2395_v12 }
 0x10e   : > { %v5486_v4 = vpop.f32.mrf.mxu0  ;;  %v5488_v62 = vpop.f32.mrf.mxu1  ;;  %4593 = vmatprep.mubr.bf16.mxu0 %v2433_v33  ;;  %4695 = vmatprep.subr.bf16.mxu0 %v4838_v35  ;;  %v2397_v33 = vld [vmem:[%s4902_s23 + $0x70] sm:$0xff] }
 0x10f   : > { %6284 = vst [vmem:[#allocation3_spill] sm:$0xff] %v5488_v62  ;;  %4638 = vmatpush3.bf16.msra.mxu1 %v4839_v59  ;;  %v4845_v59 = vld [vmem:[%s6264_s1 + $0x1d0] sm:$0xff]  }
 0x110   : > { %v5495_v41 = vpop.f32.mrf.mxu0  ;;  %v5497_v29 = vpop.f32.mrf.mxu1  ;;  %4639 = vmatprep.subr.bf16.mxu1 %v4841_v60 }
 0x111   : > { %6285 = vst [vmem:[#allocation4_spill] sm:$0xff] %v5497_v29  ;;  %4696 = vmatpush3.bf16.msra.mxu0 %v4838_v35  ;;  %v2398_v35 = vld [vmem:[%s4902_s23 + $0x78] sm:$0xff]  ;;  %v2404_v29 = vld [vmem:[%s4902_s23 + $0xa8] sm:$0xff] }
 0x112   : > { %v5501_v50 = vpop.f32.mrf.mxu0  ;;  %v5503_v61 = vpop.f32.mrf.mxu1  ;;  %4697 = vmatprep.subr.bf16.mxu0 %v4840_v58 }
 0x113   : > { %6287 = vst [vmem:[#allocation6_spill] sm:$0xff] %v5503_v61  ;;  %4640 = vmatpush3.bf16.msra.mxu1 %v4841_v60  ;;  %v4847_v61 = vld [vmem:[%s6264_s1 + $0x1c8] sm:$0xff]  }
 0x114   : > { %v5511_v34 = vpop.f32.mrf.mxu0  ;;  %v4291_v16 = vpop.f32.mrf.mxu1  ;;  %4538 = vmatmul.mubr.bf16.gmra.mxu1 %v5143_v32  ;;  %4594 = vmatmul.mubr.bf16.gmra.mxu0 %v2434_v11  ;;  %v2399_v32 = vld [vmem:[%s4902_s23 + $0x80] sm:$0xff] }
 0x115   : > { %v685_v20 = vadd.f32 %v4291_v16, %v5366_v21  ;;  %4541 = vmatprep.mubr.bf16.mxu1 %v5499_v7  ;;  %4597 = vmatprep.mubr.bf16.mxu0 %v2435_v31  ;;  %v4844_v21 = vld [vmem:[%s6264_s1 + $0x218] sm:$0xff]   ;;  %v5535_v31 = vpack.c.bf16 %v2018_v18, %v2017_v49  ;;  %v2436_v16 = vpack.c.bf16 %v2398_v35, %v2397_v33  ;;  %v2022_v35 = vld [vmem:[%s4902_s23 + $0xaa] sm:$0xff] }
 0x116   : > { %v5524_v60 = vpop.f32.mrf.mxu0  ;;  %v676_v63 = vpop.f32.mrf.mxu1  ;;  %4698 = vmatpush3.bf16.msra.mxu0 %v4840_v58  ;;  %4641 = vmatprep.subr.bf16.mxu1 %v4843_v13  ;;  %v5538_v58 = vpack.c.bf16 %v2020_v0, %v2019_v51  ;;  %v2401_v0 = vld [vmem:[%s4902_s23 + $0x90] sm:$0xff] }
 0x117   : > { %v677_v12 = vadd.f32 %v676_v63, %v5374_v25  ;;  %4699 = vmatprep.subr.bf16.mxu0 %v4842_v38  ;;  %4642 = vmatpush3.bf16.msra.mxu1 %v4843_v13  ;;  %6288 = vst [vmem:[#allocation7_spill] sm:$0xff] %v5535_v31  ;;  %v2437_v25 = vpack.c.bf16 %v2400_v3, %v2399_v32  ;;  %v2402_v32 = vld [vmem:[%s4902_s23 + $0x98] sm:$0xff] }
 0x118   : > { %v5533_v24 = vpop.f32.mrf.mxu0  ;;  %v4292_v11 = vpop.f32.mrf.mxu1  ;;  %4643 = vmatprep.subr.bf16.mxu1 %v4845_v59  ;;  %6289 = vst [vmem:[#allocation8_spill] sm:$0xff] %v5538_v58  ;;  %v2023_v3 = vld [vmem:[%s4902_s23 + $0xb2] sm:$0xff] }
 0x119   : > { %v688_v7 = vadd.f32 %v4292_v11, %v5380_v37  ;;  %v4846_v37 = vld [vmem:[%s6264_s1 + $0x210] sm:$0xff]  }
 0x11a   : > { %v5540_v63 = vpop.f32.mrf.mxu0  ;;  %v679_v13 = vpop.f32.mrf.mxu1  ;;  %4700 = vmatpush3.bf16.msra.mxu0 %v4842_v38  ;;  %v2021_v38 = vld [vmem:[%s4902_s23 + $0xa2] sm:$0xff] }
 0x11b   : > { %v680_v49 = vadd.f32 %v679_v13, %v5384_v45  ;;  %4701 = vmatprep.subr.bf16.mxu0 %v4844_v21  ;;  %4644 = vmatpush3.bf16.msra.mxu1 %v4845_v59  ;;  %v4849_v45 = vld [vmem:[%s6264_s1 + $0x1c0] sm:$0xff]  }
 0x11c   : > { %v4295_v18 = vpop.f32.mrf.mxu1  ;;  %v4351_v33 = vpop.f32.mrf.mxu0  ;;  %4542 = vmatmul.mubr.bf16.gmra.mxu1 %v5535_v31  ;;  %4598 = vmatmul.mubr.bf16.gmra.mxu0 %v2436_v16  ;;  %v2024_v31 = vld [vmem:[%s4902_s23 + $0xba] sm:$0xff] }
 0x11d   : > { %v701_v59 = vadd.f32 %v4295_v18, %v5388_v47  ;;  %v5556_v51 = vadd.f32 %v4351_v33, %v685_v20  ;;  %4545 = vmatprep.mubr.bf16.mxu1 %v5538_v58  ;;  %4601 = vmatprep.mubr.bf16.mxu0 %v2437_v25  ;;  %v2403_v16 = vld [vmem:[%s4902_s23 + $0xa0] sm:$0xff]  ;;  %v4848_v47 = vld [vmem:[%s6264_s1 + $0x208] sm:$0xff]   ;;  %v5571_v18 = vpack.c.bf16 %v2022_v35, %v2021_v38  ;;  %v2405_v35 = vld [vmem:[%s4902_s23 + $0xb0] sm:$0xff] }
 0x11e   : > { %v692_v11 = vpop.f32.mrf.mxu1  ;;  %v1016_v13 = vpop.f32.mrf.mxu0  ;;  %4702 = vmatpush3.bf16.msra.mxu0 %v4844_v21  ;;  %4645 = vmatprep.subr.bf16.mxu1 %v4847_v61  ;;  %v2438_v33 = vpack.c.bf16 %v2402_v32, %v2401_v0  ;;  %v2027_v0 = vld [vmem:[%s4902_s23 + $0xd2] sm:$0xff] }
 0x11f   : > { %v693_v62 = vadd.f32 %v692_v11, %v5398_v1  ;;  %v5566_v53 = vadd.f32 %v1016_v13, %v677_v12  ;;  %4703 = vmatprep.subr.bf16.mxu0 %v4846_v37  ;;  %4646 = vmatpush3.bf16.msra.mxu1 %v4847_v61  ;;  %6290 = vst [vmem:[#allocation9_spill] sm:$0xff] %v5571_v18 }
 0x120   : > { %v4296_v20 = vpop.f32.mrf.mxu1  ;;  %v4352_v25 = vpop.f32.mrf.mxu0  ;;  %4647 = vmatprep.subr.bf16.mxu1 %v4849_v45  ;;  %v5576_v1 = vpack.c.bf16 %v2024_v31, %v2023_v3  ;;  %v2439_v12 = vpack.c.bf16 %v2404_v29, %v2403_v16  ;;  %v2025_v31 = vld [vmem:[%s4902_s23 + $0xc2] sm:$0xff]  ;;  %v2028_v16 = vld [vmem:[%s4902_s23 + $0xda] sm:$0xff] }
 0x121   : > { %v704_v58 = vadd.f32 %v4296_v20, %v5404_v40  ;;  %v5574_v21 = vadd.f32 %v4352_v25, %v688_v7  ;;  %v4850_v40 = vld [vmem:[%s6264_s1 + $0x200] sm:$0xff]   ;;  %v2408_v25 = vld [vmem:[%s4902_s23 + $0xc8] sm:$0xff] }
 0x122   : > { %6291 = vst [vmem:[#allocation10_spill] sm:$0xff] %v5576_v1  ;;  %v695_v61 = vpop.f32.mrf.mxu1  ;;  %v1019_v11 = vpop.f32.mrf.mxu0  ;;  %4704 = vmatpush3.bf16.msra.mxu0 %v4846_v37  ;;  %v2407_v20 = vld [vmem:[%s4902_s23 + $0xc0] sm:$0xff] }
 0x123   : > { %v696_v13 = vadd.f32 %v695_v61, %v5410_v42  ;;  %v5579_v38 = vadd.f32 %v1019_v11, %v680_v49  ;;  %4705 = vmatprep.subr.bf16.mxu0 %v4848_v47  ;;  %4648 = vmatpush3.bf16.msra.mxu1 %v4849_v45  ;;  %v2026_v42 = vld [vmem:[%s4902_s23 + $0xca] sm:$0xff]  ;;  %v2406_v45 = vld [vmem:[%s4902_s23 + $0xb8] sm:$0xff] }
 0x124   : > { %v4299_v7 = vpop.f32.mrf.mxu1  ;;  %v4355_v29 = vpop.f32.mrf.mxu0  ;;  %4546 = vmatmul.mubr.bf16.gmra.mxu1 %v5571_v18  ;;  %4602 = vmatmul.mubr.bf16.gmra.mxu0 %v2438_v33  ;;  %v5600_v11 = vpack.c.bf16 %v2026_v42, %v2025_v31  ;;  %v2441_v18 = vpack.c.bf16 %v2408_v25, %v2407_v20  ;;  %v2411_v20 = vld [vmem:[%s4902_s23 + $0xe0] sm:$0xff]  ;;  %v2412_v25 = vld [vmem:[%s4902_s23 + $0xe8] sm:$0xff] }
 0x125   : > { %v717_v49 = vadd.f32 %v4299_v7, %v5414_v54  ;;  %v5588_v37 = vadd.f32 %v4355_v29, %v701_v59  ;;  %4549 = vmatprep.mubr.bf16.mxu1 %v5576_v1  ;;  %4605 = vmatprep.mubr.bf16.mxu0 %v2439_v12  ;;  %v2440_v12 = vpack.c.bf16 %v2406_v45, %v2405_v35 }
 0x126   : > { %v708_v32 = vpop.f32.mrf.mxu1  ;;  %v1032_v3 = vpop.f32.mrf.mxu0  ;;  %4706 = vmatpush3.bf16.msra.mxu0 %v4848_v47  ;;  %v5605_v1 = vpack.c.bf16 %v2028_v16, %v2027_v0  ;;  %v2032_v16 = vld [vmem:[%s4902_s23 + $0xfa] sm:$0xff] }
 0x127   : > { %v709_v33 = vadd.f32 %v708_v32, %v5422_v55  ;;  %v5598_v61 = vadd.f32 %v1032_v3, %v693_v62  ;;  %4707 = vmatprep.subr.bf16.mxu0 %v4850_v40 }
 0x128   : > { %v4300_v54 = vpop.f32.mrf.mxu1  ;;  %v4356_v59 = vpop.f32.mrf.mxu0  ;;  %6292 = vst [vmem:[#allocation11_spill] sm:$0xff] %v5605_v1 }
 0x129   : > { %v720_v7 = vadd.f32 %v4300_v54, %v5428_v9  ;;  %v5603_v29 = vadd.f32 %v4356_v59, %v704_v58  ;;  %v2029_v9 = vld [vmem:[%s4902_s23 + $0xe2] sm:$0xff]  ;;  %v2030_v58 = vld [vmem:[%s4902_s23 + $0xea] sm:$0xff] }
 0x12a   : > { %v711_v47 = vpop.f32.mrf.mxu1  ;;  %v1035_v55 = vpop.f32.mrf.mxu0  ;;  %4708 = vmatpush3.bf16.msra.mxu0 %v4850_v40  ;;  %v2031_v40 = vld [vmem:[%s4902_s23 + $0xf2] sm:$0xff] }
 0x12b   : > { %v712_v62 = vadd.f32 %v711_v47, %v5432_v52  ;;  %v5608_v32 = vadd.f32 %v1035_v55, %v696_v13  ;;  %v2409_v52 = vld [vmem:[%s4902_s23 + $0xd0] sm:$0xff]  ;;  %v2410_v13 = vld [vmem:[%s4902_s23 + $0xd8] sm:$0xff] }
 0x12c   : > { %v4303_v31 = vpop.f32.mrf.mxu1  ;;  %v4359_v42 = vpop.f32.mrf.mxu0  ;;  %4550 = vmatmul.mubr.bf16.gmra.mxu1 %v5600_v11  ;;  %4606 = vmatmul.mubr.bf16.gmra.mxu0 %v2440_v12  ;;  %v2442_v47 = vpack.c.bf16 %v2410_v13, %v2409_v52 }
 0x12d   : > { %v733_v35 = vadd.f32 %v4303_v31, %v5439_v27  ;;  %v5614_v45 = vadd.f32 %v4359_v42, %v717_v49  ;;  %4553 = vmatprep.mubr.bf16.mxu1 %v5605_v1  ;;  %4609 = vmatprep.mubr.bf16.mxu0 %v2441_v18  ;;  %v5626_v49 = vpack.c.bf16 %v2030_v58, %v2029_v9 }
 0x12e   : > { %v724_v0 = vpop.f32.mrf.mxu1  ;;  %v1048_v3 = vpop.f32.mrf.mxu0  ;;  %v5631_v31 = vpack.c.bf16 %v2032_v16, %v2031_v40  ;;  %v2443_v42 = vpack.c.bf16 %v2412_v25, %v2411_v20  ;;  %v2036_v16 = vld [vmem:[%s4902_s23 + $0x11a] sm:$0xff]  ;;  %v2416_v25 = vld [vmem:[%s4902_s23 + $0x108] sm:$0xff] }
 0x12f   : > { %v725_v54 = vadd.f32 %v724_v0, %v5447_v15  ;;  %v5624_v59 = vadd.f32 %v1048_v3, %v709_v33  ;;  %6293 = vst [vmem:[#allocation12_spill] sm:$0xff] %v5626_v49  ;;  %v2415_v20 = vld [vmem:[%s4902_s23 + $0x100] sm:$0xff] }
 0x130   : > { %v4304_v12 = vpop.f32.mrf.mxu1  ;;  %v4360_v27 = vpop.f32.mrf.mxu0  ;;  %6294 = vst [vmem:[#allocation13_spill] sm:$0xff] %v5631_v31 }
 0x131   : > { %v736_v18 = vadd.f32 %v4304_v12, %v5459_v10  ;;  %v5629_v55 = vadd.f32 %v4360_v27, %v720_v7  ;;  %v2033_v10 = vld [vmem:[%s4902_s23 + $0x102] sm:$0xff]  ;;  %v2034_v7 = vld [vmem:[%s4902_s23 + $0x10a] sm:$0xff] }
 0x132   : > { %v727_v1 = vpop.f32.mrf.mxu1  ;;  %v1051_v15 = vpop.f32.mrf.mxu0 }
 0x133   : > { %v728_v33 = vadd.f32 %v727_v1, %v5465_v57  ;;  %v5634_v0 = vadd.f32 %v1051_v15, %v712_v62  ;;  %v2413_v57 = vld [vmem:[%s4902_s23 + $0xf0] sm:$0xff]  ;;  %v2414_v1 = vld [vmem:[%s4902_s23 + $0xf8] sm:$0xff] }
 0x134   : > { %v4307_v9 = vpop.f32.mrf.mxu1  ;;  %v4363_v58 = vpop.f32.mrf.mxu0  ;;  %4554 = vmatmul.mubr.bf16.gmra.mxu1 %v5626_v49  ;;  %4610 = vmatmul.mubr.bf16.gmra.mxu0 %v2442_v47  ;;  %v2035_v62 = vld [vmem:[%s4902_s23 + $0x112] sm:$0xff]  ;;  %v2444_v15 = vpack.c.bf16 %v2414_v1, %v2413_v57 }
 0x135   : > { %v749_v52 = vadd.f32 %v4307_v9, %v5472_v17  ;;  %v5640_v13 = vadd.f32 %v4363_v58, %v733_v35  ;;  %4557 = vmatprep.mubr.bf16.mxu1 %v5631_v31  ;;  %4613 = vmatprep.mubr.bf16.mxu0 %v2443_v42  ;;  %v5652_v35 = vpack.c.bf16 %v2034_v7, %v2033_v10 }
 0x136   : > { %v740_v40 = vpop.f32.mrf.mxu1  ;;  %v1064_v3 = vpop.f32.mrf.mxu0  ;;  %v5657_v58 = vpack.c.bf16 %v2036_v16, %v2035_v62  ;;  %v2445_v31 = vpack.c.bf16 %v2416_v25, %v2415_v20  ;;  %v2040_v16 = vld [vmem:[%s4902_s23 + $0x13a] sm:$0xff]  ;;  %v2420_v25 = vld [vmem:[%s4902_s23 + $0x128] sm:$0xff] }
 0x137   : > { %v741_v12 = vadd.f32 %v740_v40, %v5486_v4  ;;  %v5650_v27 = vadd.f32 %v1064_v3, %v725_v54  ;;  %6295 = vst [vmem:[#allocation14_spill] sm:$0xff] %v5652_v35  ;;  %v2419_v20 = vld [vmem:[%s4902_s23 + $0x120] sm:$0xff] }
 0x138   : > { %v4308_v47 = vpop.f32.mrf.mxu1  ;;  %v4364_v17 = vpop.f32.mrf.mxu0  ;;  %6296 = vst [vmem:[#allocation15_spill] sm:$0xff] %v5657_v58 }
 0x139   : > { %v752_v42 = vadd.f32 %v4308_v47, %v5495_v41  ;;  %v5655_v9 = vadd.f32 %v4364_v17, %v736_v18  ;;  %v2037_v41 = vld [vmem:[%s4902_s23 + $0x122] sm:$0xff]  ;;  %v2038_v18 = vld [vmem:[%s4902_s23 + $0x12a] sm:$0xff] }
 0x13a   : > { %v743_v49 = vpop.f32.mrf.mxu1  ;;  %v1067_v4 = vpop.f32.mrf.mxu0 }
 0x13b   : > { %v744_v54 = vadd.f32 %v743_v49, %v5501_v50  ;;  %v5660_v40 = vadd.f32 %v1067_v4, %v728_v33  ;;  %v2417_v50 = vld [vmem:[%s4902_s23 + $0x110] sm:$0xff]  ;;  %v2418_v49 = vld [vmem:[%s4902_s23 + $0x118] sm:$0xff] }
 0x13c   : > { %v4311_v10 = vpop.f32.mrf.mxu1  ;;  %v4367_v7 = vpop.f32.mrf.mxu0  ;;  %4558 = vmatmul.mubr.bf16.gmra.mxu1 %v5652_v35  ;;  %4614 = vmatmul.mubr.bf16.gmra.mxu0 %v2444_v15  ;;  %v2039_v33 = vld [vmem:[%s4902_s23 + $0x132] sm:$0xff]  ;;  %v2446_v4 = vpack.c.bf16 %v2418_v49, %v2417_v50 }
 0x13d   : > { %v765_v57 = vadd.f32 %v4311_v10, %v5511_v34  ;;  %v5666_v1 = vadd.f32 %v4367_v7, %v749_v52  ;;  %4561 = vmatprep.mubr.bf16.mxu1 %v5657_v58  ;;  %4617 = vmatprep.mubr.bf16.mxu0 %v2445_v31  ;;  %v5678_v52 = vpack.c.bf16 %v2038_v18, %v2037_v41  ;;  %v2421_v49 = vld [vmem:[%s4902_s23 + $0x130] sm:$0xff] }
 0x13e   : > { %v756_v62 = vpop.f32.mrf.mxu1  ;;  %v1080_v3 = vpop.f32.mrf.mxu0  ;;  %v5683_v7 = vpack.c.bf16 %v2040_v16, %v2039_v33  ;;  %v2447_v58 = vpack.c.bf16 %v2420_v25, %v2419_v20  ;;  %v2422_v33 = vld [vmem:[%s4902_s23 + $0x138] sm:$0xff]  ;;  %v2423_v25 = vld [vmem:[%s4902_s23 + $0x140] sm:$0xff] }
 0x13f   : > { %v757_v47 = vadd.f32 %v756_v62, %v5524_v60  ;;  %v5676_v17 = vadd.f32 %v1080_v3, %v741_v12  ;;  %6297 = vst [vmem:[#allocation16_spill] sm:$0xff] %v5678_v52  ;;  %v2044_v20 = vld [vmem:[%s4902_s23 + $0x15a] sm:$0xff] }
 0x140   : > { %v4312_v15 = vpop.f32.mrf.mxu1  ;;  %v4368_v34 = vpop.f32.mrf.mxu0  ;;  %6298 = vst [vmem:[#allocation17_spill] sm:$0xff] %v5683_v7 }
 0x141   : > { %v768_v31 = vadd.f32 %v4312_v15, %v5533_v24  ;;  %v5681_v10 = vadd.f32 %v4368_v34, %v752_v42  ;;  %v2041_v24 = vld [vmem:[%s4902_s23 + $0x142] sm:$0xff]  ;;  %v2042_v42 = vld [vmem:[%s4902_s23 + $0x14a] sm:$0xff] }
 0x142   : > { %v759_v60 = vpop.f32.mrf.mxu1  ;;  %v1083_v12 = vpop.f32.mrf.mxu0  ;;  %v2424_v15 = vld [vmem:[%s4902_s23 + $0x148] sm:$0xff] }
 0x143   : > { %v760_v62 = vadd.f32 %v759_v60, %v5540_v63  ;;  %v5686_v3 = vadd.f32 %v1083_v12, %v744_v54  ;;  %v2043_v63 = vld [vmem:[%s4902_s23 + $0x152] sm:$0xff]  ;;  %v5702_v12 = vpack.c.bf16 %v2042_v42, %v2041_v24 }
 0x144   : > { %v4315_v41 = vpop.f32.mrf.mxu1  ;;  %v4371_v18 = vpop.f32.mrf.mxu0  ;;  %4562 = vmatmul.mubr.bf16.gmra.mxu1 %v5678_v52  ;;  %4618 = vmatmul.mubr.bf16.gmra.mxu0 %v2446_v4 }
 0x145   : > { %v5691_v50 = vadd.f32 %v4371_v18, %v765_v57  ;;  %4565 = vmatprep.mubr.bf16.mxu1 %v5683_v7  ;;  %4621 = vmatprep.mubr.bf16.mxu0 %v2447_v58  ;;  %6300 = vst [vmem:[#allocation19_spill] sm:$0xff] %v5702_v12  ;;  %v2448_v57 = vpack.c.bf16 %v2422_v33, %v2421_v49  ;;  %v2046_v33 = vld [vmem:[%s4902_s23 + $0x16a] sm:$0xff] }
 0x146   : > { %v772_v16 = vpop.f32.mrf.mxu1  ;;  %v1096_v54 = vpop.f32.mrf.mxu0  ;;  %v5706_v58 = vpack.c.bf16 %v2044_v20, %v2043_v63  ;;  %v2449_v7 = vpack.c.bf16 %v2424_v15, %v2423_v25  ;;  %v2425_v63 = vld [vmem:[%s4902_s23 + $0x150] sm:$0xff] }
 0x147   : > { %6299 = vst [vmem:[#allocation18_spill] sm:$0xff] %v5691_v50  ;;  %v5700_v34 = vadd.f32 %v1096_v54, %v757_v47  ;;  %v781_v50 = vadd.f32 %v4315_v41, %v5368_v22  ;;  %v773_v42 = vadd.f32 %v772_v16, %v5376_v28  ;;  %v2426_v22 = vld [vmem:[%s4902_s23 + $0x158] sm:$0xff]  ;;  %v2772_v20 = vld [vmem:[%s4902_s23 + $0x29] sm:$0xff] }
 0x148   : > { %v4316_v60 = vpop.f32.mrf.mxu1  ;;  %v4372_v4 = vpop.f32.mrf.mxu0  ;;  %6301 = vst [vmem:[#allocation20_spill] sm:$0xff] %v5706_v58  ;;  %v2450_v16 = vpack.c.bf16 %v2426_v22, %v2425_v63 }
 0x149   : > { %v5704_v18 = vadd.f32 %v4372_v4, %v768_v31  ;;  %v2045_v31 = vld [vmem:[%s4902_s23 + $0x162] sm:$0xff]  ;;  %v784_v25 = vadd.f32 %v4316_v60, %v5382_v44 }
 0x14a   : > { %v775_v52 = vpop.f32.mrf.mxu1  ;;  %v1099_v35 = vpop.f32.mrf.mxu0 }
 0x14b   : > { %v5709_v47 = vadd.f32 %v1099_v35, %v760_v62  ;;  %v2771_v62 = vld [vmem:[%s4902_s23 + $0x21] sm:$0xff] }
 0x14c   : > { %v4319_v54 = vpop.f32.mrf.mxu1  ;;  %v4375_v24 = vpop.f32.mrf.mxu0  ;;  %4566 = vmatmul.mubr.bf16.gmra.mxu1 %v5702_v12  ;;  %4622 = vmatmul.mubr.bf16.gmra.mxu0 %v2448_v57 }
 0x14d   : > { %v5714_v49 = vadd.f32 %v4375_v24, %v781_v50  ;;  %4569 = vmatprep.mubr.bf16.mxu1 %v5706_v58  ;;  %4625 = vmatprep.mubr.bf16.mxu0 %v2449_v7  ;;  %v5725_v50 = vpack.c.bf16 %v2046_v33, %v2045_v31  ;;  %v776_v7 = vadd.f32 %v775_v52, %v5386_v46  ;;  %v2429_v46 = vld [vmem:[%s4902_s23 + $0x170] sm:$0xff]  ;;  %v2430_v52 = vld [vmem:[%s4902_s23 + $0x178] sm:$0xff] }
 0x14e   : > { %v788_v41 = vpop.f32.mrf.mxu1  ;;  %v1112_v35 = vpop.f32.mrf.mxu0  ;;  %v2815_v24 = vpack.c.bf16 %v2772_v20, %v2771_v62  ;;  %v797_v44 = vadd.f32 %v4319_v54, %v5390_v48  ;;  %v2773_v48 = vld [vmem:[%s4902_s23 + $0x31] sm:$0xff]  ;;  %v2775_v54 = vld [vmem:[%s4902_s23 + $0x41] sm:$0xff]  ;;  %v2776_v62 = vld [vmem:[%s4902_s23 + $0x49] sm:$0xff] }
 0x14f   : > { %v5723_v15 = vadd.f32 %v1112_v35, %v773_v42  ;;  %6302 = vst [vmem:[#allocation21_spill] sm:$0xff] %v5725_v50  ;;  %v789_v33 = vadd.f32 %v788_v41, %v5400_v2  ;;  %v3155_v20 = vld [vmem:[%s4902_s23 + $0x22] sm:$0xff]  ;;  %v2452_v41 = vpack.c.bf16 %v2430_v52, %v2429_v46 }
 0x150   : > { %v4320_v4 = vpop.f32.mrf.mxu1  ;;  %v4376_v28 = vpop.f32.mrf.mxu0 }
 0x151   : > { %v5728_v57 = vadd.f32 %v4376_v28, %v784_v25  ;;  %v3156_v25 = vld [vmem:[%s4902_s23 + $0x2a] sm:$0xff]  ;;  %v800_v28 = vadd.f32 %v4320_v4, %v5406_v5 }
 0x152   : > { %v791_v58 = vpop.f32.mrf.mxu1  ;;  %v1115_v12 = vpop.f32.mrf.mxu0 }
 0x153   : > { %v5731_v60 = vadd.f32 %v1115_v12, %v776_v7  ;;  %v2774_v12 = vld [vmem:[%s4902_s23 + $0x39] sm:$0xff] }
 0x154   : > { %v4323_v42 = vpop.f32.mrf.mxu1  ;;  %v4379_v31 = vpop.f32.mrf.mxu0  ;;  %4570 = vmatmul.mubr.bf16.gmra.mxu1 %v5725_v50  ;;  %4626 = vmatmul.mubr.bf16.gmra.mxu0 %v2450_v16  ;;  %v3199_v50 = vpack.c.bf16 %v3156_v25, %v3155_v20  ;;  %v3160_v20 = vld [vmem:[%s4902_s23 + $0x4a] sm:$0xff] }
 0x155   : > { %6303 = vst [vmem:[#allocation22_spill] sm:$0xff] %v5731_v60  ;;  %v5737_v63 = vadd.f32 %v4379_v31, %v797_v44  ;;  %4629 = vmatprep.mubr.bf16.mxu0 %v5408_v43  ;;  %4649 = vmatprep.mubr.bf16.mxu1 %v2815_v24  ;;  %v2816_v44 = vpack.c.bf16 %v2774_v12, %v2773_v48  ;;  %v3157_v12 = vld [vmem:[%s4902_s23 + $0x32] sm:$0xff] }
 0x156   : > { %v804_v22 = vpop.f32.mrf.mxu1  ;;  %v1128_v35 = vpop.f32.mrf.mxu0  ;;  %v792_v43 = vadd.f32 %v791_v58, %v5412_v26  ;;  %v2817_v31 = vpack.c.bf16 %v2776_v62, %v2775_v54  ;;  %v813_v5 = vadd.f32 %v4323_v42, %v5416_v39  ;;  %v2777_v26 = vld [vmem:[%s4902_s23 + $0x51] sm:$0xff]  ;;  %v2778_v58 = vld [vmem:[%s4902_s23 + $0x59] sm:$0xff]  ;;  %v2779_v39 = vld [vmem:[%s4902_s23 + $0x61] sm:$0xff] }
 0x157   : > { %6304 = vst [vmem:[#allocation23_spill] sm:$0xff] %v5737_v63  ;;  %v5747_v16 = vadd.f32 %v1128_v35, %v789_v33  ;;  %v805_v52 = vadd.f32 %v804_v22, %v5424_v8  ;;  %v3158_v54 = vld [vmem:[%s4902_s23 + $0x3a] sm:$0xff]  ;;  %v2780_v35 = vld [vmem:[%s4902_s23 + $0x69] sm:$0xff] }
 0x158   : > { %v4324_v7 = vpop.f32.mrf.mxu1  ;;  %v4380_v2 = vpop.f32.mrf.mxu0  ;;  %v3159_v62 = vld [vmem:[%s4902_s23 + $0x42] sm:$0xff]  ;;  %v3200_v8 = vpack.c.bf16 %v3158_v54, %v3157_v12  ;;  %v2782_v12 = vld [vmem:[%s4902_s23 + $0x79] sm:$0xff] }
 0x159   : > { %v5750_v24 = vadd.f32 %v4380_v2, %v800_v28  ;;  %v816_v25 = vadd.f32 %v4324_v7, %v5430_v23  ;;  %v2783_v54 = vld [vmem:[%s4902_s23 + $0x81] sm:$0xff] }
 0x15a   : > { %v807_v63 = vpop.f32.mrf.mxu1  ;;  %v1131_v60 = vpop.f32.mrf.mxu0 }
 0x15b   : > { %v5753_v4 = vadd.f32 %v1131_v60, %v792_v43  ;;  %v808_v22 = vadd.f32 %v807_v63, %v5434_v56  ;;  %v2819_v43 = vpack.c.bf16 %v2780_v35, %v2779_v39  ;;  %v3164_v35 = vld [vmem:[%s4902_s23 + $0x6a] sm:$0xff] }
 0x15c   : > { %v4327_v33 = vpop.f32.mrf.mxu1  ;;  %v4383_v46 = vpop.f32.mrf.mxu0  ;;  %4630 = vmatmul.mubr.bf16.gmra.mxu0 %v2452_v41  ;;  %4650 = vmatmul.mubr.bf16.vlgmr.msra.gmra.mxu1 %v2816_v44  ;;  %v2818_v44 = vpack.c.bf16 %v2778_v58, %v2777_v26 }
 0x15d   : > { %v5758_v48 = vadd.f32 %v4383_v46, %v813_v5  ;;  %4653 = vmatprep.mubr.bf16.mxu1 %v2817_v31  ;;  %4709 = vmatprep.mubr.bf16.mxu0 %v3199_v50  ;;  %v3201_v31 = vpack.c.bf16 %v3160_v20, %v3159_v62  ;;  %v829_v23 = vadd.f32 %v4327_v33, %v5441_v6  ;;  %v2784_v6 = vld [vmem:[%s4902_s23 + $0x89] sm:$0xff] }
 0x15e   : > { %v820_v60 = vpop.f32.mrf.mxu1  ;;  %v1144_v42 = vpop.f32.mrf.mxu0  ;;  %v3163_v33 = vld [vmem:[%s4902_s23 + $0x62] sm:$0xff] }
 0x15f   : > { %v5767_v28 = vadd.f32 %v1144_v42, %v805_v52  ;;  %v821_v56 = vadd.f32 %v820_v60, %v5449_v30  ;;  %v2781_v52 = vld [vmem:[%s4902_s23 + $0x71] sm:$0xff] }
 0x160   : > { %v4328_v2 = vpop.f32.mrf.mxu1  ;;  %v4384_v41 = vpop.f32.mrf.mxu0 }
 0x161   : > { %v5770_v50 = vadd.f32 %v4384_v41, %v816_v25  ;;  %v832_v62 = vadd.f32 %v4328_v2, %v5461_v19 }
 0x162   : > { %v823_v5 = vpop.f32.mrf.mxu1  ;;  %v1147_v46 = vpop.f32.mrf.mxu0 }
 0x163   : > { %v5773_v7 = vadd.f32 %v1147_v46, %v808_v22  ;;  %v824_v30 = vadd.f32 %v823_v5, %v5467_v14  ;;  %v3203_v22 = vpack.c.bf16 %v3164_v35, %v3163_v33  ;;  %v6306_v14 = vld [vmem:[#allocation3_spill] sm:$0xff]  ;;  %v6307_v33 = vld [vmem:[#allocation4_spill] sm:$0xff] }
 0x164   : > { %v4331_v26 = vpop.f32.mrf.mxu1  ;;  %v4387_v58 = vpop.f32.mrf.mxu0  ;;  %4654 = vmatmul.mubr.bf16.gmra.mxu1 %v2818_v44  ;;  %4710 = vmatmul.mubr.bf16.vlgmr.msra.gmra.mxu0 %v3200_v8  ;;  %v2820_v44 = vpack.c.bf16 %v2782_v12, %v2781_v52  ;;  %v2821_v8 = vpack.c.bf16 %v2784_v6, %v2783_v54  ;;  %v2785_v12 = vld [vmem:[%s4902_s23 + $0x91] sm:$0xff]  ;;  %v2786_v54 = vld [vmem:[%s4902_s23 + $0x99] sm:$0xff]  ;;  %v2788_v6 = vld [vmem:[%s4902_s23 + $0xa9] sm:$0xff] }
 0x165   : > { %v5776_v63 = vadd.f32 %v4387_v58, %v829_v23  ;;  %4657 = vmatprep.mubr.bf16.mxu1 %v2819_v43  ;;  %4713 = vmatprep.mubr.bf16.mxu0 %v3201_v31  ;;  %v845_v46 = vadd.f32 %v4331_v26, %v5474_v36  ;;  %v6305_v58 = vld [vmem:[#allocation2_spill] sm:$0xff] }
 0x166   : > { %v836_v39 = vpop.f32.mrf.mxu1  ;;  %v1160_v42 = vpop.f32.mrf.mxu0  ;;  %v2787_v26 = vld [vmem:[%s4902_s23 + $0xa1] sm:$0xff] }
 0x167   : > { %v5785_v20 = vadd.f32 %v1160_v42, %v821_v56  ;;  %v837_v5 = vadd.f32 %v836_v39, %v6306_v14 }
 0x168   : > { %v4332_v25 = vpop.f32.mrf.mxu1  ;;  %v4388_v41 = vpop.f32.mrf.mxu0 }
 0x169   : > { %v5788_v60 = vadd.f32 %v4388_v41, %v832_v62  ;;  %v848_v35 = vadd.f32 %v4332_v25, %v6307_v33  ;;  %v2792_v33 = vld [vmem:[%s4902_s23 + $0xc9] sm:$0xff] }
 0x16a   : > { %v839_v43 = vpop.f32.mrf.mxu1  ;;  %v1163_v31 = vpop.f32.mrf.mxu0 }
 0x16b   : > { %v5791_v19 = vadd.f32 %v1163_v31, %v824_v30  ;;  %v2822_v30 = vpack.c.bf16 %v2786_v54, %v2785_v12  ;;  %v6308_v31 = vld [vmem:[#allocation6_spill] sm:$0xff]  ;;  %v2789_v54 = vld [vmem:[%s4902_s23 + $0xb1] sm:$0xff] }
 0x16c   : > { %v4391_v2 = vpop.f32.mrf.mxu0  ;;  %v4411_v23 = vpop.f32.mrf.mxu1  ;;  %4658 = vmatmul.mubr.bf16.gmra.mxu1 %v2820_v44  ;;  %4714 = vmatmul.mubr.bf16.gmra.mxu0 %v6305_v58 }
 0x16d   : > { %v5795_v56 = vadd.f32 %v4391_v2, %v845_v46  ;;  %v1577_v52 = vadd.f32 %v4411_v23, %v5556_v51  ;;  %4661 = vmatprep.mubr.bf16.mxu1 %v2821_v8  ;;  %4717 = vmatprep.mubr.bf16.mxu0 %v3203_v22  ;;  %v840_v46 = vadd.f32 %v839_v43, %v6308_v31 }
 0x16e   : > { %v1176_v42 = vpop.f32.mrf.mxu0  ;;  %v1400_v36 = vpop.f32.mrf.mxu1  ;;  %v2823_v22 = vpack.c.bf16 %v2788_v6, %v2787_v26  ;;  %v2791_v6 = vld [vmem:[%s4902_s23 + $0xc1] sm:$0xff] }
 0x16f   : > { %v5803_v62 = vadd.f32 %v1176_v42, %v837_v5  ;;  %v1575_v41 = vadd.f32 %v1400_v36, %v5566_v53  ;;  %v6309_v5 = vld [vmem:[#allocation5_spill] sm:$0xff]  ;;  %v2825_v31 = vpack.c.bf16 %v2792_v33, %v2791_v6 }
 0x170   : > { %v4392_v44 = vpop.f32.mrf.mxu0  ;;  %v4412_v39 = vpop.f32.mrf.mxu1  ;;  %v2790_v42 = vld [vmem:[%s4902_s23 + $0xb9] sm:$0xff] }
 0x171   : > { %v5807_v51 = vadd.f32 %v4392_v44, %v848_v35  ;;  %v1578_v8 = vadd.f32 %v4412_v39, %v5574_v21  ;;  %v6310_v21 = vld [vmem:[#allocation7_spill] sm:$0xff] }
 0x172   : > { %v1179_v2 = vpop.f32.mrf.mxu0  ;;  %v1403_v23 = vpop.f32.mrf.mxu1 }
 0x173   : > { %v5810_v25 = vadd.f32 %v1179_v2, %v840_v46  ;;  %v1576_v53 = vadd.f32 %v1403_v23, %v5579_v38 }
 0x174   : > { %v4415_v58 = vpop.f32.mrf.mxu1  ;;  %v4471_v14 = vpop.f32.mrf.mxu0  ;;  %4662 = vmatmul.mubr.bf16.gmra.mxu1 %v2822_v30  ;;  %4718 = vmatmul.mubr.bf16.gmra.mxu0 %v6309_v5  ;;  %v2824_v30 = vpack.c.bf16 %v2790_v42, %v2789_v54  ;;  %v2793_v5 = vld [vmem:[%s4902_s23 + $0xd1] sm:$0xff] }
 0x175   : > { %v1581_v43 = vadd.f32 %v4415_v58, %v5588_v37  ;;  %v5815_v12 = vadd.f32 %v4471_v14, %v1577_v52  ;;  %4665 = vmatprep.mubr.bf16.mxu1 %v2823_v22  ;;  %4721 = vmatprep.mubr.bf16.mxu0 %v6310_v21  ;;  %v6311_v58 = vld [vmem:[#allocation8_spill] sm:$0xff]  ;;  %v2794_v21 = vld [vmem:[%s4902_s23 + $0xd9] sm:$0xff] }
 0x176   : > { %v1416_v36 = vpop.f32.mrf.mxu1  ;;  %v1784_v26 = vpop.f32.mrf.mxu0 }
 0x177   : > { %v1579_v38 = vadd.f32 %v1416_v36, %v5598_v61  ;;  %v5823_v35 = vadd.f32 %v1784_v26, %v1575_v41  ;;  %v2795_v36 = vld [vmem:[%s4902_s23 + $0xe1] sm:$0xff] }
 0x178   : > { %v4416_v44 = vpop.f32.mrf.mxu1  ;;  %v4472_v39 = vpop.f32.mrf.mxu0 }
 0x179   : > { %v1582_v37 = vadd.f32 %v4416_v44, %v5603_v29  ;;  %v5826_v52 = vadd.f32 %v4472_v39, %v1578_v8  ;;  %v6312_v8 = vld [vmem:[#allocation9_spill] sm:$0xff]  ;;  %v2826_v44 = vpack.c.bf16 %v2794_v21, %v2793_v5  ;;  %v2799_v21 = vld [vmem:[%s4902_s23 + $0x101] sm:$0xff] }
 0x17a   : > { %v1419_v46 = vpop.f32.mrf.mxu1  ;;  %v1787_v22 = vpop.f32.mrf.mxu0 }
 0x17b   : > { %v1580_v2 = vadd.f32 %v1419_v46, %v5608_v32  ;;  %v5829_v23 = vadd.f32 %v1787_v22, %v1576_v53  ;;  %v2796_v32 = vld [vmem:[%s4902_s23 + $0xe9] sm:$0xff] }
 0x17c   : > { %v4419_v61 = vpop.f32.mrf.mxu1  ;;  %v4475_v41 = vpop.f32.mrf.mxu0  ;;  %4666 = vmatmul.mubr.bf16.gmra.mxu1 %v2824_v30  ;;  %4722 = vmatmul.mubr.bf16.gmra.mxu0 %v6311_v58  ;;  %v2827_v39 = vpack.c.bf16 %v2796_v32, %v2795_v36  ;;  %v2798_v58 = vld [vmem:[%s4902_s23 + $0xf9] sm:$0xff] }
 0x17d   : > { %v1585_v14 = vadd.f32 %v4419_v61, %v5614_v45  ;;  %v5833_v29 = vadd.f32 %v4475_v41, %v1581_v43  ;;  %4669 = vmatprep.mubr.bf16.mxu1 %v2825_v31  ;;  %4725 = vmatprep.mubr.bf16.mxu0 %v6312_v8  ;;  %v6313_v61 = vld [vmem:[#allocation10_spill] sm:$0xff] }
 0x17e   : > { %v1432_v54 = vpop.f32.mrf.mxu1  ;;  %v1800_v42 = vpop.f32.mrf.mxu0 }
 0x17f   : > { %v1583_v53 = vadd.f32 %v1432_v54, %v5624_v59  ;;  %v5841_v26 = vadd.f32 %v1800_v42, %v1579_v38 }
 0x180   : > { %v4420_v6 = vpop.f32.mrf.mxu1  ;;  %v4476_v33 = vpop.f32.mrf.mxu0 }
 0x181   : > { %v1586_v45 = vadd.f32 %v4420_v6, %v5629_v55  ;;  %v5844_v43 = vadd.f32 %v4476_v33, %v1582_v37  ;;  %v2797_v37 = vld [vmem:[%s4902_s23 + $0xf1] sm:$0xff] }
 0x182   : > { %v1435_v30 = vpop.f32.mrf.mxu1  ;;  %v1803_v31 = vpop.f32.mrf.mxu0  ;;  %v2828_v32 = vpack.c.bf16 %v2798_v58, %v2797_v37  ;;  %v2803_v58 = vld [vmem:[%s4902_s23 + $0x121] sm:$0xff] }
 0x183   : > { %v1584_v46 = vadd.f32 %v1435_v30, %v5634_v0  ;;  %v5847_v22 = vadd.f32 %v1803_v31, %v1580_v2  ;;  %v2800_v0 = vld [vmem:[%s4902_s23 + $0x109] sm:$0xff] }
 0x184   : > { %v4423_v59 = vpop.f32.mrf.mxu1  ;;  %v4479_v38 = vpop.f32.mrf.mxu0  ;;  %4670 = vmatmul.mubr.bf16.gmra.mxu1 %v2826_v44  ;;  %4726 = vmatmul.mubr.bf16.gmra.mxu0 %v6313_v61  ;;  %v6314_v30 = vld [vmem:[#allocation11_spill] sm:$0xff] }
 0x185   : > { %v1589_v41 = vadd.f32 %v4423_v59, %v5640_v13  ;;  %v5851_v55 = vadd.f32 %v4479_v38, %v1585_v14  ;;  %4673 = vmatprep.mubr.bf16.mxu1 %v2827_v39  ;;  %4729 = vmatprep.mubr.bf16.mxu0 %v5600_v11  ;;  %v2829_v11 = vpack.c.bf16 %v2800_v0, %v2799_v21  ;;  %v2801_v59 = vld [vmem:[%s4902_s23 + $0x111] sm:$0xff]  ;;  %v2802_v38 = vld [vmem:[%s4902_s23 + $0x119] sm:$0xff] }
 0x186   : > { %v1448_v8 = vpop.f32.mrf.mxu1  ;;  %v1816_v5 = vpop.f32.mrf.mxu0  ;;  %v2830_v0 = vpack.c.bf16 %v2802_v38, %v2801_v59 }
 0x187   : > { %v1587_v2 = vadd.f32 %v1448_v8, %v5650_v27  ;;  %v5859_v54 = vadd.f32 %v1816_v5, %v1583_v53 }
 0x188   : > { %v4424_v42 = vpop.f32.mrf.mxu1  ;;  %v4480_v36 = vpop.f32.mrf.mxu0 }
 0x189   : > { %v1590_v13 = vadd.f32 %v4424_v42, %v5655_v9  ;;  %v5862_v14 = vadd.f32 %v4480_v36, %v1586_v45  ;;  %v6315_v45 = vld [vmem:[#allocation12_spill] sm:$0xff] }
 0x18a   : > { %v1451_v6 = vpop.f32.mrf.mxu1  ;;  %v1819_v33 = vpop.f32.mrf.mxu0 }
 0x18b   : > { %v1588_v44 = vadd.f32 %v1451_v6, %v5660_v40  ;;  %v5865_v39 = vadd.f32 %v1819_v33, %v1584_v46  ;;  %v2804_v40 = vld [vmem:[%s4902_s23 + $0x129] sm:$0xff]  ;;  %v6316_v33 = vld [vmem:[#allocation13_spill] sm:$0xff] }
 0x18c   : > { %v4427_v27 = vpop.f32.mrf.mxu1  ;;  %v4483_v53 = vpop.f32.mrf.mxu0  ;;  %4674 = vmatmul.mubr.bf16.gmra.mxu1 %v2828_v32  ;;  %4730 = vmatmul.mubr.bf16.gmra.mxu0 %v6314_v30  ;;  %v2831_v42 = vpack.c.bf16 %v2804_v40, %v2803_v58  ;;  %v2805_v30 = vld [vmem:[%s4902_s23 + $0x131] sm:$0xff] }
 0x18d   : > { %v1593_v31 = vadd.f32 %v4427_v27, %v5666_v1  ;;  %v5869_v9 = vadd.f32 %v4483_v53, %v1589_v41  ;;  %4677 = vmatprep.mubr.bf16.mxu1 %v2829_v11  ;;  %4733 = vmatprep.mubr.bf16.mxu0 %v6315_v45  ;;  %v6317_v27 = vld [vmem:[#allocation18_spill] sm:$0xff] }
 0x18e   : > { %v1464_v61 = vpop.f32.mrf.mxu1  ;;  %v1832_v37 = vpop.f32.mrf.mxu0  ;;  %v2806_v45 = vld [vmem:[%s4902_s23 + $0x139] sm:$0xff] }
 0x18f   : > { %v1591_v46 = vadd.f32 %v1464_v61, %v5676_v17  ;;  %v5877_v8 = vadd.f32 %v1832_v37, %v1587_v2  ;;  %v2807_v61 = vld [vmem:[%s4902_s23 + $0x141] sm:$0xff] }
 0x190   : > { %v4428_v5 = vpop.f32.mrf.mxu1  ;;  %v4484_v21 = vpop.f32.mrf.mxu0 }
 0x191   : > { %v1594_v1 = vadd.f32 %v4428_v5, %v5681_v10  ;;  %v5880_v41 = vadd.f32 %v4484_v21, %v1590_v13  ;;  %v6318_v13 = vld [vmem:[#allocation14_spill] sm:$0xff]  ;;  %v2832_v5 = vpack.c.bf16 %v2806_v45, %v2805_v30 }
 0x192   : > { %v1467_v36 = vpop.f32.mrf.mxu1  ;;  %v1835_v32 = vpop.f32.mrf.mxu0 }
 0x193   : > { %v1592_v11 = vadd.f32 %v1467_v36, %v5686_v3  ;;  %v5883_v6 = vadd.f32 %v1835_v32, %v1588_v44  ;;  %v2808_v3 = vld [vmem:[%s4902_s23 + $0x149] sm:$0xff] }
 0x194   : > { %v4431_v17 = vpop.f32.mrf.mxu1  ;;  %v4487_v2 = vpop.f32.mrf.mxu0  ;;  %4678 = vmatmul.mubr.bf16.gmra.mxu1 %v2830_v0  ;;  %4734 = vmatmul.mubr.bf16.gmra.mxu0 %v6316_v33  ;;  %v2833_v0 = vpack.c.bf16 %v2808_v3, %v2807_v61 }
 0x195   : > { %v1597_v53 = vadd.f32 %v4431_v17, %v6317_v27  ;;  %v5887_v10 = vadd.f32 %v4487_v2, %v1593_v31  ;;  %4681 = vmatprep.mubr.bf16.mxu1 %v2831_v42  ;;  %4737 = vmatprep.mubr.bf16.mxu0 %v6318_v13  ;;  %v6319_v2 = vld [vmem:[#allocation15_spill] sm:$0xff]  ;;  %v2809_v27 = vld [vmem:[%s4902_s23 + $0x151] sm:$0xff]  ;;  %v2810_v13 = vld [vmem:[%s4902_s23 + $0x159] sm:$0xff] }
 0x196   : > { %v1480_v59 = vpop.f32.mrf.mxu1  ;;  %v1848_v38 = vpop.f32.mrf.mxu0 }
 0x197   : > { %v1595_v44 = vadd.f32 %v1480_v59, %v5700_v34  ;;  %v5895_v37 = vadd.f32 %v1848_v38, %v1591_v46  ;;  %v2811_v59 = vld [vmem:[%s4902_s23 + $0x161] sm:$0xff] }
 0x198   : > { %v4432_v58 = vpop.f32.mrf.mxu1  ;;  %v4488_v40 = vpop.f32.mrf.mxu0 }
 0x199   : > { %v1598_v31 = vadd.f32 %v4432_v58, %v5704_v18  ;;  %v5898_v21 = vadd.f32 %v4488_v40, %v1594_v1  ;;  %v6320_v1 = vld [vmem:[#allocation16_spill] sm:$0xff]  ;;  %v2834_v58 = vpack.c.bf16 %v2810_v13, %v2809_v27  ;;  %v2814_v13 = vld [vmem:[%s4902_s23 + $0x179] sm:$0xff] }
 0x19a   : > { %v1483_v42 = vpop.f32.mrf.mxu1  ;;  %v1851_v36 = vpop.f32.mrf.mxu0 }
 0x19b   : > { %v1596_v32 = vadd.f32 %v1483_v42, %v5709_v47  ;;  %v5901_v17 = vadd.f32 %v1851_v36, %v1592_v11  ;;  %v2812_v47 = vld [vmem:[%s4902_s23 + $0x169] sm:$0xff]  ;;  %v6321_v42 = vld [vmem:[#allocation22_spill] sm:$0xff] }
 0x19c   : > { %v4435_v34 = vpop.f32.mrf.mxu1  ;;  %v4491_v46 = vpop.f32.mrf.mxu0  ;;  %4682 = vmatmul.mubr.bf16.gmra.mxu1 %v2832_v5  ;;  %4738 = vmatmul.mubr.bf16.gmra.mxu0 %v6319_v2  ;;  %v2835_v40 = vpack.c.bf16 %v2812_v47, %v2811_v59  ;;  %v6323_v2 = vld [vmem:[#allocation23_spill] sm:$0xff] }
 0x19d   : > { %v1601_v33 = vadd.f32 %v4435_v34, %v5714_v49  ;;  %v5905_v18 = vadd.f32 %v4491_v46, %v1597_v53  ;;  %4685 = vmatprep.mubr.bf16.mxu1 %v2833_v0  ;;  %4741 = vmatprep.mubr.bf16.mxu0 %v6320_v1 }
 0x19e   : > { %v1496_v30 = vpop.f32.mrf.mxu1  ;;  %v1864_v45 = vpop.f32.mrf.mxu0 }
 0x19f   : > { %v1599_v11 = vadd.f32 %v1496_v30, %v5723_v15  ;;  %v5913_v38 = vadd.f32 %v1864_v45, %v1595_v44  ;;  %v6322_v44 = vld [vmem:[#allocation17_spill] sm:$0xff] }
 0x1a0   : > { %v4436_v61 = vpop.f32.mrf.mxu1  ;;  %v4492_v3 = vpop.f32.mrf.mxu0 }
 0x1a1   : > { %v1602_v49 = vadd.f32 %v4436_v61, %v5728_v57  ;;  %v5916_v53 = vadd.f32 %v4492_v3, %v1598_v31  ;;  %v6324_v57 = vld [vmem:[#allocation19_spill] sm:$0xff]  ;;  %v2813_v31 = vld [vmem:[%s4902_s23 + $0x171] sm:$0xff] }
 0x1a2   : > { %v1499_v5 = vpop.f32.mrf.mxu1  ;;  %v1867_v0 = vpop.f32.mrf.mxu0  ;;  %v2836_v3 = vpack.c.bf16 %v2814_v13, %v2813_v31 }
 0x1a3   : > { %v1600_v36 = vadd.f32 %v1499_v5, %v6321_v42  ;;  %v5919_v34 = vadd.f32 %v1867_v0, %v1596_v32 }
 0x1a4   : > { %v4439_v46 = vpop.f32.mrf.mxu1  ;;  %v4495_v15 = vpop.f32.mrf.mxu0  ;;  %4686 = vmatmul.mubr.bf16.gmra.mxu1 %v2834_v58  ;;  %4742 = vmatmul.mubr.bf16.gmra.mxu0 %v6322_v44 }
 0x1a5   : > { %v1605_v1 = vadd.f32 %v4439_v46, %v6323_v2  ;;  %v5923_v27 = vadd.f32 %v4495_v15, %v1601_v33  ;;  %4689 = vmatprep.mubr.bf16.mxu1 %v2835_v40  ;;  %4745 = vmatprep.mubr.bf16.mxu0 %v6324_v57  ;;  %v6326_v2 = vld [vmem:[#allocation21_spill] sm:$0xff] }
 0x1a6   : > { %v1512_v30 = vpop.f32.mrf.mxu1  ;;  %v1880_v45 = vpop.f32.mrf.mxu0 }
 0x1a7   : > { %v1603_v59 = vadd.f32 %v1512_v30, %v5747_v16  ;;  %v5929_v32 = vadd.f32 %v1880_v45, %v1599_v11  ;;  %v6325_v16 = vld [vmem:[#allocation20_spill] sm:$0xff] }
 0x1a8   : > { %v4440_v47 = vpop.f32.mrf.mxu1  ;;  %v4496_v61 = vpop.f32.mrf.mxu0 }
 0x1a9   : > { %v1606_v58 = vadd.f32 %v4440_v47, %v5750_v24  ;;  %v5932_v33 = vadd.f32 %v4496_v61, %v1602_v49  ;;  %v3197_v24 = vld [vmem:[%s4902_s23 + $0x172] sm:$0xff]  ;;  %v3198_v49 = vld [vmem:[%s4902_s23 + $0x17a] sm:$0xff]  ;;  %s4770_s23 = smul.u32 352, %s6328_s13 }
 0x1aa   : > { %v1515_v40 = vpop.f32.mrf.mxu1  ;;  %v1883_v5 = vpop.f32.mrf.mxu0  ;;  %v3220_v45 = vpack.c.bf16 %v3198_v49, %v3197_v24 }
 0x1ab   : > { %v1604_v0 = vadd.f32 %v1515_v40, %v5753_v4  ;;  %v5935_v42 = vadd.f32 %v1883_v5, %v1600_v36  ;;  %s6130_s13 = scalar_lea.vmem %s6266_s3, %s4770_s23 }
 0x1ac   : > { %v4443_v46 = vpop.f32.mrf.mxu1  ;;  %v4499_v15 = vpop.f32.mrf.mxu0  ;;  %4690 = vmatmul.mubr.bf16.gmra.mxu1 %v2836_v3  ;;  %4746 = vmatmul.mubr.bf16.gmra.mxu0 %v6325_v16 }
 0x1ad   : > { %v1609_v11 = vadd.f32 %v4443_v46, %v5758_v48  ;;  %v5939_v44 = vadd.f32 %v4499_v15, %v1605_v1  ;;  %4749 = vmatprep.mubr.bf16.mxu0 %v6326_v2 }
 0x1ae   : > { %v1528_v57 = vpop.f32.mrf.mxu1  ;;  %v1896_v31 = vpop.f32.mrf.mxu0 }
 0x1af   : > { %v1607_v13 = vadd.f32 %v1528_v57, %v5767_v28  ;;  %v5945_v4 = vadd.f32 %v1896_v31, %v1603_v59 }
 0x1b0   : > { %v4444_v36 = vpop.f32.mrf.mxu1  ;;  %v4500_v30 = vpop.f32.mrf.mxu0 }
 0x1b1   : > { %v1610_v47 = vadd.f32 %v4444_v36, %v5770_v50  ;;  %v5948_v61 = vadd.f32 %v4500_v30, %v1606_v58 }
 0x1b2   : > { %v1531_v48 = vpop.f32.mrf.mxu1  ;;  %v1899_v1 = vpop.f32.mrf.mxu0 }
 0x1b3   : > { %v1608_v3 = vadd.f32 %v1531_v48, %v5773_v7  ;;  %v5951_v40 = vadd.f32 %v1899_v1, %v1604_v0 }
 0x1b4   : > { %v4447_v5 = vpop.f32.mrf.mxu1  ;;  %v4503_v46 = vpop.f32.mrf.mxu0  ;;  %4750 = vmatmul.mubr.bf16.gmra.mxu0 %v3220_v45 }
 0x1b5   : > { %v1613_v28 = vadd.f32 %v4447_v5, %v5776_v63  ;;  %v5954_v59 = vadd.f32 %v4503_v46, %v1609_v11 }
 0x1b6   : > { %v1544_v15 = vpop.f32.mrf.mxu1  ;;  %v1912_v16 = vpop.f32.mrf.mxu0 }
 0x1b7   : > { %v1611_v2 = vadd.f32 %v1544_v15, %v5785_v20  ;;  %v5957_v50 = vadd.f32 %v1912_v16, %v1607_v13 }
 0x1b8   : > { %v4448_v58 = vpop.f32.mrf.mxu1  ;;  %v4504_v24 = vpop.f32.mrf.mxu0 }
 0x1b9   : > { %v1614_v49 = vadd.f32 %v4448_v58, %v5788_v60  ;;  %v5960_v7 = vadd.f32 %v4504_v24, %v1610_v47 }
 0x1ba   : > { %v1547_v0 = vpop.f32.mrf.mxu1  ;;  %v1915_v57 = vpop.f32.mrf.mxu0 }
 0x1bb   : > { %v1612_v31 = vadd.f32 %v1547_v0, %v5791_v19  ;;  %v5963_v36 = vadd.f32 %v1915_v57, %v1608_v3 }
 0x1bc   : > { %v4451_v63 = vpop.f32.mrf.mxu1  ;;  %v4507_v11 = vpop.f32.mrf.mxu0 }
 0x1bd   : > { %v1617_v30 = vadd.f32 %v4451_v63, %v5795_v56  ;;  %v5966_v45 = vadd.f32 %v4507_v11, %v1613_v28 }
 0x1be   : > { %v1560_v20 = vpop.f32.mrf.mxu1  ;;  %v1928_v13 = vpop.f32.mrf.mxu0 }
 0x1bf   : > { %v1615_v48 = vadd.f32 %v1560_v20, %v5803_v62  ;;  %v5969_v1 = vadd.f32 %v1928_v13, %v1611_v2 }
 0x1c0   : > { %v4452_v60 = vpop.f32.mrf.mxu1  ;;  %v4508_v47 = vpop.f32.mrf.mxu0 }
 0x1c1   : > { %v1618_v5 = vadd.f32 %v4452_v60, %v5807_v51  ;;  %v5972_v46 = vadd.f32 %v4508_v47, %v1614_v49 }
 0x1c2   : > { %v1563_v19 = vpop.f32.mrf.mxu1  ;;  %v1931_v3 = vpop.f32.mrf.mxu0 }
 0x1c3   : > { %v1616_v15 = vadd.f32 %v1563_v19, %v5810_v25  ;;  %v5975_v16 = vadd.f32 %v1931_v3, %v1612_v31 }
 0x1c4   : > { %v4511_v56 = vpop.f32.mrf.mxu0  ;;  %v4531_v28 = vpop.f32.mrf.mxu1 }
 0x1c5   : > { %v5977_v58 = vadd.f32 %v4511_v56, %v1617_v30  ;;  %v2345_v62 = vadd.f32 %v4531_v28, %v5815_v12 }
 0x1c6   : > { %v1944_v2 = vpop.f32.mrf.mxu0  ;;  %v2168_v24 = vpop.f32.mrf.mxu1 }
 0x1c7   : > { %v5980_v0 = vadd.f32 %v1944_v2, %v1615_v48  ;;  %v2343_v51 = vadd.f32 %v2168_v24, %v5823_v35 }
 0x1c8   : > { %v4512_v49 = vpop.f32.mrf.mxu0  ;;  %v4532_v57 = vpop.f32.mrf.mxu1 }
 0x1c9   : > { %v5983_v63 = vadd.f32 %v4512_v49, %v1618_v5  ;;  %v2346_v25 = vadd.f32 %v4532_v57, %v5826_v52 }
 0x1ca   : > { %v1947_v31 = vpop.f32.mrf.mxu0  ;;  %v2171_v11 = vpop.f32.mrf.mxu1 }
 0x1cb   : > { %v5986_v20 = vadd.f32 %v1947_v31, %v1616_v15  ;;  %v2344_v30 = vadd.f32 %v2171_v11, %v5829_v23 }
 0x1cc   : > { %v4535_v13 = vpop.f32.mrf.mxu1  ;;  %v4591_v12 = vpop.f32.mrf.mxu0 }
 0x1cd   : > { %v2349_v60 = vadd.f32 %v4535_v13, %v5833_v29  ;;  %v5990_v48 = vadd.f32 %v4591_v12, %v2345_v62 }
 0x1ce   : > { %v2184_v47 = vpop.f32.mrf.mxu1  ;;  %v2552_v35 = vpop.f32.mrf.mxu0 }
 0x1cf   : > { %v2347_v19 = vadd.f32 %v2184_v47, %v5841_v26  ;;  %v5993_v5 = vadd.f32 %v2552_v35, %v2343_v51 }
 0x1d0   : > { %v4536_v3 = vpop.f32.mrf.mxu1  ;;  %v4592_v52 = vpop.f32.mrf.mxu0 }
 0x1d1   : > { %v2350_v56 = vadd.f32 %v4536_v3, %v5844_v43  ;;  %v5996_v15 = vadd.f32 %v4592_v52, %v2346_v25 }
 0x1d2   : > { %v2187_v28 = vpop.f32.mrf.mxu1  ;;  %v2555_v23 = vpop.f32.mrf.mxu0 }
 0x1d3   : > { %v2348_v2 = vadd.f32 %v2187_v28, %v5847_v22  ;;  %v5999_v24 = vadd.f32 %v2555_v23, %v2344_v30 }
 0x1d4   : > { %v4539_v29 = vpop.f32.mrf.mxu1  ;;  %v4595_v62 = vpop.f32.mrf.mxu0 }
 0x1d5   : > { %v2353_v49 = vadd.f32 %v4539_v29, %v5851_v55  ;;  %v6002_v57 = vadd.f32 %v4595_v62, %v2349_v60 }
 0x1d6   : > { %v2200_v26 = vpop.f32.mrf.mxu1  ;;  %v2568_v51 = vpop.f32.mrf.mxu0 }
 0x1d7   : > { %v2351_v31 = vadd.f32 %v2200_v26, %v5859_v54  ;;  %v6005_v11 = vadd.f32 %v2568_v51, %v2347_v19 }
 0x1d8   : > { %v4540_v43 = vpop.f32.mrf.mxu1  ;;  %v4596_v25 = vpop.f32.mrf.mxu0 }
 0x1d9   : > { %v2354_v13 = vadd.f32 %v4540_v43, %v5862_v14  ;;  %v6008_v12 = vadd.f32 %v4596_v25, %v2350_v56 }
 0x1da   : > { %v2203_v22 = vpop.f32.mrf.mxu1  ;;  %v2571_v30 = vpop.f32.mrf.mxu0 }
 0x1db   : > { %v2352_v47 = vadd.f32 %v2203_v22, %v5865_v39  ;;  %v6011_v35 = vadd.f32 %v2571_v30, %v2348_v2 }
 0x1dc   : > { %v4543_v55 = vpop.f32.mrf.mxu1  ;;  %v4599_v60 = vpop.f32.mrf.mxu0 }
 0x1dd   : > { %v2357_v3 = vadd.f32 %v4543_v55, %v5869_v9  ;;  %v6014_v52 = vadd.f32 %v4599_v60, %v2353_v49 }
 0x1de   : > { %v2216_v54 = vpop.f32.mrf.mxu1  ;;  %v2584_v19 = vpop.f32.mrf.mxu0 }
 0x1df   : > { %v2355_v28 = vadd.f32 %v2216_v54, %v5877_v8  ;;  %v6017_v23 = vadd.f32 %v2584_v19, %v2351_v31 }
 0x1e0   : > { %v4544_v14 = vpop.f32.mrf.mxu1  ;;  %v4600_v56 = vpop.f32.mrf.mxu0 }
 0x1e1   : > { %v2358_v29 = vadd.f32 %v4544_v14, %v5880_v41  ;;  %v6020_v62 = vadd.f32 %v4600_v56, %v2354_v13 }
 0x1e2   : > { %v2219_v39 = vpop.f32.mrf.mxu1  ;;  %v2587_v2 = vpop.f32.mrf.mxu0 }
 0x1e3   : > { %v2356_v26 = vadd.f32 %v2219_v39, %v5883_v6  ;;  %v6023_v51 = vadd.f32 %v2587_v2, %v2352_v47 }
 0x1e4   : > { %v4547_v9 = vpop.f32.mrf.mxu1  ;;  %v4603_v49 = vpop.f32.mrf.mxu0 }
 0x1e5   : > { %v2361_v43 = vadd.f32 %v4547_v9, %v5887_v10  ;;  %v6026_v25 = vadd.f32 %v4603_v49, %v2357_v3 }
 0x1e6   : > { %v2232_v8 = vpop.f32.mrf.mxu1  ;;  %v2600_v31 = vpop.f32.mrf.mxu0 }
 0x1e7   : > { %v2359_v22 = vadd.f32 %v2232_v8, %v5895_v37  ;;  %v6029_v30 = vadd.f32 %v2600_v31, %v2355_v28 }
 0x1e8   : > { %v4548_v41 = vpop.f32.mrf.mxu1  ;;  %v4604_v13 = vpop.f32.mrf.mxu0 }
 0x1e9   : > { %v2362_v55 = vadd.f32 %v4548_v41, %v5898_v21  ;;  %v6032_v60 = vadd.f32 %v4604_v13, %v2358_v29 }
 0x1ea   : > { %v2235_v6 = vpop.f32.mrf.mxu1  ;;  %v2603_v47 = vpop.f32.mrf.mxu0 }
 0x1eb   : > { %v2360_v54 = vadd.f32 %v2235_v6, %v5901_v17  ;;  %v6035_v19 = vadd.f32 %v2603_v47, %v2356_v26 }
 0x1ec   : > { %v4551_v10 = vpop.f32.mrf.mxu1  ;;  %v4607_v3 = vpop.f32.mrf.mxu0 }
 0x1ed   : > { %v2365_v14 = vadd.f32 %v4551_v10, %v5905_v18  ;;  %v6038_v56 = vadd.f32 %v4607_v3, %v2361_v43 }
 0x1ee   : > { %v2248_v37 = vpop.f32.mrf.mxu1  ;;  %v2616_v28 = vpop.f32.mrf.mxu0 }
 0x1ef   : > { %v2363_v39 = vadd.f32 %v2248_v37, %v5913_v38  ;;  %v6041_v2 = vadd.f32 %v2616_v28, %v2359_v22 }
 0x1f0   : > { %v4552_v21 = vpop.f32.mrf.mxu1  ;;  %v4608_v29 = vpop.f32.mrf.mxu0 }
 0x1f1   : > { %v2366_v9 = vadd.f32 %v4552_v21, %v5916_v53  ;;  %v6044_v49 = vadd.f32 %v4608_v29, %v2362_v55 }
 0x1f2   : > { %v2251_v17 = vpop.f32.mrf.mxu1  ;;  %v2619_v26 = vpop.f32.mrf.mxu0 }
 0x1f3   : > { %v2364_v8 = vadd.f32 %v2251_v17, %v5919_v34  ;;  %v6047_v31 = vadd.f32 %v2619_v26, %v2360_v54 }
 0x1f4   : > { %v4555_v18 = vpop.f32.mrf.mxu1  ;;  %v4611_v43 = vpop.f32.mrf.mxu0 }
 0x1f5   : > { %v2369_v41 = vadd.f32 %v4555_v18, %v5923_v27  ;;  %v6050_v13 = vadd.f32 %v4611_v43, %v2365_v14 }
 0x1f6   : > { %v2264_v38 = vpop.f32.mrf.mxu1  ;;  %v2632_v22 = vpop.f32.mrf.mxu0 }
 0x1f7   : > { %v2367_v6 = vadd.f32 %v2264_v38, %v5929_v32  ;;  %v6053_v47 = vadd.f32 %v2632_v22, %v2363_v39 }
 0x1f8   : > { %v4556_v53 = vpop.f32.mrf.mxu1  ;;  %v4612_v55 = vpop.f32.mrf.mxu0 }
 0x1f9   : > { %v2370_v10 = vadd.f32 %v4556_v53, %v5932_v33  ;;  %v6056_v3 = vadd.f32 %v4612_v55, %v2366_v9 }
 0x1fa   : > { %v2267_v34 = vpop.f32.mrf.mxu1  ;;  %v2635_v54 = vpop.f32.mrf.mxu0 }
 0x1fb   : > { %v2368_v37 = vadd.f32 %v2267_v34, %v5935_v42  ;;  %v6059_v28 = vadd.f32 %v2635_v54, %v2364_v8 }
 0x1fc   : > { %v4559_v27 = vpop.f32.mrf.mxu1  ;;  %v4615_v14 = vpop.f32.mrf.mxu0 }
 0x1fd   : > { %v2373_v21 = vadd.f32 %v4559_v27, %v5939_v44  ;;  %v6062_v29 = vadd.f32 %v4615_v14, %v2369_v41 }
 0x1fe   : > { %v2280_v32 = vpop.f32.mrf.mxu1  ;;  %v2648_v39 = vpop.f32.mrf.mxu0 }
 0x1ff   : > { %v2371_v17 = vadd.f32 %v2280_v32, %v5945_v4  ;;  %v6065_v26 = vadd.f32 %v2648_v39, %v2367_v6 }
 0x200   : > { %v4560_v33 = vpop.f32.mrf.mxu1  ;;  %v4616_v9 = vpop.f32.mrf.mxu0 }
 0x201   : > { %v2374_v18 = vadd.f32 %v4560_v33, %v5948_v61  ;;  %v6068_v43 = vadd.f32 %v4616_v9, %v2370_v10 }
 0x202   : > { %v2283_v42 = vpop.f32.mrf.mxu1  ;;  %v2651_v8 = vpop.f32.mrf.mxu0 }
 0x203   : > { %v2372_v38 = vadd.f32 %v2283_v42, %v5951_v40  ;;  %v6071_v22 = vadd.f32 %v2651_v8, %v2368_v37 }
 0x204   : > { %v4563_v44 = vpop.f32.mrf.mxu1  ;;  %v4619_v41 = vpop.f32.mrf.mxu0 }
 0x205   : > { %v2377_v53 = vadd.f32 %v4563_v44, %v5954_v59  ;;  %v6074_v55 = vadd.f32 %v4619_v41, %v2373_v21 }
 0x206   : > { %v2296_v4 = vpop.f32.mrf.mxu1  ;;  %v2664_v6 = vpop.f32.mrf.mxu0 }
 0x207   : > { %v2375_v34 = vadd.f32 %v2296_v4, %v5957_v50  ;;  %v6077_v54 = vadd.f32 %v2664_v6, %v2371_v17 }
 0x208   : > { %v4564_v61 = vpop.f32.mrf.mxu1  ;;  %v4620_v10 = vpop.f32.mrf.mxu0 }
 0x209   : > { %v2378_v27 = vadd.f32 %v4564_v61, %v5960_v7  ;;  %v6080_v14 = vadd.f32 %v4620_v10, %v2374_v18 }
 0x20a   : > { %v2299_v40 = vpop.f32.mrf.mxu1  ;;  %v2667_v37 = vpop.f32.mrf.mxu0 }
 0x20b   : > { %v2376_v32 = vadd.f32 %v2299_v40, %v5963_v36  ;;  %v6083_v39 = vadd.f32 %v2667_v37, %v2372_v38 }
 0x20c   : > { %v4567_v59 = vpop.f32.mrf.mxu1  ;;  %v4623_v21 = vpop.f32.mrf.mxu0 }
 0x20d   : > { %v2381_v33 = vadd.f32 %v4567_v59, %v5966_v45  ;;  %v6086_v9 = vadd.f32 %v4623_v21, %v2377_v53 }
 0x20e   : > { %v2312_v50 = vpop.f32.mrf.mxu1  ;;  %v2680_v17 = vpop.f32.mrf.mxu0 }
 0x20f   : > { %v2379_v42 = vadd.f32 %v2312_v50, %v5969_v1  ;;  %v6089_v8 = vadd.f32 %v2680_v17, %v2375_v34 }
 0x210   : > { %v4568_v7 = vpop.f32.mrf.mxu1  ;;  %v4624_v18 = vpop.f32.mrf.mxu0 }
 0x211   : > { %v2382_v44 = vadd.f32 %v4568_v7, %v5972_v46  ;;  %v6092_v41 = vadd.f32 %v4624_v18, %v2378_v27 }
 0x212   : > { %v2315_v36 = vpop.f32.mrf.mxu1  ;;  %v2683_v38 = vpop.f32.mrf.mxu0 }
 0x213   : > { %v2380_v4 = vadd.f32 %v2315_v36, %v5975_v16  ;;  %v6095_v6 = vadd.f32 %v2683_v38, %v2376_v32 }
 0x214   : > { %v4571_v45 = vpop.f32.mrf.mxu1  ;;  %v4627_v53 = vpop.f32.mrf.mxu0 }
 0x215   : > { %v2385_v61 = vadd.f32 %v4571_v45, %v5977_v58  ;;  %v6098_v10 = vadd.f32 %v4627_v53, %v2381_v33 }
 0x216   : > { %v2328_v1 = vpop.f32.mrf.mxu1  ;;  %v2696_v34 = vpop.f32.mrf.mxu0 }
 0x217   : > { %v2383_v40 = vadd.f32 %v2328_v1, %v5980_v0  ;;  %v6101_v37 = vadd.f32 %v2696_v34, %v2379_v42 }
 0x218   : > { %v4572_v46 = vpop.f32.mrf.mxu1  ;;  %v4628_v27 = vpop.f32.mrf.mxu0 }
 0x219   : > { %v2386_v59 = vadd.f32 %v4572_v46, %v5983_v63  ;;  %v6104_v21 = vadd.f32 %v4628_v27, %v2382_v44 }
 0x21a   : > { %v2331_v16 = vpop.f32.mrf.mxu1  ;;  %v2699_v32 = vpop.f32.mrf.mxu0 }
 0x21b   : > { %v2384_v50 = vadd.f32 %v2331_v16, %v5986_v20  ;;  %v6107_v58 = vadd.f32 %v2699_v32, %v2380_v4 }
 0x21c   : > { %v4631_v33 = vpop.f32.mrf.mxu0  ;;  %v4651_v17 = vpop.f32.mrf.mxu1 }
 0x21d   : > { %v6109_v7 = vadd.f32 %v4631_v33, %v2385_v61  ;;  %v3113_v53 = vadd.f32 %v4651_v17, %v5990_v48  ;;  %v6122_v61 = vld [vmem:[%s6265_s2] ss:$0 sm:$0xff] }
 0x21e   : > { %v2712_v0 = vpop.f32.mrf.mxu0  ;;  %v2936_v42 = vpop.f32.mrf.mxu1 }
 0x21f   : > { %v6111_v18 = vadd.f32 %v2712_v0, %v2383_v40  ;;  %v3111_v34 = vadd.f32 %v2936_v42, %v5993_v5 }
 0x220   : > { %v4632_v36 = vpop.f32.mrf.mxu0  ;;  %v4652_v38 = vpop.f32.mrf.mxu1 }
 0x221   : > { %v6113_v63 = vadd.f32 %v4632_v36, %v2386_v59  ;;  %v3114_v59 = vadd.f32 %v4652_v38, %v5996_v15 }
 0x222   : > { %v2715_v44 = vpop.f32.mrf.mxu0  ;;  %v2939_v45 = vpop.f32.mrf.mxu1 }
 0x223   : > { %v6116_v20 = vadd.f32 %v2715_v44, %v2384_v50  ;;  %v3112_v33 = vadd.f32 %v2939_v45, %v5999_v24 }
 0x224   : > { %v4655_v4 = vpop.f32.mrf.mxu1  ;;  %v4711_v1 = vpop.f32.mrf.mxu0 }
 0x225   : > { %v3497_v40 = vadd.f32 %v4711_v1, %v3113_v53  ;;  %v3117_v36 = vadd.f32 %v4655_v4, %v6002_v57 }
 0x226   : > { %v2952_v46 = vpop.f32.mrf.mxu1  ;;  %v3320_v27 = vpop.f32.mrf.mxu0 }
 0x227   : > { %v3548_v16 = vadd.f32 %v6122_v61, %v3497_v40  ;;  %v3495_v48 = vadd.f32 %v3320_v27, %v3111_v34  ;;  %v3115_v40 = vadd.f32 %v2952_v46, %v6005_v11 }
 0x228   : > { %v4656_v32 = vpop.f32.mrf.mxu1  ;;  %v4712_v50 = vpop.f32.mrf.mxu0 }
 0x229   : > { %v3592_v5 = vmax.f32 %v3548_v16, 0.0  ;;  %v3546_v17 = vadd.f32 %v6122_v61, %v3495_v48  ;;  %v3498_v0 = vadd.f32 %v4712_v50, %v3114_v59  ;;  %v3118_v57 = vadd.f32 %v4656_v32, %v6008_v12 }
 0x22a   : > { %v2955_v42 = vpop.f32.mrf.mxu1  ;;  %v3323_v15 = vpop.f32.mrf.mxu0 }
 0x22b   : > { %3636 = vst [vmem:[%s6130_s13 + $0x10] sm:$0xff] %v3592_v5  ;;  %v3590_v38 = vmax.f32 %v3546_v17, 0.0  ;;  %v3549_v44 = vadd.f32 %v6122_v61, %v3498_v0  ;;  %v3496_v53 = vadd.f32 %v3323_v15, %v3112_v33  ;;  %v3116_v11 = vadd.f32 %v2955_v42, %v6011_v35 }
 0x22c   : > { %v4659_v1 = vpop.f32.mrf.mxu1  ;;  %v4715_v34 = vpop.f32.mrf.mxu0 }
 0x22d   : > { %3634 = vst [vmem:[%s6130_s13] sm:$0xff] %v3590_v38  ;;  %v3593_v24 = vmax.f32 %v3549_v44, 0.0  ;;  %v3547_v45 = vadd.f32 %v6122_v61, %v3496_v53  ;;  %v3501_v27 = vadd.f32 %v4715_v34, %v3117_v36  ;;  %v3121_v12 = vadd.f32 %v4659_v1, %v6014_v52 }
 0x22e   : > { %v2968_v59 = vpop.f32.mrf.mxu1  ;;  %v3336_v16 = vpop.f32.mrf.mxu0 }
 0x22f   : > { %3637 = vst [vmem:[%s6130_s13 + $0x18] sm:$0xff] %v3593_v24  ;;  %v3591_v4 = vmax.f32 %v3547_v45, 0.0  ;;  %v3552_v48 = vadd.f32 %v6122_v61, %v3501_v27  ;;  %v3499_v50 = vadd.f32 %v3336_v16, %v3115_v40  ;;  %v3119_v35 = vadd.f32 %v2968_v59, %v6017_v23 }
 0x230   : > { %v4660_v33 = vpop.f32.mrf.mxu1  ;;  %v4716_v5 = vpop.f32.mrf.mxu0 }
 0x231   : > { %3635 = vst [vmem:[%s6130_s13 + $0x8] sm:$0xff] %v3591_v4  ;;  %v3596_v46 = vmax.f32 %v3552_v48, 0.0  ;;  %v3550_v17 = vadd.f32 %v6122_v61, %v3499_v50  ;;  %v3502_v0 = vadd.f32 %v4716_v5, %v3118_v57  ;;  %v3122_v52 = vadd.f32 %v4660_v33, %v6020_v62 }
 0x232   : > { %v2971_v15 = vpop.f32.mrf.mxu1  ;;  %v3339_v36 = vpop.f32.mrf.mxu0 }
 0x233   : > { %3640 = vst [vmem:[%s6130_s13 + $0x30] sm:$0xff] %v3596_v46  ;;  %v3594_v32 = vmax.f32 %v3550_v17, 0.0  ;;  %v3553_v38 = vadd.f32 %v6122_v61, %v3502_v0  ;;  %v3500_v44 = vadd.f32 %v3339_v36, %v3116_v11  ;;  %v3120_v23 = vadd.f32 %v2971_v15, %v6023_v51 }
 0x234   : > { %v4663_v53 = vpop.f32.mrf.mxu1  ;;  %v4719_v34 = vpop.f32.mrf.mxu0 }
 0x235   : > { %3638 = vst [vmem:[%s6130_s13 + $0x20] sm:$0xff] %v3594_v32  ;;  %v3597_v42 = vmax.f32 %v3553_v38, 0.0  ;;  %v3551_v40 = vadd.f32 %v6122_v61, %v3500_v44  ;;  %v3505_v24 = vadd.f32 %v4719_v34, %v3121_v12  ;;  %v3125_v62 = vadd.f32 %v4663_v53, %v6026_v25 }
 0x236   : > { %v2984_v45 = vpop.f32.mrf.mxu1  ;;  %v3352_v27 = vpop.f32.mrf.mxu0 }
 0x237   : > { %3641 = vst [vmem:[%s6130_s13 + $0x38] sm:$0xff] %v3597_v42  ;;  %v3595_v1 = vmax.f32 %v3551_v40, 0.0  ;;  %v3556_v16 = vadd.f32 %v6122_v61, %v3505_v24  ;;  %v3503_v57 = vadd.f32 %v3352_v27, %v3119_v35  ;;  %v3123_v51 = vadd.f32 %v2984_v45, %v6029_v30 }
 0x238   : > { %v4664_v4 = vpop.f32.mrf.mxu1  ;;  %v4720_v48 = vpop.f32.mrf.mxu0 }
 0x239   : > { %3639 = vst [vmem:[%s6130_s13 + $0x28] sm:$0xff] %v3595_v1  ;;  %v3600_v59 = vmax.f32 %v3556_v16, 0.0  ;;  %v3554_v50 = vadd.f32 %v6122_v61, %v3503_v57  ;;  %v3506_v5 = vadd.f32 %v4720_v48, %v3122_v52  ;;  %v3126_v25 = vadd.f32 %v4664_v4, %v6032_v60 }
 0x23a   : > { %v2987_v11 = vpop.f32.mrf.mxu1  ;;  %v3355_v46 = vpop.f32.mrf.mxu0 }
 0x23b   : > { %3644 = vst [vmem:[%s6130_s13 + $0x50] sm:$0xff] %v3600_v59  ;;  %v3598_v33 = vmax.f32 %v3554_v50, 0.0  ;;  %v3557_v17 = vadd.f32 %v6122_v61, %v3506_v5  ;;  %v3504_v0 = vadd.f32 %v3355_v46, %v3120_v23  ;;  %v3124_v30 = vadd.f32 %v2987_v11, %v6035_v19 }
 0x23c   : > { %v4667_v36 = vpop.f32.mrf.mxu1  ;;  %v4723_v12 = vpop.f32.mrf.mxu0 }
 0x23d   : > { %3642 = vst [vmem:[%s6130_s13 + $0x40] sm:$0xff] %v3598_v33  ;;  %v3601_v15 = vmax.f32 %v3557_v17, 0.0  ;;  %v3555_v32 = vadd.f32 %v6122_v61, %v3504_v0  ;;  %v3509_v38 = vadd.f32 %v4723_v12, %v3125_v62  ;;  %v3129_v60 = vadd.f32 %v4667_v36, %v6038_v56 }
 0x23e   : > { %v3000_v44 = vpop.f32.mrf.mxu1  ;;  %v3368_v34 = vpop.f32.mrf.mxu0 }
 0x23f   : > { %3645 = vst [vmem:[%s6130_s13 + $0x58] sm:$0xff] %v3601_v15  ;;  %v3599_v53 = vmax.f32 %v3555_v32, 0.0  ;;  %v3560_v35 = vadd.f32 %v6122_v61, %v3509_v38  ;;  %v3507_v42 = vadd.f32 %v3368_v34, %v3123_v51  ;;  %v3127_v19 = vadd.f32 %v3000_v44, %v6041_v2 }
 0x240   : > { %v4668_v40 = vpop.f32.mrf.mxu1  ;;  %v4724_v24 = vpop.f32.mrf.mxu0 }
 0x241   : > { %3643 = vst [vmem:[%s6130_s13 + $0x48] sm:$0xff] %v3599_v53  ;;  %v3604_v45 = vmax.f32 %v3560_v35, 0.0  ;;  %v3558_v27 = vadd.f32 %v6122_v61, %v3507_v42  ;;  %v3510_v52 = vadd.f32 %v4724_v24, %v3126_v25  ;;  %v3130_v56 = vadd.f32 %v4668_v40, %v6044_v49 }
 0x242   : > { %v3003_v1 = vpop.f32.mrf.mxu1  ;;  %v3371_v16 = vpop.f32.mrf.mxu0 }
 0x243   : > { %3648 = vst [vmem:[%s6130_s13 + $0x70] sm:$0xff] %v3604_v45  ;;  %v3602_v57 = vmax.f32 %v3558_v27, 0.0  ;;  %v3561_v4 = vadd.f32 %v6122_v61, %v3510_v52  ;;  %v3508_v48 = vadd.f32 %v3371_v16, %v3124_v30  ;;  %v3128_v2 = vadd.f32 %v3003_v1, %v6047_v31 }
 0x244   : > { %v4671_v23 = vpop.f32.mrf.mxu1  ;;  %v4727_v59 = vpop.f32.mrf.mxu0 }
 0x245   : > { %3646 = vst [vmem:[%s6130_s13 + $0x60] sm:$0xff] %v3602_v57  ;;  %v3605_v50 = vmax.f32 %v3561_v4, 0.0  ;;  %v3559_v5 = vadd.f32 %v6122_v61, %v3508_v48  ;;  %v3513_v11 = vadd.f32 %v4727_v59, %v3129_v60  ;;  %v3133_v49 = vadd.f32 %v4671_v23, %v6050_v13 }
 0x246   : > { %v3016_v46 = vpop.f32.mrf.mxu1  ;;  %v3384_v62 = vpop.f32.mrf.mxu0 }
 0x247   : > { %3649 = vst [vmem:[%s6130_s13 + $0x78] sm:$0xff] %v3605_v50  ;;  %v3603_v33 = vmax.f32 %v3559_v5, 0.0  ;;  %v3564_v17 = vadd.f32 %v6122_v61, %v3513_v11  ;;  %v3511_v0 = vadd.f32 %v3384_v62, %v3127_v19  ;;  %v3131_v31 = vadd.f32 %v3016_v46, %v6053_v47 }
 0x248   : > { %v4672_v36 = vpop.f32.mrf.mxu1  ;;  %v4728_v12 = vpop.f32.mrf.mxu0 }
 0x249   : > { %3647 = vst [vmem:[%s6130_s13 + $0x68] sm:$0xff] %v3603_v33  ;;  %v3608_v51 = vmax.f32 %v3564_v17, 0.0  ;;  %v3562_v15 = vadd.f32 %v6122_v61, %v3511_v0  ;;  %v3514_v32 = vadd.f32 %v4728_v12, %v3130_v56  ;;  %v3134_v13 = vadd.f32 %v4672_v36, %v6056_v3 }
 0x24a   : > { %v3019_v38 = vpop.f32.mrf.mxu1  ;;  %v3387_v44 = vpop.f32.mrf.mxu0 }
 0x24b   : > { %3652 = vst [vmem:[%s6130_s13 + $0x90] sm:$0xff] %v3608_v51  ;;  %v3606_v34 = vmax.f32 %v3562_v15, 0.0  ;;  %v3565_v25 = vadd.f32 %v6122_v61, %v3514_v32  ;;  %v3512_v53 = vadd.f32 %v3387_v44, %v3128_v2  ;;  %v3132_v47 = vadd.f32 %v3019_v38, %v6059_v28 }
 0x24c   : > { %v4675_v35 = vpop.f32.mrf.mxu1  ;;  %v4731_v42 = vpop.f32.mrf.mxu0 }
 0x24d   : > { %3650 = vst [vmem:[%s6130_s13 + $0x80] sm:$0xff] %v3606_v34  ;;  %v3609_v40 = vmax.f32 %v3565_v25, 0.0  ;;  %v3563_v24 = vadd.f32 %v6122_v61, %v3512_v53  ;;  %v3517_v30 = vadd.f32 %v4731_v42, %v3133_v49  ;;  %v3137_v3 = vadd.f32 %v4675_v35, %v6062_v29 }
 0x24e   : > { %v3032_v45 = vpop.f32.mrf.mxu1  ;;  %v3400_v27 = vpop.f32.mrf.mxu0 }
 0x24f   : > { %3653 = vst [vmem:[%s6130_s13 + $0x98] sm:$0xff] %v3609_v40  ;;  %v3607_v52 = vmax.f32 %v3563_v24, 0.0  ;;  %v3568_v1 = vadd.f32 %v6122_v61, %v3517_v30  ;;  %v3515_v16 = vadd.f32 %v3400_v27, %v3131_v31  ;;  %v3135_v28 = vadd.f32 %v3032_v45, %v6065_v26 }
 0x250   : > { %v4676_v60 = vpop.f32.mrf.mxu1  ;;  %v4732_v57 = vpop.f32.mrf.mxu0 }
 0x251   : > { %3651 = vst [vmem:[%s6130_s13 + $0x88] sm:$0xff] %v3607_v52  ;;  %v3612_v4 = vmax.f32 %v3568_v1, 0.0  ;;  %v3566_v48 = vadd.f32 %v6122_v61, %v3515_v16  ;;  %v3518_v23 = vadd.f32 %v4732_v57, %v3134_v13  ;;  %v3138_v29 = vadd.f32 %v4676_v60, %v6068_v43 }
 0x252   : > { %v3035_v59 = vpop.f32.mrf.mxu1  ;;  %v3403_v19 = vpop.f32.mrf.mxu0 }
 0x253   : > { %3656 = vst [vmem:[%s6130_s13 + $0xb0] sm:$0xff] %v3612_v4  ;;  %v3610_v50 = vmax.f32 %v3566_v48, 0.0  ;;  %v3569_v5 = vadd.f32 %v6122_v61, %v3518_v23  ;;  %v3516_v11 = vadd.f32 %v3403_v19, %v3132_v47  ;;  %v3136_v26 = vadd.f32 %v3035_v59, %v6071_v22 }
 0x254   : > { %v4679_v46 = vpop.f32.mrf.mxu1  ;;  %v4735_v62 = vpop.f32.mrf.mxu0 }
 0x255   : > { %3654 = vst [vmem:[%s6130_s13 + $0xa0] sm:$0xff] %v3610_v50  ;;  %v3613_v56 = vmax.f32 %v3569_v5, 0.0  ;;  %v3567_v33 = vadd.f32 %v6122_v61, %v3516_v11  ;;  %v3521_v17 = vadd.f32 %v4735_v62, %v3137_v3  ;;  %v3141_v43 = vadd.f32 %v4679_v46, %v6074_v55 }
 0x256   : > { %v3048_v0 = vpop.f32.mrf.mxu1  ;;  %v3416_v36 = vpop.f32.mrf.mxu0 }
 0x257   : > { %3657 = vst [vmem:[%s6130_s13 + $0xb8] sm:$0xff] %v3613_v56  ;;  %v3611_v12 = vmax.f32 %v3567_v33, 0.0  ;;  %v3572_v2 = vadd.f32 %v6122_v61, %v3521_v17  ;;  %v3519_v51 = vadd.f32 %v3416_v36, %v3135_v28  ;;  %v3139_v22 = vadd.f32 %v3048_v0, %v6077_v54 }
 0x258   : > { %v4680_v15 = vpop.f32.mrf.mxu1  ;;  %v4736_v32 = vpop.f32.mrf.mxu0 }
 0x259   : > { %3655 = vst [vmem:[%s6130_s13 + $0xa8] sm:$0xff] %v3611_v12  ;;  %v3616_v38 = vmax.f32 %v3572_v2, 0.0  ;;  %v3570_v44 = vadd.f32 %v6122_v61, %v3519_v51  ;;  %v3522_v49 = vadd.f32 %v4736_v32, %v3138_v29  ;;  %v3142_v55 = vadd.f32 %v4680_v15, %v6080_v14 }
 0x25a   : > { %v3051_v34 = vpop.f32.mrf.mxu1  ;;  %v3419_v25 = vpop.f32.mrf.mxu0 }
 0x25b   : > { %3660 = vst [vmem:[%s6130_s13 + $0xd0] sm:$0xff] %v3616_v38  ;;  %v3614_v53 = vmax.f32 %v3570_v44, 0.0  ;;  %v3573_v35 = vadd.f32 %v6122_v61, %v3522_v49  ;;  %v3520_v42 = vadd.f32 %v3419_v25, %v3136_v26  ;;  %v3140_v54 = vadd.f32 %v3051_v34, %v6083_v39 }
 0x25c   : > { %v4683_v31 = vpop.f32.mrf.mxu1  ;;  %v4739_v40 = vpop.f32.mrf.mxu0 }
 0x25d   : > { %3658 = vst [vmem:[%s6130_s13 + $0xc0] sm:$0xff] %v3614_v53  ;;  %v3617_v24 = vmax.f32 %v3573_v35, 0.0  ;;  %v3571_v30 = vadd.f32 %v6122_v61, %v3520_v42  ;;  %v3525_v45 = vadd.f32 %v4739_v40, %v3141_v43  ;;  %v3145_v14 = vadd.f32 %v4683_v31, %v6086_v9 }
 0x25e   : > { %v3064_v27 = vpop.f32.mrf.mxu1  ;;  %v3432_v13 = vpop.f32.mrf.mxu0 }
 0x25f   : > { %3661 = vst [vmem:[%s6130_s13 + $0xd8] sm:$0xff] %v3617_v24  ;;  %v3615_v52 = vmax.f32 %v3571_v30, 0.0  ;;  %v3576_v1 = vadd.f32 %v6122_v61, %v3525_v45  ;;  %v3523_v16 = vadd.f32 %v3432_v13, %v3139_v22  ;;  %v3143_v39 = vadd.f32 %v3064_v27, %v6089_v8 }
 0x260   : > { %v4684_v60 = vpop.f32.mrf.mxu1  ;;  %v4740_v57 = vpop.f32.mrf.mxu0 }
 0x261   : > { %3659 = vst [vmem:[%s6130_s13 + $0xc8] sm:$0xff] %v3615_v52  ;;  %v3620_v47 = vmax.f32 %v3576_v1, 0.0  ;;  %v3574_v4 = vadd.f32 %v6122_v61, %v3523_v16  ;;  %v3526_v48 = vadd.f32 %v4740_v57, %v3142_v55  ;;  %v3146_v9 = vadd.f32 %v4684_v60, %v6092_v41 }
 0x262   : > { %v3067_v23 = vpop.f32.mrf.mxu1  ;;  %v3435_v59 = vpop.f32.mrf.mxu0 }
 0x263   : > { %3664 = vst [vmem:[%s6130_s13 + $0xf0] sm:$0xff] %v3620_v47  ;;  %v3618_v19 = vmax.f32 %v3574_v4, 0.0  ;;  %v3577_v3 = vadd.f32 %v6122_v61, %v3526_v48  ;;  %v3524_v50 = vadd.f32 %v3435_v59, %v3140_v54  ;;  %v3144_v8 = vadd.f32 %v3067_v23, %v6095_v6 }
 0x264   : > { %v4687_v5 = vpop.f32.mrf.mxu1  ;;  %v4743_v11 = vpop.f32.mrf.mxu0 }
 0x265   : > { %3662 = vst [vmem:[%s6130_s13 + $0xe0] sm:$0xff] %v3618_v19  ;;  %v3621_v46 = vmax.f32 %v3577_v3, 0.0  ;;  %v3575_v62 = vadd.f32 %v6122_v61, %v3524_v50  ;;  %v3529_v28 = vadd.f32 %v4743_v11, %v3145_v14  ;;  %v3149_v41 = vadd.f32 %v4687_v5, %v6098_v10 }
 0x266   : > { %v3080_v56 = vpop.f32.mrf.mxu1  ;;  %v3448_v33 = vpop.f32.mrf.mxu0 }
 0x267   : > { %3665 = vst [vmem:[%s6130_s13 + $0xf8] sm:$0xff] %v3621_v46  ;;  %v3619_v17 = vmax.f32 %v3575_v62, 0.0  ;;  %v3580_v0 = vadd.f32 %v6122_v61, %v3529_v28  ;;  %v3527_v36 = vadd.f32 %v3448_v33, %v3143_v39  ;;  %v3147_v6 = vadd.f32 %v3080_v56, %v6101_v37 }
 0x268   : > { %v4688_v29 = vpop.f32.mrf.mxu1  ;;  %v4744_v12 = vpop.f32.mrf.mxu0 }
 0x269   : > { %3663 = vst [vmem:[%s6130_s13 + $0xe8] sm:$0xff] %v3619_v17  ;;  %v3624_v2 = vmax.f32 %v3580_v0, 0.0  ;;  %v3578_v51 = vadd.f32 %v6122_v61, %v3527_v36  ;;  %v3530_v15 = vadd.f32 %v4744_v12, %v3146_v9  ;;  %v3150_v10 = vadd.f32 %v4688_v29, %v6104_v21 }
 0x26a   : > { %v3083_v32 = vpop.f32.mrf.mxu1  ;;  %v3451_v26 = vpop.f32.mrf.mxu0 }
 0x26b   : > { %3668 = vst [vmem:[%s6130_s13 + $0x110] sm:$0xff] %v3624_v2  ;;  %v3622_v38 = vmax.f32 %v3578_v51, 0.0  ;;  %v3581_v44 = vadd.f32 %v6122_v61, %v3530_v15  ;;  %v3528_v49 = vadd.f32 %v3451_v26, %v3144_v8  ;;  %v3148_v45 = vadd.f32 %v3083_v32, %v6107_v58 }
 0x26c   : > { %v4691_v34 = vpop.f32.mrf.mxu1  ;;  %v4747_v25 = vpop.f32.mrf.mxu0 }
 0x26d   : > { %3666 = vst [vmem:[%s6130_s13 + $0x100] sm:$0xff] %v3622_v38  ;;  %v3625_v43 = vmax.f32 %v3581_v44, 0.0  ;;  %v3579_v53 = vadd.f32 %v6122_v61, %v3528_v49  ;;  %v3533_v35 = vadd.f32 %v4747_v25, %v3149_v41  ;;  %v3153_v1 = vadd.f32 %v4691_v34, %v6109_v7 }
 0x26e   : > { %v3096_v42 = vpop.f32.mrf.mxu1  ;;  %v3464_v31 = vpop.f32.mrf.mxu0 }
 0x26f   : > { %3669 = vst [vmem:[%s6130_s13 + $0x118] sm:$0xff] %v3625_v43  ;;  %v3623_v40 = vmax.f32 %v3579_v53, 0.0  ;;  %v3584_v22 = vadd.f32 %v6122_v61, %v3533_v35  ;;  %v3531_v24 = vadd.f32 %v3464_v31, %v3147_v6  ;;  %v3151_v54 = vadd.f32 %v3096_v42, %v6111_v18 }
 0x270   : > { %v4748_v30 = vpop.f32.mrf.mxu0  ;;  %v4692_v55 = vpop.f32.mrf.mxu1 }
 0x271   : > { %3667 = vst [vmem:[%s6130_s13 + $0x108] sm:$0xff] %v3623_v40  ;;  %v3628_v37 = vmax.f32 %v3584_v22, 0.0  ;;  %v3582_v27 = vadd.f32 %v6122_v61, %v3531_v24  ;;  %v3534_v13 = vadd.f32 %v4748_v30, %v3150_v10  ;;  %v3154_v59 = vadd.f32 %v4692_v55, %v6113_v63 }
 0x272   : > { %v3467_v52 = vpop.f32.mrf.mxu0  ;;  %v3099_v48 = vpop.f32.mrf.mxu1 }
 0x273   : > { %3672 = vst [vmem:[%s6130_s13 + $0x130] sm:$0xff] %v3628_v37  ;;  %v3626_v21 = vmax.f32 %v3582_v27, 0.0  ;;  %v3585_v16 = vadd.f32 %v6122_v61, %v3534_v13  ;;  %v3532_v60 = vadd.f32 %v3467_v52, %v3148_v45  ;;  %v3152_v18 = vadd.f32 %v3099_v48, %v6116_v20 }
 0x274   : > { %v4751_v57 = vpop.f32.mrf.mxu0 }
 0x275   : > { %3670 = vst [vmem:[%s6130_s13 + $0x120] sm:$0xff] %v3626_v21  ;;  %v3629_v58 = vmax.f32 %v3585_v16, 0.0  ;;  %v3583_v47 = vadd.f32 %v6122_v61, %v3532_v60  ;;  %v3537_v4 = vadd.f32 %v4751_v57, %v3153_v1 }
 0x276   : > { %v3480_v23 = vpop.f32.mrf.mxu0 }
 0x277   : > { %3673 = vst [vmem:[%s6130_s13 + $0x138] sm:$0xff] %v3629_v58  ;;  %v3627_v7 = vmax.f32 %v3583_v47, 0.0  ;;  %v3588_v14 = vadd.f32 %v6122_v61, %v3537_v4  ;;  %v3535_v19 = vadd.f32 %v3480_v23, %v3151_v54 }
 0x278   : > { %v4752_v3 = vpop.f32.mrf.mxu0 }
 0x279   : > { %3671 = vst [vmem:[%s6130_s13 + $0x128] sm:$0xff] %v3627_v7  ;;  %v3632_v50 = vmax.f32 %v3588_v14, 0.0  ;;  %v3586_v5 = vadd.f32 %v6122_v61, %v3535_v19  ;;  %v3538_v11 = vadd.f32 %v4752_v3, %v3154_v59 }
 0x27a   : > { %v3483_v39 = vpop.f32.mrf.mxu0 }
 0x27b   : > { %3676 = vst [vmem:[%s6130_s13 + $0x150] sm:$0xff] %v3632_v50  ;;  %v3630_v46 = vmax.f32 %v3586_v5, 0.0  ;;  %v3589_v63 = vadd.f32 %v6122_v61, %v3538_v11  ;;  %v3536_v62 = vadd.f32 %v3483_v39, %v3152_v18 }
 0x27d   : > { %3674 = vst [vmem:[%s6130_s13 + $0x140] sm:$0xff] %v3630_v46  ;;  %v3633_v28 = vmax.f32 %v3589_v63, 0.0  ;;  %v3587_v56 = vadd.f32 %v6122_v61, %v3536_v62 }
 0x27f   : > { %3677 = vst [vmem:[%s6130_s13 + $0x158] sm:$0xff] %v3633_v28  ;;  %v3631_v33 = vmax.f32 %v3587_v56, 0.0 }
 0x281   : > { %3675 = vst [vmem:[%s6130_s13 + $0x148] sm:$0xff] %v3631_v33 }
 0x282 PF: > { %s13_s12 = sadd.s32 1, %s4857_s12  }
 0x283   : > { %p10_p4 = scmp.ge.s32.totalorder %s13_s12, 4  }
 0x285   :  { %12 = sbr.rel (!%p10_p4) target bundleno = 1 (0x1), region = 70 }

// kernel: net_forward.4
= control target key start
LH: loop header
LB: loop body
LE: loop exit
PB: predicated region body
PF: predicated region fallthrough
CT: control target
= control target key end

     0   :  { %s4587_s12 = smov 0   ;;  %s5869_s0 = inlined_call_operand.vmem [shape: f32[2,354,128], index: 0, kind: input, shape index: {}]   ;;  %s5870_s1 = inlined_call_operand.vmem [shape: bf16[9,128,128], index: 1, kind: input, shape index: {}]   ;;  %s5871_s2 = inlined_call_operand.vmem [shape: f32[1,128], index: 2, kind: input, shape index: {}]   ;;  %s5872_s3 = inlined_call_operand.vmem [shape: f32[2,320,128], index: 3, kind: output, shape index: {}]  }
   0x1 LB: > { %s3495_s13 = sadd.s32 4294967295, %s4565_s12   ;;  %p3499_p0 = scmp.ge.s32.totalorder %s4565_s12, 1  ;;  %s4565_s12 = sphi %s4587_s12, %s13_s12  }
   0x2   : > { %p137_p1 = scmp.lt.s32.totalorder %s4565_s12, 3 }
   0x4   : > { %p138_p2 = pnand %p3499_p0, %p137_p1 }
   0x6   : > { %141 = sbr.rel (%p138_p2) target bundleno = 604 (0x25c), region = 32 }
   0xb   : > { %v4487_v0 = vld [vmem:[%s5870_s1 + $0x78] sm:$0xff]   ;;  %p161_p3 = scmp.lt.s32.totalorder %s3495_s13, 1  ;;  %v4488_v1 = vld [vmem:[%s5870_s1 + $0x70] sm:$0xff]   ;;  %v4489_v2 = vld [vmem:[%s5870_s1 + $0x68] sm:$0xff]  }
   0xc   : > { %3957 = vmatprep.subr.bf16.mxu0 %v4487_v0  ;;  %4461 = vmatprep.subr.bf16.mxu1 %v4487_v0  ;;  %v4490_v3 = vld [vmem:[%s5870_s1 + $0x60] sm:$0xff]   ;;  %v4491_v10 = vld [vmem:[%s5870_s1 + $0x58] sm:$0xff]   ;;  %v4492_v11 = vld [vmem:[%s5870_s1 + $0x50] sm:$0xff]  }
   0xd   : > { %s5898_s13 = smov (!%p161_p3, %s3495_s13), 1  ;;  %3958 = vmatpush3.bf16.msra.mxu0 %v4487_v0  ;;  %4469 = vmatpush3.bf16.msra.mxu1 %v4487_v0  ;;  %v4493_v12 = vld [vmem:[%s5870_s1 + $0x48] sm:$0xff]   ;;  %v4494_v13 = vld [vmem:[%s5870_s1 + $0x40] sm:$0xff]   ;;  %v4495_v18 = vld [vmem:[%s5870_s1 + $0x38] sm:$0xff]  }
   0xe   : > { %3959 = vmatprep.subr.bf16.mxu0 %v4488_v1  ;;  %4462 = vmatprep.subr.bf16.mxu1 %v4488_v1  ;;  %s4477_s20 = smul.u32 360, %s5898_s13  ;;  %v4496_v19 = vld [vmem:[%s5870_s1 + $0xb8] sm:$0xff]   ;;  %v4497_v26 = vld [vmem:[%s5870_s1 + $0x30] sm:$0xff]   ;;  %v4499_v34 = vld [vmem:[%s5870_s1 + $0x28] sm:$0xff]  }
   0xf   : > { %v4498_v28 = vld [vmem:[%s5870_s1 + $0xb0] sm:$0xff]   ;;  %v4500_v35 = vld [vmem:[%s5870_s1 + $0xa8] sm:$0xff]   ;;  %v4501_v44 = vld [vmem:[%s5870_s1 + $0x20] sm:$0xff]  }
  0x10   : > { %s4610_s23 = scalar_lea.vmem %s5869_s0, %s4477_s20  ;;  %v4502_v46 = vld [vmem:[%s5870_s1 + $0xa0] sm:$0xff]   ;;  %v4503_v50 = vld [vmem:[%s5870_s1 + $0x18] sm:$0xff]   ;;  %v4505_v60 = vld [vmem:[%s5870_s1 + $0x10] sm:$0xff]  }
  0x11   : > { %3960 = vmatpush3.bf16.msra.mxu0 %v4488_v1  ;;  %4470 = vmatpush3.bf16.msra.mxu1 %v4488_v1  ;;  %v248_v4 = vld [vmem:[%s4610_s23 + $0x1] sm:$0xff]  ;;  %v249_v5 = vld [vmem:[%s4610_s23 + $0x9] sm:$0xff]  ;;  %v250_v14 = vld [vmem:[%s4610_s23 + $0x11] sm:$0xff] }
  0x12   : > { %3961 = vmatprep.subr.bf16.mxu0 %v4489_v2  ;;  %4463 = vmatprep.subr.bf16.mxu1 %v4489_v2  ;;  %v268_v6 = vld [vmem:[%s4610_s23 + $0xa1] sm:$0xff]  ;;  %v288_v7 = vpack.c.bf16 %v249_v5, %v248_v4  ;;  %v269_v8 = vld [vmem:[%s4610_s23 + $0xa9] sm:$0xff]  ;;  %v251_v15 = vld [vmem:[%s4610_s23 + $0x19] sm:$0xff] }
  0x13   : > { %v4619_v9 = vpack.c.bf16 %v269_v8, %v268_v6  ;;  %v270_v16 = vld [vmem:[%s4610_s23 + $0xb1] sm:$0xff]  ;;  %v271_v17 = vld [vmem:[%s4610_s23 + $0xb9] sm:$0xff]  ;;  %v252_v20 = vld [vmem:[%s4610_s23 + $0x21] sm:$0xff]  ;;  %v4647_v23 = vpack.c.bf16 %v251_v15, %v250_v14 }
  0x14   : > { %3973 = vmatprep.mubr.bf16.mxu0 %v288_v7  ;;  %v253_v21 = vld [vmem:[%s4610_s23 + $0x29] sm:$0xff]  ;;  %v272_v22 = vld [vmem:[%s4610_s23 + $0xc1] sm:$0xff]  ;;  %v4649_v24 = vpack.c.bf16 %v271_v17, %v270_v16  ;;  %v254_v30 = vld [vmem:[%s4610_s23 + $0x31] sm:$0xff] }
  0x15   : > { %3962 = vmatpush3.bf16.msra.mxu0 %v4489_v2  ;;  %4471 = vmatpush3.bf16.msra.mxu1 %v4489_v2  ;;  %v273_v25 = vld [vmem:[%s4610_s23 + $0xc9] sm:$0xff]  ;;  %v4655_v27 = vpack.c.bf16 %v253_v21, %v252_v20  ;;  %v255_v31 = vld [vmem:[%s4610_s23 + $0x39] sm:$0xff]  ;;  %v274_v32 = vld [vmem:[%s4610_s23 + $0xd1] sm:$0xff] }
  0x16   : > { %3963 = vmatprep.subr.bf16.mxu0 %v4490_v3  ;;  %4464 = vmatprep.subr.bf16.mxu1 %v4490_v3  ;;  %v4660_v29 = vpack.c.bf16 %v273_v25, %v272_v22  ;;  %v275_v33 = vld [vmem:[%s4610_s23 + $0xd9] sm:$0xff]  ;;  %v256_v36 = vld [vmem:[%s4610_s23 + $0x41] sm:$0xff]  ;;  %v257_v37 = vld [vmem:[%s4610_s23 + $0x49] sm:$0xff]  ;;  %v4680_v40 = vpack.c.bf16 %v255_v31, %v254_v30 }
  0x17   : > { %3993 = vmatprep.mubr.bf16.mxu1 %v4619_v9  ;;  %v276_v38 = vld [vmem:[%s4610_s23 + $0xe1] sm:$0xff]  ;;  %v277_v39 = vld [vmem:[%s4610_s23 + $0xe9] sm:$0xff]  ;;  %v4682_v41 = vpack.c.bf16 %v275_v33, %v274_v32  ;;  %v4684_v42 = vpack.c.bf16 %v257_v37, %v256_v36  ;;  %v258_v45 = vld [vmem:[%s4610_s23 + $0x51] sm:$0xff] }
  0x18   : > { %v4686_v43 = vpack.c.bf16 %v277_v39, %v276_v38  ;;  %v259_v47 = vld [vmem:[%s4610_s23 + $0x59] sm:$0xff]  ;;  %v278_v48 = vld [vmem:[%s4610_s23 + $0xf1] sm:$0xff]  ;;  %v260_v52 = vld [vmem:[%s4610_s23 + $0x61] sm:$0xff] }
  0x19   : > { %3964 = vmatpush3.bf16.msra.mxu0 %v4490_v3  ;;  %4472 = vmatpush3.bf16.msra.mxu1 %v4490_v3  ;;  %v279_v49 = vld [vmem:[%s4610_s23 + $0xf9] sm:$0xff]  ;;  %v261_v53 = vld [vmem:[%s4610_s23 + $0x69] sm:$0xff]  ;;  %v280_v54 = vld [vmem:[%s4610_s23 + $0x101] sm:$0xff]  ;;  %v4712_v56 = vpack.c.bf16 %v259_v47, %v258_v45 }
  0x1a   : > { %3965 = vmatprep.subr.bf16.mxu0 %v4491_v10  ;;  %4465 = vmatprep.subr.bf16.mxu1 %v4491_v10  ;;  %v4504_v51 = vld [vmem:[%s5870_s1 + $0x98] sm:$0xff]   ;;  %v281_v55 = vld [vmem:[%s4610_s23 + $0x109] sm:$0xff]  ;;  %v4714_v57 = vpack.c.bf16 %v279_v49, %v278_v48  ;;  %v4716_v58 = vpack.c.bf16 %v261_v53, %v260_v52  ;;  %v264_v3 = vld [vmem:[%s4610_s23 + $0x81] sm:$0xff] }
  0x1b   : > { %v4718_v59 = vpack.c.bf16 %v281_v55, %v280_v54  ;;  %v262_v61 = vld [vmem:[%s4610_s23 + $0x71] sm:$0xff]  ;;  %v263_v62 = vld [vmem:[%s4610_s23 + $0x79] sm:$0xff]  ;;  %v4507_v2 = vld [vmem:[%s5870_s1 + $0x8] sm:$0xff]  }
  0x1c   : > { %v4506_v63 = vld [vmem:[%s5870_s1 + $0x90] sm:$0xff]   ;;  %v283_v1 = vld [vmem:[%s4610_s23 + $0x119] sm:$0xff]  ;;  %v284_v5 = vld [vmem:[%s4610_s23 + $0x121] sm:$0xff]  ;;  %v4744_v8 = vpack.c.bf16 %v263_v62, %v262_v61 }
  0x1d   : > { %3966 = vmatpush3.bf16.msra.mxu0 %v4491_v10  ;;  %4473 = vmatpush3.bf16.msra.mxu1 %v4491_v10  ;;  %v282_v0 = vld [vmem:[%s4610_s23 + $0x111] sm:$0xff]  ;;  %v265_v4 = vld [vmem:[%s4610_s23 + $0x89] sm:$0xff]  ;;  %v4509_v14 = vld [vmem:[%s5870_s1] sm:$0xff]  }
  0x1e   : > { %3967 = vmatprep.subr.bf16.mxu0 %v4492_v11  ;;  %4466 = vmatprep.subr.bf16.mxu1 %v4492_v11  ;;  %v285_v6 = vld [vmem:[%s4610_s23 + $0x129] sm:$0xff]  ;;  %v4746_v10 = vpack.c.bf16 %v283_v1, %v282_v0  ;;  %v4510_v15 = vld [vmem:[%s5870_s1 + $0x80] sm:$0xff]   ;;  %v286_v17 = vld [vmem:[%s4610_s23 + $0x131] sm:$0xff] }
  0x1f   : > { %v4508_v7 = vld [vmem:[%s5870_s1 + $0x88] sm:$0xff]   ;;  %v267_v16 = vld [vmem:[%s4610_s23 + $0x99] sm:$0xff]  ;;  %v174_v33 = vld [vmem:[%s4610_s23 + $0x10] sm:$0xff] }
  0x20   : > { %v173_v20 = vld [vmem:[%s4610_s23 + $0x8] sm:$0xff]  ;;  %v4511_v25 = vld [vmem:[%s5870_s1 + $0xf8] sm:$0xff]   ;;  %v176_v37 = vld [vmem:[%s4610_s23 + $0x20] sm:$0xff] }
  0x21   : > { %3968 = vmatpush3.bf16.msra.mxu0 %v4492_v11  ;;  %4474 = vmatpush3.bf16.msra.mxu1 %v4492_v11  ;;  %v4748_v11 = vpack.c.bf16 %v265_v4, %v264_v3  ;;  %v807_v21 = vld [vmem:[%s4610_s23 + $0x2] sm:$0xff]  ;;  %v808_v22 = vld [vmem:[%s4610_s23 + $0xa] sm:$0xff]  ;;  %v810_v36 = vld [vmem:[%s4610_s23 + $0x1a] sm:$0xff] }
  0x22   : > { %3969 = vmatprep.subr.bf16.mxu0 %v4493_v12  ;;  %4467 = vmatprep.subr.bf16.mxu1 %v4493_v12  ;;  %v847_v32 = vpack.c.bf16 %v808_v22, %v807_v21  ;;  %v177_v38 = vld [vmem:[%s4610_s23 + $0x28] sm:$0xff]  ;;  %v178_v49 = vld [vmem:[%s4610_s23 + $0x30] sm:$0xff]  ;;  %v814_v54 = vld [vmem:[%s4610_s23 + $0x3a] sm:$0xff] }
  0x23   : > { %v811_v39 = vld [vmem:[%s4610_s23 + $0x22] sm:$0xff]  ;;  %v4794_v47 = vpack.c.bf16 %v177_v38, %v176_v37  ;;  %v4513_v52 = vld [vmem:[%s5870_s1 + $0xf0] sm:$0xff]   ;;  %v4520_v21 = vld [vmem:[%s5870_s1 + $0x118] sm:$0xff]  }
  0x24   : > { %v4514_v53 = vld [vmem:[%s5870_s1 + $0x130] sm:$0xff]   ;;  %v180_v55 = vld [vmem:[%s4610_s23 + $0x40] sm:$0xff]  ;;  %v4516_v0 = vld [vmem:[%s5870_s1 + $0x128] sm:$0xff]  }
  0x25   : > { %3970 = vmatpush3.bf16.msra.mxu0 %v4493_v12  ;;  %4475 = vmatpush3.bf16.msra.mxu1 %v4493_v12  ;;  %v4750_v12 = vpack.c.bf16 %v285_v6, %v284_v5  ;;  %v815_v61 = vld [vmem:[%s4610_s23 + $0x42] sm:$0xff]  ;;  %v816_v62 = vld [vmem:[%s4610_s23 + $0x4a] sm:$0xff] }
  0x26   : > { %3971 = vmatprep.subr.bf16.mxu0 %v4494_v13  ;;  %4468 = vmatprep.subr.bf16.mxu1 %v4494_v13  ;;  %v4828_v4 = vpack.c.bf16 %v816_v62, %v815_v61  ;;  %v4517_v5 = vld [vmem:[%s5870_s1 + $0xe0] sm:$0xff]   ;;  %v182_v6 = vld [vmem:[%s4610_s23 + $0x50] sm:$0xff] }
  0x27   : > { %v4522_v37 = vld [vmem:[%s5870_s1 + $0x110] sm:$0xff]   ;;  %v188_v38 = vld [vmem:[%s4610_s23 + $0x80] sm:$0xff] }
  0x28   : > { %v4526_v61 = vld [vmem:[%s5870_s1 + $0x100] sm:$0xff]   ;;  %v190_v62 = vld [vmem:[%s4610_s23 + $0x90] sm:$0xff] }
  0x29   : > { %3972 = vmatpush3.bf16.msra.mxu0 %v4494_v13  ;;  %4476 = vmatpush3.bf16.msra.mxu1 %v4494_v13  ;;  %v266_v13 = vld [vmem:[%s4610_s23 + $0x91] sm:$0xff] }
  0x2a   : > { %4013 = vmatprep.subr.bf16.mxu1 %v4495_v18  ;;  %4069 = vmatprep.subr.bf16.mxu0 %v4496_v19 }
  0x2c   : > { %3974 = vmatmul.mubr.bf16.vlgmr.msra.gmra.mxu0 %v4647_v23  ;;  %3994 = vmatmul.mubr.bf16.vlgmr.msra.gmra.mxu1 %v4649_v24 }
  0x2d   : > { %4014 = vmatpush3.bf16.msra.mxu1 %v4495_v18  ;;  %4070 = vmatpush3.bf16.msra.mxu0 %v4496_v19  ;;  %v287_v18 = vld [vmem:[%s4610_s23 + $0x139] sm:$0xff] }
  0x2e   : > { %4015 = vmatprep.subr.bf16.mxu1 %v4497_v26  ;;  %3977 = vmatprep.mubr.bf16.mxu0 %v4655_v27  ;;  %v172_v19 = vld [vmem:[%s4610_s23] sm:$0xff]  ;;  %v4778_v30 = vpack.c.bf16 %v287_v18, %v286_v17  ;;  %v185_v17 = vld [vmem:[%s4610_s23 + $0x68] sm:$0xff] }
  0x2f   : > { %3997 = vmatprep.mubr.bf16.mxu1 %v4660_v29  ;;  %4071 = vmatprep.subr.bf16.mxu0 %v4498_v28  ;;  %v212_v31 = vpack.c.bf16 %v173_v20, %v172_v19  ;;  %v819_v18 = vld [vmem:[%s4610_s23 + $0x62] sm:$0xff]  ;;  %v820_v19 = vld [vmem:[%s4610_s23 + $0x6a] sm:$0xff]  ;;  %v4519_v20 = vld [vmem:[%s5870_s1 + $0xd8] sm:$0xff]  }
  0x31   : > { %4016 = vmatpush3.bf16.msra.mxu1 %v4497_v26  ;;  %4072 = vmatpush3.bf16.msra.mxu0 %v4498_v28  ;;  %v4512_v26 = vld [vmem:[%s5870_s1 + $0x138] sm:$0xff]   ;;  %v4776_v28 = vpack.c.bf16 %v267_v16, %v266_v13  ;;  %v184_v16 = vld [vmem:[%s4610_s23 + $0x60] sm:$0xff] }
  0x32   : > { %4017 = vmatprep.subr.bf16.mxu1 %v4499_v34  ;;  %4073 = vmatprep.subr.bf16.mxu0 %v4500_v35  ;;  %v817_v13 = vld [vmem:[%s4610_s23 + $0x52] sm:$0xff] }
  0x34   : > { %3978 = vmatmul.mubr.bf16.gmra.mxu0 %v4680_v40  ;;  %3998 = vmatmul.mubr.bf16.gmra.mxu1 %v4682_v41 }
  0x35   : > { %4018 = vmatpush3.bf16.msra.mxu1 %v4499_v34  ;;  %4074 = vmatpush3.bf16.msra.mxu0 %v4500_v35  ;;  %v175_v34 = vld [vmem:[%s4610_s23 + $0x18] sm:$0xff] }
  0x36   : > { %3981 = vmatprep.mubr.bf16.mxu0 %v4684_v42  ;;  %4001 = vmatprep.mubr.bf16.mxu1 %v4686_v43  ;;  %v809_v35 = vld [vmem:[%s4610_s23 + $0x12] sm:$0xff]  ;;  %v4790_v45 = vpack.c.bf16 %v175_v34, %v174_v33 }
  0x37   : > { %4019 = vmatprep.subr.bf16.mxu1 %v4501_v44  ;;  %4075 = vmatprep.subr.bf16.mxu0 %v4502_v46  ;;  %v186_v33 = vld [vmem:[%s4610_s23 + $0x70] sm:$0xff]  ;;  %v187_v34 = vld [vmem:[%s4610_s23 + $0x78] sm:$0xff] }
  0x39   : > { %4020 = vmatpush3.bf16.msra.mxu1 %v4501_v44  ;;  %4076 = vmatpush3.bf16.msra.mxu0 %v4502_v46  ;;  %v812_v44 = vld [vmem:[%s4610_s23 + $0x2a] sm:$0xff]  ;;  %v4792_v46 = vpack.c.bf16 %v810_v36, %v809_v35  ;;  %v821_v35 = vld [vmem:[%s4610_s23 + $0x72] sm:$0xff]  ;;  %v822_v36 = vld [vmem:[%s4610_s23 + $0x7a] sm:$0xff] }
  0x3a   : > { %4021 = vmatprep.subr.bf16.mxu1 %v4503_v50  ;;  %4077 = vmatprep.subr.bf16.mxu0 %v4504_v51  ;;  %v4796_v48 = vpack.c.bf16 %v812_v44, %v811_v39  ;;  %v189_v39 = vld [vmem:[%s4610_s23 + $0x88] sm:$0xff] }
  0x3b   : > { %v823_v44 = vld [vmem:[%s4610_s23 + $0x82] sm:$0xff] }
  0x3c   : > { %3982 = vmatmul.mubr.bf16.gmra.mxu0 %v4712_v56  ;;  %4002 = vmatmul.mubr.bf16.gmra.mxu1 %v4714_v57 }
  0x3d   : > { %4022 = vmatpush3.bf16.msra.mxu1 %v4503_v50  ;;  %3985 = vmatprep.mubr.bf16.mxu0 %v4716_v58  ;;  %v179_v50 = vld [vmem:[%s4610_s23 + $0x38] sm:$0xff] }
  0x3e   : > { %4005 = vmatprep.mubr.bf16.mxu1 %v4718_v59  ;;  %4078 = vmatpush3.bf16.msra.mxu0 %v4504_v51  ;;  %v813_v51 = vld [vmem:[%s4610_s23 + $0x32] sm:$0xff]  ;;  %v4822_v1 = vpack.c.bf16 %v179_v50, %v178_v49  ;;  %v824_v49 = vld [vmem:[%s4610_s23 + $0x8a] sm:$0xff] }
  0x3f   : > { %4023 = vmatprep.subr.bf16.mxu1 %v4505_v60  ;;  %4079 = vmatprep.subr.bf16.mxu0 %v4506_v63  ;;  %v4523_v50 = vld [vmem:[%s5870_s1 + $0xc8] sm:$0xff]  }
  0x41   : > { %4024 = vmatpush3.bf16.msra.mxu1 %v4505_v60  ;;  %v181_v60 = vld [vmem:[%s4610_s23 + $0x48] sm:$0xff] }
  0x42   : > { %4080 = vmatpush3.bf16.msra.mxu0 %v4506_v63  ;;  %4025 = vmatprep.subr.bf16.mxu1 %v4507_v2  ;;  %v4515_v63 = vld [vmem:[%s5870_s1 + $0xe8] sm:$0xff]   ;;  %v4826_v3 = vpack.c.bf16 %v181_v60, %v180_v55  ;;  %v4892_v55 = vpack.c.bf16 %v824_v49, %v823_v44  ;;  %v4525_v60 = vld [vmem:[%s5870_s1 + $0xc0] sm:$0xff]  }
  0x43   : > { %4081 = vmatprep.subr.bf16.mxu0 %v4508_v7 }
  0x44   : > { %3986 = vmatmul.mubr.bf16.gmra.mxu0 %v4744_v8  ;;  %4006 = vmatmul.mubr.bf16.gmra.mxu1 %v4746_v10 }
  0x45   : > { %3989 = vmatprep.mubr.bf16.mxu0 %v4748_v11  ;;  %4009 = vmatprep.mubr.bf16.mxu1 %v4750_v12 }
  0x46   : > { %4026 = vmatpush3.bf16.msra.mxu1 %v4507_v2  ;;  %4082 = vmatpush3.bf16.msra.mxu0 %v4508_v7  ;;  %v4824_v2 = vpack.c.bf16 %v814_v54, %v813_v51  ;;  %v183_v7 = vld [vmem:[%s4610_s23 + $0x58] sm:$0xff]  ;;  %v4524_v51 = vld [vmem:[%s5870_s1 + $0x108] sm:$0xff]   ;;  %v4890_v54 = vpack.c.bf16 %v189_v39, %v188_v38 }
  0x47   : > { %4027 = vmatprep.subr.bf16.mxu1 %v4509_v14  ;;  %4083 = vmatprep.subr.bf16.mxu0 %v4510_v15  ;;  %v4854_v22 = vpack.c.bf16 %v183_v7, %v182_v6  ;;  %v192_v6 = vld [vmem:[%s4610_s23 + $0xa0] sm:$0xff]  ;;  %v193_v7 = vld [vmem:[%s4610_s23 + $0xa8] sm:$0xff] }
  0x48   : > { %v832_v38 = vld [vmem:[%s4610_s23 + $0xca] sm:$0xff] }
  0x4a   : > { %4028 = vmatpush3.bf16.msra.mxu1 %v4509_v14  ;;  %4084 = vmatpush3.bf16.msra.mxu0 %v4510_v15  ;;  %v818_v14 = vld [vmem:[%s4610_s23 + $0x5a] sm:$0xff] }
  0x4b   : > { %4125 = vmatprep.subr.bf16.mxu1 %v4511_v25  ;;  %4181 = vmatprep.subr.bf16.mxu0 %v4512_v26  ;;  %v4518_v15 = vld [vmem:[%s5870_s1 + $0x120] sm:$0xff]  }
  0x4c   : > { %3990 = vmatmul.mubr.bf16.gmra.mxu0 %v4776_v28  ;;  %4010 = vmatmul.mubr.bf16.gmra.mxu1 %v4778_v30 }
  0x4d   : > { %4029 = vmatprep.mubr.bf16.mxu1 %v212_v31  ;;  %4085 = vmatprep.mubr.bf16.mxu0 %v847_v32  ;;  %v4860_v31 = vpack.c.bf16 %v820_v19, %v819_v18  ;;  %v4521_v32 = vld [vmem:[%s5870_s1 + $0xd0] sm:$0xff]   ;;  %v4926_v19 = vpack.c.bf16 %v193_v7, %v192_v6 }
  0x4e   : > { %v836_v6 = vld [vmem:[%s4610_s23 + $0xea] sm:$0xff] }
  0x54   : > { %4030 = vmatmul.mubr.bf16.vlgmr.msra.gmra.mxu1 %v4790_v45  ;;  %4086 = vmatmul.mubr.bf16.vlgmr.msra.gmra.mxu0 %v4792_v46 }
  0x55   : > { %4126 = vmatpush3.bf16.msra.mxu1 %v4511_v25  ;;  %4182 = vmatpush3.bf16.msra.mxu0 %v4512_v26  ;;  %v4856_v25 = vpack.c.bf16 %v818_v14, %v817_v13  ;;  %v4858_v26 = vpack.c.bf16 %v185_v17, %v184_v16  ;;  %v827_v13 = vld [vmem:[%s4610_s23 + $0xa2] sm:$0xff]  ;;  %v828_v14 = vld [vmem:[%s4610_s23 + $0xaa] sm:$0xff]  ;;  %v4920_v16 = vld [vmem:[%s5870_s1 + $0x1b8] sm:$0xff]  }
  0x56   : > { %4033 = vmatprep.mubr.bf16.mxu1 %v4794_v47  ;;  %4089 = vmatprep.mubr.bf16.mxu0 %v4796_v48 }
  0x57   : > { %4127 = vmatprep.subr.bf16.mxu1 %v4513_v52  ;;  %4183 = vmatprep.subr.bf16.mxu0 %v4514_v53 }
  0x59   : > { %4128 = vmatpush3.bf16.msra.mxu1 %v4513_v52  ;;  %4184 = vmatpush3.bf16.msra.mxu0 %v4514_v53  ;;  %v4886_v52 = vpack.c.bf16 %v187_v34, %v186_v33  ;;  %v4888_v53 = vpack.c.bf16 %v822_v36, %v821_v35  ;;  %v829_v33 = vld [vmem:[%s4610_s23 + $0xb2] sm:$0xff]  ;;  %v830_v34 = vld [vmem:[%s4610_s23 + $0xba] sm:$0xff]  ;;  %v197_v36 = vld [vmem:[%s4610_s23 + $0xc8] sm:$0xff] }
  0x5a   : > { %4129 = vmatprep.subr.bf16.mxu1 %v4515_v63  ;;  %4185 = vmatprep.subr.bf16.mxu0 %v4516_v0  ;;  %v196_v35 = vld [vmem:[%s4610_s23 + $0xc0] sm:$0xff]  ;;  %v858_v44 = vpack.c.bf16 %v830_v34, %v829_v33  ;;  %v203_v33 = vld [vmem:[%s4610_s23 + $0xf8] sm:$0xff] }
  0x5b   : > { %v4946_v49 = vpack.c.bf16 %v197_v36, %v196_v35  ;;  %v837_v34 = vld [vmem:[%s4610_s23 + $0xf2] sm:$0xff]  ;;  %v838_v35 = vld [vmem:[%s4610_s23 + $0xfa] sm:$0xff] }
  0x5c   : > { %4034 = vmatmul.mubr.bf16.gmra.mxu1 %v4822_v1  ;;  %4090 = vmatmul.mubr.bf16.gmra.mxu0 %v4824_v2  ;;  %v204_v36 = vld [vmem:[%s4610_s23 + $0x100] sm:$0xff] }
  0x5d   : > { %4037 = vmatprep.mubr.bf16.mxu1 %v4826_v3  ;;  %4093 = vmatprep.mubr.bf16.mxu0 %v4828_v4 }
  0x5e   : > { %4130 = vmatpush3.bf16.msra.mxu1 %v4515_v63  ;;  %4186 = vmatpush3.bf16.msra.mxu0 %v4516_v0  ;;  %v191_v63 = vld [vmem:[%s4610_s23 + $0x98] sm:$0xff] }
  0x5f   : > { %4131 = vmatprep.subr.bf16.mxu1 %v4517_v5  ;;  %4187 = vmatprep.subr.bf16.mxu0 %v4518_v15  ;;  %v825_v0 = vld [vmem:[%s4610_s23 + $0x92] sm:$0xff]  ;;  %v4922_v17 = vpack.c.bf16 %v191_v63, %v190_v62  ;;  %v834_v62 = vld [vmem:[%s4610_s23 + $0xda] sm:$0xff] }
  0x60   : > { %v200_v63 = vld [vmem:[%s4610_s23 + $0xe0] sm:$0xff] }
  0x62   : > { %4132 = vmatpush3.bf16.msra.mxu1 %v4517_v5  ;;  %4188 = vmatpush3.bf16.msra.mxu0 %v4518_v15  ;;  %v826_v5 = vld [vmem:[%s4610_s23 + $0x9a] sm:$0xff] }
  0x63   : > { %4133 = vmatprep.subr.bf16.mxu1 %v4519_v20  ;;  %4189 = vmatprep.subr.bf16.mxu0 %v4520_v21  ;;  %v4915_v15 = vld [vmem:[%s5870_s1 + $0x178] sm:$0xff]   ;;  %v4924_v18 = vpack.c.bf16 %v826_v5, %v825_v0  ;;  %v201_v0 = vld [vmem:[%s4610_s23 + $0xe8] sm:$0xff] }
  0x64   : > { %4038 = vmatmul.mubr.bf16.gmra.mxu1 %v4854_v22  ;;  %4094 = vmatmul.mubr.bf16.gmra.mxu0 %v4856_v25  ;;  %v835_v5 = vld [vmem:[%s4610_s23 + $0xe2] sm:$0xff] }
  0x65   : > { %4041 = vmatprep.mubr.bf16.mxu1 %v4858_v26  ;;  %4097 = vmatprep.mubr.bf16.mxu0 %v4860_v31 }
  0x66   : > { %4134 = vmatpush3.bf16.msra.mxu1 %v4519_v20  ;;  %4190 = vmatpush3.bf16.msra.mxu0 %v4520_v21  ;;  %v4928_v20 = vpack.c.bf16 %v828_v14, %v827_v13  ;;  %v194_v21 = vld [vmem:[%s4610_s23 + $0xb0] sm:$0xff]  ;;  %v4960_v14 = vpack.c.bf16 %v201_v0, %v200_v63  ;;  %v207_v63 = vld [vmem:[%s4610_s23 + $0x118] sm:$0xff] }
  0x67   : > { %4135 = vmatprep.subr.bf16.mxu1 %v4521_v32  ;;  %4191 = vmatprep.subr.bf16.mxu0 %v4522_v37  ;;  %v841_v0 = vld [vmem:[%s4610_s23 + $0x112] sm:$0xff] }
  0x68   : > { %5877 = vst [vmem:[#allocation2_spill] sm:$0xff] %v4928_v20 }
  0x6a   : > { %4136 = vmatpush3.bf16.msra.mxu1 %v4521_v32  ;;  %4192 = vmatpush3.bf16.msra.mxu0 %v4522_v37  ;;  %v195_v32 = vld [vmem:[%s4610_s23 + $0xb8] sm:$0xff]  ;;  %v831_v37 = vld [vmem:[%s4610_s23 + $0xc2] sm:$0xff] }
  0x6b   : > { %4137 = vmatprep.subr.bf16.mxu1 %v4523_v50  ;;  %4193 = vmatprep.subr.bf16.mxu0 %v4524_v51  ;;  %v4944_v39 = vpack.c.bf16 %v195_v32, %v194_v21  ;;  %v861_v21 = vpack.c.bf16 %v836_v6, %v835_v5  ;;  %v202_v32 = vld [vmem:[%s4610_s23 + $0xf0] sm:$0xff]  ;;  %v842_v5 = vld [vmem:[%s4610_s23 + $0x11a] sm:$0xff] }
  0x6c   : > { %4042 = vmatmul.mubr.bf16.gmra.mxu1 %v4886_v52  ;;  %4098 = vmatmul.mubr.bf16.gmra.mxu0 %v4888_v53  ;;  %v208_v6 = vld [vmem:[%s4610_s23 + $0x120] sm:$0xff] }
  0x6d   : > { %4045 = vmatprep.mubr.bf16.mxu1 %v4890_v54  ;;  %4101 = vmatprep.mubr.bf16.mxu0 %v4892_v55 }
  0x6e   : > { %4138 = vmatpush3.bf16.msra.mxu1 %v4523_v50  ;;  %4194 = vmatpush3.bf16.msra.mxu0 %v4524_v51  ;;  %v859_v50 = vpack.c.bf16 %v832_v38, %v831_v37  ;;  %v198_v51 = vld [vmem:[%s4610_s23 + $0xd0] sm:$0xff]  ;;  %v205_v37 = vld [vmem:[%s4610_s23 + $0x108] sm:$0xff] }
  0x6f   : > { %4139 = vmatprep.subr.bf16.mxu1 %v4525_v60  ;;  %4195 = vmatprep.subr.bf16.mxu0 %v4526_v61  ;;  %v839_v38 = vld [vmem:[%s4610_s23 + $0x102] sm:$0xff] }
  0x72   : > { %4140 = vmatpush3.bf16.msra.mxu1 %v4525_v60  ;;  %4196 = vmatpush3.bf16.msra.mxu0 %v4526_v61  ;;  %v199_v60 = vld [vmem:[%s4610_s23 + $0xd8] sm:$0xff] }
  0x73   : > { %4237 = vmatprep.subr.bf16.mxu1 %v4915_v15  ;;  %4293 = vmatprep.subr.bf16.mxu0 %v4920_v16  ;;  %v833_v61 = vld [vmem:[%s4610_s23 + $0xd2] sm:$0xff]  ;;  %v4958_v7 = vpack.c.bf16 %v199_v60, %v198_v51  ;;  %v862_v51 = vpack.c.bf16 %v838_v35, %v837_v34  ;;  %v4974_v60 = vpack.c.bf16 %v205_v37, %v204_v36 }
  0x74   : > { %4046 = vmatmul.mubr.bf16.gmra.mxu1 %v4922_v17  ;;  %4102 = vmatmul.mubr.bf16.gmra.mxu0 %v4924_v18  ;;  %v860_v13 = vpack.c.bf16 %v834_v62, %v833_v61  ;;  %v206_v62 = vld [vmem:[%s4610_s23 + $0x110] sm:$0xff]  ;;  %v864_v34 = vpack.c.bf16 %v842_v5, %v841_v0  ;;  %v4540_v0 = vld [vmem:[%s5870_s1 + $0x188] sm:$0xff]   ;;  %v4543_v5 = vld [vmem:[%s5870_s1 + $0x1f8] sm:$0xff]  }
  0x75   : > { %4049 = vmatprep.mubr.bf16.mxu1 %v4926_v19  ;;  %4105 = vmatprep.mubr.bf16.mxu0 %v4928_v20  ;;  %v210_v37 = vld [vmem:[%s4610_s23 + $0x130] sm:$0xff] }
  0x7c   : > { %4050 = vmatmul.mubr.bf16.gmra.mxu1 %v4944_v39  ;;  %4106 = vmatmul.mubr.bf16.gmra.mxu0 %v858_v44  ;;  %v840_v44 = vld [vmem:[%s4610_s23 + $0x10a] sm:$0xff] }
  0x7d   : > { %4053 = vmatprep.mubr.bf16.mxu1 %v4946_v49  ;;  %4109 = vmatprep.mubr.bf16.mxu0 %v859_v50  ;;  %v4972_v50 = vpack.c.bf16 %v203_v33, %v202_v32  ;;  %v863_v61 = vpack.c.bf16 %v840_v44, %v839_v38  ;;  %v844_v32 = vld [vmem:[%s4610_s23 + $0x12a] sm:$0xff]  ;;  %v4986_v33 = vpack.c.bf16 %v207_v63, %v206_v62  ;;  %v211_v38 = vld [vmem:[%s4610_s23 + $0x138] sm:$0xff] }
  0x7e   : > { %v845_v44 = vld [vmem:[%s4610_s23 + $0x132] sm:$0xff] }
  0x7f   : > { %v4529_v62 = vld [vmem:[%s5870_s1 + $0x170] sm:$0xff]  }
  0x80   : > { %v4530_v63 = vld [vmem:[%s5870_s1 + $0x1b0] sm:$0xff]  }
  0x84   : > { %4054 = vmatmul.mubr.bf16.gmra.mxu1 %v4958_v7  ;;  %4110 = vmatmul.mubr.bf16.gmra.mxu0 %v860_v13  ;;  %v209_v13 = vld [vmem:[%s4610_s23 + $0x128] sm:$0xff] }
  0x85   : > { %4057 = vmatprep.mubr.bf16.mxu1 %v4960_v14  ;;  %4113 = vmatprep.mubr.bf16.mxu0 %v861_v21  ;;  %v843_v21 = vld [vmem:[%s4610_s23 + $0x122] sm:$0xff]  ;;  %v4988_v35 = vpack.c.bf16 %v209_v13, %v208_v6  ;;  %v4544_v6 = vld [vmem:[%s5870_s1 + $0x238] sm:$0xff]  }
  0x86   : > { %v865_v36 = vpack.c.bf16 %v844_v32, %v843_v21  ;;  %v4547_v21 = vld [vmem:[%s5870_s1 + $0x1e8] sm:$0xff]  }
  0x8c   : > { %4058 = vmatmul.mubr.bf16.gmra.mxu1 %v4972_v50  ;;  %4114 = vmatmul.mubr.bf16.gmra.mxu0 %v862_v51  ;;  %v846_v51 = vld [vmem:[%s4610_s23 + $0x13a] sm:$0xff] }
  0x8d   : > { %4061 = vmatprep.mubr.bf16.mxu1 %v4974_v60  ;;  %4117 = vmatprep.mubr.bf16.mxu0 %v863_v61  ;;  %v4996_v61 = vpack.c.bf16 %v211_v38, %v210_v37  ;;  %v866_v20 = vpack.c.bf16 %v846_v51, %v845_v44  ;;  %v4551_v44 = vld [vmem:[%s5870_s1 + $0x1d8] sm:$0xff]  }
  0x94   : > { %4062 = vmatmul.mubr.bf16.gmra.mxu1 %v4986_v33  ;;  %4118 = vmatmul.mubr.bf16.gmra.mxu0 %v864_v34  ;;  %v4550_v34 = vld [vmem:[%s5870_s1 + $0x220] sm:$0xff]  }
  0x95   : > { %4065 = vmatprep.mubr.bf16.mxu1 %v4988_v35  ;;  %4121 = vmatprep.mubr.bf16.mxu0 %v865_v36 }
  0x9c   : > { %4066 = vmatmul.mubr.bf16.gmra.mxu1 %v4996_v61  ;;  %4122 = vmatmul.mubr.bf16.gmra.mxu0 %v866_v20  ;;  %v4539_v20 = vld [vmem:[%s5870_s1 + $0x148] sm:$0xff]  }
  0x9d   : > { %4141 = vmatprep.mubr.bf16.mxu1 %v4790_v45  ;;  %4197 = vmatprep.mubr.bf16.mxu0 %v4647_v23  ;;  %v4531_v23 = vld [vmem:[%s5870_s1 + $0x168] sm:$0xff]  }
  0x9e   : > { %v4532_v45 = vld [vmem:[%s5870_s1 + $0x1a8] sm:$0xff]  }
  0xa4   : > { %4142 = vmatmul.mubr.bf16.vlgmr.msra.gmra.mxu1 %v4794_v47  ;;  %4198 = vmatmul.mubr.bf16.vlgmr.msra.gmra.mxu0 %v4655_v27  ;;  %v4533_v27 = vld [vmem:[%s5870_s1 + $0x160] sm:$0xff]  }
  0xa5   : > { %4238 = vmatpush3.bf16.msra.mxu1 %v4915_v15  ;;  %4294 = vmatpush3.bf16.msra.mxu0 %v4920_v16  ;;  %v4535_v15 = vld [vmem:[%s5870_s1 + $0x158] sm:$0xff]  }
  0xa6   : > { %4145 = vmatprep.mubr.bf16.mxu1 %v4822_v1  ;;  %4201 = vmatprep.mubr.bf16.mxu0 %v4680_v40  ;;  %v4534_v40 = vld [vmem:[%s5870_s1 + $0x1a0] sm:$0xff]   ;;  %v4536_v16 = vld [vmem:[%s5870_s1 + $0x198] sm:$0xff]  }
  0xa7   : > { %4239 = vmatprep.subr.bf16.mxu1 %v4529_v62  ;;  %4295 = vmatprep.subr.bf16.mxu0 %v4530_v63 }
  0xa9   : > { %4240 = vmatpush3.bf16.msra.mxu1 %v4529_v62  ;;  %4296 = vmatpush3.bf16.msra.mxu0 %v4530_v63  ;;  %v4554_v62 = vld [vmem:[%s5870_s1 + $0x210] sm:$0xff]  }
  0xaa   : > { %4241 = vmatprep.subr.bf16.mxu1 %v4531_v23  ;;  %4297 = vmatprep.subr.bf16.mxu0 %v4532_v45 }
  0xac   : > { %4146 = vmatmul.mubr.bf16.gmra.mxu1 %v4826_v3  ;;  %4202 = vmatmul.mubr.bf16.gmra.mxu0 %v4684_v42  ;;  %v4537_v42 = vld [vmem:[%s5870_s1 + $0x150] sm:$0xff]  }
  0xad   : > { %4149 = vmatprep.mubr.bf16.mxu1 %v4854_v22  ;;  %4205 = vmatprep.mubr.bf16.mxu0 %v4712_v56  ;;  %v4538_v56 = vld [vmem:[%s5870_s1 + $0x190] sm:$0xff]  }
  0xae   : > { %4242 = vmatpush3.bf16.msra.mxu1 %v4531_v23  ;;  %4298 = vmatpush3.bf16.msra.mxu0 %v4532_v45 }
  0xaf   : > { %4243 = vmatprep.subr.bf16.mxu1 %v4533_v27  ;;  %4299 = vmatprep.subr.bf16.mxu0 %v4534_v40 }
  0xb2   : > { %4244 = vmatpush3.bf16.msra.mxu1 %v4533_v27  ;;  %4300 = vmatpush3.bf16.msra.mxu0 %v4534_v40  ;;  %v4555_v40 = vld [vmem:[%s5870_s1 + $0x1c8] sm:$0xff]  }
  0xb3   : > { %4245 = vmatprep.subr.bf16.mxu1 %v4535_v15  ;;  %4301 = vmatprep.subr.bf16.mxu0 %v4536_v16 }
  0xb4   : > { %4150 = vmatmul.mubr.bf16.gmra.mxu1 %v4858_v26  ;;  %4206 = vmatmul.mubr.bf16.gmra.mxu0 %v4716_v58  ;;  %v4541_v58 = vld [vmem:[%s5870_s1 + $0x140] sm:$0xff]  }
  0xb5   : > { %4153 = vmatprep.mubr.bf16.mxu1 %v4886_v52  ;;  %4209 = vmatprep.mubr.bf16.mxu0 %v4744_v8  ;;  %v4542_v8 = vld [vmem:[%s5870_s1 + $0x180] sm:$0xff]  }
  0xb6   : > { %4246 = vmatpush3.bf16.msra.mxu1 %v4535_v15  ;;  %4302 = vmatpush3.bf16.msra.mxu0 %v4536_v16  ;;  %v4557_v16 = vld [vmem:[%s5870_s1 + $0x1c0] sm:$0xff]  }
  0xb7   : > { %4247 = vmatprep.subr.bf16.mxu1 %v4537_v42  ;;  %4303 = vmatprep.subr.bf16.mxu0 %v4538_v56 }
  0xba   : > { %4248 = vmatpush3.bf16.msra.mxu1 %v4537_v42  ;;  %4304 = vmatpush3.bf16.msra.mxu0 %v4538_v56  ;;  %v4558_v42 = vld [vmem:[%s5870_s1 + $0x200] sm:$0xff]  }
  0xbb   : > { %4249 = vmatprep.subr.bf16.mxu1 %v4539_v20  ;;  %4305 = vmatprep.subr.bf16.mxu0 %v4540_v0 }
  0xbc   : > { %4154 = vmatmul.mubr.bf16.gmra.mxu1 %v4890_v54  ;;  %4210 = vmatmul.mubr.bf16.gmra.mxu0 %v4748_v11 }
  0xbd   : > { %4157 = vmatprep.mubr.bf16.mxu1 %v4922_v17  ;;  %4213 = vmatprep.mubr.bf16.mxu0 %v4776_v28 }
  0xbe   : > { %4250 = vmatpush3.bf16.msra.mxu1 %v4539_v20  ;;  %4306 = vmatpush3.bf16.msra.mxu0 %v4540_v0  ;;  %v1901_v0 = vld [vmem:[%s4610_s23 + $0xb2] sm:$0xff] }
  0xbf   : > { %4251 = vmatprep.subr.bf16.mxu1 %v4541_v58  ;;  %4307 = vmatprep.subr.bf16.mxu0 %v4542_v8 }
  0xc2   : > { %4252 = vmatpush3.bf16.msra.mxu1 %v4541_v58  ;;  %4308 = vmatpush3.bf16.msra.mxu0 %v4542_v8 }
  0xc3   : > { %4349 = vmatprep.subr.bf16.mxu1 %v4543_v5  ;;  %4405 = vmatprep.subr.bf16.mxu0 %v4544_v6 }
  0xc4   : > { %4158 = vmatmul.mubr.bf16.gmra.mxu1 %v4926_v19  ;;  %4214 = vmatmul.mubr.bf16.gmra.mxu0 %v4619_v9  ;;  %v1203_v9 = vld [vmem:[%s4610_s23 + $0x140] sm:$0xff] }
  0xc5   : > { %4161 = vmatprep.mubr.bf16.mxu1 %v4944_v39  ;;  %4217 = vmatprep.mubr.bf16.mxu0 %v4649_v24  ;;  %v1204_v24 = vld [vmem:[%s4610_s23 + $0x148] sm:$0xff] }
  0xcc   : > { %4162 = vmatmul.mubr.bf16.gmra.mxu1 %v4946_v49  ;;  %4218 = vmatmul.mubr.bf16.gmra.mxu0 %v4660_v29  ;;  %v1561_v29 = vld [vmem:[%s4610_s23 + $0x141] sm:$0xff] }
  0xcd   : > { %4165 = vmatprep.mubr.bf16.mxu1 %v4958_v7  ;;  %4221 = vmatprep.mubr.bf16.mxu0 %v4682_v41  ;;  %v1562_v41 = vld [vmem:[%s4610_s23 + $0x149] sm:$0xff] }
  0xd4   : > { %4166 = vmatmul.mubr.bf16.gmra.mxu1 %v4960_v14  ;;  %4222 = vmatmul.mubr.bf16.gmra.mxu0 %v4686_v43  ;;  %v5091_v43 = vpack.c.bf16 %v1204_v24, %v1203_v9  ;;  %v4545_v14 = vld [vmem:[%s5870_s1 + $0x1f0] sm:$0xff]   ;;  %v2260_v9 = vld [vmem:[%s4610_s23 + $0xc8] sm:$0xff] }
  0xd5   : > { %4169 = vmatprep.mubr.bf16.mxu1 %v4972_v50  ;;  %4225 = vmatprep.mubr.bf16.mxu0 %v4714_v57  ;;  %v1582_v57 = vpack.c.bf16 %v1562_v41, %v1561_v29 }
  0xdc   : > { %4170 = vmatmul.mubr.bf16.gmra.mxu1 %v4974_v60  ;;  %4226 = vmatmul.mubr.bf16.gmra.mxu0 %v4718_v59 }
  0xdd   : > { %4173 = vmatprep.mubr.bf16.mxu1 %v4986_v33  ;;  %4229 = vmatprep.mubr.bf16.mxu0 %v4746_v10 }
  0xe4   : > { %4174 = vmatmul.mubr.bf16.gmra.mxu1 %v4988_v35  ;;  %4230 = vmatmul.mubr.bf16.gmra.mxu0 %v4750_v12 }
  0xe5   : > { %4177 = vmatprep.mubr.bf16.mxu1 %v4996_v61  ;;  %4233 = vmatprep.mubr.bf16.mxu0 %v4778_v30  ;;  %v4553_v61 = vld [vmem:[%s5870_s1 + $0x1d0] sm:$0xff]  }
  0xec   : > { %v5093_v59 = vpop.f32.mrf.mxu0  ;;  %v5095_v11 = vpop.f32.mrf.mxu1  ;;  %4178 = vmatmul.mubr.bf16.gmra.mxu1 %v5091_v43  ;;  %4234 = vmatmul.mubr.bf16.gmra.mxu0 %v1582_v57 }
  0xed   : > { %4253 = vmatprep.mubr.bf16.mxu1 %v4792_v46  ;;  %4309 = vmatprep.mubr.bf16.mxu0 %v4794_v47  ;;  %v4546_v46 = vld [vmem:[%s5870_s1 + $0x230] sm:$0xff]  }
  0xee   : > { %v5100_v10 = vpop.f32.mrf.mxu0  ;;  %v5102_v12 = vpop.f32.mrf.mxu1 }
  0xf0   : > { %v5104_v28 = vpop.f32.mrf.mxu0  ;;  %v5106_v30 = vpop.f32.mrf.mxu1 }
  0xf2   : > { %v5108_v49 = vpop.f32.mrf.mxu0  ;;  %v5110_v7 = vpop.f32.mrf.mxu1 }
  0xf4   : > { %v5118_v47 = vpop.f32.mrf.mxu0  ;;  %v5120_v50 = vpop.f32.mrf.mxu1  ;;  %4254 = vmatmul.mubr.bf16.vlgmr.msra.gmra.mxu1 %v4796_v48  ;;  %4310 = vmatmul.mubr.bf16.vlgmr.msra.gmra.mxu0 %v4822_v1  ;;  %v4548_v48 = vld [vmem:[%s5870_s1 + $0x228] sm:$0xff]  }
  0xf5   : > { %4350 = vmatpush3.bf16.msra.mxu1 %v4543_v5  ;;  %4406 = vmatpush3.bf16.msra.mxu0 %v4544_v6  ;;  %v1902_v5 = vld [vmem:[%s4610_s23 + $0xba] sm:$0xff] }
  0xf6   : > { %v5124_v60 = vpop.f32.mrf.mxu0  ;;  %v5126_v13 = vpop.f32.mrf.mxu1  ;;  %4257 = vmatprep.mubr.bf16.mxu1 %v4824_v2  ;;  %4313 = vmatprep.mubr.bf16.mxu0 %v4826_v3  ;;  %v4549_v3 = vld [vmem:[%s5870_s1 + $0x1e0] sm:$0xff]  }
  0xf7   : > { %4351 = vmatprep.subr.bf16.mxu1 %v4545_v14  ;;  %4407 = vmatprep.subr.bf16.mxu0 %v4546_v46  ;;  %v2259_v6 = vld [vmem:[%s4610_s23 + $0xc0] sm:$0xff] }
  0xf8   : > { %v5136_v1 = vpop.f32.mrf.mxu0  ;;  %v5138_v32 = vpop.f32.mrf.mxu1 }
  0xf9   : > { %4352 = vmatpush3.bf16.msra.mxu1 %v4545_v14  ;;  %4408 = vmatpush3.bf16.msra.mxu0 %v4546_v46  ;;  %v5878_v14 = vld [vmem:[#allocation2_spill] sm:$0xff] }
  0xfa   : > { %v5140_v33 = vpop.f32.mrf.mxu0  ;;  %v5142_v2 = vpop.f32.mrf.mxu1  ;;  %4353 = vmatprep.subr.bf16.mxu1 %v4547_v21  ;;  %4409 = vmatprep.subr.bf16.mxu0 %v4548_v48  ;;  %v1903_v46 = vld [vmem:[%s4610_s23 + $0xc2] sm:$0xff] }
  0xfc   : > { %v5150_v35 = vpop.f32.mrf.mxu0  ;;  %v5152_v36 = vpop.f32.mrf.mxu1  ;;  %4258 = vmatmul.mubr.bf16.gmra.mxu1 %v4828_v4  ;;  %4314 = vmatmul.mubr.bf16.gmra.mxu0 %v4854_v22  ;;  %v4552_v4 = vld [vmem:[%s5870_s1 + $0x218] sm:$0xff]  }
  0xfd   : > { %4261 = vmatprep.mubr.bf16.mxu1 %v4856_v25  ;;  %4317 = vmatprep.mubr.bf16.mxu0 %v4858_v26 }
  0xfe   : > { %v5158_v37 = vpop.f32.mrf.mxu0  ;;  %v5160_v38 = vpop.f32.mrf.mxu1  ;;  %4354 = vmatpush3.bf16.msra.mxu1 %v4547_v21  ;;  %4410 = vmatpush3.bf16.msra.mxu0 %v4548_v48  ;;  %v1904_v21 = vld [vmem:[%s4610_s23 + $0xca] sm:$0xff] }
  0xff   : > { %4355 = vmatprep.subr.bf16.mxu1 %v4549_v3  ;;  %4411 = vmatprep.subr.bf16.mxu0 %v4550_v34 }
 0x100   : > { %v5168_v22 = vpop.f32.mrf.mxu0  ;;  %v5170_v25 = vpop.f32.mrf.mxu1 }
 0x102   : > { %v5172_v26 = vpop.f32.mrf.mxu0  ;;  %v5174_v51 = vpop.f32.mrf.mxu1  ;;  %4356 = vmatpush3.bf16.msra.mxu1 %v4549_v3  ;;  %4412 = vmatpush3.bf16.msra.mxu0 %v4550_v34  ;;  %v2261_v3 = vld [vmem:[%s4610_s23 + $0xd0] sm:$0xff]  ;;  %v2262_v34 = vld [vmem:[%s4610_s23 + $0xd8] sm:$0xff] }
 0x103   : > { %4357 = vmatprep.subr.bf16.mxu1 %v4551_v44  ;;  %4413 = vmatprep.subr.bf16.mxu0 %v4552_v4 }
 0x104   : > { %v5182_v63 = vpop.f32.mrf.mxu0  ;;  %v5184_v23 = vpop.f32.mrf.mxu1  ;;  %4262 = vmatmul.mubr.bf16.gmra.mxu1 %v4860_v31  ;;  %4318 = vmatmul.mubr.bf16.gmra.mxu0 %v4886_v52  ;;  %v4556_v31 = vld [vmem:[%s5870_s1 + $0x208] sm:$0xff]  }
 0x105   : > { %4265 = vmatprep.mubr.bf16.mxu1 %v4888_v53  ;;  %4321 = vmatprep.mubr.bf16.mxu0 %v4890_v54 }
 0x106   : > { %v5190_v45 = vpop.f32.mrf.mxu0  ;;  %v5192_v27 = vpop.f32.mrf.mxu1  ;;  %4358 = vmatpush3.bf16.msra.mxu1 %v4551_v44  ;;  %4414 = vmatpush3.bf16.msra.mxu0 %v4552_v4  ;;  %v1905_v44 = vld [vmem:[%s4610_s23 + $0xd2] sm:$0xff] }
 0x107   : > { %4359 = vmatprep.subr.bf16.mxu1 %v4553_v61  ;;  %4415 = vmatprep.subr.bf16.mxu0 %v4554_v62 }
 0x108   : > { %v5200_v52 = vpop.f32.mrf.mxu0  ;;  %v5202_v53 = vpop.f32.mrf.mxu1 }
 0x10a   : > { %v5204_v54 = vpop.f32.mrf.mxu0  ;;  %v5206_v15 = vpop.f32.mrf.mxu1  ;;  %4360 = vmatpush3.bf16.msra.mxu1 %v4553_v61  ;;  %4416 = vmatpush3.bf16.msra.mxu0 %v4554_v62  ;;  %v1906_v62 = vld [vmem:[%s4610_s23 + $0xda] sm:$0xff] }
 0x10b   : > { %4361 = vmatprep.subr.bf16.mxu1 %v4555_v40  ;;  %4417 = vmatprep.subr.bf16.mxu0 %v4556_v31 }
 0x10c   : > { %v5214_v56 = vpop.f32.mrf.mxu0  ;;  %v5216_v20 = vpop.f32.mrf.mxu1  ;;  %4266 = vmatmul.mubr.bf16.gmra.mxu1 %v4892_v55  ;;  %4322 = vmatmul.mubr.bf16.gmra.mxu0 %v4922_v17 }
 0x10d   : > { %4269 = vmatprep.mubr.bf16.mxu1 %v4924_v18  ;;  %4325 = vmatprep.mubr.bf16.mxu0 %v4926_v19  ;;  %v5234_v18 = vpack.c.bf16 %v1902_v5, %v1901_v0  ;;  %v2289_v19 = vpack.c.bf16 %v2260_v9, %v2259_v6  ;;  %v2290_v5 = vpack.c.bf16 %v2262_v34, %v2261_v3  ;;  %v1908_v3 = vld [vmem:[%s4610_s23 + $0xea] sm:$0xff] }
 0x10e   : > { %v5223_v58 = vpop.f32.mrf.mxu0  ;;  %v5225_v8 = vpop.f32.mrf.mxu1  ;;  %4362 = vmatpush3.bf16.msra.mxu1 %v4555_v40  ;;  %4418 = vmatpush3.bf16.msra.mxu0 %v4556_v31  ;;  %v2263_v40 = vld [vmem:[%s4610_s23 + $0xe0] sm:$0xff]  ;;  %v2264_v31 = vld [vmem:[%s4610_s23 + $0xe8] sm:$0xff] }
 0x10f   : > { %4363 = vmatprep.subr.bf16.mxu1 %v4557_v16  ;;  %4419 = vmatprep.subr.bf16.mxu0 %v4558_v42 }
 0x110   : > { %v5230_v55 = vpop.f32.mrf.mxu0  ;;  %v5232_v17 = vpop.f32.mrf.mxu1 }
 0x112   : > { %v5236_v24 = vpop.f32.mrf.mxu0  ;;  %v5238_v29 = vpop.f32.mrf.mxu1  ;;  %4364 = vmatpush3.bf16.msra.mxu1 %v4557_v16  ;;  %4420 = vmatpush3.bf16.msra.mxu0 %v4558_v42 }
 0x114   : > { %v4031_v41 = vpop.f32.mrf.mxu1  ;;  %v4087_v57 = vpop.f32.mrf.mxu0  ;;  %4270 = vmatmul.mubr.bf16.gmra.mxu1 %v5878_v14  ;;  %4326 = vmatmul.mubr.bf16.gmra.mxu0 %v4944_v39 }
 0x115   : > { %v657_v48 = vadd.f32 %v4031_v41, %v5093_v59  ;;  %4273 = vmatprep.mubr.bf16.mxu1 %v5234_v18  ;;  %4329 = vmatprep.mubr.bf16.mxu0 %v2289_v19  ;;  %v5255_v59 = vpack.c.bf16 %v1904_v21, %v1903_v46  ;;  %v5260_v19 = vpack.c.bf16 %v1906_v62, %v1905_v44 }
 0x116   : > { %v648_v4 = vpop.f32.mrf.mxu1  ;;  %v966_v61 = vpop.f32.mrf.mxu0  ;;  %v2291_v41 = vpack.c.bf16 %v2264_v31, %v2263_v40  ;;  %v1910_v31 = vld [vmem:[%s4610_s23 + $0xfa] sm:$0xff] }
 0x117   : > { %v5252_v16 = vadd.f32 %v4087_v57, %v657_v48  ;;  %v649_v42 = vadd.f32 %v648_v4, %v5100_v10  ;;  %5879 = vst [vmem:[#allocation2_spill] sm:$0xff] %v5260_v19  ;;  %v2265_v4 = vld [vmem:[%s4610_s23 + $0xf0] sm:$0xff] }
 0x118   : > { %v4032_v39 = vpop.f32.mrf.mxu1  ;;  %v4088_v0 = vpop.f32.mrf.mxu0 }
 0x119   : > { %v5257_v6 = vadd.f32 %v966_v61, %v649_v42  ;;  %v660_v9 = vadd.f32 %v4032_v39, %v5104_v28  ;;  %v1907_v28 = vld [vmem:[%s4610_s23 + $0xe2] sm:$0xff]  ;;  %v2266_v61 = vld [vmem:[%s4610_s23 + $0xf8] sm:$0xff] }
 0x11a   : > { %v651_v57 = vpop.f32.mrf.mxu1  ;;  %v969_v14 = vpop.f32.mrf.mxu0  ;;  %v2267_v42 = vld [vmem:[%s4610_s23 + $0x100] sm:$0xff]  ;;  %v2268_v39 = vld [vmem:[%s4610_s23 + $0x108] sm:$0xff] }
 0x11b   : > { %v5262_v10 = vadd.f32 %v4088_v0, %v660_v9  ;;  %v652_v48 = vadd.f32 %v651_v57, %v5108_v49  ;;  %v1909_v49 = vld [vmem:[%s4610_s23 + $0xf2] sm:$0xff] }
 0x11c   : > { %v4035_v46 = vpop.f32.mrf.mxu1  ;;  %v4091_v21 = vpop.f32.mrf.mxu0  ;;  %4274 = vmatmul.mubr.bf16.gmra.mxu1 %v5255_v59  ;;  %4330 = vmatmul.mubr.bf16.gmra.mxu0 %v2290_v5 }
 0x11d   : > { %v5268_v34 = vadd.f32 %v969_v14, %v652_v48  ;;  %v673_v44 = vadd.f32 %v4035_v46, %v5118_v47  ;;  %4277 = vmatprep.mubr.bf16.mxu1 %v5260_v19  ;;  %4333 = vmatprep.mubr.bf16.mxu0 %v2291_v41  ;;  %v5281_v47 = vpack.c.bf16 %v1908_v3, %v1907_v28 }
 0x11e   : > { %v664_v62 = vpop.f32.mrf.mxu1  ;;  %v982_v40 = vpop.f32.mrf.mxu0  ;;  %v2292_v14 = vpack.c.bf16 %v2266_v61, %v2265_v4  ;;  %v5286_v46 = vpack.c.bf16 %v1910_v31, %v1909_v49  ;;  %v2293_v19 = vpack.c.bf16 %v2268_v39, %v2267_v42  ;;  %v1912_v4 = vld [vmem:[%s4610_s23 + $0x10a] sm:$0xff]  ;;  %v2270_v31 = vld [vmem:[%s4610_s23 + $0x118] sm:$0xff] }
 0x11f   : > { %v5278_v0 = vadd.f32 %v4091_v21, %v673_v44  ;;  %v665_v5 = vadd.f32 %v664_v62, %v5124_v60 }
 0x120   : > { %v4036_v9 = vpop.f32.mrf.mxu1  ;;  %v4092_v57 = vpop.f32.mrf.mxu0  ;;  %5880 = vst [vmem:[#allocation3_spill] sm:$0xff] %v5286_v46 }
 0x121   : > { %v5283_v41 = vadd.f32 %v982_v40, %v665_v5  ;;  %v676_v48 = vadd.f32 %v4036_v9, %v5136_v1  ;;  %v1911_v1 = vld [vmem:[%s4610_s23 + $0x102] sm:$0xff]  ;;  %v2269_v40 = vld [vmem:[%s4610_s23 + $0x110] sm:$0xff]  ;;  %v1914_v5 = vld [vmem:[%s4610_s23 + $0x11a] sm:$0xff] }
 0x122   : > { %v667_v21 = vpop.f32.mrf.mxu1  ;;  %v985_v44 = vpop.f32.mrf.mxu0  ;;  %v2271_v9 = vld [vmem:[%s4610_s23 + $0x120] sm:$0xff] }
 0x123   : > { %v5288_v60 = vadd.f32 %v4092_v57, %v676_v48  ;;  %v668_v62 = vadd.f32 %v667_v21, %v5140_v33  ;;  %v1913_v33 = vld [vmem:[%s4610_s23 + $0x112] sm:$0xff]  ;;  %v2272_v57 = vld [vmem:[%s4610_s23 + $0x128] sm:$0xff] }
 0x124   : > { %v4039_v28 = vpop.f32.mrf.mxu1  ;;  %v4095_v3 = vpop.f32.mrf.mxu0  ;;  %4278 = vmatmul.mubr.bf16.gmra.mxu1 %v5281_v47  ;;  %4334 = vmatmul.mubr.bf16.gmra.mxu0 %v2292_v14 }
 0x125   : > { %v5294_v61 = vadd.f32 %v985_v44, %v668_v62  ;;  %v689_v49 = vadd.f32 %v4039_v28, %v5150_v35  ;;  %4281 = vmatprep.mubr.bf16.mxu1 %v5286_v46  ;;  %4337 = vmatprep.mubr.bf16.mxu0 %v2293_v19  ;;  %v5307_v62 = vpack.c.bf16 %v1912_v4, %v1911_v1 }
 0x126   : > { %v680_v42 = vpop.f32.mrf.mxu1  ;;  %v998_v39 = vpop.f32.mrf.mxu0  ;;  %v2294_v35 = vpack.c.bf16 %v2270_v31, %v2269_v40  ;;  %v5312_v46 = vpack.c.bf16 %v1914_v5, %v1913_v33  ;;  %v1916_v33 = vld [vmem:[%s4610_s23 + $0x12a] sm:$0xff] }
 0x127   : > { %5881 = vst [vmem:[#allocation4_spill] sm:$0xff] %v5294_v61  ;;  %v5304_v48 = vadd.f32 %v4095_v3, %v689_v49  ;;  %v681_v14 = vadd.f32 %v680_v42, %v5158_v37  ;;  %v2295_v61 = vpack.c.bf16 %v2272_v57, %v2271_v9  ;;  %v2273_v42 = vld [vmem:[%s4610_s23 + $0x130] sm:$0xff]  ;;  %v1918_v57 = vld [vmem:[%s4610_s23 + $0x13a] sm:$0xff] }
 0x128   : > { %v4040_v21 = vpop.f32.mrf.mxu1  ;;  %v4096_v44 = vpop.f32.mrf.mxu0 }
 0x129   : > { %5882 = vst [vmem:[#allocation5_spill] sm:$0xff] %v5304_v48  ;;  %v5309_v28 = vadd.f32 %v998_v39, %v681_v14  ;;  %v692_v19 = vadd.f32 %v4040_v21, %v5168_v22  ;;  %v1915_v22 = vld [vmem:[%s4610_s23 + $0x122] sm:$0xff]  ;;  %v2274_v39 = vld [vmem:[%s4610_s23 + $0x138] sm:$0xff] }
 0x12a   : > { %v683_v3 = vpop.f32.mrf.mxu1  ;;  %v1001_v49 = vpop.f32.mrf.mxu0 }
 0x12b   : > { %v5314_v48 = vadd.f32 %v4096_v44, %v692_v19  ;;  %v684_v37 = vadd.f32 %v683_v3, %v5172_v26  ;;  %v1917_v26 = vld [vmem:[%s4610_s23 + $0x132] sm:$0xff]  ;;  %v5331_v19 = vpack.c.bf16 %v1916_v33, %v1915_v22  ;;  %v1920_v33 = vld [vmem:[%s4610_s23 + $0x14a] sm:$0xff] }
 0x12c   : > { %v4043_v1 = vpop.f32.mrf.mxu1  ;;  %v4099_v4 = vpop.f32.mrf.mxu0  ;;  %4282 = vmatmul.mubr.bf16.gmra.mxu1 %v5307_v62  ;;  %4338 = vmatmul.mubr.bf16.gmra.mxu0 %v2294_v35 }
 0x12d   : > { %v5319_v40 = vadd.f32 %v1001_v49, %v684_v37  ;;  %v705_v31 = vadd.f32 %v4043_v1, %v5182_v63  ;;  %4285 = vmatprep.mubr.bf16.mxu1 %v5312_v46  ;;  %4341 = vmatprep.mubr.bf16.mxu0 %v2295_v61  ;;  %v2296_v63 = vpack.c.bf16 %v2274_v39, %v2273_v42 }
 0x12e   : > { %v696_v5 = vpop.f32.mrf.mxu1  ;;  %v1014_v9 = vpop.f32.mrf.mxu0  ;;  %v5336_v49 = vpack.c.bf16 %v1918_v57, %v1917_v26 }
 0x12f   : > { %v5328_v14 = vadd.f32 %v4099_v4, %v705_v31  ;;  %v697_v21 = vadd.f32 %v696_v5, %v5190_v45  ;;  %v2277_v5 = vld [vmem:[%s4610_s23 + $0x150] sm:$0xff] }
 0x130   : > { %v4044_v44 = vpop.f32.mrf.mxu1  ;;  %v4100_v35 = vpop.f32.mrf.mxu0  ;;  %5883 = vst [vmem:[#allocation6_spill] sm:$0xff] %v5336_v49 }
 0x131   : > { %v5333_v3 = vadd.f32 %v1014_v9, %v697_v21  ;;  %v708_v61 = vadd.f32 %v4044_v44, %v5200_v52  ;;  %v1919_v52 = vld [vmem:[%s4610_s23 + $0x142] sm:$0xff] }
 0x132   : > { %v699_v37 = vpop.f32.mrf.mxu1  ;;  %v1017_v1 = vpop.f32.mrf.mxu0  ;;  %v2597_v9 = vld [vmem:[%s4610_s23 + $0x21] sm:$0xff]  ;;  %v2598_v21 = vld [vmem:[%s4610_s23 + $0x29] sm:$0xff] }
 0x133   : > { %v5338_v4 = vadd.f32 %v4100_v35, %v708_v61  ;;  %v700_v45 = vadd.f32 %v699_v37, %v5204_v54  ;;  %v2278_v54 = vld [vmem:[%s4610_s23 + $0x158] sm:$0xff]  ;;  %v2955_v44 = vld [vmem:[%s4610_s23 + $0x22] sm:$0xff]  ;;  %v2956_v35 = vld [vmem:[%s4610_s23 + $0x2a] sm:$0xff] }
 0x134   : > { %v4047_v31 = vpop.f32.mrf.mxu1  ;;  %v4103_v22 = vpop.f32.mrf.mxu0  ;;  %4286 = vmatmul.mubr.bf16.gmra.mxu1 %v5331_v19  ;;  %4342 = vmatmul.mubr.bf16.gmra.mxu0 %v2296_v63 }
 0x135   : > { %5884 = vst [vmem:[#allocation7_spill] sm:$0xff] %v5338_v4  ;;  %v5344_v42 = vadd.f32 %v1017_v1, %v700_v45  ;;  %v721_v39 = vadd.f32 %v4047_v31, %v5214_v56  ;;  %4289 = vmatprep.mubr.bf16.mxu1 %v5336_v49  ;;  %4345 = vmatprep.mubr.bf16.mxu0 %v5091_v43 }
 0x136   : > { %v712_v26 = vpop.f32.mrf.mxu1  ;;  %v1030_v57 = vpop.f32.mrf.mxu0  ;;  %v5358_v56 = vpack.c.bf16 %v1920_v33, %v1919_v52  ;;  %v2298_v45 = vpack.c.bf16 %v2278_v54, %v2277_v5  ;;  %v2637_v49 = vpack.c.bf16 %v2598_v21, %v2597_v9  ;;  %v2600_v33 = vld [vmem:[%s4610_s23 + $0x39] sm:$0xff]  ;;  %v2601_v21 = vld [vmem:[%s4610_s23 + $0x41] sm:$0xff] }
 0x137   : > { %5885 = vst [vmem:[#allocation8_spill] sm:$0xff] %v5344_v42  ;;  %v5355_v61 = vadd.f32 %v4103_v22, %v721_v39  ;;  %v713_v63 = vadd.f32 %v712_v26, %v5223_v58  ;;  %v2995_v42 = vpack.c.bf16 %v2956_v35, %v2955_v44  ;;  %v2957_v9 = vld [vmem:[%s4610_s23 + $0x32] sm:$0xff]  ;;  %v2602_v44 = vld [vmem:[%s4610_s23 + $0x49] sm:$0xff] }
 0x138   : > { %v4048_v37 = vpop.f32.mrf.mxu1  ;;  %v4104_v1 = vpop.f32.mrf.mxu0  ;;  %v2959_v35 = vld [vmem:[%s4610_s23 + $0x42] sm:$0xff] }
 0x139   : > { %v5360_v43 = vadd.f32 %v1030_v57, %v713_v63  ;;  %v724_v31 = vadd.f32 %v4048_v37, %v5230_v55  ;;  %v2599_v55 = vld [vmem:[%s4610_s23 + $0x31] sm:$0xff]  ;;  %v2958_v57 = vld [vmem:[%s4610_s23 + $0x3a] sm:$0xff] }
 0x13a   : > { %v715_v4 = vpop.f32.mrf.mxu1  ;;  %v1033_v22 = vpop.f32.mrf.mxu0  ;;  %v2960_v63 = vld [vmem:[%s4610_s23 + $0x4a] sm:$0xff] }
 0x13b   : > { %v5363_v39 = vadd.f32 %v4104_v1, %v724_v31  ;;  %v716_v58 = vadd.f32 %v715_v4, %v5236_v24 }
 0x13c   : > { %v4051_v26 = vpop.f32.mrf.mxu1  ;;  %v4107_v52 = vpop.f32.mrf.mxu0  ;;  %4290 = vmatmul.mubr.bf16.gmra.mxu1 %v5358_v56  ;;  %4346 = vmatmul.mubr.bf16.gmra.mxu0 %v2298_v45 }
 0x13d   : > { %v5369_v5 = vadd.f32 %v1033_v22, %v716_v58  ;;  %v737_v54 = vadd.f32 %v4051_v26, %v5095_v11  ;;  %4365 = vmatprep.mubr.bf16.mxu1 %v2637_v49  ;;  %4421 = vmatprep.mubr.bf16.mxu0 %v2995_v42  ;;  %v2638_v22 = vpack.c.bf16 %v2600_v33, %v2599_v55  ;;  %v2603_v33 = vld [vmem:[%s4610_s23 + $0x51] sm:$0xff] }
 0x13e   : > { %v728_v24 = vpop.f32.mrf.mxu1  ;;  %v1046_v4 = vpop.f32.mrf.mxu0  ;;  %v2996_v11 = vpack.c.bf16 %v2958_v57, %v2957_v9  ;;  %v2639_v58 = vpack.c.bf16 %v2602_v44, %v2601_v21  ;;  %v2997_v26 = vpack.c.bf16 %v2960_v63, %v2959_v35  ;;  %v2961_v21 = vld [vmem:[%s4610_s23 + $0x52] sm:$0xff]  ;;  %v2605_v44 = vld [vmem:[%s4610_s23 + $0x61] sm:$0xff] }
 0x13f   : > { %5886 = vst [vmem:[#allocation9_spill] sm:$0xff] %v5369_v5  ;;  %v5378_v37 = vadd.f32 %v4107_v52, %v737_v54  ;;  %v729_v1 = vadd.f32 %v728_v24, %v5102_v12  ;;  %v2963_v63 = vld [vmem:[%s4610_s23 + $0x62] sm:$0xff] }
 0x140   : > { %v4052_v45 = vpop.f32.mrf.mxu1  ;;  %v4108_v31 = vpop.f32.mrf.mxu0 }
 0x141   : > { %v5381_v49 = vadd.f32 %v1046_v4, %v729_v1  ;;  %v740_v42 = vadd.f32 %v4052_v45, %v5106_v30  ;;  %v2604_v30 = vld [vmem:[%s4610_s23 + $0x59] sm:$0xff]  ;;  %v2964_v1 = vld [vmem:[%s4610_s23 + $0x6a] sm:$0xff] }
 0x142   : > { %v731_v5 = vpop.f32.mrf.mxu1  ;;  %v1049_v52 = vpop.f32.mrf.mxu0  ;;  %v2962_v4 = vld [vmem:[%s4610_s23 + $0x5a] sm:$0xff] }
 0x143   : > { %v5384_v54 = vadd.f32 %v4108_v31, %v740_v42  ;;  %v732_v12 = vadd.f32 %v731_v5, %v5110_v7  ;;  %v2606_v5 = vld [vmem:[%s4610_s23 + $0x69] sm:$0xff]  ;;  %v2640_v42 = vpack.c.bf16 %v2604_v30, %v2603_v33  ;;  %v2607_v30 = vld [vmem:[%s4610_s23 + $0x71] sm:$0xff] }
 0x144   : > { %v4055_v24 = vpop.f32.mrf.mxu1  ;;  %v4111_v55 = vpop.f32.mrf.mxu0  ;;  %4366 = vmatmul.mubr.bf16.vlgmr.msra.gmra.mxu1 %v2638_v22  ;;  %4422 = vmatmul.mubr.bf16.vlgmr.msra.gmra.mxu0 %v2996_v11 }
 0x145   : > { %v5389_v9 = vadd.f32 %v1049_v52, %v732_v12  ;;  %v753_v57 = vadd.f32 %v4055_v24, %v5120_v50  ;;  %4369 = vmatprep.mubr.bf16.mxu1 %v2639_v58  ;;  %4425 = vmatprep.mubr.bf16.mxu0 %v2997_v26  ;;  %v2998_v50 = vpack.c.bf16 %v2962_v4, %v2961_v21 }
 0x146   : > { %v744_v35 = vpop.f32.mrf.mxu1  ;;  %v1062_v7 = vpop.f32.mrf.mxu0  ;;  %v2641_v52 = vpack.c.bf16 %v2606_v5, %v2605_v44  ;;  %v2999_v12 = vpack.c.bf16 %v2964_v1, %v2963_v63  ;;  %v2965_v44 = vld [vmem:[%s4610_s23 + $0x72] sm:$0xff]  ;;  %v2609_v5 = vld [vmem:[%s4610_s23 + $0x81] sm:$0xff]  ;;  %v2610_v1 = vld [vmem:[%s4610_s23 + $0x89] sm:$0xff] }
 0x147   : > { %v5398_v45 = vadd.f32 %v4111_v55, %v753_v57  ;;  %v745_v31 = vadd.f32 %v744_v35, %v5126_v13 }
 0x148   : > { %v4056_v22 = vpop.f32.mrf.mxu1  ;;  %v4112_v11 = vpop.f32.mrf.mxu0 }
 0x149   : > { %v5401_v58 = vadd.f32 %v1062_v7, %v745_v31  ;;  %v756_v26 = vadd.f32 %v4056_v22, %v5138_v32  ;;  %v2608_v32 = vld [vmem:[%s4610_s23 + $0x79] sm:$0xff]  ;;  %v2967_v31 = vld [vmem:[%s4610_s23 + $0x82] sm:$0xff]  ;;  %v2968_v22 = vld [vmem:[%s4610_s23 + $0x8a] sm:$0xff] }
 0x14a   : > { %v747_v24 = vpop.f32.mrf.mxu1  ;;  %v1065_v55 = vpop.f32.mrf.mxu0  ;;  %v2966_v7 = vld [vmem:[%s4610_s23 + $0x7a] sm:$0xff] }
 0x14b   : > { %v5404_v57 = vadd.f32 %v4112_v11, %v756_v26  ;;  %v748_v13 = vadd.f32 %v747_v24, %v5142_v2  ;;  %v2642_v24 = vpack.c.bf16 %v2608_v32, %v2607_v30  ;;  %v2611_v32 = vld [vmem:[%s4610_s23 + $0x91] sm:$0xff] }
 0x14c   : > { %v4059_v35 = vpop.f32.mrf.mxu1  ;;  %v4115_v33 = vpop.f32.mrf.mxu0  ;;  %4370 = vmatmul.mubr.bf16.gmra.mxu1 %v2640_v42  ;;  %4426 = vmatmul.mubr.bf16.gmra.mxu0 %v2998_v50 }
 0x14d   : > { %v5409_v21 = vadd.f32 %v1065_v55, %v748_v13  ;;  %v769_v4 = vadd.f32 %v4059_v35, %v5152_v36  ;;  %4373 = vmatprep.mubr.bf16.mxu1 %v2641_v52  ;;  %4429 = vmatprep.mubr.bf16.mxu0 %v2999_v12  ;;  %v3000_v36 = vpack.c.bf16 %v2966_v7, %v2965_v44 }
 0x14e   : > { %v760_v63 = vpop.f32.mrf.mxu1  ;;  %v1078_v2 = vpop.f32.mrf.mxu0  ;;  %v2643_v55 = vpack.c.bf16 %v2610_v1, %v2609_v5  ;;  %v3001_v13 = vpack.c.bf16 %v2968_v22, %v2967_v31  ;;  %v2969_v5 = vld [vmem:[%s4610_s23 + $0x92] sm:$0xff]  ;;  %v2613_v1 = vld [vmem:[%s4610_s23 + $0xa1] sm:$0xff]  ;;  %v2614_v22 = vld [vmem:[%s4610_s23 + $0xa9] sm:$0xff] }
 0x14f   : > { %v5418_v11 = vadd.f32 %v4115_v33, %v769_v4  ;;  %v761_v42 = vadd.f32 %v760_v63, %v5160_v38 }
 0x150   : > { %v4060_v50 = vpop.f32.mrf.mxu1  ;;  %v4116_v26 = vpop.f32.mrf.mxu0 }
 0x151   : > { %v5421_v52 = vadd.f32 %v1078_v2, %v761_v42  ;;  %v772_v12 = vadd.f32 %v4060_v50, %v5170_v25  ;;  %v2612_v25 = vld [vmem:[%s4610_s23 + $0x99] sm:$0xff]  ;;  %v2971_v42 = vld [vmem:[%s4610_s23 + $0xa2] sm:$0xff]  ;;  %v2972_v50 = vld [vmem:[%s4610_s23 + $0xaa] sm:$0xff] }
 0x152   : > { %v763_v35 = vpop.f32.mrf.mxu1  ;;  %v1081_v33 = vpop.f32.mrf.mxu0  ;;  %v2970_v2 = vld [vmem:[%s4610_s23 + $0x9a] sm:$0xff] }
 0x153   : > { %v5424_v4 = vadd.f32 %v4116_v26, %v772_v12  ;;  %v764_v38 = vadd.f32 %v763_v35, %v5174_v51  ;;  %v2644_v35 = vpack.c.bf16 %v2612_v25, %v2611_v32 }
 0x154   : > { %v4063_v63 = vpop.f32.mrf.mxu1  ;;  %v4119_v30 = vpop.f32.mrf.mxu0  ;;  %4374 = vmatmul.mubr.bf16.gmra.mxu1 %v2642_v24  ;;  %4430 = vmatmul.mubr.bf16.gmra.mxu0 %v3000_v36 }
 0x155   : > { %v5429_v44 = vadd.f32 %v1081_v33, %v764_v38  ;;  %v785_v7 = vadd.f32 %v4063_v63, %v5184_v23  ;;  %4377 = vmatprep.mubr.bf16.mxu1 %v2643_v55  ;;  %4433 = vmatprep.mubr.bf16.mxu0 %v3001_v13  ;;  %v3002_v33 = vpack.c.bf16 %v2970_v2, %v2969_v5  ;;  %v2616_v5 = vld [vmem:[%s4610_s23 + $0xb9] sm:$0xff] }
 0x156   : > { %v776_v31 = vpop.f32.mrf.mxu1  ;;  %v1094_v51 = vpop.f32.mrf.mxu0  ;;  %v2645_v55 = vpack.c.bf16 %v2614_v22, %v2613_v1  ;;  %v3003_v13 = vpack.c.bf16 %v2972_v50, %v2971_v42  ;;  %v2618_v22 = vld [vmem:[%s4610_s23 + $0xc9] sm:$0xff] }
 0x157   : > { %5887 = vst [vmem:[#allocation10_spill] sm:$0xff] %v5429_v44  ;;  %v5438_v26 = vadd.f32 %v4119_v30, %v785_v7  ;;  %v777_v24 = vadd.f32 %v776_v31, %v5192_v27 }
 0x158   : > { %v4064_v36 = vpop.f32.mrf.mxu1  ;;  %v4120_v12 = vpop.f32.mrf.mxu0 }
 0x159   : > { %v5441_v38 = vadd.f32 %v1094_v51, %v777_v24  ;;  %v788_v23 = vadd.f32 %v4064_v36, %v5202_v53  ;;  %v2615_v53 = vld [vmem:[%s4610_s23 + $0xb1] sm:$0xff]  ;;  %v2617_v51 = vld [vmem:[%s4610_s23 + $0xc1] sm:$0xff] }
 0x15a   : > { %v779_v63 = vpop.f32.mrf.mxu1  ;;  %v1097_v44 = vpop.f32.mrf.mxu0  ;;  %v2646_v36 = vpack.c.bf16 %v2616_v5, %v2615_v53  ;;  %v2621_v53 = vld [vmem:[%s4610_s23 + $0xe1] sm:$0xff]  ;;  %v2622_v5 = vld [vmem:[%s4610_s23 + $0xe9] sm:$0xff] }
 0x15b   : > { %v5444_v30 = vadd.f32 %v4120_v12, %v788_v23  ;;  %v780_v27 = vadd.f32 %v779_v63, %v5206_v15  ;;  %v2647_v12 = vpack.c.bf16 %v2618_v22, %v2617_v51 }
 0x15c   : > { %v4067_v7 = vpop.f32.mrf.mxu1  ;;  %v4123_v31 = vpop.f32.mrf.mxu0  ;;  %4378 = vmatmul.mubr.bf16.gmra.mxu1 %v2644_v35  ;;  %4434 = vmatmul.mubr.bf16.gmra.mxu0 %v3002_v33 }
 0x15d   : > { %v5447_v32 = vadd.f32 %v1097_v44, %v780_v27  ;;  %v801_v25 = vadd.f32 %v4067_v7, %v5216_v20  ;;  %4381 = vmatprep.mubr.bf16.mxu1 %v2645_v55  ;;  %4437 = vmatprep.mubr.bf16.mxu0 %v3003_v13  ;;  %v2620_v7 = vld [vmem:[%s4610_s23 + $0xd9] sm:$0xff] }
 0x15e   : > { %v792_v2 = vpop.f32.mrf.mxu1  ;;  %v1110_v1 = vpop.f32.mrf.mxu0 }
 0x15f   : > { %v5454_v42 = vadd.f32 %v4123_v31, %v801_v25  ;;  %v793_v15 = vadd.f32 %v792_v2, %v5225_v8 }
 0x160   : > { %v4068_v50 = vpop.f32.mrf.mxu1  ;;  %v4124_v24 = vpop.f32.mrf.mxu0 }
 0x161   : > { %v5457_v44 = vadd.f32 %v1110_v1, %v793_v15  ;;  %v804_v20 = vadd.f32 %v4068_v50, %v5232_v17  ;;  %v2619_v17 = vld [vmem:[%s4610_s23 + $0xd1] sm:$0xff] }
 0x162   : > { %v795_v35 = vpop.f32.mrf.mxu1  ;;  %v1113_v33 = vpop.f32.mrf.mxu0 }
 0x163   : > { %v5460_v23 = vadd.f32 %v4124_v24, %v804_v20  ;;  %v796_v55 = vadd.f32 %v795_v35, %v5238_v29 }
 0x164   : > { %v4143_v13 = vpop.f32.mrf.mxu1  ;;  %v4199_v8 = vpop.f32.mrf.mxu0  ;;  %4382 = vmatmul.mubr.bf16.gmra.mxu1 %v2646_v36  ;;  %4438 = vmatmul.mubr.bf16.gmra.mxu0 %v5234_v18  ;;  %v2648_v18 = vpack.c.bf16 %v2620_v7, %v2619_v17  ;;  %v2626_v17 = vld [vmem:[%s4610_s23 + $0x109] sm:$0xff] }
 0x165   : > { %v5464_v63 = vadd.f32 %v1113_v33, %v796_v55  ;;  %v1485_v27 = vadd.f32 %v4143_v13, %v5252_v16  ;;  %4385 = vmatprep.mubr.bf16.mxu1 %v2647_v12  ;;  %4441 = vmatprep.mubr.bf16.mxu0 %v5255_v59  ;;  %v2649_v59 = vpack.c.bf16 %v2622_v5, %v2621_v53  ;;  %v5888_v12 = vld [vmem:[#allocation2_spill] sm:$0xff] }
 0x166   : > { %v1324_v31 = vpop.f32.mrf.mxu1  ;;  %v1682_v25 = vpop.f32.mrf.mxu0  ;;  %v2624_v55 = vld [vmem:[%s4610_s23 + $0xf9] sm:$0xff] }
 0x167   : > { %v5472_v2 = vadd.f32 %v4199_v8, %v1485_v27  ;;  %v1483_v29 = vadd.f32 %v1324_v31, %v5257_v6  ;;  %v2625_v27 = vld [vmem:[%s4610_s23 + $0x101] sm:$0xff] }
 0x168   : > { %v4144_v1 = vpop.f32.mrf.mxu1  ;;  %v4200_v51 = vpop.f32.mrf.mxu0 }
 0x169   : > { %v5475_v22 = vadd.f32 %v1682_v25, %v1483_v29  ;;  %v1486_v16 = vadd.f32 %v4144_v1, %v5262_v10  ;;  %v2623_v10 = vld [vmem:[%s4610_s23 + $0xf1] sm:$0xff] }
 0x16a   : > { %v1327_v15 = vpop.f32.mrf.mxu1  ;;  %v1685_v50 = vpop.f32.mrf.mxu0  ;;  %v2650_v53 = vpack.c.bf16 %v2624_v55, %v2623_v10  ;;  %v2629_v10 = vld [vmem:[%s4610_s23 + $0x121] sm:$0xff]  ;;  %v2630_v55 = vld [vmem:[%s4610_s23 + $0x129] sm:$0xff] }
 0x16b   : > { %v5478_v24 = vadd.f32 %v4200_v51, %v1486_v16  ;;  %v1484_v36 = vadd.f32 %v1327_v15, %v5268_v34  ;;  %v5890_v15 = vld [vmem:[#allocation3_spill] sm:$0xff] }
 0x16c   : > { %v4147_v20 = vpop.f32.mrf.mxu1  ;;  %v4203_v6 = vpop.f32.mrf.mxu0  ;;  %4386 = vmatmul.mubr.bf16.gmra.mxu1 %v2648_v18  ;;  %4442 = vmatmul.mubr.bf16.gmra.mxu0 %v5888_v12  ;;  %v5889_v18 = vld [vmem:[#allocation4_spill] sm:$0xff] }
 0x16d   : > { %v5482_v35 = vadd.f32 %v1685_v50, %v1484_v36  ;;  %v1489_v33 = vadd.f32 %v4147_v20, %v5278_v0  ;;  %4389 = vmatprep.mubr.bf16.mxu1 %v2649_v59  ;;  %4445 = vmatprep.mubr.bf16.mxu0 %v5281_v47  ;;  %v2651_v47 = vpack.c.bf16 %v2626_v17, %v2625_v27  ;;  %v5891_v36 = vld [vmem:[#allocation5_spill] sm:$0xff] }
 0x16e   : > { %v1340_v13 = vpop.f32.mrf.mxu1  ;;  %v1698_v8 = vpop.f32.mrf.mxu0 }
 0x16f   : > { %v5490_v7 = vadd.f32 %v4203_v6, %v1489_v33  ;;  %v1487_v34 = vadd.f32 %v1340_v13, %v5283_v41  ;;  %v2628_v6 = vld [vmem:[%s4610_s23 + $0x119] sm:$0xff] }
 0x170   : > { %v4148_v31 = vpop.f32.mrf.mxu1  ;;  %v4204_v25 = vpop.f32.mrf.mxu0 }
 0x171   : > { %v5493_v5 = vadd.f32 %v1698_v8, %v1487_v34  ;;  %v1490_v0 = vadd.f32 %v4148_v31, %v5288_v60  ;;  %v2627_v60 = vld [vmem:[%s4610_s23 + $0x111] sm:$0xff] }
 0x172   : > { %v1343_v29 = vpop.f32.mrf.mxu1  ;;  %v1701_v1 = vpop.f32.mrf.mxu0  ;;  %v2652_v34 = vpack.c.bf16 %v2628_v6, %v2627_v60 }
 0x173   : > { %v5496_v51 = vadd.f32 %v4204_v25, %v1490_v0  ;;  %v1488_v16 = vadd.f32 %v1343_v29, %v5889_v18 }
 0x174   : > { %v4151_v59 = vpop.f32.mrf.mxu1  ;;  %v4207_v41 = vpop.f32.mrf.mxu0  ;;  %4390 = vmatmul.mubr.bf16.gmra.mxu1 %v2650_v53  ;;  %4446 = vmatmul.mubr.bf16.gmra.mxu0 %v5890_v15 }
 0x175   : > { %v5500_v50 = vadd.f32 %v1701_v1, %v1488_v16  ;;  %v1493_v20 = vadd.f32 %v4151_v59, %v5891_v36  ;;  %4393 = vmatprep.mubr.bf16.mxu1 %v2651_v47  ;;  %4449 = vmatprep.mubr.bf16.mxu0 %v5307_v62  ;;  %v2653_v62 = vpack.c.bf16 %v2630_v55, %v2629_v10  ;;  %v2632_v59 = vld [vmem:[%s4610_s23 + $0x139] sm:$0xff]  ;;  %v2633_v36 = vld [vmem:[%s4610_s23 + $0x141] sm:$0xff] }
 0x176   : > { %v1356_v12 = vpop.f32.mrf.mxu1  ;;  %v1714_v33 = vpop.f32.mrf.mxu0 }
 0x177   : > { %v5508_v13 = vadd.f32 %v4207_v41, %v1493_v20  ;;  %v1491_v8 = vadd.f32 %v1356_v12, %v5309_v28  ;;  %v2634_v20 = vld [vmem:[%s4610_s23 + $0x149] sm:$0xff] }
 0x178   : > { %v4152_v27 = vpop.f32.mrf.mxu1  ;;  %v4208_v17 = vpop.f32.mrf.mxu0 }
 0x179   : > { %v5511_v31 = vadd.f32 %v1714_v33, %v1491_v8  ;;  %v1494_v25 = vadd.f32 %v4152_v27, %v5314_v48  ;;  %v2631_v48 = vld [vmem:[%s4610_s23 + $0x131] sm:$0xff] }
 0x17a   : > { %v1359_v53 = vpop.f32.mrf.mxu1  ;;  %v1717_v0 = vpop.f32.mrf.mxu0  ;;  %v2654_v12 = vpack.c.bf16 %v2632_v59, %v2631_v48 }
 0x17b   : > { %v5514_v47 = vadd.f32 %v4208_v17, %v1494_v25  ;;  %v1492_v29 = vadd.f32 %v1359_v53, %v5319_v40  ;;  %v5893_v17 = vld [vmem:[#allocation8_spill] sm:$0xff] }
 0x17c   : > { %v4155_v1 = vpop.f32.mrf.mxu1  ;;  %v4211_v28 = vpop.f32.mrf.mxu0  ;;  %4394 = vmatmul.mubr.bf16.gmra.mxu1 %v2652_v34  ;;  %4450 = vmatmul.mubr.bf16.gmra.mxu0 %v5312_v46  ;;  %v2635_v53 = vld [vmem:[%s4610_s23 + $0x151] sm:$0xff] }
 0x17d   : > { %v5518_v18 = vadd.f32 %v1717_v0, %v1492_v29  ;;  %v1497_v16 = vadd.f32 %v4155_v1, %v5328_v14  ;;  %4397 = vmatprep.mubr.bf16.mxu1 %v2653_v62  ;;  %4453 = vmatprep.mubr.bf16.mxu0 %v5331_v19  ;;  %v5892_v14 = vld [vmem:[#allocation7_spill] sm:$0xff]  ;;  %v2655_v19 = vpack.c.bf16 %v2634_v20, %v2633_v36  ;;  %v2636_v1 = vld [vmem:[%s4610_s23 + $0x159] sm:$0xff] }
 0x17e   : > { %v1372_v41 = vpop.f32.mrf.mxu1  ;;  %v1730_v15 = vpop.f32.mrf.mxu0 }
 0x17f   : > { %v5526_v60 = vadd.f32 %v4211_v28, %v1497_v16  ;;  %v1495_v40 = vadd.f32 %v1372_v41, %v5333_v3  ;;  %v5894_v3 = vld [vmem:[#allocation6_spill] sm:$0xff]  ;;  %v2993_v28 = vld [vmem:[%s4610_s23 + $0x152] sm:$0xff] }
 0x180   : > { %v4156_v6 = vpop.f32.mrf.mxu1  ;;  %v4212_v46 = vpop.f32.mrf.mxu0  ;;  %v2994_v16 = vld [vmem:[%s4610_s23 + $0x15a] sm:$0xff]  ;;  %s4478_s23 = smul.u32 320, %s5898_s13 }
 0x181   : > { %v5529_v33 = vadd.f32 %v1730_v15, %v1495_v40  ;;  %v1498_v10 = vadd.f32 %v4156_v6, %v5892_v14  ;;  %v2656_v40 = vpack.c.bf16 %v2636_v1, %v2635_v53  ;;  %v3014_v6 = vpack.c.bf16 %v2994_v16, %v2993_v28 }
 0x182   : > { %v1375_v55 = vpop.f32.mrf.mxu1  ;;  %v1733_v8 = vpop.f32.mrf.mxu0  ;;  %s5748_s13 = scalar_lea.vmem %s5872_s3, %s4478_s23 }
 0x183   : > { %v5532_v27 = vadd.f32 %v4212_v46, %v1498_v10  ;;  %v1496_v34 = vadd.f32 %v1375_v55, %v5893_v17  ;;  %v5895_v10 = vld [vmem:[#allocation9_spill] sm:$0xff] }
 0x184   : > { %v4159_v25 = vpop.f32.mrf.mxu1  ;;  %v4215_v62 = vpop.f32.mrf.mxu0  ;;  %4398 = vmatmul.mubr.bf16.gmra.mxu1 %v2654_v12  ;;  %4454 = vmatmul.mubr.bf16.gmra.mxu0 %v5894_v3 }
 0x185   : > { %v5537_v0 = vadd.f32 %v1733_v8, %v1496_v34  ;;  %v1501_v29 = vadd.f32 %v4159_v25, %v5355_v61  ;;  %4401 = vmatprep.mubr.bf16.mxu1 %v2655_v19  ;;  %4457 = vmatprep.mubr.bf16.mxu0 %v5358_v56 }
 0x186   : > { %v1388_v48 = vpop.f32.mrf.mxu1  ;;  %v1746_v59 = vpop.f32.mrf.mxu0 }
 0x187   : > { %v5544_v41 = vadd.f32 %v4215_v62, %v1501_v29  ;;  %v1499_v15 = vadd.f32 %v1388_v48, %v5360_v43 }
 0x188   : > { %v4160_v36 = vpop.f32.mrf.mxu1  ;;  %v4216_v20 = vpop.f32.mrf.mxu0 }
 0x189   : > { %v5547_v46 = vadd.f32 %v1746_v59, %v1499_v15  ;;  %v1502_v61 = vadd.f32 %v4160_v36, %v5363_v39 }
 0x18a   : > { %v1391_v12 = vpop.f32.mrf.mxu1  ;;  %v1749_v14 = vpop.f32.mrf.mxu0 }
 0x18b   : > { %v5550_v56 = vadd.f32 %v4216_v20, %v1502_v61  ;;  %v1500_v19 = vadd.f32 %v1391_v12, %v5895_v10 }
 0x18c   : > { %v4163_v55 = vpop.f32.mrf.mxu1  ;;  %v4219_v8 = vpop.f32.mrf.mxu0  ;;  %4402 = vmatmul.mubr.bf16.gmra.mxu1 %v2656_v40  ;;  %4458 = vmatmul.mubr.bf16.gmra.mxu0 %v3014_v6 }
 0x18d   : > { %v5553_v17 = vadd.f32 %v1749_v14, %v1500_v19  ;;  %v1505_v43 = vadd.f32 %v4163_v55, %v5378_v37 }
 0x18e   : > { %v1404_v34 = vpop.f32.mrf.mxu1  ;;  %v1762_v25 = vpop.f32.mrf.mxu0 }
 0x18f   : > { %v5556_v62 = vadd.f32 %v4219_v8, %v1505_v43  ;;  %v1503_v39 = vadd.f32 %v1404_v34, %v5381_v49 }
 0x190   : > { %v4164_v3 = vpop.f32.mrf.mxu1  ;;  %v4220_v53 = vpop.f32.mrf.mxu0 }
 0x191   : > { %v5559_v29 = vadd.f32 %v1762_v25, %v1503_v39  ;;  %v1506_v1 = vadd.f32 %v4164_v3, %v5384_v54 }
 0x192   : > { %v1407_v28 = vpop.f32.mrf.mxu1  ;;  %v1765_v16 = vpop.f32.mrf.mxu0 }
 0x193   : > { %v5562_v48 = vadd.f32 %v4220_v53, %v1506_v1  ;;  %v1504_v59 = vadd.f32 %v1407_v28, %v5389_v9 }
 0x194   : > { %v4167_v15 = vpop.f32.mrf.mxu1  ;;  %v4223_v37 = vpop.f32.mrf.mxu0 }
 0x195   : > { %v5565_v36 = vadd.f32 %v1765_v16, %v1504_v59  ;;  %v1509_v20 = vadd.f32 %v4167_v15, %v5398_v45 }
 0x196   : > { %v1420_v40 = vpop.f32.mrf.mxu1  ;;  %v1778_v49 = vpop.f32.mrf.mxu0 }
 0x197   : > { %v5568_v6 = vadd.f32 %v4223_v37, %v1509_v20  ;;  %v1507_v61 = vadd.f32 %v1420_v40, %v5401_v58  ;;  %v5896_v37 = vld [vmem:[#allocation10_spill] sm:$0xff] }
 0x198   : > { %v4168_v12 = vpop.f32.mrf.mxu1  ;;  %v4224_v54 = vpop.f32.mrf.mxu0 }
 0x199   : > { %v5571_v14 = vadd.f32 %v1778_v49, %v1507_v61  ;;  %v1510_v10 = vadd.f32 %v4168_v12, %v5404_v57 }
 0x19a   : > { %v1423_v19 = vpop.f32.mrf.mxu1  ;;  %v1781_v9 = vpop.f32.mrf.mxu0 }
 0x19b   : > { %v5574_v55 = vadd.f32 %v4224_v54, %v1510_v10  ;;  %v1508_v8 = vadd.f32 %v1423_v19, %v5409_v21 }
 0x19c   : > { %v4171_v43 = vpop.f32.mrf.mxu1  ;;  %v4227_v45 = vpop.f32.mrf.mxu0 }
 0x19d   : > { %v5577_v34 = vadd.f32 %v1781_v9, %v1508_v8  ;;  %v1513_v25 = vadd.f32 %v4171_v43, %v5418_v11 }
 0x19e   : > { %v1436_v39 = vpop.f32.mrf.mxu1  ;;  %v1794_v58 = vpop.f32.mrf.mxu0 }
 0x19f   : > { %v5580_v3 = vadd.f32 %v4227_v45, %v1513_v25  ;;  %v1511_v53 = vadd.f32 %v1436_v39, %v5421_v52 }
 0x1a0   : > { %v4172_v1 = vpop.f32.mrf.mxu1  ;;  %v4228_v57 = vpop.f32.mrf.mxu0 }
 0x1a1   : > { %v5583_v28 = vadd.f32 %v1794_v58, %v1511_v53  ;;  %v1514_v16 = vadd.f32 %v4172_v1, %v5424_v4 }
 0x1a2   : > { %v1439_v59 = vpop.f32.mrf.mxu1  ;;  %v1797_v21 = vpop.f32.mrf.mxu0 }
 0x1a3   : > { %v5586_v15 = vadd.f32 %v4228_v57, %v1514_v16  ;;  %v1512_v20 = vadd.f32 %v1439_v59, %v5896_v37 }
 0x1a4   : > { %v4175_v40 = vpop.f32.mrf.mxu1  ;;  %v4231_v11 = vpop.f32.mrf.mxu0 }
 0x1a5   : > { %v5589_v49 = vadd.f32 %v1797_v21, %v1512_v20  ;;  %v1517_v61 = vadd.f32 %v4175_v40, %v5438_v26 }
 0x1a6   : > { %v1452_v12 = vpop.f32.mrf.mxu1  ;;  %v1810_v52 = vpop.f32.mrf.mxu0 }
 0x1a7   : > { %v5592_v54 = vadd.f32 %v4231_v11, %v1517_v61  ;;  %v1515_v10 = vadd.f32 %v1452_v12, %v5441_v38 }
 0x1a8   : > { %v4176_v19 = vpop.f32.mrf.mxu1  ;;  %v4232_v4 = vpop.f32.mrf.mxu0 }
 0x1a9   : > { %v5595_v9 = vadd.f32 %v1810_v52, %v1515_v10  ;;  %v1518_v8 = vadd.f32 %v4176_v19, %v5444_v30 }
 0x1aa   : > { %v1455_v43 = vpop.f32.mrf.mxu1  ;;  %v1813_v45 = vpop.f32.mrf.mxu0 }
 0x1ab   : > { %v5598_v25 = vadd.f32 %v4232_v4, %v1518_v8  ;;  %v1516_v39 = vadd.f32 %v1455_v43, %v5447_v32 }
 0x1ac   : > { %v4179_v58 = vpop.f32.mrf.mxu1  ;;  %v4235_v26 = vpop.f32.mrf.mxu0 }
 0x1ad   : > { %v5601_v53 = vadd.f32 %v1813_v45, %v1516_v39  ;;  %v1521_v1 = vadd.f32 %v4179_v58, %v5454_v42 }
 0x1ae   : > { %v1468_v57 = vpop.f32.mrf.mxu1  ;;  %v1826_v38 = vpop.f32.mrf.mxu0 }
 0x1af   : > { %v5604_v16 = vadd.f32 %v4235_v26, %v1521_v1  ;;  %v1519_v59 = vadd.f32 %v1468_v57, %v5457_v44 }
 0x1b0   : > { %v4180_v21 = vpop.f32.mrf.mxu1  ;;  %v4236_v30 = vpop.f32.mrf.mxu0 }
 0x1b1   : > { %v5607_v37 = vadd.f32 %v1826_v38, %v1519_v59  ;;  %v1522_v20 = vadd.f32 %v4180_v21, %v5460_v23 }
 0x1b2   : > { %v1471_v40 = vpop.f32.mrf.mxu1  ;;  %v1829_v32 = vpop.f32.mrf.mxu0 }
 0x1b3   : > { %v5610_v11 = vadd.f32 %v4236_v30, %v1522_v20  ;;  %v1520_v61 = vadd.f32 %v1471_v40, %v5464_v63 }
 0x1b4   : > { %v4255_v12 = vpop.f32.mrf.mxu1  ;;  %v4311_v42 = vpop.f32.mrf.mxu0 }
 0x1b5   : > { %v5613_v52 = vadd.f32 %v1829_v32, %v1520_v61  ;;  %v2201_v10 = vadd.f32 %v4255_v12, %v5472_v2 }
 0x1b6   : > { %v2040_v19 = vpop.f32.mrf.mxu1  ;;  %v2398_v44 = vpop.f32.mrf.mxu0 }
 0x1b7   : > { %v5616_v4 = vadd.f32 %v4311_v42, %v2201_v10  ;;  %v2199_v8 = vadd.f32 %v2040_v19, %v5475_v22 }
 0x1b8   : > { %v4256_v43 = vpop.f32.mrf.mxu1  ;;  %v4312_v23 = vpop.f32.mrf.mxu0 }
 0x1b9   : > { %v5619_v45 = vadd.f32 %v2398_v44, %v2199_v8  ;;  %v2202_v39 = vadd.f32 %v4256_v43, %v5478_v24 }
 0x1ba   : > { %v2043_v58 = vpop.f32.mrf.mxu1  ;;  %v2401_v63 = vpop.f32.mrf.mxu0 }
 0x1bb   : > { %v5622_v26 = vadd.f32 %v4312_v23, %v2202_v39  ;;  %v2200_v1 = vadd.f32 %v2043_v58, %v5482_v35 }
 0x1bc   : > { %v4259_v57 = vpop.f32.mrf.mxu1  ;;  %v4315_v2 = vpop.f32.mrf.mxu0 }
 0x1bd   : > { %v5625_v38 = vadd.f32 %v2401_v63, %v2200_v1  ;;  %v2205_v59 = vadd.f32 %v4259_v57, %v5490_v7 }
 0x1be   : > { %v2056_v21 = vpop.f32.mrf.mxu1  ;;  %v2414_v22 = vpop.f32.mrf.mxu0 }
 0x1bf   : > { %v5628_v30 = vadd.f32 %v4315_v2, %v2205_v59  ;;  %v2203_v20 = vadd.f32 %v2056_v21, %v5493_v5 }
 0x1c0   : > { %v4260_v40 = vpop.f32.mrf.mxu1  ;;  %v4316_v24 = vpop.f32.mrf.mxu0 }
 0x1c1   : > { %v5631_v32 = vadd.f32 %v2414_v22, %v2203_v20  ;;  %v2206_v61 = vadd.f32 %v4260_v40, %v5496_v51 }
 0x1c2   : > { %v2059_v12 = vpop.f32.mrf.mxu1  ;;  %v2417_v35 = vpop.f32.mrf.mxu0 }
 0x1c3   : > { %v5634_v42 = vadd.f32 %v4316_v24, %v2206_v61  ;;  %v2204_v10 = vadd.f32 %v2059_v12, %v5500_v50 }
 0x1c4   : > { %v4263_v19 = vpop.f32.mrf.mxu1  ;;  %v4319_v7 = vpop.f32.mrf.mxu0 }
 0x1c5   : > { %v5637_v44 = vadd.f32 %v2417_v35, %v2204_v10  ;;  %v2209_v8 = vadd.f32 %v4263_v19, %v5508_v13 }
 0x1c6   : > { %v2072_v43 = vpop.f32.mrf.mxu1  ;;  %v2430_v5 = vpop.f32.mrf.mxu0 }
 0x1c7   : > { %v5640_v23 = vadd.f32 %v4319_v7, %v2209_v8  ;;  %v2207_v39 = vadd.f32 %v2072_v43, %v5511_v31 }
 0x1c8   : > { %v4264_v58 = vpop.f32.mrf.mxu1  ;;  %v4320_v51 = vpop.f32.mrf.mxu0 }
 0x1c9   : > { %v5643_v63 = vadd.f32 %v2430_v5, %v2207_v39  ;;  %v2210_v1 = vadd.f32 %v4264_v58, %v5514_v47 }
 0x1ca   : > { %v2075_v57 = vpop.f32.mrf.mxu1  ;;  %v2433_v50 = vpop.f32.mrf.mxu0 }
 0x1cb   : > { %v5646_v2 = vadd.f32 %v4320_v51, %v2210_v1  ;;  %v2208_v59 = vadd.f32 %v2075_v57, %v5518_v18 }
 0x1cc   : > { %v4267_v21 = vpop.f32.mrf.mxu1  ;;  %v4323_v13 = vpop.f32.mrf.mxu0 }
 0x1cd   : > { %v5649_v22 = vadd.f32 %v2433_v50, %v2208_v59  ;;  %v2213_v20 = vadd.f32 %v4267_v21, %v5526_v60 }
 0x1ce   : > { %v2088_v40 = vpop.f32.mrf.mxu1  ;;  %v2446_v31 = vpop.f32.mrf.mxu0 }
 0x1cf   : > { %v5652_v24 = vadd.f32 %v4323_v13, %v2213_v20  ;;  %v2211_v61 = vadd.f32 %v2088_v40, %v5529_v33 }
 0x1d0   : > { %v4268_v12 = vpop.f32.mrf.mxu1  ;;  %v4324_v47 = vpop.f32.mrf.mxu0 }
 0x1d1   : > { %v5655_v35 = vadd.f32 %v2446_v31, %v2211_v61  ;;  %v2214_v10 = vadd.f32 %v4268_v12, %v5532_v27 }
 0x1d2   : > { %v2091_v19 = vpop.f32.mrf.mxu1  ;;  %v2449_v18 = vpop.f32.mrf.mxu0 }
 0x1d3   : > { %v5658_v7 = vadd.f32 %v4324_v47, %v2214_v10  ;;  %v2212_v8 = vadd.f32 %v2091_v19, %v5537_v0 }
 0x1d4   : > { %v4271_v43 = vpop.f32.mrf.mxu1  ;;  %v4327_v60 = vpop.f32.mrf.mxu0 }
 0x1d5   : > { %v5661_v5 = vadd.f32 %v2449_v18, %v2212_v8  ;;  %v2217_v39 = vadd.f32 %v4271_v43, %v5544_v41 }
 0x1d6   : > { %v2104_v58 = vpop.f32.mrf.mxu1  ;;  %v2462_v33 = vpop.f32.mrf.mxu0 }
 0x1d7   : > { %v5664_v51 = vadd.f32 %v4327_v60, %v2217_v39  ;;  %v2215_v1 = vadd.f32 %v2104_v58, %v5547_v46 }
 0x1d8   : > { %v4272_v57 = vpop.f32.mrf.mxu1  ;;  %v4328_v27 = vpop.f32.mrf.mxu0 }
 0x1d9   : > { %v5667_v50 = vadd.f32 %v2462_v33, %v2215_v1  ;;  %v2218_v59 = vadd.f32 %v4272_v57, %v5550_v56 }
 0x1da   : > { %v2107_v21 = vpop.f32.mrf.mxu1  ;;  %v2465_v0 = vpop.f32.mrf.mxu0 }
 0x1db   : > { %v5670_v13 = vadd.f32 %v4328_v27, %v2218_v59  ;;  %v2216_v20 = vadd.f32 %v2107_v21, %v5553_v17 }
 0x1dc   : > { %v4275_v40 = vpop.f32.mrf.mxu1  ;;  %v4331_v41 = vpop.f32.mrf.mxu0 }
 0x1dd   : > { %v5673_v31 = vadd.f32 %v2465_v0, %v2216_v20  ;;  %v2221_v61 = vadd.f32 %v4275_v40, %v5556_v62 }
 0x1de   : > { %v2120_v12 = vpop.f32.mrf.mxu1  ;;  %v2478_v46 = vpop.f32.mrf.mxu0 }
 0x1df   : > { %v5676_v47 = vadd.f32 %v4331_v41, %v2221_v61  ;;  %v2219_v10 = vadd.f32 %v2120_v12, %v5559_v29 }
 0x1e0   : > { %v4276_v19 = vpop.f32.mrf.mxu1  ;;  %v4332_v56 = vpop.f32.mrf.mxu0 }
 0x1e1   : > { %v5679_v18 = vadd.f32 %v2478_v46, %v2219_v10  ;;  %v2222_v8 = vadd.f32 %v4276_v19, %v5562_v48 }
 0x1e2   : > { %v2123_v43 = vpop.f32.mrf.mxu1  ;;  %v2481_v17 = vpop.f32.mrf.mxu0 }
 0x1e3   : > { %v5682_v60 = vadd.f32 %v4332_v56, %v2222_v8  ;;  %v2220_v39 = vadd.f32 %v2123_v43, %v5565_v36 }
 0x1e4   : > { %v4279_v58 = vpop.f32.mrf.mxu1  ;;  %v4335_v62 = vpop.f32.mrf.mxu0 }
 0x1e5   : > { %v5685_v33 = vadd.f32 %v2481_v17, %v2220_v39  ;;  %v2225_v1 = vadd.f32 %v4279_v58, %v5568_v6 }
 0x1e6   : > { %v2136_v57 = vpop.f32.mrf.mxu1  ;;  %v2494_v29 = vpop.f32.mrf.mxu0 }
 0x1e7   : > { %v5688_v27 = vadd.f32 %v4335_v62, %v2225_v1  ;;  %v2223_v59 = vadd.f32 %v2136_v57, %v5571_v14 }
 0x1e8   : > { %v4280_v21 = vpop.f32.mrf.mxu1  ;;  %v4336_v48 = vpop.f32.mrf.mxu0 }
 0x1e9   : > { %v5691_v0 = vadd.f32 %v2494_v29, %v2223_v59  ;;  %v2226_v20 = vadd.f32 %v4280_v21, %v5574_v55 }
 0x1ea   : > { %v2139_v40 = vpop.f32.mrf.mxu1  ;;  %v2497_v36 = vpop.f32.mrf.mxu0 }
 0x1eb   : > { %v5694_v41 = vadd.f32 %v4336_v48, %v2226_v20  ;;  %v2224_v61 = vadd.f32 %v2139_v40, %v5577_v34 }
 0x1ec   : > { %v4283_v12 = vpop.f32.mrf.mxu1  ;;  %v4339_v6 = vpop.f32.mrf.mxu0 }
 0x1ed   : > { %v5697_v46 = vadd.f32 %v2497_v36, %v2224_v61  ;;  %v2229_v10 = vadd.f32 %v4283_v12, %v5580_v3 }
 0x1ee   : > { %v2152_v19 = vpop.f32.mrf.mxu1  ;;  %v2510_v14 = vpop.f32.mrf.mxu0 }
 0x1ef   : > { %v5700_v56 = vadd.f32 %v4339_v6, %v2229_v10  ;;  %v2227_v8 = vadd.f32 %v2152_v19, %v5583_v28 }
 0x1f0   : > { %v4284_v43 = vpop.f32.mrf.mxu1  ;;  %v4340_v55 = vpop.f32.mrf.mxu0 }
 0x1f1   : > { %v5703_v17 = vadd.f32 %v2510_v14, %v2227_v8  ;;  %v2230_v39 = vadd.f32 %v4284_v43, %v5586_v15 }
 0x1f2   : > { %v2155_v58 = vpop.f32.mrf.mxu1  ;;  %v2513_v34 = vpop.f32.mrf.mxu0 }
 0x1f3   : > { %v5706_v62 = vadd.f32 %v4340_v55, %v2230_v39  ;;  %v2228_v1 = vadd.f32 %v2155_v58, %v5589_v49 }
 0x1f4   : > { %v4287_v57 = vpop.f32.mrf.mxu1  ;;  %v4343_v3 = vpop.f32.mrf.mxu0 }
 0x1f5   : > { %v5709_v29 = vadd.f32 %v2513_v34, %v2228_v1  ;;  %v2233_v59 = vadd.f32 %v4287_v57, %v5592_v54 }
 0x1f6   : > { %v2168_v21 = vpop.f32.mrf.mxu1  ;;  %v2526_v28 = vpop.f32.mrf.mxu0 }
 0x1f7   : > { %v5712_v48 = vadd.f32 %v4343_v3, %v2233_v59  ;;  %v2231_v20 = vadd.f32 %v2168_v21, %v5595_v9 }
 0x1f8   : > { %v4288_v40 = vpop.f32.mrf.mxu1  ;;  %v4344_v15 = vpop.f32.mrf.mxu0 }
 0x1f9   : > { %v5715_v36 = vadd.f32 %v2526_v28, %v2231_v20  ;;  %v2234_v61 = vadd.f32 %v4288_v40, %v5598_v25 }
 0x1fa   : > { %v2171_v12 = vpop.f32.mrf.mxu1  ;;  %v2529_v49 = vpop.f32.mrf.mxu0 }
 0x1fb   : > { %v5718_v6 = vadd.f32 %v4344_v15, %v2234_v61  ;;  %v2232_v10 = vadd.f32 %v2171_v12, %v5601_v53 }
 0x1fc   : > { %v4291_v19 = vpop.f32.mrf.mxu1  ;;  %v4347_v54 = vpop.f32.mrf.mxu0 }
 0x1fd   : > { %v5721_v14 = vadd.f32 %v2529_v49, %v2232_v10  ;;  %v2237_v8 = vadd.f32 %v4291_v19, %v5604_v16 }
 0x1fe   : > { %v2184_v43 = vpop.f32.mrf.mxu1  ;;  %v2542_v9 = vpop.f32.mrf.mxu0 }
 0x1ff   : > { %v5724_v55 = vadd.f32 %v4347_v54, %v2237_v8  ;;  %v2235_v39 = vadd.f32 %v2184_v43, %v5607_v37  ;;  %v5740_v37 = vld [vmem:[%s5871_s2] ss:$0 sm:$0xff] }
 0x200   : > { %v4292_v25 = vpop.f32.mrf.mxu1  ;;  %v4348_v58 = vpop.f32.mrf.mxu0 }
 0x201   : > { %v5727_v34 = vadd.f32 %v2542_v9, %v2235_v39  ;;  %v2238_v1 = vadd.f32 %v4292_v25, %v5610_v11 }
 0x202   : > { %v2187_v53 = vpop.f32.mrf.mxu1  ;;  %v2545_v57 = vpop.f32.mrf.mxu0 }
 0x203   : > { %v5730_v3 = vadd.f32 %v4348_v58, %v2238_v1  ;;  %v2236_v59 = vadd.f32 %v2187_v53, %v5613_v52 }
 0x204   : > { %v4367_v16 = vpop.f32.mrf.mxu1  ;;  %v4423_v21 = vpop.f32.mrf.mxu0 }
 0x205   : > { %v5733_v28 = vadd.f32 %v2545_v57, %v2236_v59  ;;  %v2917_v20 = vadd.f32 %v4367_v16, %v5616_v4 }
 0x206   : > { %v2756_v40 = vpop.f32.mrf.mxu1  ;;  %v3114_v11 = vpop.f32.mrf.mxu0 }
 0x207   : > { %v3275_v15 = vadd.f32 %v4423_v21, %v2917_v20  ;;  %v2915_v61 = vadd.f32 %v2756_v40, %v5619_v45 }
 0x208   : > { %v4368_v12 = vpop.f32.mrf.mxu1  ;;  %v4424_v49 = vpop.f32.mrf.mxu0 }
 0x209   : > { %v3322_v52 = vadd.f32 %v5740_v37, %v3275_v15  ;;  %v3273_v10 = vadd.f32 %v3114_v11, %v2915_v61  ;;  %v2918_v19 = vadd.f32 %v4368_v12, %v5622_v26 }
 0x20a   : > { %v2759_v4 = vpop.f32.mrf.mxu1  ;;  %v3117_v54 = vpop.f32.mrf.mxu0 }
 0x20b   : > { %v3362_v8 = vmax.f32 %v3322_v52, 0.0  ;;  %v3320_v43 = vadd.f32 %v5740_v37, %v3273_v10  ;;  %v3276_v45 = vadd.f32 %v4424_v49, %v2918_v19  ;;  %v2916_v9 = vadd.f32 %v2759_v4, %v5625_v38 }
 0x20c   : > { %v4371_v39 = vpop.f32.mrf.mxu1  ;;  %v4427_v25 = vpop.f32.mrf.mxu0 }
 0x20d   : > { %3402 = vst [vmem:[%s5748_s13 + $0x10] sm:$0xff] %v3362_v8  ;;  %v3360_v26 = vmax.f32 %v3320_v43, 0.0  ;;  %v3323_v58 = vadd.f32 %v5740_v37, %v3276_v45  ;;  %v3274_v1 = vadd.f32 %v3117_v54, %v2916_v9  ;;  %v2921_v53 = vadd.f32 %v4371_v39, %v5628_v30 }
 0x20e   : > { %v2772_v57 = vpop.f32.mrf.mxu1  ;;  %v3130_v59 = vpop.f32.mrf.mxu0 }
 0x20f   : > { %3400 = vst [vmem:[%s5748_s13] sm:$0xff] %v3360_v26  ;;  %v3363_v16 = vmax.f32 %v3323_v58, 0.0  ;;  %v3321_v21 = vadd.f32 %v5740_v37, %v3274_v1  ;;  %v3279_v20 = vadd.f32 %v4427_v25, %v2921_v53  ;;  %v2919_v38 = vadd.f32 %v2772_v57, %v5631_v32 }
 0x210   : > { %v4372_v40 = vpop.f32.mrf.mxu1  ;;  %v4428_v11 = vpop.f32.mrf.mxu0 }
 0x211   : > { %3403 = vst [vmem:[%s5748_s13 + $0x18] sm:$0xff] %v3363_v16  ;;  %v3361_v15 = vmax.f32 %v3321_v21, 0.0  ;;  %v3326_v61 = vadd.f32 %v5740_v37, %v3279_v20  ;;  %v3277_v12 = vadd.f32 %v3130_v59, %v2919_v38  ;;  %v2922_v30 = vadd.f32 %v4372_v40, %v5634_v42 }
 0x212   : > { %v2775_v49 = vpop.f32.mrf.mxu1  ;;  %v3133_v52 = vpop.f32.mrf.mxu0 }
 0x213   : > { %3401 = vst [vmem:[%s5748_s13 + $0x8] sm:$0xff] %v3361_v15  ;;  %v3366_v10 = vmax.f32 %v3326_v61, 0.0  ;;  %v3324_v19 = vadd.f32 %v5740_v37, %v3277_v12  ;;  %v3280_v4 = vadd.f32 %v4428_v11, %v2922_v30  ;;  %v2920_v32 = vadd.f32 %v2775_v49, %v5637_v44 }
 0x214   : > { %v4375_v54 = vpop.f32.mrf.mxu1  ;;  %v4431_v8 = vpop.f32.mrf.mxu0 }
 0x215   : > { %3406 = vst [vmem:[%s5748_s13 + $0x30] sm:$0xff] %v3366_v10  ;;  %v3364_v43 = vmax.f32 %v3324_v19, 0.0  ;;  %v3327_v45 = vadd.f32 %v5740_v37, %v3280_v4  ;;  %v3278_v9 = vadd.f32 %v3133_v52, %v2920_v32  ;;  %v2925_v42 = vadd.f32 %v4375_v54, %v5640_v23 }
 0x216   : > { %v2788_v39 = vpop.f32.mrf.mxu1  ;;  %v3146_v25 = vpop.f32.mrf.mxu0 }
 0x217   : > { %3404 = vst [vmem:[%s5748_s13 + $0x20] sm:$0xff] %v3364_v43  ;;  %v3367_v26 = vmax.f32 %v3327_v45, 0.0  ;;  %v3325_v58 = vadd.f32 %v5740_v37, %v3278_v9  ;;  %v3283_v1 = vadd.f32 %v4431_v8, %v2925_v42  ;;  %v2923_v44 = vadd.f32 %v2788_v39, %v5643_v63 }
 0x218   : > { %v4376_v53 = vpop.f32.mrf.mxu1  ;;  %v4432_v57 = vpop.f32.mrf.mxu0 }
 0x219   : > { %3407 = vst [vmem:[%s5748_s13 + $0x38] sm:$0xff] %v3367_v26  ;;  %v3365_v59 = vmax.f32 %v3325_v58, 0.0  ;;  %v3330_v16 = vadd.f32 %v5740_v37, %v3283_v1  ;;  %v3281_v21 = vadd.f32 %v3146_v25, %v2923_v44  ;;  %v2926_v23 = vadd.f32 %v4376_v53, %v5646_v2 }
 0x21a   : > { %v2791_v20 = vpop.f32.mrf.mxu1  ;;  %v3149_v38 = vpop.f32.mrf.mxu0 }
 0x21b   : > { %3405 = vst [vmem:[%s5748_s13 + $0x28] sm:$0xff] %v3365_v59  ;;  %v3370_v40 = vmax.f32 %v3330_v16, 0.0  ;;  %v3328_v11 = vadd.f32 %v5740_v37, %v3281_v21  ;;  %v3284_v15 = vadd.f32 %v4432_v57, %v2926_v23  ;;  %v2924_v63 = vadd.f32 %v2791_v20, %v5649_v22 }
 0x21c   : > { %v4379_v61 = vpop.f32.mrf.mxu1  ;;  %v4435_v12 = vpop.f32.mrf.mxu0 }
 0x21d   : > { %3410 = vst [vmem:[%s5748_s13 + $0x50] sm:$0xff] %v3370_v40  ;;  %v3368_v30 = vmax.f32 %v3328_v11, 0.0  ;;  %v3331_v49 = vadd.f32 %v5740_v37, %v3284_v15  ;;  %v3282_v52 = vadd.f32 %v3149_v38, %v2924_v63  ;;  %v2929_v2 = vadd.f32 %v4379_v61, %v5652_v24 }
 0x21e   : > { %v2804_v10 = vpop.f32.mrf.mxu1  ;;  %v3162_v19 = vpop.f32.mrf.mxu0 }
 0x21f   : > { %3408 = vst [vmem:[%s5748_s13 + $0x40] sm:$0xff] %v3368_v30  ;;  %v3371_v4 = vmax.f32 %v3331_v49, 0.0  ;;  %v3329_v32 = vadd.f32 %v5740_v37, %v3282_v52  ;;  %v3287_v54 = vadd.f32 %v4435_v12, %v2929_v2  ;;  %v2927_v22 = vadd.f32 %v2804_v10, %v5655_v35 }
 0x220   : > { %v4380_v8 = vpop.f32.mrf.mxu1  ;;  %v4436_v43 = vpop.f32.mrf.mxu0 }
 0x221   : > { %3411 = vst [vmem:[%s5748_s13 + $0x58] sm:$0xff] %v3371_v4  ;;  %v3369_v45 = vmax.f32 %v3329_v32, 0.0  ;;  %v3334_v9 = vadd.f32 %v5740_v37, %v3287_v54  ;;  %v3285_v42 = vadd.f32 %v3162_v19, %v2927_v22  ;;  %v2930_v24 = vadd.f32 %v4380_v8, %v5658_v7 }
 0x222   : > { %v2807_v39 = vpop.f32.mrf.mxu1  ;;  %v3165_v25 = vpop.f32.mrf.mxu0 }
 0x223   : > { %3409 = vst [vmem:[%s5748_s13 + $0x48] sm:$0xff] %v3369_v45  ;;  %v3374_v26 = vmax.f32 %v3334_v9, 0.0  ;;  %v3332_v58 = vadd.f32 %v5740_v37, %v3285_v42  ;;  %v3288_v1 = vadd.f32 %v4436_v43, %v2930_v24  ;;  %v2928_v35 = vadd.f32 %v2807_v39, %v5661_v5 }
 0x224   : > { %v4383_v44 = vpop.f32.mrf.mxu1  ;;  %v4439_v53 = vpop.f32.mrf.mxu0 }
 0x225   : > { %3414 = vst [vmem:[%s5748_s13 + $0x70] sm:$0xff] %v3374_v26  ;;  %v3372_v57 = vmax.f32 %v3332_v58, 0.0  ;;  %v3335_v59 = vadd.f32 %v5740_v37, %v3288_v1  ;;  %v3286_v16 = vadd.f32 %v3165_v25, %v2928_v35  ;;  %v2933_v7 = vadd.f32 %v4383_v44, %v5664_v51 }
 0x226   : > { %v2820_v21 = vpop.f32.mrf.mxu1  ;;  %v3178_v23 = vpop.f32.mrf.mxu0 }
 0x227   : > { %3412 = vst [vmem:[%s5748_s13 + $0x60] sm:$0xff] %v3372_v57  ;;  %v3375_v20 = vmax.f32 %v3335_v59, 0.0  ;;  %v3333_v38 = vadd.f32 %v5740_v37, %v3286_v16  ;;  %v3291_v40 = vadd.f32 %v4439_v53, %v2933_v7  ;;  %v2931_v5 = vadd.f32 %v2820_v21, %v5667_v50 }
 0x228   : > { %v4384_v11 = vpop.f32.mrf.mxu1  ;;  %v4440_v15 = vpop.f32.mrf.mxu0 }
 0x229   : > { %3415 = vst [vmem:[%s5748_s13 + $0x78] sm:$0xff] %v3375_v20  ;;  %v3373_v63 = vmax.f32 %v3333_v38, 0.0  ;;  %v3338_v61 = vadd.f32 %v5740_v37, %v3291_v40  ;;  %v3289_v12 = vadd.f32 %v3178_v23, %v2931_v5  ;;  %v2934_v51 = vadd.f32 %v4384_v11, %v5670_v13 }
 0x22a   : > { %v2823_v30 = vpop.f32.mrf.mxu1  ;;  %v3181_v49 = vpop.f32.mrf.mxu0 }
 0x22b   : > { %3413 = vst [vmem:[%s5748_s13 + $0x68] sm:$0xff] %v3373_v63  ;;  %v3378_v52 = vmax.f32 %v3338_v61, 0.0  ;;  %v3336_v2 = vadd.f32 %v5740_v37, %v3289_v12  ;;  %v3292_v10 = vadd.f32 %v4440_v15, %v2934_v51  ;;  %v2932_v50 = vadd.f32 %v2823_v30, %v5673_v31 }
 0x22c   : > { %v4387_v19 = vpop.f32.mrf.mxu1  ;;  %v4443_v4 = vpop.f32.mrf.mxu0 }
 0x22d   : > { %3418 = vst [vmem:[%s5748_s13 + $0x90] sm:$0xff] %v3378_v52  ;;  %v3376_v32 = vmax.f32 %v3336_v2, 0.0  ;;  %v3339_v54 = vadd.f32 %v5740_v37, %v3292_v10  ;;  %v3290_v22 = vadd.f32 %v3181_v49, %v2932_v50  ;;  %v2937_v13 = vadd.f32 %v4387_v19, %v5676_v47 }
 0x22e   : > { %v2836_v8 = vpop.f32.mrf.mxu1  ;;  %v3194_v43 = vpop.f32.mrf.mxu0 }
 0x22f   : > { %3416 = vst [vmem:[%s5748_s13 + $0x80] sm:$0xff] %v3376_v32  ;;  %v3379_v45 = vmax.f32 %v3339_v54, 0.0  ;;  %v3337_v9 = vadd.f32 %v5740_v37, %v3290_v22  ;;  %v3295_v42 = vadd.f32 %v4443_v4, %v2937_v13  ;;  %v2935_v31 = vadd.f32 %v2836_v8, %v5679_v18 }
 0x230   : > { %v4388_v24 = vpop.f32.mrf.mxu1  ;;  %v4444_v39 = vpop.f32.mrf.mxu0 }
 0x231   : > { %3419 = vst [vmem:[%s5748_s13 + $0x98] sm:$0xff] %v3379_v45  ;;  %v3377_v25 = vmax.f32 %v3337_v9, 0.0  ;;  %v3342_v26 = vadd.f32 %v5740_v37, %v3295_v42  ;;  %v3293_v58 = vadd.f32 %v3194_v43, %v2935_v31  ;;  %v2938_v47 = vadd.f32 %v4388_v24, %v5682_v60 }
 0x232   : > { %v2839_v1 = vpop.f32.mrf.mxu1  ;;  %v3197_v35 = vpop.f32.mrf.mxu0 }
 0x233   : > { %3417 = vst [vmem:[%s5748_s13 + $0x88] sm:$0xff] %v3377_v25  ;;  %v3382_v44 = vmax.f32 %v3342_v26, 0.0  ;;  %v3340_v53 = vadd.f32 %v5740_v37, %v3293_v58  ;;  %v3296_v57 = vadd.f32 %v4444_v39, %v2938_v47  ;;  %v2936_v18 = vadd.f32 %v2839_v1, %v5685_v33 }
 0x234   : > { %v4391_v59 = vpop.f32.mrf.mxu1  ;;  %v4447_v16 = vpop.f32.mrf.mxu0 }
 0x235   : > { %3422 = vst [vmem:[%s5748_s13 + $0xb0] sm:$0xff] %v3382_v44  ;;  %v3380_v7 = vmax.f32 %v3340_v53, 0.0  ;;  %v3343_v21 = vadd.f32 %v5740_v37, %v3296_v57  ;;  %v3294_v23 = vadd.f32 %v3197_v35, %v2936_v18  ;;  %v2941_v60 = vadd.f32 %v4391_v59, %v5688_v27 }
 0x236   : > { %v2852_v20 = vpop.f32.mrf.mxu1  ;;  %v3210_v38 = vpop.f32.mrf.mxu0 }
 0x237   : > { %3420 = vst [vmem:[%s5748_s13 + $0xa0] sm:$0xff] %v3380_v7  ;;  %v3383_v40 = vmax.f32 %v3343_v21, 0.0  ;;  %v3341_v5 = vadd.f32 %v5740_v37, %v3294_v23  ;;  %v3299_v11 = vadd.f32 %v4447_v16, %v2941_v60  ;;  %v2939_v33 = vadd.f32 %v2852_v20, %v5691_v0 }
 0x238   : > { %v4392_v15 = vpop.f32.mrf.mxu1  ;;  %v4448_v63 = vpop.f32.mrf.mxu0 }
 0x239   : > { %3423 = vst [vmem:[%s5748_s13 + $0xb8] sm:$0xff] %v3383_v40  ;;  %v3381_v61 = vmax.f32 %v3341_v5, 0.0  ;;  %v3346_v12 = vadd.f32 %v5740_v37, %v3299_v11  ;;  %v3297_v51 = vadd.f32 %v3210_v38, %v2939_v33  ;;  %v2942_v27 = vadd.f32 %v4392_v15, %v5694_v41 }
 0x23a   : > { %v2855_v30 = vpop.f32.mrf.mxu1  ;;  %v3213_v49 = vpop.f32.mrf.mxu0 }
 0x23b   : > { %3421 = vst [vmem:[%s5748_s13 + $0xa8] sm:$0xff] %v3381_v61  ;;  %v3386_v52 = vmax.f32 %v3346_v12, 0.0  ;;  %v3344_v2 = vadd.f32 %v5740_v37, %v3297_v51  ;;  %v3300_v10 = vadd.f32 %v4448_v63, %v2942_v27  ;;  %v2940_v0 = vadd.f32 %v2855_v30, %v5697_v46 }
 0x23c   : > { %v4395_v50 = vpop.f32.mrf.mxu1  ;;  %v4451_v19 = vpop.f32.mrf.mxu0 }
 0x23d   : > { %3426 = vst [vmem:[%s5748_s13 + $0xd0] sm:$0xff] %v3386_v52  ;;  %v3384_v4 = vmax.f32 %v3344_v2, 0.0  ;;  %v3347_v32 = vadd.f32 %v5740_v37, %v3300_v10  ;;  %v3298_v54 = vadd.f32 %v3213_v49, %v2940_v0  ;;  %v2945_v41 = vadd.f32 %v4395_v50, %v5700_v56 }
 0x23e   : > { %v2868_v22 = vpop.f32.mrf.mxu1  ;;  %v3226_v13 = vpop.f32.mrf.mxu0 }
 0x23f   : > { %3424 = vst [vmem:[%s5748_s13 + $0xc0] sm:$0xff] %v3384_v4  ;;  %v3387_v8 = vmax.f32 %v3347_v32, 0.0  ;;  %v3345_v43 = vadd.f32 %v5740_v37, %v3298_v54  ;;  %v3303_v45 = vadd.f32 %v4451_v19, %v2945_v41  ;;  %v2943_v46 = vadd.f32 %v2868_v22, %v5703_v17 }
 0x240   : > { %v4396_v9 = vpop.f32.mrf.mxu1  ;;  %v4452_v42 = vpop.f32.mrf.mxu0 }
 0x241   : > { %3427 = vst [vmem:[%s5748_s13 + $0xd8] sm:$0xff] %v3387_v8  ;;  %v3385_v31 = vmax.f32 %v3345_v43, 0.0  ;;  %v3350_v24 = vadd.f32 %v5740_v37, %v3303_v45  ;;  %v3301_v39 = vadd.f32 %v3226_v13, %v2943_v46  ;;  %v2946_v56 = vadd.f32 %v4396_v9, %v5706_v62 }
 0x242   : > { %v2871_v25 = vpop.f32.mrf.mxu1  ;;  %v3229_v26 = vpop.f32.mrf.mxu0 }
 0x243   : > { %3425 = vst [vmem:[%s5748_s13 + $0xc8] sm:$0xff] %v3385_v31  ;;  %v3390_v58 = vmax.f32 %v3350_v24, 0.0  ;;  %v3348_v47 = vadd.f32 %v5740_v37, %v3301_v39  ;;  %v3304_v1 = vadd.f32 %v4452_v42, %v2946_v56  ;;  %v2944_v17 = vadd.f32 %v2871_v25, %v5709_v29 }
 0x244   : > { %v4399_v35 = vpop.f32.mrf.mxu1  ;;  %v4455_v44 = vpop.f32.mrf.mxu0 }
 0x245   : > { %3430 = vst [vmem:[%s5748_s13 + $0xf0] sm:$0xff] %v3390_v58  ;;  %v3388_v53 = vmax.f32 %v3348_v47, 0.0  ;;  %v3351_v57 = vadd.f32 %v5740_v37, %v3304_v1  ;;  %v3302_v18 = vadd.f32 %v3229_v26, %v2944_v17  ;;  %v2949_v62 = vadd.f32 %v4399_v35, %v5712_v48 }
 0x246   : > { %v2884_v59 = vpop.f32.mrf.mxu1  ;;  %v3242_v16 = vpop.f32.mrf.mxu0 }
 0x247   : > { %3428 = vst [vmem:[%s5748_s13 + $0xe0] sm:$0xff] %v3388_v53  ;;  %v3391_v7 = vmax.f32 %v3351_v57, 0.0  ;;  %v3349_v21 = vadd.f32 %v5740_v37, %v3302_v18  ;;  %v3307_v23 = vadd.f32 %v4455_v44, %v2949_v62  ;;  %v2947_v29 = vadd.f32 %v2884_v59, %v5715_v36 }
 0x248   : > { %v4400_v60 = vpop.f32.mrf.mxu1  ;;  %v4456_v20 = vpop.f32.mrf.mxu0 }
 0x249   : > { %3431 = vst [vmem:[%s5748_s13 + $0xf8] sm:$0xff] %v3391_v7  ;;  %v3389_v38 = vmax.f32 %v3349_v21, 0.0  ;;  %v3354_v40 = vadd.f32 %v5740_v37, %v3307_v23  ;;  %v3305_v5 = vadd.f32 %v3242_v16, %v2947_v29  ;;  %v2950_v48 = vadd.f32 %v4400_v60, %v5718_v6 }
 0x24a   : > { %v2887_v11 = vpop.f32.mrf.mxu1  ;;  %v3245_v33 = vpop.f32.mrf.mxu0 }
 0x24b   : > { %3429 = vst [vmem:[%s5748_s13 + $0xe8] sm:$0xff] %v3389_v38  ;;  %v3394_v15 = vmax.f32 %v3354_v40, 0.0  ;;  %v3352_v63 = vadd.f32 %v5740_v37, %v3305_v5  ;;  %v3308_v61 = vadd.f32 %v4456_v20, %v2950_v48  ;;  %v2948_v36 = vadd.f32 %v2887_v11, %v5721_v14 }
 0x24c   : > { %v4403_v12 = vpop.f32.mrf.mxu1  ;;  %v4459_v51 = vpop.f32.mrf.mxu0 }
 0x24d   : > { %3434 = vst [vmem:[%s5748_s13 + $0x110] sm:$0xff] %v3394_v15  ;;  %v3392_v27 = vmax.f32 %v3352_v63, 0.0  ;;  %v3355_v30 = vadd.f32 %v5740_v37, %v3308_v61  ;;  %v3306_v49 = vadd.f32 %v3245_v33, %v2948_v36  ;;  %v2953_v6 = vadd.f32 %v4403_v12, %v5724_v55 }
 0x24e   : > { %v2900_v52 = vpop.f32.mrf.mxu1  ;;  %v3258_v2 = vpop.f32.mrf.mxu0 }
 0x24f   : > { %3432 = vst [vmem:[%s5748_s13 + $0x100] sm:$0xff] %v3392_v27  ;;  %v3395_v10 = vmax.f32 %v3355_v30, 0.0  ;;  %v3353_v0 = vadd.f32 %v5740_v37, %v3306_v49  ;;  %v3311_v50 = vadd.f32 %v4459_v51, %v2953_v6  ;;  %v2951_v14 = vadd.f32 %v2900_v52, %v5727_v34 }
 0x250   : > { %v4404_v19 = vpop.f32.mrf.mxu1  ;;  %v4460_v4 = vpop.f32.mrf.mxu0 }
 0x251   : > { %3435 = vst [vmem:[%s5748_s13 + $0x118] sm:$0xff] %v3395_v10  ;;  %v3393_v32 = vmax.f32 %v3353_v0, 0.0  ;;  %v3358_v54 = vadd.f32 %v5740_v37, %v3311_v50  ;;  %v3309_v41 = vadd.f32 %v3258_v2, %v2951_v14  ;;  %v2954_v55 = vadd.f32 %v4404_v19, %v5730_v3 }
 0x252   : > { %v2903_v22 = vpop.f32.mrf.mxu1  ;;  %v3261_v45 = vpop.f32.mrf.mxu0 }
 0x253   : > { %3433 = vst [vmem:[%s5748_s13 + $0x108] sm:$0xff] %v3393_v32  ;;  %v3398_v13 = vmax.f32 %v3358_v54, 0.0  ;;  %v3356_v8 = vadd.f32 %v5740_v37, %v3309_v41  ;;  %v3312_v43 = vadd.f32 %v4460_v4, %v2954_v55  ;;  %v2952_v34 = vadd.f32 %v2903_v22, %v5733_v28 }
 0x255   : > { %3438 = vst [vmem:[%s5748_s13 + $0x130] sm:$0xff] %v3398_v13  ;;  %v3396_v46 = vmax.f32 %v3356_v8, 0.0  ;;  %v3359_v9 = vadd.f32 %v5740_v37, %v3312_v43  ;;  %v3310_v42 = vadd.f32 %v3261_v45, %v2952_v34 }
 0x257   : > { %3436 = vst [vmem:[%s5748_s13 + $0x120] sm:$0xff] %v3396_v46  ;;  %v3399_v31 = vmax.f32 %v3359_v9, 0.0  ;;  %v3357_v24 = vadd.f32 %v5740_v37, %v3310_v42 }
 0x259   : > { %3439 = vst [vmem:[%s5748_s13 + $0x138] sm:$0xff] %v3399_v31  ;;  %v3397_v3 = vmax.f32 %v3357_v24, 0.0 }
 0x25b   : > { %3437 = vst [vmem:[%s5748_s13 + $0x128] sm:$0xff] %v3397_v3 }
 0x25c PF: > { %s13_s12 = sadd.s32 1, %s4565_s12  }
 0x25d   : > { %p10_p4 = scmp.ge.s32.totalorder %s13_s12, 4  }
 0x25f   :  { %12 = sbr.rel (!%p10_p4) target bundleno = 1 (0x1), region = 70 }

</bundles_post_ra>
